<compile_context>
chip_gen: v6e
topology: v6e:2x2x1
jax: 0.10.0
libtpu: 0.0.40
codegen_flags: <defaults>
</compile_context>

<pallas_src>
import jax
import jax.numpy as jnp
from jax.experimental import pallas as pl
from jax.experimental.pallas import tpu as pltpu

_GUARD = 8  # sublane-aligned guard rows around the f32 staging scratch


def bottleneck_kernel(x_ref, xt_ref, xb_ref,
                      w1_ref, s1_ref, b1_ref,
                      w2_ref, s2_ref, b2_ref,
                      w3_ref, s3_ref, b3_ref,
                      out_ref, ebuf_ref, cbuf_ref, lbuf_ref, rbuf_ref):
    _, TH, W, Cp = x_ref.shape
    Pp = w1_ref.shape[1]
    M = TH * W                      # output rows handled by this step
    R = M + 2 * W                   # halo-extended rows
    r = pl.program_id(1)
    last_r = pl.num_programs(1) - 1

    # ---- conv1 (1x1) + bn1 + relu: ONE tall matmul over tile + halo rows ----
    x_all = jnp.concatenate(
        [xt_ref[...].reshape(W, Cp),
         x_ref[...].reshape(M, Cp),
         xb_ref[...].reshape(W, Cp)], axis=0)
    h1 = jnp.dot(x_all.astype(jnp.bfloat16), w1_ref[...],
                 preferred_element_type=jnp.float32)
    h1 = jnp.maximum(h1 * s1_ref[...] + b1_ref[...], 0.0)

    # Stage h1: f32 copy (for the +/-1 shifted reads) + bf16 copy (center taps).
    ebuf_ref[pl.ds(_GUARD, R), :] = h1
    cbuf_ref[...] = h1.astype(jnp.bfloat16)

    # conv2's zero padding applies to h1 (AFTER bn1+relu): zero the halo rows
    # only when this tile touches the top / bottom image border.
    @pl.when(r == 0)
    def _():
        ebuf_ref[pl.ds(_GUARD, W), :] = jnp.zeros((W, Pp), jnp.float32)
        cbuf_ref[pl.ds(0, W), :] = jnp.zeros((W, Pp), jnp.bfloat16)

    @pl.when(r == last_r)
    def _():
        ebuf_ref[pl.ds(_GUARD + W + M, W), :] = jnp.zeros((W, Pp), jnp.float32)
        cbuf_ref[pl.ds(W + M, W), :] = jnp.zeros((W, Pp), jnp.bfloat16)

    # ---- hoisted dx = -1 / +1 shift + edge mask (once per step, not per tap)
    # lbuf[g] = h1e[g-1] (0 where x == 0), rbuf[g] = h1e[g+1] (0 where x == W-1).
    # The single guard row touched on each side is always replaced by the mask.
    col = jax.lax.broadcasted_iota(jnp.int32, (R, 1), 0) % W
    left = ebuf_ref[pl.ds(_GUARD - 1, R), :]
    lbuf_ref[...] = jnp.where(col == 0, 0.0, left).astype(jnp.bfloat16)
    right = ebuf_ref[pl.ds(_GUARD + 1, R), :]
    rbuf_ref[...] = jnp.where(col == W - 1, 0.0, right).astype(jnp.bfloat16)

    # ---- conv2 (3x3, stride 1, pad 1) + bn2 + relu: 9 aligned bf16 MXU taps -
    # out[y, x] += h1e[y + ky, x + kx - 1] @ w2[ky, kx]; in the flattened
    # buffers that is the aligned M-row slice at offset ky*W of
    # (lbuf | cbuf | rbuf) for kx = 0 | 1 | 2.
    acc = jnp.zeros((M, Pp), jnp.float32)
    tap_bufs = (lbuf_ref, cbuf_ref, rbuf_ref)
    for ky in range(3):
        for kx in range(3):
            patch = tap_bufs[kx][pl.ds(ky * W, M), :]
            acc = acc + jnp.dot(patch, w2_ref[ky, kx],
                                preferred_element_type=jnp.float32)
    h2 = jnp.maximum(acc * s2_ref[...] + b2_ref[...], 0.0)

    # ---- conv3 (1x1) + bn3 + identity residual + relu -----------------------
    h3 = jnp.dot(h2.astype(jnp.bfloat16), w3_ref[...],
                 preferred_element_type=jnp.float32)
    h3 = h3 * s3_ref[...] + b3_ref[...]
    identity = x_ref[...].reshape(M, Cp)     # f32 re-read keeps vreg pressure low
    out_ref[...] = jnp.maximum(h3 + identity, 0.0).reshape(1, TH, W, Cp)


def _round_up(v, m):
    return (v + m - 1) // m * m


def _vmem_capacity_bytes():
    try:
        cap = int(pltpu.get_tpu_info().vmem_capacity_bytes)
        if cap > 0:
            return cap
    except Exception:
        pass
    return 64 * 1024 * 1024          # conservative fallback (v7x per-TC VMEM)


def _estimate_vmem_need(TH, W, Cp, Pp, single_buffer_weights):
    """Rough per-step VMEM footprint: blocks + weights + scratch + temps."""
    M = TH * W
    R = M + 2 * W
    act_in = (M + 2 * W) * Cp * 4                       # x tile + 2 halo rows (f32)
    act_out = M * Cp * 4
    weights = (Cp * Pp + 9 * Pp * Pp + Pp * Cp) * 2 + (4 * Pp + 2 * Cp) * 4
    wmult = 1 if single_buffer_weights else 2
    scratch = (R + 2 * _GUARD) * Pp * 4 + 3 * R * Pp * 2
    temps = R * Cp * 6 + R * Pp * 8 + M * Pp * 8 + M * Cp * 4
    return 2 * (act_in + act_out) + wmult * weights + scratch + temps


def _pick_block_rows(H, W, Cp, Pp, vmem_cap, max_rows=1024):
    """Largest row tile TH dividing H with TH*W <= max_rows that fits VMEM."""
    best = 1
    for d in range(1, H + 1):
        if H % d or d * W > max_rows:
            continue
        if 2 * _estimate_vmem_need(d, W, Cp, Pp, True) <= int(0.6 * vmem_cap):
            best = d
    return best


def _build_call(N, H, W, TH, Cp, Pp, vmem_limit, single_buffer_weights):
    R = TH * W + 2 * W
    wkw = {"pipeline_mode": pl.Buffered(1)} if single_buffer_weights else {}
    cmap2 = lambda n, r: (0, 0)
    cmap4 = lambda n, r: (0, 0, 0, 0)
    in_specs = [
        # x tile, plus the single rows just above / below it (clamped at the
        # image border; the kernel zeroes them there via pl.when).
        pl.BlockSpec((1, TH, W, Cp), lambda n, r: (n, r, 0, 0)),
        pl.BlockSpec((1, 1, W, Cp),
                     lambda n, r: (n, jnp.maximum(r * TH - 1, 0), 0, 0)),
        pl.BlockSpec((1, 1, W, Cp),
                     lambda n, r: (n, jnp.minimum(r * TH + TH, H - 1), 0, 0)),
        pl.BlockSpec((Cp, Pp), cmap2, **wkw),            # w1
        pl.BlockSpec((1, Pp), cmap2, **wkw),             # s1
        pl.BlockSpec((1, Pp), cmap2, **wkw),             # b1
        pl.BlockSpec((3, 3, Pp, Pp), cmap4, **wkw),      # w2
        pl.BlockSpec((1, Pp), cmap2, **wkw),             # s2
        pl.BlockSpec((1, Pp), cmap2, **wkw),             # b2
        pl.BlockSpec((Pp, Cp), cmap2, **wkw),            # w3
        pl.BlockSpec((1, Cp), cmap2, **wkw),             # s3
        pl.BlockSpec((1, Cp), cmap2, **wkw),             # b3
    ]
    return pl.pallas_call(
        bottleneck_kernel,
        out_shape=jax.ShapeDtypeStruct((N, H, W, Cp), jnp.float32),
        grid_spec=pltpu.PrefetchScalarGridSpec(
            num_scalar_prefetch=0,
            grid=(N, H // TH),
            in_specs=in_specs,
            out_specs=pl.BlockSpec((1, TH, W, Cp), lambda n, r: (n, r, 0, 0)),
            scratch_shapes=[
                pltpu.VMEM((R + 2 * _GUARD, Pp), jnp.float32),   # ebuf (shift src)
                pltpu.VMEM((R, Pp), jnp.bfloat16),               # cbuf (center taps)
                pltpu.VMEM((R, Pp), jnp.bfloat16),               # lbuf (x-1 taps)
                pltpu.VMEM((R, Pp), jnp.bfloat16),               # rbuf (x+1 taps)
            ],
        ),
        compiler_params=pltpu.CompilerParams(
            dimension_semantics=("parallel", "parallel"),
            vmem_limit_bytes=vmem_limit,
        ),
    )


def bottleneck_forward(x_nchw, params, *, block_rows=None):
    """x_nchw: (N, C, H, W) float32 with C == planes * expansion."""
    x = jnp.transpose(x_nchw, (0, 2, 3, 1)).astype(jnp.float32)   # -> NHWC
    N, H, W, Cin = x.shape
    P = params["w1"].shape[1]
    Cout = params["w3"].shape[1]
    assert Cin == Cout, "identity skip requires inplanes == planes * expansion"
    assert W % 8 == 0, "W must be a multiple of 8 (sublane-aligned rows)"

    # Lane-dense channel padding (exact: padded channels stay zero everywhere).
    Cp = _round_up(Cin, 128)
    Pp = _round_up(P, 128)

    vmem_cap = _vmem_capacity_bytes()
    TH = block_rows if block_rows is not None else _pick_block_rows(H, W, Cp, Pp, vmem_cap)
    TH = min(TH, H)
    assert H % TH == 0, "H must be divisible by the row-tile size"

    xp = jnp.pad(x, ((0, 0), (0, 0), (0, 0), (0, Cp - Cin)))
    pad2 = lambda a, rr, cc: jnp.pad(a, ((0, rr - a.shape[0]), (0, cc - a.shape[1])))
    w1p = pad2(params["w1"], Cp, Pp).astype(jnp.bfloat16)
    w3p = pad2(params["w3"], Pp, Cp).astype(jnp.bfloat16)
    w2p = jnp.pad(params["w2"],
                  ((0, 0), (0, 0), (0, Pp - P), (0, Pp - P))).astype(jnp.bfloat16)
    s1p = pad2(params["s1"], 1, Pp); b1p = pad2(params["b1"], 1, Pp)
    s2p = pad2(params["s2"], 1, Pp); b2p = pad2(params["b2"], 1, Pp)
    s3p = pad2(params["s3"], 1, Cp); b3p = pad2(params["b3"], 1, Cp)

    args = (xp, xp, xp, w1p, s1p, b1p, w2p, s2p, b2p, w3p, s3p, b3p)

    out = None
    last_err = None
    # Try single-buffered constant-index weight specs first; fall back to the
    # default double-buffered specs if this JAX rejects pl.Buffered(1).
    for single_buffer in (True, False):
        need = _estimate_vmem_need(TH, W, Cp, Pp, single_buffer)
        vmem_limit = int(min(max(2 * need, 16 * 1024 * 1024),
                             int(0.78 * vmem_cap)))
        try:
            call = _build_call(N, H, W, TH, Cp, Pp, vmem_limit, single_buffer)
            out = jax.block_until_ready(call(*args))
            break
        except Exception as e:   # noqa: BLE001 - retry with default buffering
            last_err = e
            out = None
    if out is None:
        raise last_err

    out = out[..., :Cin]
    return jnp.transpose(out, (0, 3, 1, 2))                      # -> NCHW


def init_params(key, inplanes, planes, expansion=4, eps=1e-5):
    ks = jax.random.split(key, 15)
    w1 = 0.1 * jax.random.normal(ks[0], (inplanes, planes), jnp.float32)
    w2 = 0.1 * jax.random.normal(ks[1], (3, 3, planes, planes), jnp.float32)
    w3 = 0.1 * jax.random.normal(ks[2], (planes, planes * expansion), jnp.float32)

    def bn(kg, kb, km, kv, c):
        gamma = 1.0 + 0.1 * jax.random.normal(kg, (c,), jnp.float32)
        beta = 0.1 * jax.random.normal(kb, (c,), jnp.float32)
        mean = 0.1 * jax.random.normal(km, (c,), jnp.float32)
        var = 1.0 + 0.1 * jax.random.uniform(kv, (c,), jnp.float32)
        scale = gamma / jnp.sqrt(var + eps)
        bias = beta - mean * scale
        return scale.reshape(1, c), bias.reshape(1, c)

    s1, b1 = bn(ks[3], ks[4], ks[5], ks[6], planes)
    s2, b2 = bn(ks[7], ks[8], ks[9], ks[10], planes)
    s3, b3 = bn(ks[11], ks[12], ks[13], ks[14], planes * expansion)
    return dict(w1=w1, s1=s1, b1=b1, w2=w2, s2=s2, b2=b2, w3=w3, s3=s3, b3=b3)


def reference_forward(x_nchw, params):
    """Pure-JAX reference with the same precision policy (bf16 matmul inputs,
    f32 accumulation, f32 bn/relu/residual)."""
    x = jnp.transpose(x_nchw, (0, 2, 3, 1)).astype(jnp.float32)

    def conv(h, w_hwio, pad):
        return jax.lax.conv_general_dilated(
            h.astype(jnp.bfloat16), w_hwio.astype(jnp.bfloat16),
            window_strides=(1, 1), padding=pad,
            dimension_numbers=("NHWC", "HWIO", "NHWC"),
            preferred_element_type=jnp.float32)

    h = conv(x, params["w1"].reshape(1, 1, *params["w1"].shape), "VALID")
    h = jnp.maximum(h * params["s1"][0] + params["b1"][0], 0.0)
    h = conv(h, params["w2"], "SAME")
    h = jnp.maximum(h * params["s2"][0] + params["b2"][0], 0.0)
    h = conv(h, params["w3"].reshape(1, 1, *params["w3"].shape), "VALID")
    h = h * params["s3"][0] + params["b3"][0]
    out = jnp.maximum(h + x, 0.0)
    return jnp.transpose(out, (0, 3, 1, 2))


if __name__ == "__main__":
    planes = 4
    expansion = 4
    inplanes = planes * expansion   # 16: identity skip requires matching shapes
    N, H, W = 2, 16, 16

    key = jax.random.PRNGKey(0)
    kx, kp = jax.random.split(key)
    x = jax.random.normal(kx, (N, inplanes, H, W), jnp.float32)   # NCHW input
    params = init_params(kp, inplanes, planes, expansion)

    out = bottleneck_forward(x, params)
    out = jax.block_until_ready(out)

    ref = reference_forward(x, params)
    assert out.shape == (N, inplanes, H, W)
    max_err = float(jnp.max(jnp.abs(out - ref)))
    assert jnp.allclose(out, ref, atol=1e-2, rtol=1e-2), (
        f"mismatch vs reference, max abs err = {max_err}")

    print("KERNEL_OK")
</pallas_src>

<mosaic_0001>
module attributes {stable_mosaic.version = 11 : i64} {
  func.func @bottleneck_kernel(%arg0: i32, %arg1: i32, %arg2: memref<1x16x16x128xf32, #tpu.memory_space<vmem>>, %arg3: memref<1x1x16x128xf32, #tpu.memory_space<vmem>>, %arg4: memref<1x1x16x128xf32, #tpu.memory_space<vmem>>, %arg5: memref<128x128xbf16, #tpu.memory_space<vmem>>, %arg6: memref<1x128xf32, #tpu.memory_space<vmem>>, %arg7: memref<1x128xf32, #tpu.memory_space<vmem>>, %arg8: memref<3x3x128x128xbf16, #tpu.memory_space<vmem>>, %arg9: memref<1x128xf32, #tpu.memory_space<vmem>>, %arg10: memref<1x128xf32, #tpu.memory_space<vmem>>, %arg11: memref<128x128xbf16, #tpu.memory_space<vmem>>, %arg12: memref<1x128xf32, #tpu.memory_space<vmem>>, %arg13: memref<1x128xf32, #tpu.memory_space<vmem>>, %arg14: memref<1x16x16x128xf32, #tpu.memory_space<vmem>>, %arg15: memref<304x128xf32, #tpu.memory_space<vmem>>, %arg16: memref<288x128xbf16, #tpu.memory_space<vmem>>, %arg17: memref<288x128xbf16, #tpu.memory_space<vmem>>, %arg18: memref<288x128xbf16, #tpu.memory_space<vmem>>) attributes {dimension_semantics = [#tpu.dimension_semantics<parallel>, #tpu.dimension_semantics<parallel>], iteration_bounds = array<i64: 2, 1>, scalar_prefetch = 0 : i64, scratch_operands = 4 : i64, tpu.core_type = #tpu.core_type<tc>, window_params = [{transform_indices = @transform_0, window_bounds = array<i64: 1, 16, 16, 128>}, {transform_indices = @transform_1, window_bounds = array<i64: 1, 1, 16, 128>}, {transform_indices = @transform_2, window_bounds = array<i64: 1, 1, 16, 128>}, {pipeline_mode = #tpu.pipeline_mode<synchronous>, transform_indices = @transform_3, window_bounds = array<i64: 128, 128>}, {pipeline_mode = #tpu.pipeline_mode<synchronous>, transform_indices = @transform_4, window_bounds = array<i64: 1, 128>}, {pipeline_mode = #tpu.pipeline_mode<synchronous>, transform_indices = @transform_5, window_bounds = array<i64: 1, 128>}, {pipeline_mode = #tpu.pipeline_mode<synchronous>, transform_indices = @transform_6, window_bounds = array<i64: 3, 3, 128, 128>}, {pipeline_mode = #tpu.pipeline_mode<synchronous>, transform_indices = @transform_7, window_bounds = array<i64: 1, 128>}, {pipeline_mode = #tpu.pipeline_mode<synchronous>, transform_indices = @transform_8, window_bounds = array<i64: 1, 128>}, {pipeline_mode = #tpu.pipeline_mode<synchronous>, transform_indices = @transform_9, window_bounds = array<i64: 128, 128>}, {pipeline_mode = #tpu.pipeline_mode<synchronous>, transform_indices = @transform_10, window_bounds = array<i64: 1, 128>}, {pipeline_mode = #tpu.pipeline_mode<synchronous>, transform_indices = @transform_11, window_bounds = array<i64: 1, 128>}, {transform_indices = @transform_12, window_bounds = array<i64: 1, 16, 16, 128>}]} {
    %c0 = arith.constant 0 : index
    %c0_0 = arith.constant 0 : index
    %c0_1 = arith.constant 0 : index
    %c0_2 = arith.constant 0 : index
    %0 = vector.load %arg3[%c0, %c0_0, %c0_1, %c0_2] : memref<1x1x16x128xf32, #tpu.memory_space<vmem>>, vector<1x1x16x128xf32>
    %1 = vector.shape_cast %0 : vector<1x1x16x128xf32> to vector<16x128xf32>
    %c0_3 = arith.constant 0 : index
    %c0_4 = arith.constant 0 : index
    %c0_5 = arith.constant 0 : index
    %c0_6 = arith.constant 0 : index
    %2 = vector.load %arg2[%c0_3, %c0_4, %c0_5, %c0_6] : memref<1x16x16x128xf32, #tpu.memory_space<vmem>>, vector<1x16x16x128xf32>
    %3 = vector.shape_cast %2 : vector<1x16x16x128xf32> to vector<256x128xf32>
    %c0_7 = arith.constant 0 : index
    %c0_8 = arith.constant 0 : index
    %c0_9 = arith.constant 0 : index
    %c0_10 = arith.constant 0 : index
    %4 = vector.load %arg4[%c0_7, %c0_8, %c0_9, %c0_10] : memref<1x1x16x128xf32, #tpu.memory_space<vmem>>, vector<1x1x16x128xf32>
    %5 = vector.shape_cast %4 : vector<1x1x16x128xf32> to vector<16x128xf32>
    %6 = tpu.concatenate %1, %3, %5 in 0 : vector<16x128xf32>, vector<256x128xf32>, vector<16x128xf32> -> vector<288x128xf32>
    %7 = arith.truncf %6 : vector<288x128xf32> to vector<288x128xbf16>
    %c0_11 = arith.constant 0 : index
    %c0_12 = arith.constant 0 : index
    %8 = vector.load %arg5[%c0_11, %c0_12] : memref<128x128xbf16, #tpu.memory_space<vmem>>, vector<128x128xbf16>
    %cst = arith.constant dense<0.000000e+00> : vector<288x128xf32>
    %9 = tpu.matmul %7, %8, %cst {dimension_numbers = #tpu.dot_dimension_numbers<[1], [0], [0], [1], [0, 0, 1, 1], [], []>} : vector<288x128xbf16>, vector<128x128xbf16>, vector<288x128xf32> -> vector<288x128xf32>
    %c0_13 = arith.constant 0 : index
    %c0_14 = arith.constant 0 : index
    %10 = vector.load %arg6[%c0_13, %c0_14] : memref<1x128xf32, #tpu.memory_space<vmem>>, vector<1x128xf32>
    %11 = vector.broadcast %10 : vector<1x128xf32> to vector<288x128xf32>
    %12 = arith.mulf %9, %11 : vector<288x128xf32>
    %c0_15 = arith.constant 0 : index
    %c0_16 = arith.constant 0 : index
    %13 = vector.load %arg7[%c0_15, %c0_16] : memref<1x128xf32, #tpu.memory_space<vmem>>, vector<1x128xf32>
    %14 = vector.broadcast %13 : vector<1x128xf32> to vector<288x128xf32>
    %15 = arith.addf %12, %14 : vector<288x128xf32>
    %cst_17 = arith.constant 0.000000e+00 : f32
    %16 = vector.broadcast %cst_17 : f32 to vector<288x128xf32>
    %17 = arith.maximumf %15, %16 : vector<288x128xf32>
    %c8 = arith.constant 8 : index
    %c0_18 = arith.constant 0 : index
    %18 = vector.load %arg15[%c8, %c0_18] : memref<304x128xf32, #tpu.memory_space<vmem>>, vector<288x128xf32>
    tpu.vector_store %arg15[%c8, %c0_18], %17 {strides = array<i32>} : memref<304x128xf32, #tpu.memory_space<vmem>>, vector<288x128xf32>,
    %19 = arith.truncf %17 : vector<288x128xf32> to vector<288x128xbf16>
    %c0_19 = arith.constant 0 : index
    %c0_20 = arith.constant 0 : index
    %20 = vector.load %arg16[%c0_19, %c0_20] : memref<288x128xbf16, #tpu.memory_space<vmem>>, vector<288x128xbf16>
    tpu.vector_store %arg16[%c0_19, %c0_20], %19 {strides = array<i32>} : memref<288x128xbf16, #tpu.memory_space<vmem>>, vector<288x128xbf16>,
    %c0_i32 = arith.constant 0 : i32
    %21 = arith.cmpi eq, %arg1, %c0_i32 : i32
    %22 = arith.extui %21 : i1 to i32
    %c0_i32_21 = arith.constant 0 : i32
    %23 = arith.cmpi ne, %22, %c0_i32_21 : i32
    scf.if %23 {
      %cst_118 = arith.constant 0.000000e+00 : f32
      %132 = vector.broadcast %cst_118 : f32 to vector<16x128xf32>
      %c8_119 = arith.constant 8 : index
      %c0_120 = arith.constant 0 : index
      %133 = vector.load %arg15[%c8_119, %c0_120] : memref<304x128xf32, #tpu.memory_space<vmem>>, vector<16x128xf32>
      tpu.vector_store %arg15[%c8_119, %c0_120], %132 {strides = array<i32>} : memref<304x128xf32, #tpu.memory_space<vmem>>, vector<16x128xf32>,
      %cst_121 = arith.constant 0.000000e+00 : bf16
      %134 = vector.broadcast %cst_121 : bf16 to vector<16x128xbf16>
      %c0_122 = arith.constant 0 : index
      %c0_123 = arith.constant 0 : index
      %135 = vector.load %arg16[%c0_122, %c0_123] : memref<288x128xbf16, #tpu.memory_space<vmem>>, vector<16x128xbf16>
      tpu.vector_store %arg16[%c0_122, %c0_123], %134 {strides = array<i32>} : memref<288x128xbf16, #tpu.memory_space<vmem>>, vector<16x128xbf16>,
    } else {
    }
    %c0_i32_22 = arith.constant 0 : i32
    %24 = arith.cmpi eq, %arg1, %c0_i32_22 : i32
    %25 = arith.extui %24 : i1 to i32
    %c0_i32_23 = arith.constant 0 : i32
    %26 = arith.cmpi ne, %25, %c0_i32_23 : i32
    scf.if %26 {
      %cst_118 = arith.constant 0.000000e+00 : f32
      %132 = vector.broadcast %cst_118 : f32 to vector<16x128xf32>
      %c280 = arith.constant 280 : index
      %c0_119 = arith.constant 0 : index
      %133 = vector.load %arg15[%c280, %c0_119] : memref<304x128xf32, #tpu.memory_space<vmem>>, vector<16x128xf32>
      tpu.vector_store %arg15[%c280, %c0_119], %132 {strides = array<i32>} : memref<304x128xf32, #tpu.memory_space<vmem>>, vector<16x128xf32>,
      %cst_120 = arith.constant 0.000000e+00 : bf16
      %134 = vector.broadcast %cst_120 : bf16 to vector<16x128xbf16>
      %c272 = arith.constant 272 : index
      %c0_121 = arith.constant 0 : index
      %135 = vector.load %arg16[%c272, %c0_121] : memref<288x128xbf16, #tpu.memory_space<vmem>>, vector<16x128xbf16>
      tpu.vector_store %arg16[%c272, %c0_121], %134 {strides = array<i32>} : memref<288x128xbf16, #tpu.memory_space<vmem>>, vector<16x128xbf16>,
    } else {
    }
    %27 = tpu.iota {dimensions = array<i32: 0>} : vector<288x1xi32>
    %c16_i32 = arith.constant 16 : i32
    %c0_i32_24 = arith.constant 0 : i32
    %28 = arith.cmpi eq, %c16_i32, %c0_i32_24 : i32
    %c1_i32 = arith.constant 1 : i32
    %29 = arith.select %28, %c1_i32, %c16_i32 : i32
    %30 = vector.broadcast %29 : i32 to vector<288x1xi32>
    %31 = arith.remsi %27, %30 : vector<288x1xi32>
    %c0_i32_25 = arith.constant 0 : i32
    %32 = vector.broadcast %c0_i32_25 : i32 to vector<288x1xi32>
    %33 = arith.cmpi ne, %31, %32 : vector<288x1xi32>
    %c0_i32_26 = arith.constant 0 : i32
    %34 = vector.broadcast %c0_i32_26 : i32 to vector<288x1xi32>
    %35 = arith.cmpi slt, %31, %34 : vector<288x1xi32>
    %c0_i32_27 = arith.constant 0 : i32
    %36 = arith.cmpi slt, %29, %c0_i32_27 : i32
    %37 = vector.broadcast %36 : i1 to vector<288x1xi1>
    %38 = vector.broadcast %37 : vector<288x1xi1> to vector<288x1xi1>
    %39 = arith.xori %35, %38 : vector<288x1xi1>
    %40 = arith.andi %39, %33 : vector<288x1xi1>
    %41 = vector.broadcast %29 : i32 to vector<288x1xi32>
    %42 = arith.addi %31, %41 : vector<288x1xi32>
    %43 = arith.select %40, %42, %31 : vector<288x1xi1>, vector<288x1xi32>
    %c7 = arith.constant 7 : index
    %c0_28 = arith.constant 0 : index
    %44 = vector.load %arg15[%c7, %c0_28] : memref<304x128xf32, #tpu.memory_space<vmem>>, vector<288x128xf32>
    %c0_i32_29 = arith.constant 0 : i32
    %45 = vector.broadcast %c0_i32_29 : i32 to vector<288x1xi32>
    %46 = arith.cmpi eq, %43, %45 : vector<288x1xi32>
    %cst_30 = arith.constant 0.000000e+00 : f32
    %47 = vector.shape_cast %46 : vector<288x1xi1> to vector<288x1xi1>
    %48 = vector.broadcast %47 : vector<288x1xi1> to vector<288x128xi1>
    %49 = vector.broadcast %cst_30 : f32 to vector<288x128xf32>
    %50 = arith.select %48, %49, %44 : vector<288x128xi1>, vector<288x128xf32>
    %51 = arith.truncf %50 : vector<288x128xf32> to vector<288x128xbf16>
    %c0_31 = arith.constant 0 : index
    %c0_32 = arith.constant 0 : index
    %52 = vector.load %arg17[%c0_31, %c0_32] : memref<288x128xbf16, #tpu.memory_space<vmem>>, vector<288x128xbf16>
    tpu.vector_store %arg17[%c0_31, %c0_32], %51 {strides = array<i32>} : memref<288x128xbf16, #tpu.memory_space<vmem>>, vector<288x128xbf16>,
    %c9 = arith.constant 9 : index
    %c0_33 = arith.constant 0 : index
    %53 = vector.load %arg15[%c9, %c0_33] : memref<304x128xf32, #tpu.memory_space<vmem>>, vector<288x128xf32>
    %c15_i32 = arith.constant 15 : i32
    %54 = vector.broadcast %c15_i32 : i32 to vector<288x1xi32>
    %55 = arith.cmpi eq, %43, %54 : vector<288x1xi32>
    %cst_34 = arith.constant 0.000000e+00 : f32
    %56 = vector.shape_cast %55 : vector<288x1xi1> to vector<288x1xi1>
    %57 = vector.broadcast %56 : vector<288x1xi1> to vector<288x128xi1>
    %58 = vector.broadcast %cst_34 : f32 to vector<288x128xf32>
    %59 = arith.select %57, %58, %53 : vector<288x128xi1>, vector<288x128xf32>
    %60 = arith.truncf %59 : vector<288x128xf32> to vector<288x128xbf16>
    %c0_35 = arith.constant 0 : index
    %c0_36 = arith.constant 0 : index
    %61 = vector.load %arg18[%c0_35, %c0_36] : memref<288x128xbf16, #tpu.memory_space<vmem>>, vector<288x128xbf16>
    tpu.vector_store %arg18[%c0_35, %c0_36], %60 {strides = array<i32>} : memref<288x128xbf16, #tpu.memory_space<vmem>>, vector<288x128xbf16>,
    %cst_37 = arith.constant 0.000000e+00 : f32
    %62 = vector.broadcast %cst_37 : f32 to vector<256x128xf32>
    %c0_38 = arith.constant 0 : index
    %c0_39 = arith.constant 0 : index
    %63 = vector.load %arg17[%c0_38, %c0_39] : memref<288x128xbf16, #tpu.memory_space<vmem>>, vector<256x128xbf16>
    %c0_40 = arith.constant 0 : index
    %c0_41 = arith.constant 0 : index
    %c0_42 = arith.constant 0 : index
    %c0_43 = arith.constant 0 : index
    %64 = vector.load %arg8[%c0_40, %c0_41, %c0_42, %c0_43] : memref<3x3x128x128xbf16, #tpu.memory_space<vmem>>, vector<1x1x128x128xbf16>
    %65 = vector.shape_cast %64 : vector<1x1x128x128xbf16> to vector<128x128xbf16>
    %cst_44 = arith.constant dense<0.000000e+00> : vector<256x128xf32>
    %66 = tpu.matmul %63, %65, %cst_44 {dimension_numbers = #tpu.dot_dimension_numbers<[1], [0], [0], [1], [0, 0, 1, 1], [], []>} : vector<256x128xbf16>, vector<128x128xbf16>, vector<256x128xf32> -> vector<256x128xf32>
    %67 = arith.addf %62, %66 : vector<256x128xf32>
    %c0_45 = arith.constant 0 : index
    %c0_46 = arith.constant 0 : index
    %68 = vector.load %arg16[%c0_45, %c0_46] : memref<288x128xbf16, #tpu.memory_space<vmem>>, vector<256x128xbf16>
    %c0_47 = arith.constant 0 : index
    %c1 = arith.constant 1 : index
    %c0_48 = arith.constant 0 : index
    %c0_49 = arith.constant 0 : index
    %69 = vector.load %arg8[%c0_47, %c1, %c0_48, %c0_49] : memref<3x3x128x128xbf16, #tpu.memory_space<vmem>>, vector<1x1x128x128xbf16>
    %70 = vector.shape_cast %69 : vector<1x1x128x128xbf16> to vector<128x128xbf16>
    %cst_50 = arith.constant dense<0.000000e+00> : vector<256x128xf32>
    %71 = tpu.matmul %68, %70, %cst_50 {dimension_numbers = #tpu.dot_dimension_numbers<[1], [0], [0], [1], [0, 0, 1, 1], [], []>} : vector<256x128xbf16>, vector<128x128xbf16>, vector<256x128xf32> -> vector<256x128xf32>
    %72 = arith.addf %67, %71 : vector<256x128xf32>
    %c0_51 = arith.constant 0 : index
    %c0_52 = arith.constant 0 : index
    %73 = vector.load %arg18[%c0_51, %c0_52] : memref<288x128xbf16, #tpu.memory_space<vmem>>, vector<256x128xbf16>
    %c0_53 = arith.constant 0 : index
    %c2 = arith.constant 2 : index
    %c0_54 = arith.constant 0 : index
    %c0_55 = arith.constant 0 : index
    %74 = vector.load %arg8[%c0_53, %c2, %c0_54, %c0_55] : memref<3x3x128x128xbf16, #tpu.memory_space<vmem>>, vector<1x1x128x128xbf16>
    %75 = vector.shape_cast %74 : vector<1x1x128x128xbf16> to vector<128x128xbf16>
    %cst_56 = arith.constant dense<0.000000e+00> : vector<256x128xf32>
    %76 = tpu.matmul %73, %75, %cst_56 {dimension_numbers = #tpu.dot_dimension_numbers<[1], [0], [0], [1], [0, 0, 1, 1], [], []>} : vector<256x128xbf16>, vector<128x128xbf16>, vector<256x128xf32> -> vector<256x128xf32>
    %77 = arith.addf %72, %76 : vector<256x128xf32>
    %c16 = arith.constant 16 : index
    %c0_57 = arith.constant 0 : index
    %78 = vector.load %arg17[%c16, %c0_57] : memref<288x128xbf16, #tpu.memory_space<vmem>>, vector<256x128xbf16>
    %c1_58 = arith.constant 1 : index
    %c0_59 = arith.constant 0 : index
    %c0_60 = arith.constant 0 : index
    %c0_61 = arith.constant 0 : index
    %79 = vector.load %arg8[%c1_58, %c0_59, %c0_60, %c0_61] : memref<3x3x128x128xbf16, #tpu.memory_space<vmem>>, vector<1x1x128x128xbf16>
    %80 = vector.shape_cast %79 : vector<1x1x128x128xbf16> to vector<128x128xbf16>
    %cst_62 = arith.constant dense<0.000000e+00> : vector<256x128xf32>
    %81 = tpu.matmul %78, %80, %cst_62 {dimension_numbers = #tpu.dot_dimension_numbers<[1], [0], [0], [1], [0, 0, 1, 1], [], []>} : vector<256x128xbf16>, vector<128x128xbf16>, vector<256x128xf32> -> vector<256x128xf32>
    %82 = arith.addf %77, %81 : vector<256x128xf32>
    %c16_63 = arith.constant 16 : index
    %c0_64 = arith.constant 0 : index
    %83 = vector.load %arg16[%c16_63, %c0_64] : memref<288x128xbf16, #tpu.memory_space<vmem>>, vector<256x128xbf16>
    %c1_65 = arith.constant 1 : index
    %c1_66 = arith.constant 1 : index
    %c0_67 = arith.constant 0 : index
    %c0_68 = arith.constant 0 : index
    %84 = vector.load %arg8[%c1_65, %c1_66, %c0_67, %c0_68] : memref<3x3x128x128xbf16, #tpu.memory_space<vmem>>, vector<1x1x128x128xbf16>
    %85 = vector.shape_cast %84 : vector<1x1x128x128xbf16> to vector<128x128xbf16>
    %cst_69 = arith.constant dense<0.000000e+00> : vector<256x128xf32>
    %86 = tpu.matmul %83, %85, %cst_69 {dimension_numbers = #tpu.dot_dimension_numbers<[1], [0], [0], [1], [0, 0, 1, 1], [], []>} : vector<256x128xbf16>, vector<128x128xbf16>, vector<256x128xf32> -> vector<256x128xf32>
    %87 = arith.addf %82, %86 : vector<256x128xf32>
    %c16_70 = arith.constant 16 : index
    %c0_71 = arith.constant 0 : index
    %88 = vector.load %arg18[%c16_70, %c0_71] : memref<288x128xbf16, #tpu.memory_space<vmem>>, vector<256x128xbf16>
    %c1_72 = arith.constant 1 : index
    %c2_73 = arith.constant 2 : index
    %c0_74 = arith.constant 0 : index
    %c0_75 = arith.constant 0 : index
    %89 = vector.load %arg8[%c1_72, %c2_73, %c0_74, %c0_75] : memref<3x3x128x128xbf16, #tpu.memory_space<vmem>>, vector<1x1x128x128xbf16>
    %90 = vector.shape_cast %89 : vector<1x1x128x128xbf16> to vector<128x128xbf16>
    %cst_76 = arith.constant dense<0.000000e+00> : vector<256x128xf32>
    %91 = tpu.matmul %88, %90, %cst_76 {dimension_numbers = #tpu.dot_dimension_numbers<[1], [0], [0], [1], [0, 0, 1, 1], [], []>} : vector<256x128xbf16>, vector<128x128xbf16>, vector<256x128xf32> -> vector<256x128xf32>
    %92 = arith.addf %87, %91 : vector<256x128xf32>
    %c32 = arith.constant 32 : index
    %c0_77 = arith.constant 0 : index
    %93 = vector.load %arg17[%c32, %c0_77] : memref<288x128xbf16, #tpu.memory_space<vmem>>, vector<256x128xbf16>
    %c2_78 = arith.constant 2 : index
    %c0_79 = arith.constant 0 : index
    %c0_80 = arith.constant 0 : index
    %c0_81 = arith.constant 0 : index
    %94 = vector.load %arg8[%c2_78, %c0_79, %c0_80, %c0_81] : memref<3x3x128x128xbf16, #tpu.memory_space<vmem>>, vector<1x1x128x128xbf16>
    %95 = vector.shape_cast %94 : vector<1x1x128x128xbf16> to vector<128x128xbf16>
    %cst_82 = arith.constant dense<0.000000e+00> : vector<256x128xf32>
    %96 = tpu.matmul %93, %95, %cst_82 {dimension_numbers = #tpu.dot_dimension_numbers<[1], [0], [0], [1], [0, 0, 1, 1], [], []>} : vector<256x128xbf16>, vector<128x128xbf16>, vector<256x128xf32> -> vector<256x128xf32>
    %97 = arith.addf %92, %96 : vector<256x128xf32>
    %c32_83 = arith.constant 32 : index
    %c0_84 = arith.constant 0 : index
    %98 = vector.load %arg16[%c32_83, %c0_84] : memref<288x128xbf16, #tpu.memory_space<vmem>>, vector<256x128xbf16>
    %c2_85 = arith.constant 2 : index
    %c1_86 = arith.constant 1 : index
    %c0_87 = arith.constant 0 : index
    %c0_88 = arith.constant 0 : index
    %99 = vector.load %arg8[%c2_85, %c1_86, %c0_87, %c0_88] : memref<3x3x128x128xbf16, #tpu.memory_space<vmem>>, vector<1x1x128x128xbf16>
    %100 = vector.shape_cast %99 : vector<1x1x128x128xbf16> to vector<128x128xbf16>
    %cst_89 = arith.constant dense<0.000000e+00> : vector<256x128xf32>
    %101 = tpu.matmul %98, %100, %cst_89 {dimension_numbers = #tpu.dot_dimension_numbers<[1], [0], [0], [1], [0, 0, 1, 1], [], []>} : vector<256x128xbf16>, vector<128x128xbf16>, vector<256x128xf32> -> vector<256x128xf32>
    %102 = arith.addf %97, %101 : vector<256x128xf32>
    %c32_90 = arith.constant 32 : index
    %c0_91 = arith.constant 0 : index
    %103 = vector.load %arg18[%c32_90, %c0_91] : memref<288x128xbf16, #tpu.memory_space<vmem>>, vector<256x128xbf16>
    %c2_92 = arith.constant 2 : index
    %c2_93 = arith.constant 2 : index
    %c0_94 = arith.constant 0 : index
    %c0_95 = arith.constant 0 : index
    %104 = vector.load %arg8[%c2_92, %c2_93, %c0_94, %c0_95] : memref<3x3x128x128xbf16, #tpu.memory_space<vmem>>, vector<1x1x128x128xbf16>
    %105 = vector.shape_cast %104 : vector<1x1x128x128xbf16> to vector<128x128xbf16>
    %cst_96 = arith.constant dense<0.000000e+00> : vector<256x128xf32>
    %106 = tpu.matmul %103, %105, %cst_96 {dimension_numbers = #tpu.dot_dimension_numbers<[1], [0], [0], [1], [0, 0, 1, 1], [], []>} : vector<256x128xbf16>, vector<128x128xbf16>, vector<256x128xf32> -> vector<256x128xf32>
    %107 = arith.addf %102, %106 : vector<256x128xf32>
    %c0_97 = arith.constant 0 : index
    %c0_98 = arith.constant 0 : index
    %108 = vector.load %arg9[%c0_97, %c0_98] : memref<1x128xf32, #tpu.memory_space<vmem>>, vector<1x128xf32>
    %109 = vector.broadcast %108 : vector<1x128xf32> to vector<256x128xf32>
    %110 = arith.mulf %107, %109 : vector<256x128xf32>
    %c0_99 = arith.constant 0 : index
    %c0_100 = arith.constant 0 : index
    %111 = vector.load %arg10[%c0_99, %c0_100] : memref<1x128xf32, #tpu.memory_space<vmem>>, vector<1x128xf32>
    %112 = vector.broadcast %111 : vector<1x128xf32> to vector<256x128xf32>
    %113 = arith.addf %110, %112 : vector<256x128xf32>
    %cst_101 = arith.constant 0.000000e+00 : f32
    %114 = vector.broadcast %cst_101 : f32 to vector<256x128xf32>
    %115 = arith.maximumf %113, %114 : vector<256x128xf32>
    %116 = arith.truncf %115 : vector<256x128xf32> to vector<256x128xbf16>
    %c0_102 = arith.constant 0 : index
    %c0_103 = arith.constant 0 : index
    %117 = vector.load %arg11[%c0_102, %c0_103] : memref<128x128xbf16, #tpu.memory_space<vmem>>, vector<128x128xbf16>
    %cst_104 = arith.constant dense<0.000000e+00> : vector<256x128xf32>
    %118 = tpu.matmul %116, %117, %cst_104 {dimension_numbers = #tpu.dot_dimension_numbers<[1], [0], [0], [1], [0, 0, 1, 1], [], []>} : vector<256x128xbf16>, vector<128x128xbf16>, vector<256x128xf32> -> vector<256x128xf32>
    %c0_105 = arith.constant 0 : index
    %c0_106 = arith.constant 0 : index
    %119 = vector.load %arg12[%c0_105, %c0_106] : memref<1x128xf32, #tpu.memory_space<vmem>>, vector<1x128xf32>
    %120 = vector.broadcast %119 : vector<1x128xf32> to vector<256x128xf32>
    %121 = arith.mulf %118, %120 : vector<256x128xf32>
    %c0_107 = arith.constant 0 : index
    %c0_108 = arith.constant 0 : index
    %122 = vector.load %arg13[%c0_107, %c0_108] : memref<1x128xf32, #tpu.memory_space<vmem>>, vector<1x128xf32>
    %123 = vector.broadcast %122 : vector<1x128xf32> to vector<256x128xf32>
    %124 = arith.addf %121, %123 : vector<256x128xf32>
    %c0_109 = arith.constant 0 : index
    %c0_110 = arith.constant 0 : index
    %c0_111 = arith.constant 0 : index
    %c0_112 = arith.constant 0 : index
    %125 = vector.load %arg2[%c0_109, %c0_110, %c0_111, %c0_112] : memref<1x16x16x128xf32, #tpu.memory_space<vmem>>, vector<1x16x16x128xf32>
    %126 = vector.shape_cast %125 : vector<1x16x16x128xf32> to vector<256x128xf32>
    %127 = arith.addf %124, %126 : vector<256x128xf32>
    %cst_113 = arith.constant 0.000000e+00 : f32
    %128 = vector.broadcast %cst_113 : f32 to vector<256x128xf32>
    %129 = arith.maximumf %127, %128 : vector<256x128xf32>
    %130 = vector.shape_cast %129 : vector<256x128xf32> to vector<1x16x16x128xf32>
    %c0_114 = arith.constant 0 : index
    %c0_115 = arith.constant 0 : index
    %c0_116 = arith.constant 0 : index
    %c0_117 = arith.constant 0 : index
    %131 = vector.load %arg14[%c0_114, %c0_115, %c0_116, %c0_117] : memref<1x16x16x128xf32, #tpu.memory_space<vmem>>, vector<1x16x16x128xf32>
    tpu.vector_store %arg14[%c0_114, %c0_115, %c0_116, %c0_117], %130 {strides = array<i32>} : memref<1x16x16x128xf32, #tpu.memory_space<vmem>>, vector<1x16x16x128xf32>,
    return
  }
  func.func @transform_0(%arg0: i32, %arg1: i32) -> (i32, i32, i32, i32) {
    %c0_i32 = arith.constant 0 : i32
    %c0_i32_0 = arith.constant 0 : i32
    %c0_i32_1 = arith.constant 0 : i32
    return %arg0, %arg1, %c0_i32, %c0_i32_0 : i32, i32, i32, i32
  }
  func.func @transform_1(%arg0: i32, %arg1: i32) -> (i32, i32, i32, i32) {
    %c16_i32 = arith.constant 16 : i32
    %0 = arith.muli %arg1, %c16_i32 : i32
    %c1_i32 = arith.constant 1 : i32
    %1 = arith.subi %0, %c1_i32 : i32
    %c0_i32 = arith.constant 0 : i32
    %2 = arith.maxsi %1, %c0_i32 : i32
    %c0_i32_0 = arith.constant 0 : i32
    %c0_i32_1 = arith.constant 0 : i32
    %c0_i32_2 = arith.constant 0 : i32
    return %arg0, %2, %c0_i32_0, %c0_i32_1 : i32, i32, i32, i32
  }
  func.func @transform_2(%arg0: i32, %arg1: i32) -> (i32, i32, i32, i32) {
    %c16_i32 = arith.constant 16 : i32
    %0 = arith.muli %arg1, %c16_i32 : i32
    %c16_i32_0 = arith.constant 16 : i32
    %1 = arith.addi %0, %c16_i32_0 : i32
    %c15_i32 = arith.constant 15 : i32
    %2 = arith.minsi %1, %c15_i32 : i32
    %c0_i32 = arith.constant 0 : i32
    %c0_i32_1 = arith.constant 0 : i32
    %c0_i32_2 = arith.constant 0 : i32
    return %arg0, %2, %c0_i32, %c0_i32_1 : i32, i32, i32, i32
  }
  func.func @transform_3(%arg0: i32, %arg1: i32) -> (i32, i32) {
    %c0_i32 = arith.constant 0 : i32
    %c0_i32_0 = arith.constant 0 : i32
    %c0_i32_1 = arith.constant 0 : i32
    return %c0_i32, %c0_i32_0 : i32, i32
  }
  func.func @transform_4(%arg0: i32, %arg1: i32) -> (i32, i32) {
    %c0_i32 = arith.constant 0 : i32
    %c0_i32_0 = arith.constant 0 : i32
    %c0_i32_1 = arith.constant 0 : i32
    return %c0_i32, %c0_i32_0 : i32, i32
  }
  func.func @transform_5(%arg0: i32, %arg1: i32) -> (i32, i32) {
    %c0_i32 = arith.constant 0 : i32
    %c0_i32_0 = arith.constant 0 : i32
    %c0_i32_1 = arith.constant 0 : i32
    return %c0_i32, %c0_i32_0 : i32, i32
  }
  func.func @transform_6(%arg0: i32, %arg1: i32) -> (i32, i32, i32, i32) {
    %c0_i32 = arith.constant 0 : i32
    %c0_i32_0 = arith.constant 0 : i32
    %c0_i32_1 = arith.constant 0 : i32
    %c0_i32_2 = arith.constant 0 : i32
    %c0_i32_3 = arith.constant 0 : i32
    return %c0_i32, %c0_i32_0, %c0_i32_1, %c0_i32_2 : i32, i32, i32, i32
  }
  func.func @transform_7(%arg0: i32, %arg1: i32) -> (i32, i32) {
    %c0_i32 = arith.constant 0 : i32
    %c0_i32_0 = arith.constant 0 : i32
    %c0_i32_1 = arith.constant 0 : i32
    return %c0_i32, %c0_i32_0 : i32, i32
  }
  func.func @transform_8(%arg0: i32, %arg1: i32) -> (i32, i32) {
    %c0_i32 = arith.constant 0 : i32
    %c0_i32_0 = arith.constant 0 : i32
    %c0_i32_1 = arith.constant 0 : i32
    return %c0_i32, %c0_i32_0 : i32, i32
  }
  func.func @transform_9(%arg0: i32, %arg1: i32) -> (i32, i32) {
    %c0_i32 = arith.constant 0 : i32
    %c0_i32_0 = arith.constant 0 : i32
    %c0_i32_1 = arith.constant 0 : i32
    return %c0_i32, %c0_i32_0 : i32, i32
  }
  func.func @transform_10(%arg0: i32, %arg1: i32) -> (i32, i32) {
    %c0_i32 = arith.constant 0 : i32
    %c0_i32_0 = arith.constant 0 : i32
    %c0_i32_1 = arith.constant 0 : i32
    return %c0_i32, %c0_i32_0 : i32, i32
  }
  func.func @transform_11(%arg0: i32, %arg1: i32) -> (i32, i32) {
    %c0_i32 = arith.constant 0 : i32
    %c0_i32_0 = arith.constant 0 : i32
    %c0_i32_1 = arith.constant 0 : i32
    return %c0_i32, %c0_i32_0 : i32, i32
  }
  func.func @transform_12(%arg0: i32, %arg1: i32) -> (i32, i32, i32, i32) {
    %c0_i32 = arith.constant 0 : i32
    %c0_i32_0 = arith.constant 0 : i32
    %c0_i32_1 = arith.constant 0 : i32
    return %arg0, %arg1, %c0_i32, %c0_i32_0 : i32, i32, i32, i32
  }
}

module attributes {stable_mosaic.version = 11 : i64} {
  func.func @bottleneck_kernel(%arg0: i32, %arg1: i32, %arg2: memref<1x16x16x128xf32, #tpu.memory_space<vmem>>, %arg3: memref<1x1x16x128xf32, #tpu.memory_space<vmem>>, %arg4: memref<1x1x16x128xf32, #tpu.memory_space<vmem>>, %arg5: memref<128x128xbf16, #tpu.memory_space<vmem>>, %arg6: memref<1x128xf32, #tpu.memory_space<vmem>>, %arg7: memref<1x128xf32, #tpu.memory_space<vmem>>, %arg8: memref<3x3x128x128xbf16, #tpu.memory_space<vmem>>, %arg9: memref<1x128xf32, #tpu.memory_space<vmem>>, %arg10: memref<1x128xf32, #tpu.memory_space<vmem>>, %arg11: memref<128x128xbf16, #tpu.memory_space<vmem>>, %arg12: memref<1x128xf32, #tpu.memory_space<vmem>>, %arg13: memref<1x128xf32, #tpu.memory_space<vmem>>, %arg14: memref<1x16x16x128xf32, #tpu.memory_space<vmem>>, %arg15: memref<304x128xf32, #tpu.memory_space<vmem>>, %arg16: memref<288x128xbf16, #tpu.memory_space<vmem>>, %arg17: memref<288x128xbf16, #tpu.memory_space<vmem>>, %arg18: memref<288x128xbf16, #tpu.memory_space<vmem>>) attributes {dimension_semantics = [#tpu.dimension_semantics<parallel>, #tpu.dimension_semantics<parallel>], iteration_bounds = array<i64: 2, 1>, scalar_prefetch = 0 : i64, scratch_operands = 4 : i64, tpu.core_type = #tpu.core_type<tc>, window_params = [{transform_indices = @transform_0, window_bounds = array<i64: 1, 16, 16, 128>}, {transform_indices = @transform_1, window_bounds = array<i64: 1, 1, 16, 128>}, {transform_indices = @transform_2, window_bounds = array<i64: 1, 1, 16, 128>}, {pipeline_mode = #tpu.pipeline_mode<synchronous>, transform_indices = @transform_3, window_bounds = array<i64: 128, 128>}, {pipeline_mode = #tpu.pipeline_mode<synchronous>, transform_indices = @transform_4, window_bounds = array<i64: 1, 128>}, {pipeline_mode = #tpu.pipeline_mode<synchronous>, transform_indices = @transform_5, window_bounds = array<i64: 1, 128>}, {pipeline_mode = #tpu.pipeline_mode<synchronous>, transform_indices = @transform_6, window_bounds = array<i64: 3, 3, 128, 128>}, {pipeline_mode = #tpu.pipeline_mode<synchronous>, transform_indices = @transform_7, window_bounds = array<i64: 1, 128>}, {pipeline_mode = #tpu.pipeline_mode<synchronous>, transform_indices = @transform_8, window_bounds = array<i64: 1, 128>}, {pipeline_mode = #tpu.pipeline_mode<synchronous>, transform_indices = @transform_9, window_bounds = array<i64: 128, 128>}, {pipeline_mode = #tpu.pipeline_mode<synchronous>, transform_indices = @transform_10, window_bounds = array<i64: 1, 128>}, {pipeline_mode = #tpu.pipeline_mode<synchronous>, transform_indices = @transform_11, window_bounds = array<i64: 1, 128>}, {transform_indices = @transform_12, window_bounds = array<i64: 1, 16, 16, 128>}]} {
    %c0 = arith.constant 0 : index
    %c0_0 = arith.constant 0 : index
    %c0_1 = arith.constant 0 : index
    %c0_2 = arith.constant 0 : index
    %0 = vector.load %arg3[%c0, %c0_0, %c0_1, %c0_2] : memref<1x1x16x128xf32, #tpu.memory_space<vmem>>, vector<1x1x16x128xf32>
    %1 = vector.shape_cast %0 : vector<1x1x16x128xf32> to vector<16x128xf32>
    %c0_3 = arith.constant 0 : index
    %c0_4 = arith.constant 0 : index
    %c0_5 = arith.constant 0 : index
    %c0_6 = arith.constant 0 : index
    %2 = vector.load %arg2[%c0_3, %c0_4, %c0_5, %c0_6] : memref<1x16x16x128xf32, #tpu.memory_space<vmem>>, vector<1x16x16x128xf32>
    %3 = vector.shape_cast %2 : vector<1x16x16x128xf32> to vector<256x128xf32>
    %c0_7 = arith.constant 0 : index
    %c0_8 = arith.constant 0 : index
    %c0_9 = arith.constant 0 : index
    %c0_10 = arith.constant 0 : index
    %4 = vector.load %arg4[%c0_7, %c0_8, %c0_9, %c0_10] : memref<1x1x16x128xf32, #tpu.memory_space<vmem>>, vector<1x1x16x128xf32>
    %5 = vector.shape_cast %4 : vector<1x1x16x128xf32> to vector<16x128xf32>
    %6 = tpu.concatenate %1, %3, %5 in 0 : vector<16x128xf32>, vector<256x128xf32>, vector<16x128xf32> -> vector<288x128xf32>
    %7 = arith.truncf %6 : vector<288x128xf32> to vector<288x128xbf16>
    %c0_11 = arith.constant 0 : index
    %c0_12 = arith.constant 0 : index
    %8 = vector.load %arg5[%c0_11, %c0_12] : memref<128x128xbf16, #tpu.memory_space<vmem>>, vector<128x128xbf16>
    %cst = arith.constant dense<0.000000e+00> : vector<288x128xf32>
    %9 = tpu.matmul %7, %8, %cst {dimension_numbers = #tpu.dot_dimension_numbers<[1], [0], [0], [1], [0, 0, 1, 1], [], []>} : vector<288x128xbf16>, vector<128x128xbf16>, vector<288x128xf32> -> vector<288x128xf32>
    %c0_13 = arith.constant 0 : index
    %c0_14 = arith.constant 0 : index
    %10 = vector.load %arg6[%c0_13, %c0_14] : memref<1x128xf32, #tpu.memory_space<vmem>>, vector<1x128xf32>
    %11 = vector.broadcast %10 : vector<1x128xf32> to vector<288x128xf32>
    %12 = arith.mulf %9, %11 : vector<288x128xf32>
    %c0_15 = arith.constant 0 : index
    %c0_16 = arith.constant 0 : index
    %13 = vector.load %arg7[%c0_15, %c0_16] : memref<1x128xf32, #tpu.memory_space<vmem>>, vector<1x128xf32>
    %14 = vector.broadcast %13 : vector<1x128xf32> to vector<288x128xf32>
    %15 = arith.addf %12, %14 : vector<288x128xf32>
    %cst_17 = arith.constant 0.000000e+00 : f32
    %16 = vector.broadcast %cst_17 : f32 to vector<288x128xf32>
    %17 = arith.maximumf %15, %16 : vector<288x128xf32>
    %c8 = arith.constant 8 : index
    %c0_18 = arith.constant 0 : index
    %18 = vector.load %arg15[%c8, %c0_18] : memref<304x128xf32, #tpu.memory_space<vmem>>, vector<288x128xf32>
    tpu.vector_store %arg15[%c8, %c0_18], %17 {strides = array<i32>} : memref<304x128xf32, #tpu.memory_space<vmem>>, vector<288x128xf32>,
    %19 = arith.truncf %17 : vector<288x128xf32> to vector<288x128xbf16>
    %c0_19 = arith.constant 0 : index
    %c0_20 = arith.constant 0 : index
    %20 = vector.load %arg16[%c0_19, %c0_20] : memref<288x128xbf16, #tpu.memory_space<vmem>>, vector<288x128xbf16>
    tpu.vector_store %arg16[%c0_19, %c0_20], %19 {strides = array<i32>} : memref<288x128xbf16, #tpu.memory_space<vmem>>, vector<288x128xbf16>,
    %c0_i32 = arith.constant 0 : i32
    %21 = arith.cmpi eq, %arg1, %c0_i32 : i32
    %22 = arith.extui %21 : i1 to i32
    %c0_i32_21 = arith.constant 0 : i32
    %23 = arith.cmpi ne, %22, %c0_i32_21 : i32
    scf.if %23 {
      %cst_118 = arith.constant 0.000000e+00 : f32
      %132 = vector.broadcast %cst_118 : f32 to vector<16x128xf32>
      %c8_119 = arith.constant 8 : index
      %c0_120 = arith.constant 0 : index
      %133 = vector.load %arg15[%c8_119, %c0_120] : memref<304x128xf32, #tpu.memory_space<vmem>>, vector<16x128xf32>
      tpu.vector_store %arg15[%c8_119, %c0_120], %132 {strides = array<i32>} : memref<304x128xf32, #tpu.memory_space<vmem>>, vector<16x128xf32>,
      %cst_121 = arith.constant 0.000000e+00 : bf16
      %134 = vector.broadcast %cst_121 : bf16 to vector<16x128xbf16>
      %c0_122 = arith.constant 0 : index
      %c0_123 = arith.constant 0 : index
      %135 = vector.load %arg16[%c0_122, %c0_123] : memref<288x128xbf16, #tpu.memory_space<vmem>>, vector<16x128xbf16>
      tpu.vector_store %arg16[%c0_122, %c0_123], %134 {strides = array<i32>} : memref<288x128xbf16, #tpu.memory_space<vmem>>, vector<16x128xbf16>,
    } else {
    }
    %c0_i32_22 = arith.constant 0 : i32
    %24 = arith.cmpi eq, %arg1, %c0_i32_22 : i32
    %25 = arith.extui %24 : i1 to i32
    %c0_i32_23 = arith.constant 0 : i32
    %26 = arith.cmpi ne, %25, %c0_i32_23 : i32
    scf.if %26 {
      %cst_118 = arith.constant 0.000000e+00 : f32
      %132 = vector.broadcast %cst_118 : f32 to vector<16x128xf32>
      %c280 = arith.constant 280 : index
      %c0_119 = arith.constant 0 : index
      %133 = vector.load %arg15[%c280, %c0_119] : memref<304x128xf32, #tpu.memory_space<vmem>>, vector<16x128xf32>
      tpu.vector_store %arg15[%c280, %c0_119], %132 {strides = array<i32>} : memref<304x128xf32, #tpu.memory_space<vmem>>, vector<16x128xf32>,
      %cst_120 = arith.constant 0.000000e+00 : bf16
      %134 = vector.broadcast %cst_120 : bf16 to vector<16x128xbf16>
      %c272 = arith.constant 272 : index
      %c0_121 = arith.constant 0 : index
      %135 = vector.load %arg16[%c272, %c0_121] : memref<288x128xbf16, #tpu.memory_space<vmem>>, vector<16x128xbf16>
      tpu.vector_store %arg16[%c272, %c0_121], %134 {strides = array<i32>} : memref<288x128xbf16, #tpu.memory_space<vmem>>, vector<16x128xbf16>,
    } else {
    }
    %27 = tpu.iota {dimensions = array<i32: 0>} : vector<288x1xi32>
    %c16_i32 = arith.constant 16 : i32
    %c0_i32_24 = arith.constant 0 : i32
    %28 = arith.cmpi eq, %c16_i32, %c0_i32_24 : i32
    %c1_i32 = arith.constant 1 : i32
    %29 = arith.select %28, %c1_i32, %c16_i32 : i32
    %30 = vector.broadcast %29 : i32 to vector<288x1xi32>
    %31 = arith.remsi %27, %30 : vector<288x1xi32>
    %c0_i32_25 = arith.constant 0 : i32
    %32 = vector.broadcast %c0_i32_25 : i32 to vector<288x1xi32>
    %33 = arith.cmpi ne, %31, %32 : vector<288x1xi32>
    %c0_i32_26 = arith.constant 0 : i32
    %34 = vector.broadcast %c0_i32_26 : i32 to vector<288x1xi32>
    %35 = arith.cmpi slt, %31, %34 : vector<288x1xi32>
    %c0_i32_27 = arith.constant 0 : i32
    %36 = arith.cmpi slt, %29, %c0_i32_27 : i32
    %37 = vector.broadcast %36 : i1 to vector<288x1xi1>
    %38 = vector.broadcast %37 : vector<288x1xi1> to vector<288x1xi1>
    %39 = arith.xori %35, %38 : vector<288x1xi1>
    %40 = arith.andi %39, %33 : vector<288x1xi1>
    %41 = vector.broadcast %29 : i32 to vector<288x1xi32>
    %42 = arith.addi %31, %41 : vector<288x1xi32>
    %43 = arith.select %40, %42, %31 : vector<288x1xi1>, vector<288x1xi32>
    %c7 = arith.constant 7 : index
    %c0_28 = arith.constant 0 : index
    %44 = vector.load %arg15[%c7, %c0_28] : memref<304x128xf32, #tpu.memory_space<vmem>>, vector<288x128xf32>
    %c0_i32_29 = arith.constant 0 : i32
    %45 = vector.broadcast %c0_i32_29 : i32 to vector<288x1xi32>
    %46 = arith.cmpi eq, %43, %45 : vector<288x1xi32>
    %cst_30 = arith.constant 0.000000e+00 : f32
    %47 = vector.shape_cast %46 : vector<288x1xi1> to vector<288x1xi1>
    %48 = vector.broadcast %47 : vector<288x1xi1> to vector<288x128xi1>
    %49 = vector.broadcast %cst_30 : f32 to vector<288x128xf32>
    %50 = arith.select %48, %49, %44 : vector<288x128xi1>, vector<288x128xf32>
    %51 = arith.truncf %50 : vector<288x128xf32> to vector<288x128xbf16>
    %c0_31 = arith.constant 0 : index
    %c0_32 = arith.constant 0 : index
    %52 = vector.load %arg17[%c0_31, %c0_32] : memref<288x128xbf16, #tpu.memory_space<vmem>>, vector<288x128xbf16>
    tpu.vector_store %arg17[%c0_31, %c0_32], %51 {strides = array<i32>} : memref<288x128xbf16, #tpu.memory_space<vmem>>, vector<288x128xbf16>,
    %c9 = arith.constant 9 : index
    %c0_33 = arith.constant 0 : index
    %53 = vector.load %arg15[%c9, %c0_33] : memref<304x128xf32, #tpu.memory_space<vmem>>, vector<288x128xf32>
    %c15_i32 = arith.constant 15 : i32
    %54 = vector.broadcast %c15_i32 : i32 to vector<288x1xi32>
    %55 = arith.cmpi eq, %43, %54 : vector<288x1xi32>
    %cst_34 = arith.constant 0.000000e+00 : f32
    %56 = vector.shape_cast %55 : vector<288x1xi1> to vector<288x1xi1>
    %57 = vector.broadcast %56 : vector<288x1xi1> to vector<288x128xi1>
    %58 = vector.broadcast %cst_34 : f32 to vector<288x128xf32>
    %59 = arith.select %57, %58, %53 : vector<288x128xi1>, vector<288x128xf32>
    %60 = arith.truncf %59 : vector<288x128xf32> to vector<288x128xbf16>
    %c0_35 = arith.constant 0 : index
    %c0_36 = arith.constant 0 : index
    %61 = vector.load %arg18[%c0_35, %c0_36] : memref<288x128xbf16, #tpu.memory_space<vmem>>, vector<288x128xbf16>
    tpu.vector_store %arg18[%c0_35, %c0_36], %60 {strides = array<i32>} : memref<288x128xbf16, #tpu.memory_space<vmem>>, vector<288x128xbf16>,
    %cst_37 = arith.constant 0.000000e+00 : f32
    %62 = vector.broadcast %cst_37 : f32 to vector<256x128xf32>
    %c0_38 = arith.constant 0 : index
    %c0_39 = arith.constant 0 : index
    %63 = vector.load %arg17[%c0_38, %c0_39] : memref<288x128xbf16, #tpu.memory_space<vmem>>, vector<256x128xbf16>
    %c0_40 = arith.constant 0 : index
    %c0_41 = arith.constant 0 : index
    %c0_42 = arith.constant 0 : index
    %c0_43 = arith.constant 0 : index
    %64 = vector.load %arg8[%c0_40, %c0_41, %c0_42, %c0_43] : memref<3x3x128x128xbf16, #tpu.memory_space<vmem>>, vector<1x1x128x128xbf16>
    %65 = vector.shape_cast %64 : vector<1x1x128x128xbf16> to vector<128x128xbf16>
    %cst_44 = arith.constant dense<0.000000e+00> : vector<256x128xf32>
    %66 = tpu.matmul %63, %65, %cst_44 {dimension_numbers = #tpu.dot_dimension_numbers<[1], [0], [0], [1], [0, 0, 1, 1], [], []>} : vector<256x128xbf16>, vector<128x128xbf16>, vector<256x128xf32> -> vector<256x128xf32>
    %67 = arith.addf %62, %66 : vector<256x128xf32>
    %c0_45 = arith.constant 0 : index
    %c0_46 = arith.constant 0 : index
    %68 = vector.load %arg16[%c0_45, %c0_46] : memref<288x128xbf16, #tpu.memory_space<vmem>>, vector<256x128xbf16>
    %c0_47 = arith.constant 0 : index
    %c1 = arith.constant 1 : index
    %c0_48 = arith.constant 0 : index
    %c0_49 = arith.constant 0 : index
    %69 = vector.load %arg8[%c0_47, %c1, %c0_48, %c0_49] : memref<3x3x128x128xbf16, #tpu.memory_space<vmem>>, vector<1x1x128x128xbf16>
    %70 = vector.shape_cast %69 : vector<1x1x128x128xbf16> to vector<128x128xbf16>
    %cst_50 = arith.constant dense<0.000000e+00> : vector<256x128xf32>
    %71 = tpu.matmul %68, %70, %cst_50 {dimension_numbers = #tpu.dot_dimension_numbers<[1], [0], [0], [1], [0, 0, 1, 1], [], []>} : vector<256x128xbf16>, vector<128x128xbf16>, vector<256x128xf32> -> vector<256x128xf32>
    %72 = arith.addf %67, %71 : vector<256x128xf32>
    %c0_51 = arith.constant 0 : index
    %c0_52 = arith.constant 0 : index
    %73 = vector.load %arg18[%c0_51, %c0_52] : memref<288x128xbf16, #tpu.memory_space<vmem>>, vector<256x128xbf16>
    %c0_53 = arith.constant 0 : index
    %c2 = arith.constant 2 : index
    %c0_54 = arith.constant 0 : index
    %c0_55 = arith.constant 0 : index
    %74 = vector.load %arg8[%c0_53, %c2, %c0_54, %c0_55] : memref<3x3x128x128xbf16, #tpu.memory_space<vmem>>, vector<1x1x128x128xbf16>
    %75 = vector.shape_cast %74 : vector<1x1x128x128xbf16> to vector<128x128xbf16>
    %cst_56 = arith.constant dense<0.000000e+00> : vector<256x128xf32>
    %76 = tpu.matmul %73, %75, %cst_56 {dimension_numbers = #tpu.dot_dimension_numbers<[1], [0], [0], [1], [0, 0, 1, 1], [], []>} : vector<256x128xbf16>, vector<128x128xbf16>, vector<256x128xf32> -> vector<256x128xf32>
    %77 = arith.addf %72, %76 : vector<256x128xf32>
    %c16 = arith.constant 16 : index
    %c0_57 = arith.constant 0 : index
    %78 = vector.load %arg17[%c16, %c0_57] : memref<288x128xbf16, #tpu.memory_space<vmem>>, vector<256x128xbf16>
    %c1_58 = arith.constant 1 : index
    %c0_59 = arith.constant 0 : index
    %c0_60 = arith.constant 0 : index
    %c0_61 = arith.constant 0 : index
    %79 = vector.load %arg8[%c1_58, %c0_59, %c0_60, %c0_61] : memref<3x3x128x128xbf16, #tpu.memory_space<vmem>>, vector<1x1x128x128xbf16>
    %80 = vector.shape_cast %79 : vector<1x1x128x128xbf16> to vector<128x128xbf16>
    %cst_62 = arith.constant dense<0.000000e+00> : vector<256x128xf32>
    %81 = tpu.matmul %78, %80, %cst_62 {dimension_numbers = #tpu.dot_dimension_numbers<[1], [0], [0], [1], [0, 0, 1, 1], [], []>} : vector<256x128xbf16>, vector<128x128xbf16>, vector<256x128xf32> -> vector<256x128xf32>
    %82 = arith.addf %77, %81 : vector<256x128xf32>
    %c16_63 = arith.constant 16 : index
    %c0_64 = arith.constant 0 : index
    %83 = vector.load %arg16[%c16_63, %c0_64] : memref<288x128xbf16, #tpu.memory_space<vmem>>, vector<256x128xbf16>
    %c1_65 = arith.constant 1 : index
    %c1_66 = arith.constant 1 : index
    %c0_67 = arith.constant 0 : index
    %c0_68 = arith.constant 0 : index
    %84 = vector.load %arg8[%c1_65, %c1_66, %c0_67, %c0_68] : memref<3x3x128x128xbf16, #tpu.memory_space<vmem>>, vector<1x1x128x128xbf16>
    %85 = vector.shape_cast %84 : vector<1x1x128x128xbf16> to vector<128x128xbf16>
    %cst_69 = arith.constant dense<0.000000e+00> : vector<256x128xf32>
    %86 = tpu.matmul %83, %85, %cst_69 {dimension_numbers = #tpu.dot_dimension_numbers<[1], [0], [0], [1], [0, 0, 1, 1], [], []>} : vector<256x128xbf16>, vector<128x128xbf16>, vector<256x128xf32> -> vector<256x128xf32>
    %87 = arith.addf %82, %86 : vector<256x128xf32>
    %c16_70 = arith.constant 16 : index
    %c0_71 = arith.constant 0 : index
    %88 = vector.load %arg18[%c16_70, %c0_71] : memref<288x128xbf16, #tpu.memory_space<vmem>>, vector<256x128xbf16>
    %c1_72 = arith.constant 1 : index
    %c2_73 = arith.constant 2 : index
    %c0_74 = arith.constant 0 : index
    %c0_75 = arith.constant 0 : index
    %89 = vector.load %arg8[%c1_72, %c2_73, %c0_74, %c0_75] : memref<3x3x128x128xbf16, #tpu.memory_space<vmem>>, vector<1x1x128x128xbf16>
    %90 = vector.shape_cast %89 : vector<1x1x128x128xbf16> to vector<128x128xbf16>
    %cst_76 = arith.constant dense<0.000000e+00> : vector<256x128xf32>
    %91 = tpu.matmul %88, %90, %cst_76 {dimension_numbers = #tpu.dot_dimension_numbers<[1], [0], [0], [1], [0, 0, 1, 1], [], []>} : vector<256x128xbf16>, vector<128x128xbf16>, vector<256x128xf32> -> vector<256x128xf32>
    %92 = arith.addf %87, %91 : vector<256x128xf32>
    %c32 = arith.constant 32 : index
    %c0_77 = arith.constant 0 : index
    %93 = vector.load %arg17[%c32, %c0_77] : memref<288x128xbf16, #tpu.memory_space<vmem>>, vector<256x128xbf16>
    %c2_78 = arith.constant 2 : index
    %c0_79 = arith.constant 0 : index
    %c0_80 = arith.constant 0 : index
    %c0_81 = arith.constant 0 : index
    %94 = vector.load %arg8[%c2_78, %c0_79, %c0_80, %c0_81] : memref<3x3x128x128xbf16, #tpu.memory_space<vmem>>, vector<1x1x128x128xbf16>
    %95 = vector.shape_cast %94 : vector<1x1x128x128xbf16> to vector<128x128xbf16>
    %cst_82 = arith.constant dense<0.000000e+00> : vector<256x128xf32>
    %96 = tpu.matmul %93, %95, %cst_82 {dimension_numbers = #tpu.dot_dimension_numbers<[1], [0], [0], [1], [0, 0, 1, 1], [], []>} : vector<256x128xbf16>, vector<128x128xbf16>, vector<256x128xf32> -> vector<256x128xf32>
    %97 = arith.addf %92, %96 : vector<256x128xf32>
    %c32_83 = arith.constant 32 : index
    %c0_84 = arith.constant 0 : index
    %98 = vector.load %arg16[%c32_83, %c0_84] : memref<288x128xbf16, #tpu.memory_space<vmem>>, vector<256x128xbf16>
    %c2_85 = arith.constant 2 : index
    %c1_86 = arith.constant 1 : index
    %c0_87 = arith.constant 0 : index
    %c0_88 = arith.constant 0 : index
    %99 = vector.load %arg8[%c2_85, %c1_86, %c0_87, %c0_88] : memref<3x3x128x128xbf16, #tpu.memory_space<vmem>>, vector<1x1x128x128xbf16>
    %100 = vector.shape_cast %99 : vector<1x1x128x128xbf16> to vector<128x128xbf16>
    %cst_89 = arith.constant dense<0.000000e+00> : vector<256x128xf32>
    %101 = tpu.matmul %98, %100, %cst_89 {dimension_numbers = #tpu.dot_dimension_numbers<[1], [0], [0], [1], [0, 0, 1, 1], [], []>} : vector<256x128xbf16>, vector<128x128xbf16>, vector<256x128xf32> -> vector<256x128xf32>
    %102 = arith.addf %97, %101 : vector<256x128xf32>
    %c32_90 = arith.constant 32 : index
    %c0_91 = arith.constant 0 : index
    %103 = vector.load %arg18[%c32_90, %c0_91] : memref<288x128xbf16, #tpu.memory_space<vmem>>, vector<256x128xbf16>
    %c2_92 = arith.constant 2 : index
    %c2_93 = arith.constant 2 : index
    %c0_94 = arith.constant 0 : index
    %c0_95 = arith.constant 0 : index
    %104 = vector.load %arg8[%c2_92, %c2_93, %c0_94, %c0_95] : memref<3x3x128x128xbf16, #tpu.memory_space<vmem>>, vector<1x1x128x128xbf16>
    %105 = vector.shape_cast %104 : vector<1x1x128x128xbf16> to vector<128x128xbf16>
    %cst_96 = arith.constant dense<0.000000e+00> : vector<256x128xf32>
    %106 = tpu.matmul %103, %105, %cst_96 {dimension_numbers = #tpu.dot_dimension_numbers<[1], [0], [0], [1], [0, 0, 1, 1], [], []>} : vector<256x128xbf16>, vector<128x128xbf16>, vector<256x128xf32> -> vector<256x128xf32>
    %107 = arith.addf %102, %106 : vector<256x128xf32>
    %c0_97 = arith.constant 0 : index
    %c0_98 = arith.constant 0 : index
    %108 = vector.load %arg9[%c0_97, %c0_98] : memref<1x128xf32, #tpu.memory_space<vmem>>, vector<1x128xf32>
    %109 = vector.broadcast %108 : vector<1x128xf32> to vector<256x128xf32>
    %110 = arith.mulf %107, %109 : vector<256x128xf32>
    %c0_99 = arith.constant 0 : index
    %c0_100 = arith.constant 0 : index
    %111 = vector.load %arg10[%c0_99, %c0_100] : memref<1x128xf32, #tpu.memory_space<vmem>>, vector<1x128xf32>
    %112 = vector.broadcast %111 : vector<1x128xf32> to vector<256x128xf32>
    %113 = arith.addf %110, %112 : vector<256x128xf32>
    %cst_101 = arith.constant 0.000000e+00 : f32
    %114 = vector.broadcast %cst_101 : f32 to vector<256x128xf32>
    %115 = arith.maximumf %113, %114 : vector<256x128xf32>
    %116 = arith.truncf %115 : vector<256x128xf32> to vector<256x128xbf16>
    %c0_102 = arith.constant 0 : index
    %c0_103 = arith.constant 0 : index
    %117 = vector.load %arg11[%c0_102, %c0_103] : memref<128x128xbf16, #tpu.memory_space<vmem>>, vector<128x128xbf16>
    %cst_104 = arith.constant dense<0.000000e+00> : vector<256x128xf32>
    %118 = tpu.matmul %116, %117, %cst_104 {dimension_numbers = #tpu.dot_dimension_numbers<[1], [0], [0], [1], [0, 0, 1, 1], [], []>} : vector<256x128xbf16>, vector<128x128xbf16>, vector<256x128xf32> -> vector<256x128xf32>
    %c0_105 = arith.constant 0 : index
    %c0_106 = arith.constant 0 : index
    %119 = vector.load %arg12[%c0_105, %c0_106] : memref<1x128xf32, #tpu.memory_space<vmem>>, vector<1x128xf32>
    %120 = vector.broadcast %119 : vector<1x128xf32> to vector<256x128xf32>
    %121 = arith.mulf %118, %120 : vector<256x128xf32>
    %c0_107 = arith.constant 0 : index
    %c0_108 = arith.constant 0 : index
    %122 = vector.load %arg13[%c0_107, %c0_108] : memref<1x128xf32, #tpu.memory_space<vmem>>, vector<1x128xf32>
    %123 = vector.broadcast %122 : vector<1x128xf32> to vector<256x128xf32>
    %124 = arith.addf %121, %123 : vector<256x128xf32>
    %c0_109 = arith.constant 0 : index
    %c0_110 = arith.constant 0 : index
    %c0_111 = arith.constant 0 : index
    %c0_112 = arith.constant 0 : index
    %125 = vector.load %arg2[%c0_109, %c0_110, %c0_111, %c0_112] : memref<1x16x16x128xf32, #tpu.memory_space<vmem>>, vector<1x16x16x128xf32>
    %126 = vector.shape_cast %125 : vector<1x16x16x128xf32> to vector<256x128xf32>
    %127 = arith.addf %124, %126 : vector<256x128xf32>
    %cst_113 = arith.constant 0.000000e+00 : f32
    %128 = vector.broadcast %cst_113 : f32 to vector<256x128xf32>
    %129 = arith.maximumf %127, %128 : vector<256x128xf32>
    %130 = vector.shape_cast %129 : vector<256x128xf32> to vector<1x16x16x128xf32>
    %c0_114 = arith.constant 0 : index
    %c0_115 = arith.constant 0 : index
    %c0_116 = arith.constant 0 : index
    %c0_117 = arith.constant 0 : index
    %131 = vector.load %arg14[%c0_114, %c0_115, %c0_116, %c0_117] : memref<1x16x16x128xf32, #tpu.memory_space<vmem>>, vector<1x16x16x128xf32>
    tpu.vector_store %arg14[%c0_114, %c0_115, %c0_116, %c0_117], %130 {strides = array<i32>} : memref<1x16x16x128xf32, #tpu.memory_space<vmem>>, vector<1x16x16x128xf32>,
    return
  }
  func.func @transform_0(%arg0: i32, %arg1: i32) -> (i32, i32, i32, i32) {
    %c0_i32 = arith.constant 0 : i32
    %c0_i32_0 = arith.constant 0 : i32
    %c0_i32_1 = arith.constant 0 : i32
    return %arg0, %arg1, %c0_i32, %c0_i32_0 : i32, i32, i32, i32
  }
  func.func @transform_1(%arg0: i32, %arg1: i32) -> (i32, i32, i32, i32) {
    %c16_i32 = arith.constant 16 : i32
    %0 = arith.muli %arg1, %c16_i32 : i32
    %c1_i32 = arith.constant 1 : i32
    %1 = arith.subi %0, %c1_i32 : i32
    %c0_i32 = arith.constant 0 : i32
    %2 = arith.maxsi %1, %c0_i32 : i32
    %c0_i32_0 = arith.constant 0 : i32
    %c0_i32_1 = arith.constant 0 : i32
    %c0_i32_2 = arith.constant 0 : i32
    return %arg0, %2, %c0_i32_0, %c0_i32_1 : i32, i32, i32, i32
  }
  func.func @transform_2(%arg0: i32, %arg1: i32) -> (i32, i32, i32, i32) {
    %c16_i32 = arith.constant 16 : i32
    %0 = arith.muli %arg1, %c16_i32 : i32
    %c16_i32_0 = arith.constant 16 : i32
    %1 = arith.addi %0, %c16_i32_0 : i32
    %c15_i32 = arith.constant 15 : i32
    %2 = arith.minsi %1, %c15_i32 : i32
    %c0_i32 = arith.constant 0 : i32
    %c0_i32_1 = arith.constant 0 : i32
    %c0_i32_2 = arith.constant 0 : i32
    return %arg0, %2, %c0_i32, %c0_i32_1 : i32, i32, i32, i32
  }
  func.func @transform_3(%arg0: i32, %arg1: i32) -> (i32, i32) {
    %c0_i32 = arith.constant 0 : i32
    %c0_i32_0 = arith.constant 0 : i32
    %c0_i32_1 = arith.constant 0 : i32
    return %c0_i32, %c0_i32_0 : i32, i32
  }
  func.func @transform_4(%arg0: i32, %arg1: i32) -> (i32, i32) {
    %c0_i32 = arith.constant 0 : i32
    %c0_i32_0 = arith.constant 0 : i32
    %c0_i32_1 = arith.constant 0 : i32
    return %c0_i32, %c0_i32_0 : i32, i32
  }
  func.func @transform_5(%arg0: i32, %arg1: i32) -> (i32, i32) {
    %c0_i32 = arith.constant 0 : i32
    %c0_i32_0 = arith.constant 0 : i32
    %c0_i32_1 = arith.constant 0 : i32
    return %c0_i32, %c0_i32_0 : i32, i32
  }
  func.func @transform_6(%arg0: i32, %arg1: i32) -> (i32, i32, i32, i32) {
    %c0_i32 = arith.constant 0 : i32
    %c0_i32_0 = arith.constant 0 : i32
    %c0_i32_1 = arith.constant 0 : i32
    %c0_i32_2 = arith.constant 0 : i32
    %c0_i32_3 = arith.constant 0 : i32
    return %c0_i32, %c0_i32_0, %c0_i32_1, %c0_i32_2 : i32, i32, i32, i32
  }
  func.func @transform_7(%arg0: i32, %arg1: i32) -> (i32, i32) {
    %c0_i32 = arith.constant 0 : i32
    %c0_i32_0 = arith.constant 0 : i32
    %c0_i32_1 = arith.constant 0 : i32
    return %c0_i32, %c0_i32_0 : i32, i32
  }
  func.func @transform_8(%arg0: i32, %arg1: i32) -> (i32, i32) {
    %c0_i32 = arith.constant 0 : i32
    %c0_i32_0 = arith.constant 0 : i32
    %c0_i32_1 = arith.constant 0 : i32
    return %c0_i32, %c0_i32_0 : i32, i32
  }
  func.func @transform_9(%arg0: i32, %arg1: i32) -> (i32, i32) {
    %c0_i32 = arith.constant 0 : i32
    %c0_i32_0 = arith.constant 0 : i32
    %c0_i32_1 = arith.constant 0 : i32
    return %c0_i32, %c0_i32_0 : i32, i32
  }
  func.func @transform_10(%arg0: i32, %arg1: i32) -> (i32, i32) {
    %c0_i32 = arith.constant 0 : i32
    %c0_i32_0 = arith.constant 0 : i32
    %c0_i32_1 = arith.constant 0 : i32
    return %c0_i32, %c0_i32_0 : i32, i32
  }
  func.func @transform_11(%arg0: i32, %arg1: i32) -> (i32, i32) {
    %c0_i32 = arith.constant 0 : i32
    %c0_i32_0 = arith.constant 0 : i32
    %c0_i32_1 = arith.constant 0 : i32
    return %c0_i32, %c0_i32_0 : i32, i32
  }
  func.func @transform_12(%arg0: i32, %arg1: i32) -> (i32, i32, i32, i32) {
    %c0_i32 = arith.constant 0 : i32
    %c0_i32_0 = arith.constant 0 : i32
    %c0_i32_1 = arith.constant 0 : i32
    return %arg0, %arg1, %c0_i32, %c0_i32_0 : i32, i32, i32, i32
  }
}

</mosaic_0001>

<bundles_post_ra>
// kernel: tpu_custom_call.1
= control target key start
LH: loop header
LB: loop body
LE: loop exit
PB: predicated region body
PF: predicated region fallthrough
CT: control target
= control target key end

     0   :  { %s10642_s0 = inlined_call_operand.hbm [shape: f32[2,16,16,128], index: 0, kind: input, shape index: {}]   ;;  %s10643_s1 = inlined_call_operand.hbm [shape: f32[2,16,16,128], index: 1, kind: input, shape index: {}]   ;;  %s10644_s2 = inlined_call_operand.hbm [shape: f32[2,16,16,128], index: 2, kind: input, shape index: {}]   ;;  %s10645_s3 = inlined_call_operand.hbm [shape: bf16[128,128], index: 3, kind: input, shape index: {}]   ;;  %s10646_s4 = inlined_call_operand.vmem [shape: f32[1,128], index: 4, kind: input, shape index: {}]   ;;  %s10647_s5 = inlined_call_operand.vmem [shape: f32[1,128], index: 5, kind: input, shape index: {}]   ;;  %s10648_s6 = inlined_call_operand.hbm [shape: bf16[3,3,128,128], index: 6, kind: input, shape index: {}]   ;;  %s10649_s7 = inlined_call_operand.vmem [shape: f32[1,128], index: 7, kind: input, shape index: {}]   ;;  %s10650_s8 = inlined_call_operand.vmem [shape: f32[1,128], index: 8, kind: input, shape index: {}]   ;;  %s10651_s9 = inlined_call_operand.hbm [shape: bf16[128,128], index: 9, kind: input, shape index: {}]   ;;  %s10652_s10 = inlined_call_operand.vmem [shape: f32[1,128], index: 10, kind: input, shape index: {}]   ;;  %s10653_s11 = inlined_call_operand.vmem [shape: f32[1,128], index: 11, kind: input, shape index: {}]   ;;  %s10654_s12 = inlined_call_operand.hbm [shape: f32[2,16,16,128], index: 12, kind: output, shape index: {}]  }
   0x1   :  { %10673 = sst [smem:[#allocation43_spill]] %s10643_s1 }
   0x2   :  { %10674 = sst [smem:[#allocation44_spill]] %s10645_s3 }
   0x3   :  { %10675 = sst [smem:[#allocation45_spill]] %s10648_s6 }
   0x4   :  { %10676 = sst [smem:[#allocation46_spill]] %s10650_s8 }
   0x5   :  { %10677 = sst [smem:[#allocation47_spill]] %s10652_s10 }
   0x6   :  { %10678 = sst [smem:[#allocation48_spill]] %s10653_s11 }
   0x7   :  { %10679 = sst [smem:[#allocation49_spill]] %s10654_s12 }
   0x8   :  { %17 = vsyncpa [#allocation7], 0 }
   0x9   :  { %19 = vsyncpa [#allocation7 + $0x1], 0 }
   0xa   :  { %20 = vsyncpa [#allocation10], 0 }
   0xb   :  { %22 = vsyncpa [#allocation10 + $0x1], 0 }
   0xc   :  { %23 = vsyncpa [#allocation13], 0 }
   0xd   :  { %24 = vsyncpa [#allocation16], 0 }
   0xe   :  { %25 = vsyncpa [#allocation8], 0 }
   0xf   :  { %27 = vsyncpa [#allocation8 + $0x1], 0  ;;  %s8902_s21 = smov 0   ;;  %s8904_s22 = smov 0  }
  0x10   :  { %s8906_s23 = smov 0   ;;  %s8908_s24 = smov 0  }
  0x11   :  { %s8910_s25 = smov 0   ;;  %s8912_s26 = smov 0  }
  0x12 LB: > { %10680 = sst [smem:[#allocation23_spill]] %s8800_s21  ;;  %s8933_s27 = sadd.s32 4294967295, %s8820_s26   ;;  %s8820_s26 = sphi %s8912_s26, %s33_s26   ;;  %s8816_s25 = sphi %s8910_s25, %s10812_s25   ;;  %s8812_s24 = sphi %s8908_s24, %s10811_s24   ;;  %s8808_s23 = sphi %s8906_s23, %s10810_s23   ;;  %s8804_s22 = sphi %s8904_s22, %s10814_s22   ;;  %s8800_s21 = sphi %s8902_s21, %s10813_s21  }
  0x13   : > { %10681 = sst [smem:[#allocation24_spill]] %s8808_s23  ;;  %s6598_s28 = sadd.s32 4294967294, %s8820_s26  }
  0x14   : > { %10682 = sst [smem:[#allocation25_spill]] %s8812_s24  ;;  %p61_p0 = scmp.ne.s32.totalorder %s8808_s23, %s8804_s22 }
  0x15   : > { %10683 = sst [smem:[#allocation26_spill]] %s8816_s25  ;;  %p62_p1 = scmp.eq.s32.totalorder %s8820_s26, 0 }
  0x16   : > { %p67_p2 = scmp.ne.s32.totalorder %s8804_s22, %s8800_s21  ;;  %p10655_p3 = scmp.eq.s32.totalorder %s8933_s27, 0 }
  0x17   : > { %p8942_p4 = por %p62_p1, %p61_p0  ;;  %p354_p5 = scmp.eq.s32.totalorder %s8933_s27, 1 }
  0x18   : > { %p8949_p6 = por %p10655_p3, %p67_p2  ;;  %p360_p7 = scmp.eq.s32.totalorder %s6598_s28, 1 }
  0x19   : > { %p8953_p8 = por %p354_p5, %p61_p0  ;;  %p6599_p9 = scmp.ge.s32.totalorder %s8820_s26, 1 }
  0x1a   : > { %p8958_p10 = por %p360_p7, %p67_p2  ;;  %p367_p11 = scmp.lt.s32.totalorder %s8820_s26, 3 }
  0x1b   : > { %s10686_s13 = scalar_select %p8953_p8, 1, 0 }
  0x1c   : > { %s10688_s14 = scalar_select %p8958_p10, 1, 0 }
  0x1d   : > { %10687 = sst [smem:[#allocation27_spill]] %s10686_s13  ;;  %p8963_p12 = pnand %p6599_p9, %p367_p11 }
  0x1e   : > { %10689 = sst [smem:[#allocation28_spill]] %s10688_s14  ;;  %s8822_s16 = smov [#allocation12]  }
  0x1f   : > { %s379_s17 = sshll.u32 %s8822_s16, 4  ;;  %p8241_p13 = pneg %p8963_p12  ;;  %s380_s17 = int_to_ptr.vmem [resolvable:$true] %s379_s17 }
  0x20   : > { %s45_s19 = sadd.s32 1, %s8816_s25  ;;  %s54_s20 = sadd.s32 1, %s8808_s23 }
  0x21   : > { %p8972_p1 = pnand %p8241_p13, %p10655_p3  ;;  %p8978_p2 = scmp.ge.s32.totalorder %s45_s19, 2 }
  0x22   : > { %s8577_s16 = scalar_lea.vmem %s380_s17, 1024  ;;  %p8585_p13 = scmp.lt.s32.totalorder %s380_s17, %s380_s17 }
  0x23   : > { %p8568_p5 = pneg %p8972_p1  ;;  %p8578_p7 = scmp.ne.s32.totalorder %s380_s17, %s8577_s16 }
  0x24   : > { %p8586_p0 = scmp.lt.s32.totalorder %s8577_s16, %s8577_s16 }
  0x25   : > { %p8580_p9 = pnand %p8578_p7, %p8568_p5 }
  0x26   : > { %p8587_p3 = por %p8586_p0, %p8585_p13 }
  0x27   : > { %p8581_p11 = pneg %p8580_p9 }
  0x29   : > { %p8588_p10 = pnand %p8587_p3, %p8581_p11 }
  0x2b   : > { %8591 = shalt.err (!%p8588_p10)
}
  0x2c   : > { %s10661_s14 = smov 64   ;;  %s10663_s21 = smov 4  }
  0x2d   : > { %s10693_s3 = sld [smem:[#allocation44_spill]]  ;;  %s10816_s19 = smov (%p8978_p2, %s45_s19), 0 }
  0x2e   : > { %10694 = sst [smem:[#allocation29_spill]] %s10816_s19  ;;  %p8268_p3 = scmp.lt.s32.totalorder %s8820_s26, 2 }
  0x2f   : > { %s9001_s13 = sand.u32 1, %s8808_s23   ;;  %s49_s24 = ssub.s32 %s8816_s25, %s10816_s19 }
  0x30   : > { %s9006_s11 = sshll.u32 %s8816_s25, 12  ;;  %p52_p10 = scmp.eq.s32.totalorder %s49_s24, 0 }
  0x31   : > { %p9010_p0 = pnand %p8268_p3, %p8942_p4  ;;  %s6607_s28 = sshll.u32 %s9001_s13, 4 }
  0x32   : > { %s9015_s12 = scalar_select %p52_p10, %s8808_s23, %s54_s20  }
  0x33   : > { %8244 = dma.hbm_to_vmem [thread:$0]  (!%p8972_p1), %s10693_s3, 1024, %s380_s17, [#allocation13], %s10661_s14, %s10661_s14, %s10663_s21  }
  0x34   : > { %10696 = sst [smem:[#allocation30_spill]] %s9015_s12  ;;  %s461_s17 = sand.u32 1, %s8820_s26  }
  0x35   : > { %s10697_s1 = sld [smem:[#allocation43_spill]]  ;;  %s465_s3 = scalar_lea.vmem [#allocation9], %s6607_s28 }
  0x36   : > { %s478_s19 = sshll.u32 %s465_s3, 4  ;;  %s492_s25 = scalar_lea.vmem [#allocation11], %s6607_s28  ;;  %s479_s19 = int_to_ptr.vmem [resolvable:$true] %s478_s19 }
  0x37   : > { %s505_s24 = sshll.u32 %s492_s25, 4  ;;  %s9023_s29 = scalar_lea.sflag [#allocation10], %s461_s17  ;;  %s9036_s24 = int_to_ptr.vmem [resolvable:$true] %s505_s24 }
  0x38   : > { %p10667_p4 = pneg %p9010_p0  ;;  %s8605_s8 = scalar_lea.vmem %s479_s19, 256 }
  0x39   : > { %p8606_p2 = scmp.ne.s32.totalorder %s479_s19, %s8605_s8  ;;  %s8825_s20 = smov [#allocation9]  }
  0x3a   : > { %s8610_s12 = sshll.u32 %s8825_s20, 4  ;;  %s8611_s12 = int_to_ptr.vmem [resolvable:$false] %s8610_s12 }
  0x3b   : > { %s477_s21 = scalar_lea.hbm %s10697_s1, %s9006_s11  ;;  %p8608_p7 = pnand %p8606_p2, %p10667_p4 }
  0x3c   : > { %s8612_s14 = scalar_lea.vmem %s8611_s12, 512  ;;  %p8613_p11 = scmp.lt.s32.totalorder %s479_s19, %s8611_s12 }
  0x3d   : > { %p8609_p9 = pneg %p8608_p7  ;;  %p8614_p13 = scmp.lt.s32.totalorder %s8612_s14, %s8605_s8 }
  0x3f   : > { %p8615_p3 = por %p8614_p13, %p8613_p11 }
  0x41   : > { %p8616_p10 = pnand %p8615_p3, %p8609_p9 }
  0x43   : > { %8619 = shalt.err (!%p8616_p10)
}
  0x44   : > { %s10668_s3 = smov 128   ;;  %s10670_s25 = smov 8  }
  0x45   : > { %8257 = dma.hbm_to_vmem [thread:$0]  (!%p9010_p0), %s477_s21, 256, %s479_s19, %s9023_s29, %s10668_s3, %s10668_s3, %s10670_s25  }
  0x46   : > { %s8828_s17 = smov [#allocation14]   ;;  %s8829_s12 = smov [#allocation15]  }
  0x47   : > { %s398_s28 = sshll.u32 %s8828_s17, 4  ;;  %s417_s8 = sshll.u32 %s8829_s12, 4  ;;  %s399_s28 = int_to_ptr.vmem [resolvable:$true] %s398_s28  ;;  %s418_s8 = int_to_ptr.vmem [resolvable:$true] %s417_s8 }
  0x48   : > { %s8631_s16 = scalar_lea.vmem %s399_s28, 9216  ;;  %p8639_p11 = scmp.lt.s32.totalorder %s399_s28, %s399_s28 }
  0x49   : > { %p8632_p2 = scmp.ne.s32.totalorder %s399_s28, %s8631_s16  ;;  %p8640_p13 = scmp.lt.s32.totalorder %s8631_s16, %s8631_s16 }
  0x4b   : > { %p8634_p7 = pnand %p8632_p2, %p8568_p5  ;;  %p8641_p3 = por %p8640_p13, %p8639_p11 }
  0x4d   : > { %p8635_p9 = pneg %p8634_p7 }
  0x4f   : > { %p8642_p10 = pnand %p8641_p3, %p8635_p9 }
  0x51   : > { %8645 = shalt.err (!%p8642_p10)
}
  0x52   : > { %s10698_s21 = smov 4   ;;  %s10699_s19 = smov 64  }
  0x53   : > { %s10700_s6 = sld [smem:[#allocation45_spill]]  ;;  %s8657_s17 = scalar_lea.vmem %s418_s8, 1024 }
  0x54   : > { %p8658_p4 = scmp.ne.s32.totalorder %s418_s8, %s8657_s17  ;;  %p8665_p11 = scmp.lt.s32.totalorder %s418_s8, %s418_s8 }
  0x55   : > { %p8666_p9 = scmp.lt.s32.totalorder %s8657_s17, %s8657_s17 }
  0x56   : > { %p8660_p2 = pnand %p8658_p4, %p8568_p5 }
  0x57   : > { %p8667_p13 = por %p8666_p9, %p8665_p11 }
  0x58   : > { %p8661_p7 = pneg %p8660_p2 }
  0x59   : > { %8247 = dma.hbm_to_vmem [thread:$0]  (!%p8972_p1), %s10700_s6, 9216, %s399_s28, [#allocation13], %s10699_s19, %s10699_s19, %s10698_s21  }
  0x5a   : > { %p8668_p3 = pnand %p8667_p13, %p8661_p7 }
  0x5c   : > { %8671 = shalt.err (!%p8668_p3)
}
  0x5d   : > { %8250 = dma.hbm_to_vmem [thread:$0]  (!%p8972_p1), %s10651_s9, 1024, %s418_s8, [#allocation16], %s10699_s19, %s10699_s19, %s10698_s21  }
  0x5e   : > { %s6604_s28 = sshll.u32 %s9001_s13, 8  ;;  %s450_s17 = scalar_lea.hbm %s10642_s0, %s9006_s11 }
  0x5f   : > { %s6975_s3 = sadd.s32 3840, %s9006_s11  ;;  %s441_s25 = scalar_lea.vmem [#allocation6], %s6604_s28 }
  0x60   : > { %s451_s18 = sshll.u32 %s441_s25, 4  ;;  %s9069_s23 = scalar_lea.hbm %s10644_s2, %s6975_s3  ;;  %s452_s18 = int_to_ptr.vmem [resolvable:$true] %s451_s18 }
  0x61   : > { %s438_s12 = scalar_lea.sflag [#allocation7], %s9001_s13  ;;  %s8685_s16 = scalar_lea.vmem %s452_s18, 4096 }
  0x62   : > { %p8686_p5 = scmp.ne.s32.totalorder %s452_s18, %s8685_s16  ;;  %p10701_p4 = pneg %p9010_p0 }
  0x63   : > { %s8830_s8 = smov [#allocation6]  }
  0x64   : > { %p8688_p1 = pnand %p8686_p5, %p10701_p4  ;;  %s8690_s21 = sshll.u32 %s8830_s8, 4  ;;  %s8691_s21 = int_to_ptr.vmem [resolvable:$false] %s8690_s21 }
  0x65   : > { %s8692_s19 = scalar_lea.vmem %s8691_s21, 8192  ;;  %p8693_p2 = scmp.lt.s32.totalorder %s452_s18, %s8691_s21 }
  0x66   : > { %p8689_p10 = pneg %p8688_p1  ;;  %p8694_p7 = scmp.lt.s32.totalorder %s8692_s19, %s8685_s16 }
  0x68   : > { %p8695_p11 = por %p8694_p7, %p8693_p2 }
  0x6a   : > { %p8696_p9 = pnand %p8695_p11, %p8689_p10 }
  0x6c   : > { %8699 = shalt.err (!%p8696_p9)
}
  0x6d   : > { %s10702_s1 = smov 8   ;;  %s10703_s6 = smov 128  }
  0x6e   : > { %8254 = dma.hbm_to_vmem [thread:$0]  (!%p9010_p0), %s450_s17, 4096, %s452_s18, %s438_s12, %s10703_s6, %s10703_s6, %s10702_s1  }
  0x6f   : > { %s8713_s11 = scalar_lea.vmem %s9036_s24, 256  ;;  %p10704_p3 = pmov %p10701_p4 }
  0x70   : > { %p8714_p13 = scmp.ne.s32.totalorder %s9036_s24, %s8713_s11  ;;  %s8831_s13 = smov [#allocation11]  }
  0x71   : > { %s8718_s3 = sshll.u32 %s8831_s13, 4  ;;  %s8719_s3 = int_to_ptr.vmem [resolvable:$false] %s8718_s3 }
  0x72   : > { %p8716_p5 = pnand %p8714_p13, %p10704_p3  ;;  %s8720_s25 = scalar_lea.vmem %s8719_s3, 512 }
  0x73   : > { %p8721_p1 = scmp.lt.s32.totalorder %s9036_s24, %s8719_s3  ;;  %p8722_p10 = scmp.lt.s32.totalorder %s8720_s25, %s8713_s11 }
  0x74   : > { %p8717_p4 = pneg %p8716_p5 }
  0x75   : > { %p8723_p2 = por %p8722_p10, %p8721_p1 }
  0x77   : > { %p8724_p7 = pnand %p8723_p2, %p8717_p4 }
  0x79   : > { %8727 = shalt.err (!%p8724_p7)
}
  0x7a   : > { %8260 = dma.hbm_to_vmem [thread:$0]  (!%p9010_p0), %s9069_s23, 256, %s9036_s24, %s9023_s29, %s10703_s6, %s10703_s6, %s10702_s1  }
  0x7b   : > { %517 = sbr.rel (%p8963_p12) target bundleno = 1138 (0x472), region = 68 }
  0x80   : > { %s9097_s28 = sand.u32 1, %s8804_s22  }
  0x81   : > { %s6614_s20 = sshll.u32 %s9097_s28, 8  ;;  %s520_s14 = scalar_lea.sflag [#allocation7], %s9097_s28 }
  0x82   : > { %s9103_s10 = scalar_lea.vmem [#allocation6], %s6614_s20 }
  0x83   : > { %8779 = dma.done.wait (%p8949_p6), %s520_s14, 4096  }
  0x84   : > { %8781 = vsyncadd (%p8949_p6), %s520_s14, 4294963200  ;;  %s528_s23 = sand.u32 1, %s8933_s27   ;;  %s6615_s15 = sshll.u32 %s9097_s28, 4 }
  0x85   : > { %s529_s24 = scalar_lea.sflag [#allocation10], %s528_s23  ;;  %s532_s29 = scalar_lea.vmem [#allocation9], %s6615_s15 }
  0x86   : > { %8783 = dma.done.wait (%p8949_p6), %s529_s24, 512  }
  0x87   : > { %8785 = vsyncadd (%p8949_p6), %s529_s24, 4294966784  ;;  %s9115_s17 = scalar_lea.vmem [#allocation11], %s6615_s15  ;;  %p10705_p12 = scmp.eq.s32.totalorder %s8933_s27, 0 }
  0x89   : > { %8787 = dma.done.wait (%p10705_p12), [#allocation13], 10240   ;;  %p10706_p0 = pmov %p10705_p12 }
  0x8b   : > { %8789 = vsyncadd (%p10706_p0), [#allocation13], 4294957056  ;;  %p10707_p11 = pmov %p10706_p0 }
  0x8c   : > { %p10708_p9 = pmov %p10706_p0 }
  0x8d   : > { %8791 = dma.done.wait (%p10707_p11), [#allocation16], 1024  }
  0x8e   : > { %8793 = vsyncadd (%p10708_p9), [#allocation16], 4294966272  ;;  %v8332_v0 = vld [vmem:[#allocation12 + $0x38] sm:$0xff]   ;;  %v8333_v1 = vld [vmem:[#allocation12 + $0x30] sm:$0xff]   ;;  %s10787_s3 = sld [smem:[#allocation46_spill]]  ;;  %s8834_s1 = smov [#allocation17]  }
  0x8f   : > { %7673 = vmatprep.subr.bf16.mxu0 %v8332_v0  ;;  %v8334_v2 = vld [vmem:[#allocation12 + $0x28] sm:$0xff]   ;;  %v8335_v3 = vld [vmem:[#allocation12 + $0x20] sm:$0xff]   ;;  %v8336_v7 = vld [vmem:[#allocation12 + $0x18] sm:$0xff]   ;;  %s10800_s23 = sld [smem:[#allocation47_spill]]  ;;  %s8732_s6 = sshll.u32 %s8834_s1, 4  ;;  %s8733_s6 = int_to_ptr.vmem [resolvable:$false] %s8732_s6 }
  0x90   : > { %7674 = vmatpush3.bf16.msra.mxu0 %v8332_v0  ;;  %v615_v4 = vld [vmem:[%s532_s29] sm:$0xff]  ;;  %v616_v5 = vld [vmem:[%s532_s29 + $0x8] sm:$0xff]  ;;  %s10801_s29 = sld [smem:[#allocation48_spill]]  ;;  %s8734_s11 = scalar_lea.vmem %s8733_s6, 8192 }
  0x91   : > { %7675 = vmatprep.subr.bf16.mxu0 %v8333_v1  ;;  %v651_v6 = vpack.c.bf16 %v616_v5, %v615_v4  ;;  %v8337_v8 = vld [vmem:[#allocation12 + $0x10] sm:$0xff]   ;;  %v8338_v9 = vld [vmem:[#allocation12 + $0x8] sm:$0xff]   ;;  %v8340_v10 = vld [vmem:[#allocation14 + $0x78] sm:$0xff]   ;;  %s10804_s8 = sld [smem:[#allocation49_spill]] }
  0x92   : > { %v8341_v11 = vld [vmem:[#allocation14 + $0x70] sm:$0xff]   ;;  %v8339_v12 = vld [vmem:[#allocation12] sm:$0xff]   ;;  %8205 = vmatprep.subr.bf16.mxu1 %v8340_v10  ;;  %v618_v14 = vld [vmem:[%s9103_s10 + $0x8] sm:$0xff] }
  0x93   : > { %7689 = vmatprep.mubr.bf16.mxu0 %v651_v6  ;;  %8213 = vmatpush3.bf16.msra.mxu1 %v8340_v10  ;;  %v617_v13 = vld [vmem:[%s9103_s10] sm:$0xff]  ;;  %v619_v15 = vld [vmem:[%s9103_s10 + $0x10] sm:$0xff]  ;;  %v620_v16 = vld [vmem:[%s9103_s10 + $0x18] sm:$0xff] }
  0x94   : > { %7676 = vmatpush3.bf16.msra.mxu0 %v8333_v1  ;;  %8206 = vmatprep.subr.bf16.mxu1 %v8341_v11  ;;  %v652_v17 = vpack.c.bf16 %v618_v14, %v617_v13  ;;  %v653_v18 = vpack.c.bf16 %v620_v16, %v619_v15  ;;  %v621_v19 = vld [vmem:[%s9103_s10 + $0x20] sm:$0xff]  ;;  %v622_v20 = vld [vmem:[%s9103_s10 + $0x28] sm:$0xff]  ;;  %v623_v21 = vld [vmem:[%s9103_s10 + $0x30] sm:$0xff] }
  0x95   : > { %7677 = vmatprep.subr.bf16.mxu0 %v8334_v2  ;;  %v624_v22 = vld [vmem:[%s9103_s10 + $0x38] sm:$0xff]  ;;  %v654_v23 = vpack.c.bf16 %v622_v20, %v621_v19  ;;  %v625_v25 = vld [vmem:[%s9103_s10 + $0x40] sm:$0xff]  ;;  %v626_v26 = vld [vmem:[%s9103_s10 + $0x48] sm:$0xff] }
  0x96   : > { %v655_v24 = vpack.c.bf16 %v624_v22, %v623_v21  ;;  %v627_v27 = vld [vmem:[%s9103_s10 + $0x50] sm:$0xff]  ;;  %v628_v28 = vld [vmem:[%s9103_s10 + $0x58] sm:$0xff]  ;;  %v656_v29 = vpack.c.bf16 %v626_v26, %v625_v25  ;;  %v629_v31 = vld [vmem:[%s9103_s10 + $0x60] sm:$0xff] }
  0x97   : > { %8214 = vmatpush3.bf16.msra.mxu1 %v8341_v11  ;;  %v657_v30 = vpack.c.bf16 %v628_v28, %v627_v27  ;;  %v630_v32 = vld [vmem:[%s9103_s10 + $0x68] sm:$0xff]  ;;  %v631_v33 = vld [vmem:[%s9103_s10 + $0x70] sm:$0xff]  ;;  %v632_v34 = vld [vmem:[%s9103_s10 + $0x78] sm:$0xff] }
  0x98   : > { %7678 = vmatpush3.bf16.msra.mxu0 %v8334_v2  ;;  %v658_v35 = vpack.c.bf16 %v630_v32, %v629_v31  ;;  %v659_v36 = vpack.c.bf16 %v632_v34, %v631_v33  ;;  %v633_v37 = vld [vmem:[%s9103_s10 + $0x80] sm:$0xff]  ;;  %v634_v38 = vld [vmem:[%s9103_s10 + $0x88] sm:$0xff]  ;;  %v635_v39 = vld [vmem:[%s9103_s10 + $0x90] sm:$0xff]  ;;  %v8832_v2 = vmov 0.0  }
  0x99   : > { %7679 = vmatprep.subr.bf16.mxu0 %v8335_v3  ;;  %v636_v40 = vld [vmem:[%s9103_s10 + $0x98] sm:$0xff]  ;;  %v660_v41 = vpack.c.bf16 %v634_v38, %v633_v37  ;;  %v637_v43 = vld [vmem:[%s9103_s10 + $0xa0] sm:$0xff]  ;;  %v638_v44 = vld [vmem:[%s9103_s10 + $0xa8] sm:$0xff]  ;;  %1252 = vst [vmem:[#allocation2 + $0x8] sm:$0xff] %v8832_v2 }
  0x9a   : > { %v661_v42 = vpack.c.bf16 %v636_v40, %v635_v39  ;;  %v639_v45 = vld [vmem:[%s9103_s10 + $0xb0] sm:$0xff]  ;;  %v640_v46 = vld [vmem:[%s9103_s10 + $0xb8] sm:$0xff]  ;;  %v662_v47 = vpack.c.bf16 %v638_v44, %v637_v43  ;;  %v641_v49 = vld [vmem:[%s9103_s10 + $0xc0] sm:$0xff]  ;;  %1253 = vst [vmem:[#allocation2 + $0x10] sm:$0xff] %v8832_v2 }
  0x9b   : > { %v663_v48 = vpack.c.bf16 %v640_v46, %v639_v45  ;;  %v642_v50 = vld [vmem:[%s9103_s10 + $0xc8] sm:$0xff]  ;;  %v643_v51 = vld [vmem:[%s9103_s10 + $0xd0] sm:$0xff]  ;;  %v644_v52 = vld [vmem:[%s9103_s10 + $0xd8] sm:$0xff]  ;;  %1256 = vst [vmem:[#allocation2 + $0x118] sm:$0xff] %v8832_v2 }
  0x9c   : > { %7680 = vmatpush3.bf16.msra.mxu0 %v8335_v3  ;;  %v664_v53 = vpack.c.bf16 %v642_v50, %v641_v49  ;;  %v665_v54 = vpack.c.bf16 %v644_v52, %v643_v51  ;;  %v645_v55 = vld [vmem:[%s9103_s10 + $0xe0] sm:$0xff]  ;;  %v646_v56 = vld [vmem:[%s9103_s10 + $0xe8] sm:$0xff]  ;;  %v647_v57 = vld [vmem:[%s9103_s10 + $0xf0] sm:$0xff]  ;;  %1257 = vst [vmem:[#allocation2 + $0x120] sm:$0xff] %v8832_v2 }
  0x9d   : > { %7681 = vmatprep.subr.bf16.mxu0 %v8336_v7  ;;  %v648_v58 = vld [vmem:[%s9103_s10 + $0xf8] sm:$0xff]  ;;  %v666_v59 = vpack.c.bf16 %v646_v56, %v645_v55  ;;  %v649_v61 = vld [vmem:[%s9115_s17] sm:$0xff]  ;;  %v8342_v0 = vld [vmem:[#allocation14 + $0x68] sm:$0xff]  }
  0x9e   : > { %v667_v60 = vpack.c.bf16 %v648_v58, %v647_v57  ;;  %v650_v62 = vld [vmem:[%s9115_s17 + $0x8] sm:$0xff]  ;;  %8207 = vmatprep.subr.bf16.mxu1 %v8342_v0  ;;  %v8343_v1 = vld [vmem:[#allocation14 + $0x60] sm:$0xff]   ;;  %v8345_v4 = vld [vmem:[#allocation14 + $0x50] sm:$0xff]   ;;  %s10468_s17 = scalar_lea.vmem [#allocation17], %s6614_s20  ;;  %s10802_s20 = sld [smem:[#allocation25_spill]] }
  0x9f   : > { %v668_v63 = vpack.c.bf16 %v650_v62, %v649_v61  ;;  %8215 = vmatpush3.bf16.msra.mxu1 %v8342_v0  ;;  %v8344_v3 = vld [vmem:[#allocation14 + $0x58] sm:$0xff]   ;;  %v8346_v5 = vld [vmem:[#allocation14 + $0x48] sm:$0xff]   ;;  %v8347_v6 = vld [vmem:[#allocation14 + $0x40] sm:$0xff]   ;;  %s6432_s18 = sshll.u32 %s10468_s17, 4  ;;  %s10592_s18 = int_to_ptr.vmem [resolvable:$true] %s6432_s18 }
  0xa0   : > { %7682 = vmatpush3.bf16.msra.mxu0 %v8336_v7  ;;  %8208 = vmatprep.subr.bf16.mxu1 %v8343_v1  ;;  %v9159_v7 = vld [vmem:[#allocation14 + $0xb8] sm:$0xff]   ;;  %v9172_v22 = vld [vmem:[%s10646_s4] ss:$0 sm:$0xff]  ;;  %s8728_s19 = scalar_lea.vmem %s10592_s18, 4096  ;;  %p8735_p5 = scmp.lt.s32.totalorder %s10592_s18, %s8733_s6 }
  0xa1   : > { %7683 = vmatprep.subr.bf16.mxu0 %v8337_v8  ;;  %v1730_v14 = vld [vmem:[#allocation2 + $0xf] sm:$0xff]  ;;  %p8729_p6 = scmp.ne.s32.totalorder %s10592_s18, %s8728_s19  ;;  %p8736_p4 = scmp.lt.s32.totalorder %s8734_s11, %s8728_s19 }
  0xa3   : > { %8216 = vmatpush3.bf16.msra.mxu1 %v8343_v1  ;;  %v2123_v19 = vld [vmem:[#allocation2 + $0x119] sm:$0xff]  ;;  %p8730_p13 = pnand %p8729_p6, %p8953_p8  ;;  %p8737_p1 = por %p8736_p4, %p8735_p5 }
  0xa4   : > { %7684 = vmatpush3.bf16.msra.mxu0 %v8337_v8  ;;  %8209 = vmatprep.subr.bf16.mxu1 %v8344_v3  ;;  %v9162_v8 = vld [vmem:[#allocation14 + $0x38] sm:$0xff]   ;;  %s7084_s30 = sshll.u32 %s10802_s20, 12 }
  0xa5   : > { %7685 = vmatprep.subr.bf16.mxu0 %v8338_v9  ;;  %s10590_s21 = scalar_lea.hbm %s10804_s8, %s7084_s30  ;;  %p8731_p3 = pneg %p8730_p13 }
  0xa7   : > { %8217 = vmatpush3.bf16.msra.mxu1 %v8344_v3  ;;  %p8738_p10 = pnand %p8737_p1, %p8731_p3 }
  0xa8   : > { %7686 = vmatpush3.bf16.msra.mxu0 %v8338_v9  ;;  %8210 = vmatprep.subr.bf16.mxu1 %v8345_v4  ;;  %v1260_v9 = vlaneseq }
  0xa9   : > { %7687 = vmatprep.subr.bf16.mxu0 %v8339_v12 }
  0xab   : > { %8218 = vmatpush3.bf16.msra.mxu1 %v8345_v4 }
  0xac   : > { %7688 = vmatpush3.bf16.msra.mxu0 %v8339_v12  ;;  %8211 = vmatprep.subr.bf16.mxu1 %v8346_v5  ;;  %v1729_v12 = vld [vmem:[#allocation2 + $0x7] sm:$0xff] }
  0xad   : > { %7725 = vmatprep.subr.bf16.mxu0 %v8340_v10 }
  0xaf   : > { %7690 = vmatmul.mubr.bf16.vlgmr.msra.gmra.mxu0 %v652_v17  ;;  %8219 = vmatpush3.bf16.msra.mxu1 %v8346_v5  ;;  %v2124_v17 = vld [vmem:[#allocation2 + $0x121] sm:$0xff] }
  0xb0   : > { %7693 = vmatprep.mubr.bf16.mxu0 %v653_v18  ;;  %7726 = vmatpush3.bf16.msra.mxu0 %v8340_v10  ;;  %v9165_v10 = vshrl.u32 %v1260_v9, 7 }
  0xb1   : > { %7727 = vmatprep.subr.bf16.mxu0 %v8341_v11  ;;  %8212 = vmatprep.subr.bf16.mxu1 %v8347_v6 }
  0xb2   : > { %v1296_v13 = vadd.s32 280, %v9165_v10  ;;  %v1264_v39 = vadd.s32 24, %v9165_v10  ;;  %v1265_v40 = vadd.s32 32, %v9165_v10  ;;  %v1267_v49 = vadd.s32 48, %v9165_v10 }
  0xb3   : > { %8220 = vmatpush3.bf16.msra.mxu1 %v8347_v6  ;;  %v1268_v2 = vadd.s32 56, %v9165_v10 }
  0xb4   : > { %7728 = vmatpush3.bf16.msra.mxu0 %v8341_v11  ;;  %7773 = vmatprep.subr.bf16.mxu1 %v9162_v8  ;;  %v1301_v11 = vand.u32 15, %v9165_v10  ;;  %v1546_v16 = vand.u32 15, %v1296_v13  ;;  %v1329_v55 = vand.u32 15, %v1265_v40 }
  0xb5   : > { %7729 = vmatprep.subr.bf16.mxu0 %v8342_v0 }
  0xb6   : > { %vm1765_vm0 = vcmp.eq.s32.totalorder %v1301_v11, 0  ;;  %vm2160_vm1 = vcmp.eq.s32.totalorder %v1546_v16, 15  ;;  %vm9218_vm5 = vcmp.eq.s32.totalorder %v1329_v55, 0 }
  0xb7   : > { %7694 = vmatmul.mubr.bf16.gmra.mxu0 %v654_v23  ;;  %v1873_v15 = vsel %vm1765_vm0, 0.0, %v1729_v12  ;;  %v2268_v20 = vsel %vm2160_vm1, 0.0, %v2124_v17  ;;  %v8833_v12 = vmov 0  }
  0xb8   : > { %7697 = vmatprep.mubr.bf16.mxu0 %v655_v24  ;;  %7730 = vmatpush3.bf16.msra.mxu0 %v8342_v0  ;;  %v7178_v18 = vpack.c.bf16 %v1730_v14, %v1873_v15  ;;  %v7353_v21 = vpack.c.bf16 %v2268_v20, %v2123_v19  ;;  %v9177_v24 = vld [vmem:[%s10647_s5] ss:$0 sm:$0xff]  ;;  %v1269_v15 = vadd.s32 64, %v9165_v10 }
  0xb9   : > { %7731 = vmatprep.subr.bf16.mxu0 %v8343_v1 }
  0xba   : > { %7179 = vst [vmem:[#allocation4] sm:$0xff] %v7178_v18   ;;  %7406 = vst [vmem:[#allocation5 + $0x88] sm:$0xff] %v7353_v21  }
  0xbc   : > { %7732 = vmatpush3.bf16.msra.mxu0 %v8343_v1  ;;  %v1343_v1 = vand.u32 15, %v1267_v49  ;;  %v9252_v49 = vld [vmem:[#allocation14 + $0xb0] sm:$0xff]  }
  0xbd   : > { %7733 = vmatprep.subr.bf16.mxu0 %v8344_v3 }
  0xbe   : > { %vm9226_vm6 = vcmp.eq.s32.totalorder %v1343_v1, 0 }
  0xbf   : > { %7698 = vmatmul.mubr.bf16.gmra.mxu0 %v656_v29 }
  0xc0   : > { %7701 = vmatprep.mubr.bf16.mxu0 %v657_v30  ;;  %7734 = vmatpush3.bf16.msra.mxu0 %v8344_v3  ;;  %v1262_v30 = vadd.s32 8, %v9165_v10  ;;  %v2089_v3 = vld [vmem:[#allocation2 + $0x9] sm:$0xff] }
  0xc1   : > { %7735 = vmatprep.subr.bf16.mxu0 %v8345_v4 }
  0xc4   : > { %7736 = vmatpush3.bf16.msra.mxu0 %v8345_v4 }
  0xc5   : > { %7737 = vmatprep.subr.bf16.mxu0 %v8346_v5 }
  0xc7   : > { %7702 = vmatmul.mubr.bf16.gmra.mxu0 %v658_v35  ;;  %v1263_v35 = vadd.s32 16, %v9165_v10 }
  0xc8   : > { %7705 = vmatprep.mubr.bf16.mxu0 %v659_v36  ;;  %7738 = vmatpush3.bf16.msra.mxu0 %v8346_v5 }
  0xc9   : > { %7739 = vmatprep.subr.bf16.mxu0 %v8347_v6  ;;  %v1315_v46 = vand.u32 15, %v1263_v35 }
  0xcb   : > { %vm9202_vm3 = vcmp.eq.s32.totalorder %v1315_v46, 0 }
  0xcc   : > { %7740 = vmatpush3.bf16.msra.mxu0 %v8347_v6 }
  0xcd   : > { %7821 = vmatprep.subr.bf16.mxu0 %v9159_v7 }
  0xcf   : > { %7706 = vmatmul.mubr.bf16.gmra.mxu0 %v660_v41  ;;  %v1308_v41 = vand.u32 15, %v1262_v30  ;;  %v1271_v30 = vadd.s32 80, %v9165_v10 }
  0xd0   : > { %7709 = vmatprep.mubr.bf16.mxu0 %v661_v42 }
  0xd1   : > { %vm9196_vm2 = vcmp.eq.s32.totalorder %v1308_v41, 15  ;;  %v1371_v46 = vand.u32 15, %v1271_v30 }
  0xd3   : > { %vm9272_vm10 = vcmp.eq.s32.totalorder %v1371_v46, 0 }
  0xd7   : > { %7710 = vmatmul.mubr.bf16.gmra.mxu0 %v662_v47 }
  0xd8   : > { %7713 = vmatprep.mubr.bf16.mxu0 %v663_v48  ;;  %v1266_v48 = vadd.s32 40, %v9165_v10 }
  0xda   : > { %v1336_v11 = vand.u32 15, %v1266_v48  ;;  %v9250_v48 = vadd.s32 112, %v9165_v10 }
  0xdc   : > { %vm9232_vm7 = vcmp.eq.s32.totalorder %v1336_v11, 15  ;;  %v1399_v13 = vand.u32 15, %v9250_v48 }
  0xde   : > { %vm9329_vm14 = vcmp.eq.s32.totalorder %v1399_v13, 0 }
  0xdf   : > { %7714 = vmatmul.mubr.bf16.gmra.mxu0 %v664_v53 }
  0xe0   : > { %7717 = vmatprep.mubr.bf16.mxu0 %v665_v54  ;;  %v1322_v54 = vand.u32 15, %v1264_v39  ;;  %v9239_v39 = vadd.s32 88, %v9165_v10 }
  0xe2   : > { %vm9211_vm4 = vcmp.eq.s32.totalorder %v1322_v54, 15 }
  0xe7   : > { %7718 = vmatmul.mubr.bf16.gmra.mxu0 %v666_v59 }
  0xe8   : > { %7721 = vmatprep.mubr.bf16.mxu0 %v667_v60 }
  0xef   : > { %7722 = vmatmul.mubr.bf16.gmra.mxu0 %v668_v63 }
 0x16f   : > { %v7691_v23 = vpop.f32.mrf.mxu0 }
 0x170   : > { %v919_v25 = vmul.f32 %v7691_v23, %v9172_v22 }
 0x171   : > { %v767_v26 = vpop.f32.mrf.mxu0 }
 0x172   : > { %v962_v27 = vadd.f32 %v9177_v24, %v919_v25  ;;  %v917_v28 = vmul.f32 %v9172_v22, %v767_v26 }
 0x173   : > { %v7692_v29 = vpop.f32.mrf.mxu0 }
 0x174   : > { %v998_v31 = vmax.f32 %v962_v27, 0.0  ;;  %v920_v32 = vmul.f32 %v7692_v29, %v9172_v22  ;;  %v960_v33 = vadd.f32 %v9177_v24, %v917_v28  ;;  %v1350_v28 = vand.u32 15, %v1268_v2 }
 0x175   : > { %v770_v34 = vpop.f32.mrf.mxu0  ;;  %v1270_v29 = vadd.s32 72, %v9165_v10 }
 0x176   : > { %1034 = vst [vmem:[#allocation2 + $0x18] sm:$0xff] %v998_v31  ;;  %v963_v36 = vadd.f32 %v9177_v24, %v920_v32  ;;  %v918_v37 = vmul.f32 %v9172_v22, %v770_v34  ;;  %v996_v45 = vmax.f32 %v960_v33, 0.0  ;;  %vm9256_vm8 = vcmp.eq.s32.totalorder %v1350_v28, 15  ;;  %v9314_v34 = vld [vmem:[#allocation14 + $0xa0] sm:$0xff]  }
 0x177   : > { %v7695_v38 = vpop.f32.mrf.mxu0 }
 0x178   : > { %v999_v42 = vmax.f32 %v963_v36, 0.0  ;;  %v961_v43 = vadd.f32 %v9177_v24, %v918_v37  ;;  %v923_v44 = vmul.f32 %v7695_v38, %v9172_v22  ;;  %v1357_v37 = vand.u32 15, %v1269_v15 }
 0x179   : > { %v783_v47 = vpop.f32.mrf.mxu0 }
 0x17a   : > { %1035 = vst [vmem:[#allocation2 + $0x20] sm:$0xff] %v999_v42  ;;  %v7093_v50 = vpack.c.bf16 %v999_v42, %v998_v31  ;;  %v997_v51 = vmax.f32 %v961_v43, 0.0  ;;  %v966_v52 = vadd.f32 %v9177_v24, %v923_v44  ;;  %v921_v53 = vmul.f32 %v9172_v22, %v783_v47 }
 0x17b   : > { %v7696_v56 = vpop.f32.mrf.mxu0  ;;  %v9243_v43 = vadd.s32 96, %v9165_v10  ;;  %v9247_v47 = vadd.s32 104, %v9165_v10  ;;  %vm9266_vm9 = vcmp.eq.s32.totalorder %v1357_v37, 0 }
 0x17c   : > { %7356 = vst [vmem:[#allocation3 + $0x8] sm:$0xff] %v7093_v50   ;;  %v7088_v58 = vpack.c.bf16 %v997_v51, %v996_v45  ;;  %v1002_v59 = vmax.f32 %v966_v52, 0.0  ;;  %v964_v60 = vadd.f32 %v9177_v24, %v921_v53  ;;  %v924_v61 = vmul.f32 %v7696_v56, %v9172_v22 }
 0x17d   : > { %v2090_v63 = vld [vmem:[#allocation2 + $0x11] sm:$0xff]  ;;  %v786_v0 = vpop.f32.mrf.mxu0  ;;  %v1364_v52 = vand.u32 15, %v1270_v29  ;;  %v1392_v11 = vand.u32 15, %v9247_v47  ;;  %v9357_v47 = vadd.s32 168, %v9165_v10 }
 0x17e   : > { %7089 = vst [vmem:[#allocation3] sm:$0xff] %v7088_v58   ;;  %v1731_v4 = vld [vmem:[#allocation2 + $0x17] sm:$0xff]  ;;  %1038 = vst [vmem:[#allocation2 + $0x38] sm:$0xff] %v1002_v59  ;;  %v1000_v5 = vmax.f32 %v964_v60, 0.0  ;;  %v967_v6 = vadd.f32 %v9177_v24, %v924_v61  ;;  %v922_v9 = vmul.f32 %v9172_v22, %v786_v0  ;;  %v2234_v16 = vsel %vm9196_vm2, 0.0, %v2090_v63 }
 0x17f   : > { %1254 = vst [vmem:[#allocation3] sm:$0xf] %v8833_v12  ;;  %1255 = vst [vmem:[#allocation3 + $0x4] sm:$0xf] %v8833_v12  ;;  %v7699_v14 = vpop.f32.mrf.mxu0  ;;  %v7268_v21 = vpack.c.bf16 %v2234_v16, %v2089_v3  ;;  %v1875_v25 = vsel %vm9202_vm3, 0.0, %v1731_v4  ;;  %v1378_v58 = vand.u32 15, %v9239_v39 }
 0x180   : > { %1036 = vst [vmem:[#allocation2 + $0x28] sm:$0xff] %v1000_v5  ;;  %v1003_v18 = vmax.f32 %v967_v6, 0.0  ;;  %v965_v19 = vadd.f32 %v9177_v24, %v922_v9  ;;  %v927_v20 = vmul.f32 %v7699_v14, %v9172_v22  ;;  %v9262_v60 = vadd.s32 120, %v9165_v10 }
 0x181   : > { %v1732_v23 = vld [vmem:[#allocation2 + $0x1f] sm:$0xff]  ;;  %v799_v27 = vpop.f32.mrf.mxu0  ;;  %7269 = vst [vmem:[#allocation5] sm:$0xff] %v7268_v21   ;;  %v1385_v3 = vand.u32 15, %v9243_v43  ;;  %vm9279_vm11 = vcmp.eq.s32.totalorder %v1364_v52, 15  ;;  %v9288_v21 = vld [vmem:[#allocation14 + $0xa8] sm:$0xff]   ;;  %vm9306_vm12 = vcmp.eq.s32.totalorder %v1378_v58, 15 }
 0x182   : > { %v7183_v31 = vpack.c.bf16 %v1732_v23, %v1875_v25  ;;  %1039 = vst [vmem:[#allocation2 + $0x40] sm:$0xff] %v1003_v18  ;;  %v7103_v32 = vpack.c.bf16 %v1003_v18, %v1002_v59  ;;  %v1001_v33 = vmax.f32 %v965_v19, 0.0  ;;  %v970_v35 = vadd.f32 %v9177_v24, %v927_v20  ;;  %v2091_v61 = vld [vmem:[#allocation2 + $0x19] sm:$0xff] }
 0x183   : > { %v925_v36 = vmul.f32 %v9172_v22, %v799_v27  ;;  %v7700_v38 = vpop.f32.mrf.mxu0  ;;  %v8349_v59 = vld [vmem:[#allocation3 + $0x8] sm:$0xff]   ;;  %v9286_v20 = vadd.s32 128, %v9165_v10  ;;  %vm9318_vm13 = vcmp.eq.s32.totalorder %v1385_v3, 0  ;;  %v9325_v58 = vadd.s32 136, %v9165_v10 }
 0x184   : > { %7373 = vst [vmem:[#allocation4 + $0x8] sm:$0xff] %v7183_v31   ;;  %7358 = vst [vmem:[#allocation3 + $0x18] sm:$0xff] %v7103_v32   ;;  %v7098_v40 = vpack.c.bf16 %v1001_v33, %v1000_v5  ;;  %v1006_v41 = vmax.f32 %v970_v35, 0.0  ;;  %v928_v42 = vmul.f32 %v7700_v38, %v9172_v22  ;;  %v1406_v31 = vand.u32 15, %v9262_v60  ;;  %v9340_v3 = vld [vmem:[#allocation14 + $0x98] sm:$0xff]  }
 0x185   : > { %1037 = vst [vmem:[#allocation2 + $0x30] sm:$0xff] %v1001_v33  ;;  %v968_v44 = vadd.f32 %v9177_v24, %v925_v36  ;;  %v802_v45 = vpop.f32.mrf.mxu0  ;;  %vm9344_vm15 = vcmp.eq.s32.totalorder %v1392_v11, 15  ;;  %v9360_v11 = vadd.s32 176, %v9165_v10  ;;  %v1420_v60 = vand.u32 15, %v9325_v58 }
 0x186   : > { %7357 = vst [vmem:[#allocation3 + $0x10] sm:$0xff] %v7098_v40   ;;  %1042 = vst [vmem:[#allocation2 + $0x58] sm:$0xff] %v1006_v41  ;;  %v971_v50 = vadd.f32 %v9177_v24, %v928_v42  ;;  %v926_v51 = vmul.f32 %v9172_v22, %v802_v45  ;;  %v8348_v53 = vld [vmem:[#allocation3] sm:$0xff]   ;;  %vm9372_vm0 = vcmp.eq.s32.totalorder %v1406_v31, 15 }
 0x187   : > { %v2092_v54 = vld [vmem:[#allocation2 + $0x21] sm:$0xff]  ;;  %v1004_v55 = vmax.f32 %v968_v44, 0.0  ;;  %v7703_v57 = vpop.f32.mrf.mxu0  ;;  %7741 = vmatprep.mubr.bf16.mxu0 %v8348_v53  ;;  %vm9410_vm3 = vcmp.eq.s32.totalorder %v1420_v60, 15 }
 0x188   : > { %v1733_v62 = vld [vmem:[#allocation2 + $0x27] sm:$0xff]  ;;  %v2236_v63 = vsel %vm9211_vm4, 0.0, %v2092_v54  ;;  %v1007_v1 = vmax.f32 %v971_v50, 0.0  ;;  %v969_v2 = vadd.f32 %v9177_v24, %v926_v51  ;;  %v931_v6 = vmul.f32 %v7703_v57, %v9172_v22  ;;  %7742 = vmatmul.mubr.bf16.vlgmr.msra.gmra.mxu0 %v8349_v59 }
 0x189   : > { %v7273_v4 = vpack.c.bf16 %v2236_v63, %v2091_v61  ;;  %1040 = vst [vmem:[#allocation2 + $0x48] sm:$0xff] %v1004_v55  ;;  %v815_v9 = vpop.f32.mrf.mxu0  ;;  %v1736_v14 = vld [vmem:[#allocation2 + $0x3f] sm:$0xff]  ;;  %7822 = vmatpush3.bf16.msra.mxu0 %v9159_v7  ;;  %v1877_v23 = vsel %vm9218_vm5, 0.0, %v1733_v62  ;;  %v9296_v7 = vadd.s32 144, %v9165_v10  ;;  %v1413_v50 = vand.u32 15, %v9286_v20 }
 0x18a   : > { %1043 = vst [vmem:[#allocation2 + $0x60] sm:$0xff] %v1007_v1  ;;  %v7113_v15 = vpack.c.bf16 %v1007_v1, %v1006_v41  ;;  %v1005_v16 = vmax.f32 %v969_v2, 0.0  ;;  %v929_v19 = vmul.f32 %v9172_v22, %v815_v9  ;;  %v974_v29 = vadd.f32 %v9177_v24, %v931_v6  ;;  %7823 = vmatprep.subr.bf16.mxu0 %v9252_v49 }
 0x18b   : > { %7390 = vst [vmem:[#allocation5 + $0x8] sm:$0xff] %v7273_v4   ;;  %v7704_v30 = vpop.f32.mrf.mxu0  ;;  %v8353_v51 = vld [vmem:[#allocation3 + $0x18] sm:$0xff]   ;;  %v1427_v63 = vand.u32 15, %v9296_v7  ;;  %v9335_v1 = vadd.s32 152, %v9165_v10  ;;  %v9338_v2 = vadd.s32 160, %v9165_v10  ;;  %v2095_v4 = vld [vmem:[#allocation2 + $0x39] sm:$0xff] }
 0x18c   : > { %v1734_v25 = vld [vmem:[#allocation2 + $0x2f] sm:$0xff]  ;;  %v1735_v27 = vld [vmem:[#allocation2 + $0x37] sm:$0xff]  ;;  %7360 = vst [vmem:[#allocation3 + $0x28] sm:$0xff] %v7113_v15   ;;  %1041 = vst [vmem:[#allocation2 + $0x50] sm:$0xff] %v1005_v16  ;;  %v7108_v17 = vpack.c.bf16 %v1005_v16, %v1004_v55  ;;  %v9301_v35 = vadd.f32 %v9177_v24, %v929_v19  ;;  %v932_v36 = vmul.f32 %v7704_v30, %v9172_v22  ;;  %v1010_v38 = vmax.f32 %v974_v29, 0.0 }
 0x18d   : > { %v2093_v28 = vld [vmem:[#allocation2 + $0x29] sm:$0xff]  ;;  %v1879_v32 = vsel %vm9226_vm6, 0.0, %v1735_v27  ;;  %v2094_v33 = vld [vmem:[#allocation2 + $0x31] sm:$0xff]  ;;  %v818_v40 = vpop.f32.mrf.mxu0  ;;  %v7188_v26 = vpack.c.bf16 %v1734_v25, %v1877_v23  ;;  %7824 = vmatpush3.bf16.msra.mxu0 %v9252_v49  ;;  %v8352_v45 = vld [vmem:[#allocation3 + $0x10] sm:$0xff]   ;;  %vm9391_vm1 = vcmp.eq.s32.totalorder %v1413_v50, 0  ;;  %vm9400_vm2 = vcmp.eq.s32.totalorder %v1427_v63, 0 }
 0x18e   : > { %v2238_v37 = vsel %vm9232_vm7, 0.0, %v2094_v33  ;;  %v7193_v41 = vpack.c.bf16 %v1736_v14, %v1879_v32  ;;  %7359 = vst [vmem:[#allocation3 + $0x20] sm:$0xff] %v7108_v17   ;;  %v1008_v42 = vmax.f32 %v9301_v35, 0.0  ;;  %v975_v43 = vadd.f32 %v9177_v24, %v932_v36  ;;  %1046 = vst [vmem:[#allocation2 + $0x78] sm:$0xff] %v1010_v38  ;;  %7825 = vmatprep.subr.bf16.mxu0 %v9288_v21 }
 0x18f   : > { %v930_v44 = vmul.f32 %v9172_v22, %v818_v40  ;;  %v7278_v46 = vpack.c.bf16 %v2238_v37, %v2093_v28  ;;  %v7707_v48 = vpop.f32.mrf.mxu0  ;;  %7374 = vst [vmem:[#allocation4 + $0x10] sm:$0xff] %v7188_v26   ;;  %7745 = vmatprep.mubr.bf16.mxu0 %v8352_v45  ;;  %v9377_v37 = vld [vmem:[#allocation14 + $0x90] sm:$0xff]   ;;  %v1441_v45 = vand.u32 15, %v9338_v2  ;;  %v1455_v20 = vand.u32 15, %v9360_v11 }
 0x190   : > { %7375 = vst [vmem:[#allocation4 + $0x18] sm:$0xff] %v7193_v41   ;;  %v1737_v52 = vld [vmem:[#allocation2 + $0x47] sm:$0xff]  ;;  %1044 = vst [vmem:[#allocation2 + $0x68] sm:$0xff] %v1008_v42  ;;  %v1011_v49 = vmax.f32 %v975_v43, 0.0  ;;  %v935_v57 = vmul.f32 %v7707_v48, %v9172_v22  ;;  %7746 = vmatmul.mubr.bf16.gmra.mxu0 %v8353_v51  ;;  %v9406_v50 = vadd.s32 184, %v9165_v10 }
 0x191   : > { %v2096_v53 = vld [vmem:[#allocation2 + $0x41] sm:$0xff]  ;;  %v973_v55 = vadd.f32 %v9177_v24, %v930_v44  ;;  %7391 = vst [vmem:[#allocation5 + $0x10] sm:$0xff] %v7278_v46   ;;  %v831_v62 = vpop.f32.mrf.mxu0  ;;  %7826 = vmatpush3.bf16.msra.mxu0 %v9288_v21  ;;  %v1881_v15 = vsel %vm9266_vm9, 0.0, %v1737_v52  ;;  %v1434_v44 = vand.u32 15, %v9335_v1  ;;  %v2099_v48 = vld [vmem:[#allocation2 + $0x59] sm:$0xff]  ;;  %vm9457_vm5 = vcmp.eq.s32.totalorder %v1441_v45, 0 }
 0x192   : > { %v2240_v59 = vsel %vm9256_vm8, 0.0, %v2096_v53  ;;  %1047 = vst [vmem:[#allocation2 + $0x80] sm:$0xff] %v1011_v49  ;;  %v7123_v56 = vpack.c.bf16 %v1011_v49, %v1010_v38  ;;  %v9349_v13 = vadd.f32 %v9177_v24, %v935_v57  ;;  %v933_v14 = vmul.f32 %v9172_v22, %v831_v62  ;;  %7827 = vmatprep.subr.bf16.mxu0 %v9314_v34  ;;  %v1740_v28 = vld [vmem:[#allocation2 + $0x5f] sm:$0xff] }
 0x193   : > { %v1009_v6 = vmax.f32 %v973_v55, 0.0  ;;  %v1738_v16 = vld [vmem:[#allocation2 + $0x4f] sm:$0xff]  ;;  %v1739_v19 = vld [vmem:[#allocation2 + $0x57] sm:$0xff]  ;;  %v7708_v25 = vpop.f32.mrf.mxu0  ;;  %v7283_v27 = vpack.c.bf16 %v2240_v59, %v2095_v4  ;;  %v1448_v55 = vand.u32 15, %v9357_v47  ;;  %vm9439_vm4 = vcmp.eq.s32.totalorder %v1434_v44, 15 }
 0x194   : > { %v2097_v23 = vld [vmem:[#allocation2 + $0x49] sm:$0xff]  ;;  %v1883_v21 = vsel %vm9272_vm10, 0.0, %v1739_v19  ;;  %v2098_v29 = vld [vmem:[#allocation2 + $0x51] sm:$0xff]  ;;  %7362 = vst [vmem:[#allocation3 + $0x38] sm:$0xff] %v7123_v56   ;;  %v1014_v30 = vmax.f32 %v9349_v13, 0.0  ;;  %v9366_v32 = vadd.f32 %v9177_v24, %v933_v14  ;;  %v936_v5 = vmul.f32 %v7708_v25, %v9172_v22 }
 0x195   : > { %1045 = vst [vmem:[#allocation2 + $0x70] sm:$0xff] %v1009_v6  ;;  %v7118_v0 = vpack.c.bf16 %v1009_v6, %v1008_v42  ;;  %v2242_v33 = vsel %vm9279_vm11, 0.0, %v2098_v29  ;;  %v834_v35 = vpop.f32.mrf.mxu0  ;;  %v8356_v36 = vld [vmem:[#allocation3 + $0x20] sm:$0xff]   ;;  %7392 = vst [vmem:[#allocation5 + $0x18] sm:$0xff] %v7283_v27   ;;  %v7198_v38 = vpack.c.bf16 %v1738_v16, %v1881_v15  ;;  %v7203_v40 = vpack.c.bf16 %v1740_v28, %v1883_v21  ;;  %v8357_v46 = vld [vmem:[#allocation3 + $0x28] sm:$0xff]  }
 0x196   : > { %1050 = vst [vmem:[#allocation2 + $0x98] sm:$0xff] %v1014_v30  ;;  %v1012_v18 = vmax.f32 %v9366_v32, 0.0  ;;  %v934_v26 = vmul.f32 %v9172_v22, %v834_v35  ;;  %7828 = vmatpush3.bf16.msra.mxu0 %v9314_v34  ;;  %v7288_v31 = vpack.c.bf16 %v2242_v33, %v2097_v23  ;;  %v979_v42 = vadd.f32 %v9177_v24, %v936_v5  ;;  %v9408_v59 = vld [vmem:[#allocation14 + $0x88] sm:$0xff]   ;;  %v9444_v5 = vld [vmem:[#allocation14 + $0x80] sm:$0xff]   ;;  %v8368_v39 = vld [vmem:[#allocation5 + $0x8] sm:$0xff]  }
 0x197   : > { %7361 = vst [vmem:[#allocation3 + $0x30] sm:$0xff] %v7118_v0   ;;  %v2100_v41 = vld [vmem:[#allocation2 + $0x61] sm:$0xff]  ;;  %v7711_v43 = vpop.f32.mrf.mxu0  ;;  %7749 = vmatprep.mubr.bf16.mxu0 %v8356_v36  ;;  %7829 = vmatprep.subr.bf16.mxu0 %v9340_v3  ;;  %7376 = vst [vmem:[#allocation4 + $0x20] sm:$0xff] %v7198_v38   ;;  %v9420_v56 = vadd.s32 192, %v9165_v10  ;;  %v9426_v23 = vadd.s32 200, %v9165_v10  ;;  %v9429_v25 = vadd.s32 208, %v9165_v10 }
 0x198   : > { %7377 = vst [vmem:[#allocation4 + $0x28] sm:$0xff] %v7203_v40   ;;  %v1741_v51 = vld [vmem:[#allocation2 + $0x67] sm:$0xff]  ;;  %v2244_v34 = vsel %vm9306_vm12, 0.0, %v2100_v41  ;;  %1048 = vst [vmem:[#allocation2 + $0x88] sm:$0xff] %v1012_v18  ;;  %v977_v53 = vadd.f32 %v9177_v24, %v934_v26  ;;  %v939_v49 = vmul.f32 %v7711_v43, %v9172_v22  ;;  %v1015_v57 = vmax.f32 %v979_v42, 0.0  ;;  %7750 = vmatmul.mubr.bf16.gmra.mxu0 %v8357_v46  ;;  %v9495_v4 = vld [vmem:[#allocation14 + $0x130] sm:$0xff]  }
 0x199   : > { %7393 = vst [vmem:[#allocation5 + $0x20] sm:$0xff] %v7288_v31   ;;  %v847_v58 = vpop.f32.mrf.mxu0  ;;  %v7293_v62 = vpack.c.bf16 %v2244_v34, %v2099_v48  ;;  %v1885_v6 = vsel %vm9318_vm13, 0.0, %v1741_v51  ;;  %v2103_v38 = vld [vmem:[#allocation2 + $0x79] sm:$0xff]  ;;  %v1462_v42 = vand.u32 15, %v9406_v50  ;;  %v1469_v43 = vand.u32 15, %v9420_v56 }
 0x19a   : > { %v1013_v1 = vmax.f32 %v977_v53, 0.0  ;;  %v9415_v7 = vadd.f32 %v9177_v24, %v939_v49  ;;  %v937_v63 = vmul.f32 %v9172_v22, %v847_v58  ;;  %7830 = vmatpush3.bf16.msra.mxu0 %v9340_v3  ;;  %1051 = vst [vmem:[#allocation2 + $0xa0] sm:$0xff] %v1015_v57  ;;  %v7133_v16 = vpack.c.bf16 %v1015_v57, %v1014_v30  ;;  %v1744_v3 = vld [vmem:[#allocation2 + $0x7f] sm:$0xff] }
 0x19b   : > { %v7712_v19 = vpop.f32.mrf.mxu0  ;;  %7831 = vmatprep.subr.bf16.mxu0 %v9377_v37  ;;  %7394 = vst [vmem:[#allocation5 + $0x28] sm:$0xff] %v7293_v62   ;;  %v8361_v44 = vld [vmem:[#allocation3 + $0x38] sm:$0xff]   ;;  %v1476_v57 = vand.u32 15, %v9426_v23  ;;  %v1483_v45 = vand.u32 15, %v9429_v25  ;;  %vm9499_vm6 = vcmp.eq.s32.totalorder %v1455_v20, 0  ;;  %vm9505_vm7 = vcmp.eq.s32.totalorder %v1448_v55, 15 }
 0x19c   : > { %v1742_v13 = vld [vmem:[#allocation2 + $0x6f] sm:$0xff]  ;;  %v1743_v14 = vld [vmem:[#allocation2 + $0x77] sm:$0xff]  ;;  %1049 = vst [vmem:[#allocation2 + $0x90] sm:$0xff] %v1013_v1  ;;  %v7128_v28 = vpack.c.bf16 %v1013_v1, %v1012_v18  ;;  %v1018_v21 = vmax.f32 %v9415_v7, 0.0  ;;  %v9435_v29 = vadd.f32 %v9177_v24, %v937_v63  ;;  %7364 = vst [vmem:[#allocation3 + $0x48] sm:$0xff] %v7133_v16   ;;  %v940_v32 = vmul.f32 %v7712_v19, %v9172_v22 }
 0x19d   : > { %v2101_v15 = vld [vmem:[#allocation2 + $0x69] sm:$0xff]  ;;  %v1887_v54 = vsel %vm9329_vm14, 0.0, %v1743_v14  ;;  %v2102_v27 = vld [vmem:[#allocation2 + $0x71] sm:$0xff]  ;;  %v850_v61 = vpop.f32.mrf.mxu0  ;;  %v7208_v35 = vpack.c.bf16 %v1742_v13, %v1885_v6  ;;  %v9476_v16 = vadd.s32 216, %v9165_v10  ;;  %vm9515_vm8 = vcmp.eq.s32.totalorder %v1462_v42, 15 }
 0x19e   : > { %v2246_v0 = vsel %vm9344_vm15, 0.0, %v2102_v27  ;;  %v8360_v33 = vld [vmem:[#allocation3 + $0x30] sm:$0xff]   ;;  %v7213_v36 = vpack.c.bf16 %v1744_v3, %v1887_v54  ;;  %7363 = vst [vmem:[#allocation3 + $0x40] sm:$0xff] %v7128_v28   ;;  %1054 = vst [vmem:[#allocation2 + $0xb8] sm:$0xff] %v1018_v21  ;;  %v1016_v40 = vmax.f32 %v9435_v29, 0.0  ;;  %v938_v9 = vmul.f32 %v9172_v22, %v850_v61  ;;  %7832 = vmatpush3.bf16.msra.mxu0 %v9377_v37  ;;  %v8363_v18 = vld [vmem:[#allocation5] sm:$0xff]  }
 0x19f   : > { %v7298_v26 = vpack.c.bf16 %v2246_v0, %v2101_v15  ;;  %v2104_v60 = vld [vmem:[#allocation2 + $0x81] sm:$0xff]  ;;  %v983_v31 = vadd.f32 %v9177_v24, %v940_v32  ;;  %v7715_v41 = vpop.f32.mrf.mxu0  ;;  %7753 = vmatprep.mubr.bf16.mxu0 %v8360_v33  ;;  %7833 = vmatprep.subr.bf16.mxu0 %v9408_v59  ;;  %7378 = vst [vmem:[#allocation4 + $0x30] sm:$0xff] %v7208_v35   ;;  %v9470_v1 = vld [vmem:[#allocation14 + $0x138] sm:$0xff]   ;;  %v9487_v28 = vld [vmem:[#allocation14 + $0x30] sm:$0xff]   ;;  %vm9523_vm9 = vcmp.eq.s32.totalorder %v1469_v43, 0  ;;  %vm9527_vm10 = vcmp.eq.s32.totalorder %v1483_v45, 0 }
 0x1a0   : > { %7379 = vst [vmem:[#allocation4 + $0x38] sm:$0xff] %v7213_v36   ;;  %v1745_v46 = vld [vmem:[#allocation2 + $0x87] sm:$0xff]  ;;  %v2248_v37 = vsel %vm9372_vm0, 0.0, %v2104_v60  ;;  %1052 = vst [vmem:[#allocation2 + $0xa8] sm:$0xff] %v1016_v40  ;;  %v981_v51 = vadd.f32 %v9177_v24, %v938_v9  ;;  %v943_v34 = vmul.f32 %v7715_v41, %v9172_v22  ;;  %7754 = vmatmul.mubr.bf16.gmra.mxu0 %v8361_v44  ;;  %v1490_v42 = vand.u32 15, %v9476_v16 }
 0x1a1   : > { %7395 = vst [vmem:[#allocation5 + $0x30] sm:$0xff] %v7298_v26   ;;  %v1019_v53 = vmax.f32 %v983_v31, 0.0  ;;  %v863_v49 = vpop.f32.mrf.mxu0  ;;  %v7303_v58 = vpack.c.bf16 %v2248_v37, %v2103_v38  ;;  %7837 = vmatprep.mubr.bf16.mxu0 %v8363_v18  ;;  %v1889_v7 = vsel %vm9391_vm1, 0.0, %v1745_v46  ;;  %v1748_v19 = vld [vmem:[#allocation2 + $0x9f] sm:$0xff]  ;;  %vm9535_vm11 = vcmp.eq.s32.totalorder %v1476_v57, 15 }
 0x1a2   : > { %v1017_v17 = vmax.f32 %v981_v51, 0.0  ;;  %v9465_v62 = vadd.f32 %v9177_v24, %v943_v34  ;;  %v941_v2 = vmul.f32 %v9172_v22, %v863_v49  ;;  %7834 = vmatpush3.bf16.msra.mxu0 %v9408_v59  ;;  %v9479_v59 = vadd.s32 224, %v9165_v10  ;;  %v8369_v31 = vld [vmem:[#allocation5 + $0x10] sm:$0xff]  }
 0x1a3   : > { %v1746_v63 = vld [vmem:[#allocation2 + $0x8f] sm:$0xff]  ;;  %v1747_v6 = vld [vmem:[#allocation2 + $0x97] sm:$0xff]  ;;  %1055 = vst [vmem:[#allocation2 + $0xc0] sm:$0xff] %v1019_v53  ;;  %v7143_v14 = vpack.c.bf16 %v1019_v53, %v1018_v21  ;;  %v7716_v15 = vpop.f32.mrf.mxu0  ;;  %7835 = vmatprep.subr.bf16.mxu0 %v9444_v5  ;;  %7396 = vst [vmem:[#allocation5 + $0x38] sm:$0xff] %v7303_v58   ;;  %vm9585_vm13 = vcmp.eq.s32.totalorder %v1490_v42, 15 }
 0x1a4   : > { %v2105_v13 = vld [vmem:[#allocation2 + $0x89] sm:$0xff]  ;;  %v1891_v52 = vsel %vm9400_vm2, 0.0, %v1747_v6  ;;  %v2106_v25 = vld [vmem:[#allocation2 + $0x91] sm:$0xff]  ;;  %1053 = vst [vmem:[#allocation2 + $0xb0] sm:$0xff] %v1017_v17  ;;  %v7138_v3 = vpack.c.bf16 %v1017_v17, %v1016_v40  ;;  %v1022_v54 = vmax.f32 %v9465_v62, 0.0  ;;  %v9485_v27 = vadd.f32 %v9177_v24, %v941_v2  ;;  %v2107_v11 = vld [vmem:[#allocation2 + $0x99] sm:$0xff] }
 0x1a5   : > { %v2250_v21 = vsel %vm9410_vm3, 0.0, %v2106_v25  ;;  %7366 = vst [vmem:[#allocation3 + $0x58] sm:$0xff] %v7143_v14   ;;  %v944_v29 = vmul.f32 %v7716_v15, %v9172_v22  ;;  %v866_v0 = vpop.f32.mrf.mxu0  ;;  %v8365_v32 = vld [vmem:[#allocation3 + $0x40] sm:$0xff]   ;;  %v7218_v61 = vpack.c.bf16 %v1746_v63, %v1889_v7  ;;  %v7223_v33 = vpack.c.bf16 %v1748_v19, %v1891_v52  ;;  %v8367_v38 = vld [vmem:[#allocation3 + $0x48] sm:$0xff]   ;;  %v9545_v58 = vld [vmem:[#allocation14 + $0x128] sm:$0xff]  }
 0x1a6   : > { %7365 = vst [vmem:[#allocation3 + $0x50] sm:$0xff] %v7138_v3   ;;  %1058 = vst [vmem:[#allocation2 + $0xd8] sm:$0xff] %v1022_v54  ;;  %v1020_v35 = vmax.f32 %v9485_v27, 0.0  ;;  %v942_v36 = vmul.f32 %v9172_v22, %v866_v0  ;;  %7836 = vmatpush3.bf16.msra.mxu0 %v9444_v5  ;;  %v7308_v40 = vpack.c.bf16 %v2250_v21, %v2105_v13  ;;  %7757 = vmatprep.mubr.bf16.mxu1 %v8365_v32  ;;  %v9571_v32 = vld [vmem:[#allocation14 + $0x120] sm:$0xff]  }
 0x1a7   : > { %v2108_v9 = vld [vmem:[#allocation2 + $0xa1] sm:$0xff]  ;;  %v987_v60 = vadd.f32 %v9177_v24, %v944_v29  ;;  %v7719_v5 = vpop.f32.mrf.mxu0  ;;  %7917 = vmatprep.subr.bf16.mxu0 %v9470_v1  ;;  %7380 = vst [vmem:[#allocation4 + $0x40] sm:$0xff] %v7218_v61   ;;  %7381 = vst [vmem:[#allocation4 + $0x48] sm:$0xff] %v7223_v33   ;;  %7758 = vmatmul.mubr.bf16.vlgmr.msra.gmra.mxu1 %v8367_v38  ;;  %v1497_v49 = vand.u32 15, %v9479_v59  ;;  %v9550_v7 = vadd.s32 232, %v9165_v10  ;;  %v9553_v63 = vadd.s32 240, %v9165_v10 }
 0x1a8   : > { %v1749_v20 = vld [vmem:[#allocation2 + $0xa7] sm:$0xff]  ;;  %v2252_v41 = vsel %vm9439_vm4, 0.0, %v2108_v9  ;;  %1056 = vst [vmem:[#allocation2 + $0xc8] sm:$0xff] %v1020_v35  ;;  %v985_v55 = vadd.f32 %v9177_v24, %v942_v36  ;;  %v947_v44 = vmul.f32 %v7719_v5, %v9172_v22  ;;  %7397 = vst [vmem:[#allocation5 + $0x40] sm:$0xff] %v7308_v40   ;;  %7774 = vmatpush3.bf16.msra.mxu1 %v9162_v8  ;;  %v9591_v5 = vld [vmem:[#allocation14 + $0x18] sm:$0xff]  }
 0x1a9   : > { %v1023_v30 = vmax.f32 %v987_v60, 0.0  ;;  %v879_v50 = vpop.f32.mrf.mxu0  ;;  %7838 = vmatmul.mubr.bf16.vlgmr.msra.gmra.mxu0 %v8368_v39  ;;  %v7313_v51 = vpack.c.bf16 %v2252_v41, %v2107_v11  ;;  %7775 = vmatprep.subr.bf16.mxu1 %v9487_v28  ;;  %v8372_v8 = vld [vmem:[#allocation14 + $0x28] sm:$0xff]   ;;  %v1893_v23 = vsel %vm9457_vm5, 0.0, %v1749_v20  ;;  %v9562_v59 = vld [vmem:[#allocation14 + $0x20] sm:$0xff]   ;;  %v1511_v33 = vand.u32 15, %v9553_v63  ;;  %v9619_v63 = vld [vmem:[#allocation14 + $0x10] sm:$0xff]  }
 0x1aa   : > { %v1021_v34 = vmax.f32 %v985_v55, 0.0  ;;  %v9540_v43 = vadd.f32 %v9177_v24, %v947_v44  ;;  %v945_v53 = vmul.f32 %v9172_v22, %v879_v50  ;;  %7841 = vmatprep.mubr.bf16.mxu0 %v8369_v31  ;;  %7918 = vmatpush3.bf16.msra.mxu0 %v9470_v1  ;;  %v1752_v6 = vld [vmem:[#allocation2 + $0xbf] sm:$0xff]  ;;  %v8374_v36 = vld [vmem:[#allocation5 + $0x18] sm:$0xff]   ;;  %vm9581_vm12 = vcmp.eq.s32.totalorder %v1497_v49, 0 }
 0x1ab   : > { %v1750_v57 = vld [vmem:[#allocation2 + $0xaf] sm:$0xff]  ;;  %v1751_v17 = vld [vmem:[#allocation2 + $0xb7] sm:$0xff]  ;;  %1059 = vst [vmem:[#allocation2 + $0xe0] sm:$0xff] %v1023_v30  ;;  %v7153_v2 = vpack.c.bf16 %v1023_v30, %v1022_v54  ;;  %v7720_v45 = vpop.f32.mrf.mxu0  ;;  %7398 = vst [vmem:[#allocation5 + $0x48] sm:$0xff] %v7313_v51   ;;  %7919 = vmatprep.subr.bf16.mxu0 %v9495_v4  ;;  %v1504_v55 = vand.u32 15, %v9550_v7  ;;  %v9599_v44 = vadd.s32 256, %v9165_v10 }
 0x1ac   : > { %v2109_v62 = vld [vmem:[#allocation2 + $0xa9] sm:$0xff]  ;;  %v1895_v48 = vsel %vm9499_vm6, 0.0, %v1751_v17  ;;  %v2110_v13 = vld [vmem:[#allocation2 + $0xb1] sm:$0xff]  ;;  %1057 = vst [vmem:[#allocation2 + $0xd0] sm:$0xff] %v1021_v34  ;;  %v7148_v14 = vpack.c.bf16 %v1021_v34, %v1020_v35  ;;  %v1026_v15 = vmax.f32 %v9540_v43, 0.0  ;;  %v9560_v16 = vadd.f32 %v9177_v24, %v945_v53  ;;  %7776 = vmatpush3.bf16.msra.mxu1 %v9487_v28  ;;  %v2111_v38 = vld [vmem:[#allocation2 + $0xb9] sm:$0xff] }
 0x1ad   : > { %v2254_v19 = vsel %vm9505_vm7, 0.0, %v2110_v13  ;;  %7368 = vst [vmem:[#allocation3 + $0x68] sm:$0xff] %v7153_v2   ;;  %v948_v1 = vmul.f32 %v7720_v45, %v9172_v22  ;;  %v882_v52 = vpop.f32.mrf.mxu0  ;;  %v8371_v25 = vld [vmem:[#allocation3 + $0x50] sm:$0xff]   ;;  %v7228_v3 = vpack.c.bf16 %v1750_v57, %v1893_v23  ;;  %v7233_v54 = vpack.c.bf16 %v1752_v6, %v1895_v48  ;;  %7777 = vmatprep.subr.bf16.mxu1 %v8372_v8  ;;  %v8373_v29 = vld [vmem:[#allocation3 + $0x58] sm:$0xff]   ;;  %v9602_v30 = vld [vmem:[#allocation14 + $0x118] sm:$0xff]  }
 0x1ae   : > { %7367 = vst [vmem:[#allocation3 + $0x60] sm:$0xff] %v7148_v14   ;;  %1062 = vst [vmem:[#allocation2 + $0xf8] sm:$0xff] %v1026_v15  ;;  %v1024_v27 = vmax.f32 %v9560_v16, 0.0  ;;  %v946_v21 = vmul.f32 %v9172_v22, %v882_v52  ;;  %v7318_v0 = vpack.c.bf16 %v2254_v19, %v2109_v62  ;;  %7761 = vmatprep.mubr.bf16.mxu1 %v8371_v25  ;;  %v9576_v35 = vadd.s32 248, %v9165_v10  ;;  %v8565_v53 = vld [vmem:[%s10647_s5] ss:$0 sm:$0xff] }
 0x1af   : > { %v2112_v39 = vld [vmem:[#allocation2 + $0xc1] sm:$0xff]  ;;  %v991_v61 = vadd.f32 %v9177_v24, %v948_v1  ;;  %v7723_v28 = vpop.f32.mrf.mxu0  ;;  %7920 = vmatpush3.bf16.msra.mxu0 %v9495_v4  ;;  %7382 = vst [vmem:[#allocation4 + $0x50] sm:$0xff] %v7228_v3   ;;  %7383 = vst [vmem:[#allocation4 + $0x58] sm:$0xff] %v7233_v54   ;;  %7762 = vmatmul.mubr.bf16.gmra.mxu1 %v8373_v29  ;;  %v8375_v4 = vld [vmem:[#allocation5 + $0x20] sm:$0xff]   ;;  %vm9604_vm14 = vcmp.eq.s32.totalorder %v1511_v33, 0  ;;  %v9630_v54 = vadd.s32 272, %v9165_v10 }
 0x1b0   : > { %v2256_v40 = vsel %vm9515_vm8, 0.0, %v2112_v39  ;;  %1060 = vst [vmem:[#allocation2 + $0xe8] sm:$0xff] %v1024_v27  ;;  %v989_v26 = vadd.f32 %v9177_v24, %v946_v21  ;;  %v951_v60 = vmul.f32 %v7723_v28, %v9172_v22  ;;  %7399 = vst [vmem:[#allocation5 + $0x50] sm:$0xff] %v7318_v0   ;;  %7921 = vmatprep.subr.bf16.mxu0 %v9545_v58  ;;  %v1753_v31 = vld [vmem:[#allocation2 + $0xc7] sm:$0xff]  ;;  %7778 = vmatpush3.bf16.msra.mxu1 %v8372_v8  ;;  %v8564_v22 = vld [vmem:[%s10646_s4] ss:$0 sm:$0xff] }
 0x1b1   : > { %v1027_v11 = vmax.f32 %v991_v61, 0.0  ;;  %v895_v20 = vpop.f32.mrf.mxu0  ;;  %7842 = vmatmul.mubr.bf16.gmra.mxu0 %v8374_v36  ;;  %v7323_v41 = vpack.c.bf16 %v2256_v40, %v2111_v38  ;;  %7779 = vmatprep.subr.bf16.mxu1 %v9562_v59  ;;  %v1518_v8 = vand.u32 15, %v9576_v35  ;;  %v1897_v57 = vsel %vm9523_vm9, 0.0, %v1753_v31  ;;  %v8380_v13 = vld [vmem:[#allocation5 + $0x28] sm:$0xff]   ;;  %v9626_v52 = vld [vmem:[#allocation14 + $0x110] sm:$0xff]   ;;  %v8415_v38 = vld [vmem:[#allocation14 + $0x108] sm:$0xff]  }
 0x1b2   : > { %v1025_v47 = vmax.f32 %v989_v26, 0.0  ;;  %v949_v24 = vmul.f32 %v8564_v22, %v895_v20  ;;  %7845 = vmatprep.mubr.bf16.mxu0 %v8375_v4  ;;  %v9611_v49 = vadd.f32 %v8565_v53, %v951_v60  ;;  %v1756_v17 = vld [vmem:[#allocation2 + $0xdf] sm:$0xff]  ;;  %vm9635_vm15 = vcmp.eq.s32.totalorder %v1504_v55, 15  ;;  %v8428_v0 = vld [vmem:[#allocation14 + $0xc8] sm:$0xff]  }
 0x1b3   : > { %v1754_v50 = vld [vmem:[#allocation2 + $0xcf] sm:$0xff]  ;;  %v1755_v42 = vld [vmem:[#allocation2 + $0xd7] sm:$0xff]  ;;  %1063 = vst [vmem:[#allocation2 + $0x100] sm:$0xff] %v1027_v11  ;;  %v7163_v34 = vpack.c.bf16 %v1027_v11, %v1026_v15  ;;  %v7724_v23 = vpop.f32.mrf.mxu0  ;;  %7400 = vst [vmem:[#allocation5 + $0x58] sm:$0xff] %v7323_v41   ;;  %7922 = vmatpush3.bf16.msra.mxu0 %v9545_v58  ;;  %v1525_v35 = vand.u32 15, %v9599_v44  ;;  %vm9645_vm0 = vcmp.eq.s32.totalorder %v1518_v8, 15 }
 0x1b4   : > { %v2113_v51 = vld [vmem:[#allocation2 + $0xc9] sm:$0xff]  ;;  %v1899_v62 = vsel %vm9527_vm10, 0.0, %v1755_v42  ;;  %v2114_v2 = vld [vmem:[#allocation2 + $0xd1] sm:$0xff]  ;;  %1061 = vst [vmem:[#allocation2 + $0xf0] sm:$0xff] %v1025_v47  ;;  %v7158_v45 = vpack.c.bf16 %v1025_v47, %v1024_v27  ;;  %v992_v7 = vadd.f32 %v8565_v53, %v949_v24  ;;  %7923 = vmatprep.subr.bf16.mxu0 %v9571_v32  ;;  %v952_v58 = vmul.f32 %v8564_v22, %v7724_v23  ;;  %v2115_v27 = vld [vmem:[#allocation2 + $0xd9] sm:$0xff] }
 0x1b5   : > { %v2258_v6 = vsel %vm9535_vm11, 0.0, %v2114_v2  ;;  %7370 = vst [vmem:[#allocation3 + $0x78] sm:$0xff] %v7163_v34   ;;  %v898_v48 = vpop.f32.mrf.mxu0  ;;  %7780 = vmatpush3.bf16.msra.mxu1 %v9562_v59  ;;  %v8377_v46 = vld [vmem:[#allocation3 + $0x60] sm:$0xff]   ;;  %v7238_v37 = vpack.c.bf16 %v1754_v50, %v1897_v57  ;;  %v7243_v14 = vpack.c.bf16 %v1756_v17, %v1899_v62  ;;  %v8379_v19 = vld [vmem:[#allocation3 + $0x68] sm:$0xff]   ;;  %v1030_v25 = vmax.f32 %v9611_v49, 0.0  ;;  %v8381_v59 = vld [vmem:[#allocation5 + $0x30] sm:$0xff]  }
 0x1b6   : > { %7369 = vst [vmem:[#allocation3 + $0x70] sm:$0xff] %v7158_v45   ;;  %v1028_v15 = vmax.f32 %v992_v7, 0.0  ;;  %v950_v16 = vmul.f32 %v8564_v22, %v898_v48  ;;  %7781 = vmatprep.subr.bf16.mxu1 %v9591_v5  ;;  %v7328_v1 = vpack.c.bf16 %v2258_v6, %v2113_v51  ;;  %v995_v3 = vadd.f32 %v8565_v53, %v952_v58  ;;  %v8388_v41 = vld [vmem:[#allocation14] sm:$0xff]   ;;  %v8386_v50 = vld [vmem:[#allocation5 + $0x38] sm:$0xff]   ;;  %v8390_v62 = vld [vmem:[#allocation14 + $0xf8] sm:$0xff]  }
 0x1b7   : > { %v2116_v56 = vld [vmem:[#allocation2 + $0xe1] sm:$0xff]  ;;  %7765 = vmatprep.mubr.bf16.mxu1 %v8377_v46  ;;  %7924 = vmatpush3.bf16.msra.mxu0 %v9571_v32  ;;  %7384 = vst [vmem:[#allocation4 + $0x60] sm:$0xff] %v7238_v37   ;;  %7385 = vst [vmem:[#allocation4 + $0x68] sm:$0xff] %v7243_v14   ;;  %v1539_v31 = vand.u32 15, %v9630_v54  ;;  %vm9659_vm1 = vcmp.eq.s32.totalorder %v1525_v35, 0  ;;  %v8397_v6 = vld [vmem:[#allocation14 + $0xf0] sm:$0xff]  }
 0x1b8   : > { %v1757_v21 = vld [vmem:[#allocation2 + $0xe7] sm:$0xff]  ;;  %v2260_v29 = vsel %vm9585_vm13, 0.0, %v2116_v56  ;;  %1064 = vst [vmem:[#allocation2 + $0x108] sm:$0xff] %v1028_v15  ;;  %v993_v39 = vadd.f32 %v8565_v53, %v950_v16  ;;  %7766 = vmatmul.mubr.bf16.gmra.mxu1 %v8379_v19  ;;  %7401 = vst [vmem:[#allocation5 + $0x60] sm:$0xff] %v7328_v1   ;;  %7925 = vmatprep.subr.bf16.mxu0 %v9602_v30  ;;  %v1031_v61 = vmax.f32 %v995_v3, 0.0  ;;  %v8387_v53 = vld [vmem:[#allocation5 + $0x40] sm:$0xff]  }
 0x1b9   : > { %7782 = vmatpush3.bf16.msra.mxu1 %v9591_v5  ;;  %7846 = vmatmul.mubr.bf16.gmra.mxu0 %v8380_v13  ;;  %v8384_v32 = vld [vmem:[#allocation14 + $0x8] sm:$0xff]   ;;  %v7333_v33 = vpack.c.bf16 %v2260_v29, %v2115_v27  ;;  %v1901_v40 = vsel %vm9581_vm12, 0.0, %v1757_v21  ;;  %v8389_v24 = vld [vmem:[#allocation4] sm:$0xff]   ;;  %vm9666_vm2 = vcmp.eq.s32.totalorder %v1539_v31, 0  ;;  %v9674_v58 = vld [vmem:[#allocation14 + $0x1b8] sm:$0xff]  }
 0x1ba   : > { %v1760_v28 = vld [vmem:[#allocation2 + $0xff] sm:$0xff]  ;;  %v1029_v36 = vmax.f32 %v993_v39, 0.0  ;;  %7849 = vmatprep.mubr.bf16.mxu0 %v8381_v59  ;;  %7783 = vmatprep.subr.bf16.mxu1 %v9619_v63  ;;  %v7173_v5 = vpack.c.bf16 %v1031_v61, %v1030_v25  ;;  %v8391_v13 = vld [vmem:[#allocation4 + $0x8] sm:$0xff]   ;;  %v8392_v37 = vld [vmem:[#allocation4 + $0x10] sm:$0xff]   ;;  %v1294_v39 = vadd.s32 264, %v9165_v10 }
 0x1bb   : > { %v1758_v18 = vld [vmem:[#allocation2 + $0xef] sm:$0xff]  ;;  %v1759_v26 = vld [vmem:[#allocation2 + $0xf7] sm:$0xff]  ;;  %7402 = vst [vmem:[#allocation5 + $0x68] sm:$0xff] %v7333_v33   ;;  %7926 = vmatpush3.bf16.msra.mxu0 %v9602_v30  ;;  %v8417_v51 = vld [vmem:[#allocation14 + $0x100] sm:$0xff]  }
 0x1bc   : > { %v2117_v60 = vld [vmem:[#allocation2 + $0xe9] sm:$0xff]  ;;  %v1903_v11 = vsel %vm9604_vm14, 0.0, %v1759_v26  ;;  %v2118_v20 = vld [vmem:[#allocation2 + $0xf1] sm:$0xff]  ;;  %1065 = vst [vmem:[#allocation2 + $0x110] sm:$0xff] %v1029_v36  ;;  %v7168_v9 = vpack.c.bf16 %v1029_v36, %v1028_v15  ;;  %7927 = vmatprep.subr.bf16.mxu0 %v9626_v52  ;;  %v7248_v47 = vpack.c.bf16 %v1758_v18, %v1901_v40  ;;  %7372 = vst [vmem:[#allocation3 + $0x88] sm:$0xff] %v7173_v5  }
 0x1bd   : > { %v2262_v55 = vsel %vm9635_vm15, 0.0, %v2118_v20  ;;  %7784 = vmatpush3.bf16.msra.mxu1 %v9619_v63  ;;  %v8383_v22 = vld [vmem:[#allocation3 + $0x70] sm:$0xff]   ;;  %v7253_v44 = vpack.c.bf16 %v1760_v28, %v1903_v11  ;;  %1258 = vst [vmem:[#allocation3 + $0x88] sm:$0xf] %v8833_v12  ;;  %1259 = vst [vmem:[#allocation3 + $0x8c] sm:$0xf] %v8833_v12 }
 0x1be   : > { %7371 = vst [vmem:[#allocation3 + $0x80] sm:$0xff] %v7168_v9   ;;  %7785 = vmatprep.subr.bf16.mxu1 %v8384_v32  ;;  %v8385_v30 = vld [vmem:[#allocation3 + $0x78] sm:$0xff]   ;;  %v7338_v42 = vpack.c.bf16 %v2262_v55, %v2117_v60  ;;  %7386 = vst [vmem:[#allocation4 + $0x70] sm:$0xff] %v7248_v47   ;;  %7769 = vmatprep.mubr.bf16.mxu1 %v8383_v22  ;;  %v2119_v49 = vld [vmem:[#allocation2 + $0xf9] sm:$0xff]  ;;  %v1532_v28 = vand.u32 15, %v1294_v39 }
 0x1bf   : > { %v2120_v43 = vld [vmem:[#allocation2 + $0x101] sm:$0xff]  ;;  %7928 = vmatpush3.bf16.msra.mxu0 %v9626_v52  ;;  %7387 = vst [vmem:[#allocation4 + $0x78] sm:$0xff] %v7253_v44   ;;  %v8393_v14 = vld [vmem:[#allocation5 + $0x48] sm:$0xff]   ;;  %v8402_v25 = vld [vmem:[#allocation5 + $0x60] sm:$0xff]  }
 0x1c0   : > { %v1761_v8 = vld [vmem:[#allocation2 + $0x107] sm:$0xff]  ;;  %v2264_v12 = vsel %vm9645_vm0, 0.0, %v2120_v43  ;;  %v1764_v23 = vld [vmem:[#allocation2 + $0x11f] sm:$0xff]  ;;  %7770 = vmatmul.mubr.bf16.gmra.mxu1 %v8385_v30  ;;  %7403 = vst [vmem:[#allocation5 + $0x70] sm:$0xff] %v7338_v42   ;;  %7929 = vmatprep.subr.bf16.mxu0 %v8415_v38  ;;  %v8423_v54 = vld [vmem:[#allocation14 + $0xd0] sm:$0xff]   ;;  %vm2158_vm3 = vcmp.eq.s32.totalorder %v1532_v28, 15 }
 0x1c1   : > { %7786 = vmatpush3.bf16.msra.mxu1 %v8384_v32  ;;  %7850 = vmatmul.mubr.bf16.gmra.mxu0 %v8386_v50  ;;  %v7343_v17 = vpack.c.bf16 %v2264_v12, %v2119_v49  ;;  %v1905_v2 = vsel %vm9659_vm1, 0.0, %v1761_v8  ;;  %v8395_v15 = vld [vmem:[#allocation5 + $0x50] sm:$0xff]   ;;  %v8404_v16 = vld [vmem:[#allocation14 + $0xe8] sm:$0xff]   ;;  %v8398_v1 = vld [vmem:[#allocation4 + $0x18] sm:$0xff]  }
 0x1c2   : > { %7853 = vmatprep.mubr.bf16.mxu0 %v8387_v53  ;;  %7787 = vmatprep.subr.bf16.mxu1 %v8388_v41  ;;  %v8411_v19 = vld [vmem:[#allocation14 + $0xe0] sm:$0xff]   ;;  %v8400_v56 = vld [vmem:[#allocation5 + $0x58] sm:$0xff]   ;;  %v8418_v3 = vld [vmem:[#allocation14 + $0xd8] sm:$0xff]  }
 0x1c3   : > { %v1762_v45 = vld [vmem:[#allocation2 + $0x10f] sm:$0xff]  ;;  %v1763_v7 = vld [vmem:[#allocation2 + $0x117] sm:$0xff]  ;;  %7789 = vmatprep.mubr.bf16.mxu1 %v8389_v24  ;;  %7404 = vst [vmem:[#allocation5 + $0x78] sm:$0xff] %v7343_v17   ;;  %7930 = vmatpush3.bf16.msra.mxu0 %v8415_v38  ;;  %v8399_v52 = vld [vmem:[#allocation4 + $0x20] sm:$0xff]  }
 0x1c4   : > { %v1907_v63 = vsel %vm9666_vm2, 0.0, %v1763_v7  ;;  %7931 = vmatprep.subr.bf16.mxu0 %v8417_v51  ;;  %v7258_v48 = vpack.c.bf16 %v1762_v45, %v1905_v2  ;;  %v8405_v59 = vld [vmem:[#allocation4 + $0x28] sm:$0xff]   ;;  %v8406_v27 = vld [vmem:[#allocation4 + $0x30] sm:$0xff]   ;;  %v8407_v21 = vld [vmem:[#allocation5 + $0x68] sm:$0xff]  }
 0x1c5   : > { %v7263_v46 = vpack.c.bf16 %v1764_v23, %v1907_v63  ;;  %7788 = vmatpush3.bf16.msra.mxu1 %v8388_v41  ;;  %v8433_v61 = vld [vmem:[#allocation14 + $0xc0] sm:$0xff]   ;;  %v8412_v32 = vld [vmem:[#allocation4 + $0x38] sm:$0xff]   ;;  %v8419_v10 = vld [vmem:[#allocation4 + $0x48] sm:$0xff]  }
 0x1c6   : > { %7869 = vmatprep.subr.bf16.mxu1 %v8390_v62  ;;  %7388 = vst [vmem:[#allocation4 + $0x80] sm:$0xff] %v7258_v48   ;;  %v8413_v33 = vld [vmem:[#allocation4 + $0x40] sm:$0xff]   ;;  %v8416_v36 = vld [vmem:[#allocation3 + $0x8] sm:$0xff]   ;;  %v2121_v26 = vld [vmem:[#allocation2 + $0x109] sm:$0xff] }
 0x1c7   : > { %7389 = vst [vmem:[#allocation4 + $0x88] sm:$0xff] %v7263_v46   ;;  %7932 = vmatpush3.bf16.msra.mxu0 %v8417_v51  ;;  %v8409_v29 = vld [vmem:[#allocation5 + $0x70] sm:$0xff]   ;;  %v9678_v38 = vld [vmem:[#allocation14 + $0x178] sm:$0xff]   ;;  %v8420_v4 = vld [vmem:[#allocation4 + $0x50] sm:$0xff]  }
 0x1c8   : > { %7790 = vmatmul.mubr.bf16.vlgmr.msra.gmra.mxu1 %v8391_v13  ;;  %8013 = vmatprep.subr.bf16.mxu0 %v9674_v58  ;;  %v2122_v40 = vld [vmem:[#allocation2 + $0x111] sm:$0xff]  ;;  %v8421_v18 = vld [vmem:[#allocation3 + $0x10] sm:$0xff]   ;;  %v8422_v31 = vld [vmem:[#allocation3 + $0x18] sm:$0xff]  }
 0x1c9   : > { %7870 = vmatpush3.bf16.msra.mxu1 %v8390_v62  ;;  %7793 = vmatprep.mubr.bf16.mxu1 %v8392_v37  ;;  %v2266_v60 = vsel %vm2158_vm3, 0.0, %v2122_v40  ;;  %v8444_v5 = vld [vmem:[#allocation14 + $0x1b0] sm:$0xff]   ;;  %v8449_v20 = vld [vmem:[#allocation14 + $0x1a8] sm:$0xff]   ;;  %v8424_v9 = vld [vmem:[#allocation4 + $0x58] sm:$0xff]  }
 0x1ca   : > { %7854 = vmatmul.mubr.bf16.gmra.mxu0 %v8393_v14  ;;  %7871 = vmatprep.subr.bf16.mxu1 %v8397_v6  ;;  %v8414_v35 = vld [vmem:[#allocation5 + $0x78] sm:$0xff]   ;;  %v7348_v11 = vpack.c.bf16 %v2266_v60, %v2121_v26  ;;  %v8425_v41 = vld [vmem:[#allocation4 + $0x60] sm:$0xff]   ;;  %v8426_v47 = vld [vmem:[#allocation3 + $0x20] sm:$0xff]  }
 0x1cb   : > { %7857 = vmatprep.mubr.bf16.mxu0 %v8395_v15  ;;  %v8451_v55 = vld [vmem:[#allocation14 + $0x1a0] sm:$0xff]   ;;  %v8427_v22 = vld [vmem:[#allocation3 + $0x28] sm:$0xff]   ;;  %v8429_v44 = vld [vmem:[#allocation4 + $0x68] sm:$0xff]  }
 0x1cc   : > { %7405 = vst [vmem:[#allocation5 + $0x80] sm:$0xff] %v7348_v11   ;;  %v8456_v24 = vld [vmem:[#allocation14 + $0x198] sm:$0xff]   ;;  %v8430_v30 = vld [vmem:[#allocation4 + $0x70] sm:$0xff]   ;;  %v8431_v50 = vld [vmem:[#allocation3 + $0x30] sm:$0xff]  }
 0x1cd   : > { %7872 = vmatpush3.bf16.msra.mxu1 %v8397_v6  ;;  %v8458_v42 = vld [vmem:[#allocation14 + $0x190] sm:$0xff]   ;;  %v8432_v51 = vld [vmem:[#allocation3 + $0x38] sm:$0xff]   ;;  %v8434_v43 = vld [vmem:[#allocation4 + $0x78] sm:$0xff]  }
 0x1ce   : > { %7873 = vmatprep.subr.bf16.mxu1 %v8404_v16  ;;  %v8463_v34 = vld [vmem:[#allocation14 + $0x188] sm:$0xff]   ;;  %v8436_v49 = vld [vmem:[#allocation3 + $0x40] sm:$0xff]   ;;  %v8465_v8 = vld [vmem:[#allocation14 + $0x180] sm:$0xff]  }
 0x1cf   : > { %v8435_v53 = vld [vmem:[#allocation4 + $0x8] sm:$0xff]   ;;  %v8437_v12 = vld [vmem:[#allocation3 + $0x48] sm:$0xff]   ;;  %v8439_v57 = vld [vmem:[#allocation4 + $0x10] sm:$0xff]  }
 0x1d0   : > { %7794 = vmatmul.mubr.bf16.gmra.mxu1 %v8398_v1  ;;  %v9682_v23 = vld [vmem:[#allocation14 + $0x238] sm:$0xff]   ;;  %v8445_v17 = vld [vmem:[#allocation14 + $0x170] sm:$0xff]   ;;  %v8441_v2 = vld [vmem:[#allocation3 + $0x50] sm:$0xff]  }
 0x1d1   : > { %7797 = vmatprep.mubr.bf16.mxu1 %v8399_v52  ;;  %7874 = vmatpush3.bf16.msra.mxu1 %v8404_v16  ;;  %v8440_v62 = vld [vmem:[#allocation4 + $0x18] sm:$0xff]   ;;  %v8443_v45 = vld [vmem:[#allocation3 + $0x58] sm:$0xff]   ;;  %v8446_v63 = vld [vmem:[#allocation4 + $0x20] sm:$0xff]  }
 0x1d2   : > { %7858 = vmatmul.mubr.bf16.gmra.mxu0 %v8400_v56  ;;  %7875 = vmatprep.subr.bf16.mxu1 %v8411_v19  ;;  %v8452_v7 = vld [vmem:[#allocation14 + $0x168] sm:$0xff]   ;;  %v8459_v6 = vld [vmem:[#allocation14 + $0x160] sm:$0xff]   ;;  %v8448_v48 = vld [vmem:[#allocation3 + $0x60] sm:$0xff]  }
 0x1d3   : > { %7861 = vmatprep.mubr.bf16.mxu0 %v8402_v25  ;;  %v8450_v46 = vld [vmem:[#allocation3 + $0x68] sm:$0xff]   ;;  %v8453_v37 = vld [vmem:[#allocation4 + $0x30] sm:$0xff]   ;;  %v8455_v16 = vld [vmem:[#allocation3 + $0x70] sm:$0xff]  }
 0x1d4   : > { %v8466_v13 = vld [vmem:[#allocation14 + $0x158] sm:$0xff]   ;;  %v8471_v14 = vld [vmem:[#allocation14 + $0x150] sm:$0xff]   ;;  %v8476_v1 = vld [vmem:[#allocation14 + $0x148] sm:$0xff]  }
 0x1d5   : > { %7876 = vmatpush3.bf16.msra.mxu1 %v8411_v19  ;;  %v8454_v15 = vld [vmem:[#allocation4 + $0x38] sm:$0xff]   ;;  %v8457_v19 = vld [vmem:[#allocation3 + $0x78] sm:$0xff]   ;;  %v8460_v52 = vld [vmem:[#allocation4 + $0x40] sm:$0xff]  }
 0x1d6   : > { %7877 = vmatprep.subr.bf16.mxu1 %v8418_v3  ;;  %v8481_v56 = vld [vmem:[#allocation14 + $0x140] sm:$0xff]   ;;  %v8461_v25 = vld [vmem:[#allocation4 + $0x48] sm:$0xff]   ;;  %v8477_v40 = vld [vmem:[#allocation4 + $0x70] sm:$0xff]  }
 0x1d7   : > { %v8470_v39 = vld [vmem:[#allocation4 + $0x20] sm:$0xff]   ;;  %v8474_v28 = vld [vmem:[#allocation4 + $0x28] sm:$0xff]   ;;  %v8506_v26 = vld [vmem:[#allocation14 + $0x210] sm:$0xff]  }
 0x1d8   : > { %7798 = vmatmul.mubr.bf16.gmra.mxu1 %v8405_v59  ;;  %v8486_v59 = vld [vmem:[#allocation14 + $0x1f8] sm:$0xff]   ;;  %v8480_v60 = vld [vmem:[#allocation4 + $0x40] sm:$0xff]   ;;  %v8484_v11 = vld [vmem:[#allocation4 + $0x48] sm:$0xff]  }
 0x1d9   : > { %7801 = vmatprep.mubr.bf16.mxu1 %v8406_v27  ;;  %7878 = vmatpush3.bf16.msra.mxu1 %v8418_v3  ;;  %v8462_v3 = vld [vmem:[#allocation3 + $0x80] sm:$0xff]  }
 0x1da   : > { %7862 = vmatmul.mubr.bf16.gmra.mxu0 %v8407_v21  ;;  %7879 = vmatprep.subr.bf16.mxu1 %v8423_v54  ;;  %v8467_v27 = vld [vmem:[#allocation4 + $0x50] sm:$0xff]   ;;  %v8468_v21 = vld [vmem:[#allocation4 + $0x58] sm:$0xff]  }
 0x1db   : > { %7865 = vmatprep.mubr.bf16.mxu0 %v8409_v29  ;;  %v8469_v29 = vld [vmem:[#allocation4 + $0x18] sm:$0xff]  }
 0x1dd   : > { %7880 = vmatpush3.bf16.msra.mxu1 %v8423_v54  ;;  %v8464_v54 = vld [vmem:[#allocation4 + $0x10] sm:$0xff]  }
 0x1de   : > { %7881 = vmatprep.subr.bf16.mxu1 %v8428_v0 }
 0x1e0   : > { %7802 = vmatmul.mubr.bf16.gmra.mxu1 %v8412_v32  ;;  %v8472_v32 = vld [vmem:[#allocation4 + $0x60] sm:$0xff]  }
 0x1e1   : > { %7805 = vmatprep.mubr.bf16.mxu1 %v8413_v33  ;;  %7882 = vmatpush3.bf16.msra.mxu1 %v8428_v0  ;;  %v8492_v0 = vld [vmem:[#allocation14 + $0x230] sm:$0xff]   ;;  %v8473_v33 = vld [vmem:[#allocation4 + $0x68] sm:$0xff]  }
 0x1e2   : > { %7866 = vmatmul.mubr.bf16.gmra.mxu0 %v8414_v35  ;;  %7883 = vmatprep.subr.bf16.mxu1 %v8433_v61  ;;  %v8499_v35 = vld [vmem:[#allocation14 + $0x220] sm:$0xff]  }
 0x1e3   : > { %7933 = vmatprep.mubr.bf16.mxu0 %v8416_v36  ;;  %v8475_v36 = vld [vmem:[#allocation4 + $0x30] sm:$0xff]  }
 0x1e5   : > { %7884 = vmatpush3.bf16.msra.mxu1 %v8433_v61  ;;  %v8497_v61 = vld [vmem:[#allocation14 + $0x228] sm:$0xff]  }
 0x1e6   : > { %7965 = vmatprep.subr.bf16.mxu1 %v9678_v38 }
 0x1e8   : > { %7806 = vmatmul.mubr.bf16.gmra.mxu1 %v8419_v10  ;;  %v8478_v10 = vld [vmem:[#allocation4 + $0x78] sm:$0xff]  }
 0x1e9   : > { %7809 = vmatprep.mubr.bf16.mxu1 %v8420_v4  ;;  %v8511_v4 = vld [vmem:[#allocation14 + $0x208] sm:$0xff]  }
 0x1ea   : > { %7934 = vmatmul.mubr.bf16.vlgmr.msra.gmra.mxu0 %v8421_v18  ;;  %v8479_v18 = vld [vmem:[#allocation4 + $0x38] sm:$0xff]  }
 0x1eb   : > { %7937 = vmatprep.mubr.bf16.mxu0 %v8422_v31  ;;  %8014 = vmatpush3.bf16.msra.mxu0 %v9674_v58  ;;  %v8447_v58 = vld [vmem:[#allocation4 + $0x28] sm:$0xff]   ;;  %v8483_v31 = vld [vmem:[#allocation5 + $0x8] sm:$0xff]  }
 0x1ec   : > { %8015 = vmatprep.subr.bf16.mxu0 %v8444_v5 }
 0x1ef   : > { %8016 = vmatpush3.bf16.msra.mxu0 %v8444_v5  ;;  %v8482_v5 = vld [vmem:[#allocation4 + $0x80] sm:$0xff]  }
 0x1f0   : > { %7810 = vmatmul.mubr.bf16.gmra.mxu1 %v8424_v9  ;;  %8017 = vmatprep.subr.bf16.mxu0 %v8449_v20  ;;  %v8485_v9 = vld [vmem:[#allocation4 + $0x50] sm:$0xff]  }
 0x1f1   : > { %7813 = vmatprep.mubr.bf16.mxu1 %v8425_v41  ;;  %v8487_v41 = vld [vmem:[#allocation5 + $0x10] sm:$0xff]  }
 0x1f2   : > { %7938 = vmatmul.mubr.bf16.gmra.mxu0 %v8426_v47  ;;  %v8493_v47 = vld [vmem:[#allocation14 + $0x1f0] sm:$0xff]  }
 0x1f3   : > { %7941 = vmatprep.mubr.bf16.mxu0 %v8427_v22  ;;  %8018 = vmatpush3.bf16.msra.mxu0 %v8449_v20  ;;  %v8513_v20 = vld [vmem:[#allocation14 + $0x200] sm:$0xff]   ;;  %v8489_v22 = vld [vmem:[#allocation4 + $0x58] sm:$0xff]  }
 0x1f4   : > { %8019 = vmatprep.subr.bf16.mxu0 %v8451_v55 }
 0x1f7   : > { %8020 = vmatpush3.bf16.msra.mxu0 %v8451_v55  ;;  %v8488_v55 = vld [vmem:[#allocation5 + $0x18] sm:$0xff]  }
 0x1f8   : > { %7814 = vmatmul.mubr.bf16.gmra.mxu1 %v8429_v44  ;;  %8021 = vmatprep.subr.bf16.mxu0 %v8456_v24  ;;  %v8491_v44 = vld [vmem:[#allocation4 + $0x60] sm:$0xff]  }
 0x1f9   : > { %7817 = vmatprep.mubr.bf16.mxu1 %v8430_v30  ;;  %v8500_v30 = vld [vmem:[#allocation14 + $0x1e8] sm:$0xff]  }
 0x1fa   : > { %7942 = vmatmul.mubr.bf16.gmra.mxu0 %v8431_v50 }
 0x1fb   : > { %7945 = vmatprep.mubr.bf16.mxu0 %v8432_v51  ;;  %8022 = vmatpush3.bf16.msra.mxu0 %v8456_v24  ;;  %v8494_v51 = vld [vmem:[#allocation5 + $0x20] sm:$0xff]  }
 0x1fc   : > { %8023 = vmatprep.subr.bf16.mxu0 %v8458_v42 }
 0x1ff   : > { %8024 = vmatpush3.bf16.msra.mxu0 %v8458_v42 }
 0x200   : > { %7818 = vmatmul.mubr.bf16.gmra.mxu1 %v8434_v43  ;;  %8025 = vmatprep.subr.bf16.mxu0 %v8463_v34 }
 0x201   : > { %7885 = vmatprep.mubr.bf16.mxu1 %v8435_v53  ;;  %v8495_v53 = vld [vmem:[#allocation5 + $0x28] sm:$0xff]  }
 0x202   : > { %7946 = vmatmul.mubr.bf16.gmra.mxu0 %v8436_v49  ;;  %v8496_v49 = vld [vmem:[#allocation4 + $0x68] sm:$0xff]  }
 0x203   : > { %7949 = vmatprep.mubr.bf16.mxu0 %v8437_v12  ;;  %8026 = vmatpush3.bf16.msra.mxu0 %v8463_v34  ;;  %v8507_v34 = vld [vmem:[#allocation14 + $0x1e0] sm:$0xff]   ;;  %v8498_v12 = vld [vmem:[#allocation4 + $0x70] sm:$0xff]  }
 0x204   : > { %8027 = vmatprep.subr.bf16.mxu0 %v8465_v8 }
 0x207   : > { %8028 = vmatpush3.bf16.msra.mxu0 %v8465_v8 }
 0x208   : > { %7886 = vmatmul.mubr.bf16.vlgmr.msra.gmra.mxu1 %v8439_v57  ;;  %8109 = vmatprep.subr.bf16.mxu0 %v9682_v23 }
 0x209   : > { %7966 = vmatpush3.bf16.msra.mxu1 %v9678_v38  ;;  %7889 = vmatprep.mubr.bf16.mxu1 %v8440_v62  ;;  %v8504_v38 = vld [vmem:[#allocation14 + $0x218] sm:$0xff]   ;;  %v8501_v62 = vld [vmem:[#allocation5 + $0x30] sm:$0xff]  }
 0x20a   : > { %7950 = vmatmul.mubr.bf16.gmra.mxu0 %v8441_v2  ;;  %7967 = vmatprep.subr.bf16.mxu1 %v8445_v17  ;;  %v8519_v2 = vld [vmem:[#allocation14 + $0x1d0] sm:$0xff]  }
 0x20b   : > { %7953 = vmatprep.mubr.bf16.mxu0 %v8443_v45 }
 0x20d   : > { %7968 = vmatpush3.bf16.msra.mxu1 %v8445_v17 }
 0x20e   : > { %7969 = vmatprep.subr.bf16.mxu1 %v8452_v7 }
 0x210   : > { %7890 = vmatmul.mubr.bf16.gmra.mxu1 %v8446_v63  ;;  %v8503_v63 = vld [vmem:[#allocation4 + $0x78] sm:$0xff]  }
 0x211   : > { %7893 = vmatprep.mubr.bf16.mxu1 %v8447_v58  ;;  %7970 = vmatpush3.bf16.msra.mxu1 %v8452_v7  ;;  %v8502_v7 = vld [vmem:[#allocation5 + $0x38] sm:$0xff]   ;;  %v8505_v58 = vld [vmem:[#allocation4 + $0x80] sm:$0xff]  }
 0x212   : > { %7954 = vmatmul.mubr.bf16.gmra.mxu0 %v8448_v48  ;;  %7971 = vmatprep.subr.bf16.mxu1 %v8459_v6  ;;  %v8524_v48 = vld [vmem:[#allocation14 + $0x1c8] sm:$0xff]  }
 0x213   : > { %7957 = vmatprep.mubr.bf16.mxu0 %v8450_v46 }
 0x215   : > { %7972 = vmatpush3.bf16.msra.mxu1 %v8459_v6 }
 0x216   : > { %7973 = vmatprep.subr.bf16.mxu1 %v8466_v13 }
 0x218   : > { %7894 = vmatmul.mubr.bf16.gmra.mxu1 %v8453_v37  ;;  %v8508_v37 = vld [vmem:[#allocation5 + $0x40] sm:$0xff]  }
 0x219   : > { %7897 = vmatprep.mubr.bf16.mxu1 %v8454_v15  ;;  %7974 = vmatpush3.bf16.msra.mxu1 %v8466_v13 }
 0x21a   : > { %7958 = vmatmul.mubr.bf16.gmra.mxu0 %v8455_v16  ;;  %7975 = vmatprep.subr.bf16.mxu1 %v8471_v14  ;;  %v8509_v16 = vld [vmem:[#allocation5 + $0x48] sm:$0xff]  }
 0x21b   : > { %7961 = vmatprep.mubr.bf16.mxu0 %v8457_v19  ;;  %v8510_v19 = vld [vmem:[#allocation4 + $0x88] sm:$0xff]  }
 0x21d   : > { %7976 = vmatpush3.bf16.msra.mxu1 %v8471_v14  ;;  %v8529_v14 = vld [vmem:[#allocation14 + $0x1c0] sm:$0xff]  }
 0x21e   : > { %7977 = vmatprep.subr.bf16.mxu1 %v8476_v1 }
 0x220   : > { %7898 = vmatmul.mubr.bf16.gmra.mxu1 %v8460_v52  ;;  %v8512_v52 = vld [vmem:[#allocation5 + $0x10] sm:$0xff]  }
 0x221   : > { %7901 = vmatprep.mubr.bf16.mxu1 %v8461_v25  ;;  %7978 = vmatpush3.bf16.msra.mxu1 %v8476_v1 }
 0x222   : > { %7962 = vmatmul.mubr.bf16.gmra.mxu0 %v8462_v3  ;;  %7979 = vmatprep.subr.bf16.mxu1 %v8481_v56  ;;  %v8515_v3 = vld [vmem:[#allocation5 + $0x50] sm:$0xff]  }
 0x223   : > { %8029 = vmatprep.mubr.bf16.mxu0 %v8464_v54 }
 0x225   : > { %7980 = vmatpush3.bf16.msra.mxu1 %v8481_v56 }
 0x226   : > { %8061 = vmatprep.subr.bf16.mxu1 %v8486_v59 }
 0x228   : > { %7902 = vmatmul.mubr.bf16.gmra.mxu1 %v8467_v27 }
 0x229   : > { %7905 = vmatprep.mubr.bf16.mxu1 %v8468_v21  ;;  %v8517_v21 = vld [vmem:[#allocation5 + $0x18] sm:$0xff]  }
 0x22a   : > { %8030 = vmatmul.mubr.bf16.vlgmr.msra.gmra.mxu0 %v8469_v29 }
 0x22b   : > { %8033 = vmatprep.mubr.bf16.mxu0 %v8470_v39  ;;  %8110 = vmatpush3.bf16.msra.mxu0 %v9682_v23  ;;  %v8514_v23 = vld [vmem:[#allocation14 + $0x1d8] sm:$0xff]  }
 0x22c   : > { %8111 = vmatprep.subr.bf16.mxu0 %v8492_v0 }
 0x22f   : > { %8112 = vmatpush3.bf16.msra.mxu0 %v8492_v0  ;;  %v8518_v0 = vld [vmem:[#allocation5 + $0x20] sm:$0xff]  }
 0x230   : > { %7906 = vmatmul.mubr.bf16.gmra.mxu1 %v8472_v32  ;;  %8113 = vmatprep.subr.bf16.mxu0 %v8497_v61 }
 0x231   : > { %7909 = vmatprep.mubr.bf16.mxu1 %v8473_v33 }
 0x232   : > { %8034 = vmatmul.mubr.bf16.gmra.mxu0 %v8474_v28 }
 0x233   : > { %8037 = vmatprep.mubr.bf16.mxu0 %v8475_v36  ;;  %8114 = vmatpush3.bf16.msra.mxu0 %v8497_v61 }
 0x234   : > { %8115 = vmatprep.subr.bf16.mxu0 %v8499_v35 }
 0x237   : > { %8116 = vmatpush3.bf16.msra.mxu0 %v8499_v35  ;;  %v8520_v35 = vld [vmem:[#allocation5 + $0x60] sm:$0xff]  }
 0x238   : > { %7910 = vmatmul.mubr.bf16.gmra.mxu1 %v8477_v40  ;;  %8117 = vmatprep.subr.bf16.mxu0 %v8504_v38 }
 0x239   : > { %7913 = vmatprep.mubr.bf16.mxu1 %v8478_v10  ;;  %v8522_v10 = vld [vmem:[#allocation5 + $0x28] sm:$0xff]  }
 0x23a   : > { %8038 = vmatmul.mubr.bf16.gmra.mxu0 %v8479_v18 }
 0x23b   : > { %8041 = vmatprep.mubr.bf16.mxu0 %v8480_v60  ;;  %8118 = vmatpush3.bf16.msra.mxu0 %v8504_v38  ;;  %v8521_v38 = vld [vmem:[#allocation5 + $0x68] sm:$0xff]  }
 0x23c   : > { %8119 = vmatprep.subr.bf16.mxu0 %v8506_v26 }
 0x23f   : > { %8120 = vmatpush3.bf16.msra.mxu0 %v8506_v26  ;;  %v8523_v26 = vld [vmem:[#allocation5 + $0x30] sm:$0xff]  }
 0x240   : > { %7914 = vmatmul.mubr.bf16.gmra.mxu1 %v8482_v5  ;;  %8121 = vmatprep.subr.bf16.mxu0 %v8511_v4 }
 0x241   : > { %7981 = vmatprep.mubr.bf16.mxu1 %v8483_v31 }
 0x242   : > { %8042 = vmatmul.mubr.bf16.gmra.mxu0 %v8484_v11 }
 0x243   : > { %8045 = vmatprep.mubr.bf16.mxu0 %v8485_v9  ;;  %8122 = vmatpush3.bf16.msra.mxu0 %v8511_v4 }
 0x244   : > { %8123 = vmatprep.subr.bf16.mxu0 %v8513_v20 }
 0x247   : > { %8124 = vmatpush3.bf16.msra.mxu0 %v8513_v20  ;;  %v8525_v20 = vld [vmem:[#allocation5 + $0x70] sm:$0xff]  }
 0x248   : > { %7982 = vmatmul.mubr.bf16.vlgmr.msra.gmra.mxu1 %v8487_v41  ;;  %v9687_v24 = vpop.f32.mrf.mxu0  ;;  %v8526_v41 = vld [vmem:[#allocation5 + $0x78] sm:$0xff]  }
 0x249   : > { %8062 = vmatpush3.bf16.msra.mxu1 %v8486_v59  ;;  %7985 = vmatprep.mubr.bf16.mxu1 %v8488_v55  ;;  %v8516_v59 = vld [vmem:[#allocation5 + $0x58] sm:$0xff]  }
 0x24a   : > { %8046 = vmatmul.mubr.bf16.gmra.mxu0 %v8489_v22  ;;  %8063 = vmatprep.subr.bf16.mxu1 %v8493_v47  ;;  %v9689_v50 = vpop.f32.mrf.mxu0  ;;  %v8527_v55 = vld [vmem:[#allocation5 + $0x38] sm:$0xff]  }
 0x24b   : > { %8049 = vmatprep.mubr.bf16.mxu0 %v8491_v44  ;;  %v8528_v44 = vld [vmem:[#allocation5 + $0x40] sm:$0xff]  }
 0x24c   : > { %v9691_v42 = vpop.f32.mrf.mxu0 }
 0x24d   : > { %8064 = vmatpush3.bf16.msra.mxu1 %v8493_v47 }
 0x24e   : > { %8065 = vmatprep.subr.bf16.mxu1 %v8500_v30  ;;  %v9693_v43 = vpop.f32.mrf.mxu0 }
 0x250   : > { %7986 = vmatmul.mubr.bf16.gmra.mxu1 %v8494_v51  ;;  %v9695_v8 = vpop.f32.mrf.mxu0 }
 0x251   : > { %7989 = vmatprep.mubr.bf16.mxu1 %v8495_v53  ;;  %8066 = vmatpush3.bf16.msra.mxu1 %v8500_v30 }
 0x252   : > { %8050 = vmatmul.mubr.bf16.gmra.mxu0 %v8496_v49  ;;  %8067 = vmatprep.subr.bf16.mxu1 %v8507_v34  ;;  %v9697_v57 = vpop.f32.mrf.mxu0 }
 0x253   : > { %8053 = vmatprep.mubr.bf16.mxu0 %v8498_v12  ;;  %v8530_v12 = vld [vmem:[#allocation5 + $0x80] sm:$0xff]  }
 0x254   : > { %v9699_v17 = vpop.f32.mrf.mxu0 }
 0x255   : > { %8068 = vmatpush3.bf16.msra.mxu1 %v8507_v34 }
 0x256   : > { %8069 = vmatprep.subr.bf16.mxu1 %v8514_v23  ;;  %v9701_v45 = vpop.f32.mrf.mxu0 }
 0x258   : > { %7990 = vmatmul.mubr.bf16.gmra.mxu1 %v8501_v62  ;;  %v9703_v6 = vpop.f32.mrf.mxu0  ;;  %v8531_v62 = vld [vmem:[#allocation3 + $0x10] sm:$0xff]  }
 0x259   : > { %7993 = vmatprep.mubr.bf16.mxu1 %v8502_v7  ;;  %8070 = vmatpush3.bf16.msra.mxu1 %v8514_v23  ;;  %v8532_v7 = vld [vmem:[#allocation5 + $0x48] sm:$0xff]  }
 0x25a   : > { %8054 = vmatmul.mubr.bf16.gmra.mxu0 %v8503_v63  ;;  %8071 = vmatprep.subr.bf16.mxu1 %v8519_v2  ;;  %v9705_v46 = vpop.f32.mrf.mxu0 }
 0x25b   : > { %8057 = vmatprep.mubr.bf16.mxu0 %v8505_v58  ;;  %v8533_v58 = vld [vmem:[#allocation5 + $0x50] sm:$0xff]  }
 0x25c   : > { %v9707_v13 = vpop.f32.mrf.mxu0 }
 0x25d   : > { %8072 = vmatpush3.bf16.msra.mxu1 %v8519_v2 }
 0x25e   : > { %8073 = vmatprep.subr.bf16.mxu1 %v8524_v48  ;;  %v9709_v15 = vpop.f32.mrf.mxu0 }
 0x260   : > { %7994 = vmatmul.mubr.bf16.gmra.mxu1 %v8508_v37  ;;  %v9711_v1 = vpop.f32.mrf.mxu0 }
 0x261   : > { %7997 = vmatprep.mubr.bf16.mxu1 %v8509_v16  ;;  %8074 = vmatpush3.bf16.msra.mxu1 %v8524_v48 }
 0x262   : > { %8058 = vmatmul.mubr.bf16.gmra.mxu0 %v8510_v19  ;;  %8075 = vmatprep.subr.bf16.mxu1 %v8529_v14  ;;  %v9713_v56 = vpop.f32.mrf.mxu0 }
 0x263   : > { %8125 = vmatprep.mubr.bf16.mxu0 %v8512_v52  ;;  %v8534_v52 = vld [vmem:[#allocation3 + $0x18] sm:$0xff]  }
 0x264   : > { %v9715_v25 = vpop.f32.mrf.mxu0 }
 0x265   : > { %8076 = vmatpush3.bf16.msra.mxu1 %v8529_v14 }
 0x266   : > { %v9717_v54 = vpop.f32.mrf.mxu0 }
 0x267   : > { %v9719_v27 = vpop.f32.mrf.mxu1 }
 0x268   : > { %7998 = vmatmul.mubr.bf16.gmra.mxu1 %v8515_v3 }
 0x269   : > { %v9721_v29 = vpop.f32.mrf.mxu0  ;;  %8001 = vmatprep.mubr.bf16.mxu1 %v8516_v59  ;;  %v9723_v39 = vpop.f32.mrf.mxu1  ;;  %v8535_v59 = vld [vmem:[#allocation3 + $0x20] sm:$0xff]  }
 0x26a   : > { %8126 = vmatmul.mubr.bf16.vlgmr.msra.gmra.mxu0 %v8517_v21 }
 0x26b   : > { %8129 = vmatprep.mubr.bf16.mxu0 %v8518_v0  ;;  %v9725_v61 = vpop.f32.mrf.mxu0  ;;  %v9727_v32 = vpop.f32.mrf.mxu1  ;;  %v8536_v0 = vld [vmem:[#allocation5 + $0x58] sm:$0xff]  }
 0x26d   : > { %v9729_v33 = vpop.f32.mrf.mxu0  ;;  %v9731_v28 = vpop.f32.mrf.mxu1 }
 0x26f   : > { %v9733_v36 = vpop.f32.mrf.mxu0  ;;  %v9735_v40 = vpop.f32.mrf.mxu1 }
 0x270   : > { %8002 = vmatmul.mubr.bf16.gmra.mxu1 %v8520_v35 }
 0x271   : > { %v9737_v18 = vpop.f32.mrf.mxu0  ;;  %8005 = vmatprep.mubr.bf16.mxu1 %v8521_v38  ;;  %v9739_v60 = vpop.f32.mrf.mxu1  ;;  %v8537_v38 = vld [vmem:[#allocation5 + $0x60] sm:$0xff]  }
 0x272   : > { %8130 = vmatmul.mubr.bf16.gmra.mxu0 %v8522_v10 }
 0x273   : > { %8133 = vmatprep.mubr.bf16.mxu0 %v8523_v26  ;;  %v9741_v4 = vpop.f32.mrf.mxu0  ;;  %v9743_v5 = vpop.f32.mrf.mxu1 }
 0x275   : > { %v9745_v31 = vpop.f32.mrf.mxu0  ;;  %v9747_v11 = vpop.f32.mrf.mxu1 }
 0x277   : > { %v9749_v9 = vpop.f32.mrf.mxu0 }
 0x278   : > { %v9751_v47 = vpop.f32.mrf.mxu1  ;;  %8006 = vmatmul.mubr.bf16.gmra.mxu1 %v8525_v20 }
 0x279   : > { %v9753_v22 = vpop.f32.mrf.mxu0  ;;  %8009 = vmatprep.mubr.bf16.mxu1 %v8526_v41 }
 0x27a   : > { %8134 = vmatmul.mubr.bf16.gmra.mxu0 %v8527_v55  ;;  %v9755_v30 = vpop.f32.mrf.mxu1 }
 0x27b   : > { %8137 = vmatprep.mubr.bf16.mxu0 %v8528_v44  ;;  %v9757_v51 = vpop.f32.mrf.mxu0 }
 0x27c   : > { %v9759_v34 = vpop.f32.mrf.mxu1 }
 0x27d   : > { %v9761_v53 = vpop.f32.mrf.mxu0 }
 0x27e   : > { %v9763_v49 = vpop.f32.mrf.mxu1 }
 0x27f   : > { %v9765_v23 = vpop.f32.mrf.mxu0 }
 0x280   : > { %v9767_v2 = vpop.f32.mrf.mxu1  ;;  %8010 = vmatmul.mubr.bf16.gmra.mxu1 %v8530_v12 }
 0x281   : > { %v9769_v63 = vpop.f32.mrf.mxu0  ;;  %8077 = vmatprep.mubr.bf16.mxu1 %v8531_v62 }
 0x282   : > { %8138 = vmatmul.mubr.bf16.gmra.mxu0 %v8532_v7  ;;  %v9771_v48 = vpop.f32.mrf.mxu1 }
 0x283   : > { %8141 = vmatprep.mubr.bf16.mxu0 %v8533_v58  ;;  %v9773_v37 = vpop.f32.mrf.mxu0  ;;  %v8538_v58 = vld [vmem:[#allocation3 + $0x28] sm:$0xff]  }
 0x284   : > { %v9775_v14 = vpop.f32.mrf.mxu1 }
 0x285   : > { %v9777_v16 = vpop.f32.mrf.mxu0 }
 0x286   : > { %v9779_v19 = vpop.f32.mrf.mxu1 }
 0x287   : > { %v9781_v3 = vpop.f32.mrf.mxu0 }
 0x288   : > { %v7791_v21 = vpop.f32.mrf.mxu1  ;;  %8078 = vmatmul.mubr.bf16.vlgmr.msra.gmra.mxu1 %v8534_v52 }
 0x289   : > { %v3038_v35 = vadd.f32 %v7791_v21, %v9687_v24  ;;  %8081 = vmatprep.mubr.bf16.mxu1 %v8535_v59  ;;  %v8539_v59 = vld [vmem:[#allocation3 + $0x30] sm:$0xff]  }
 0x28a   : > { %v9784_v10 = vpop.f32.mrf.mxu0  ;;  %8142 = vmatmul.mubr.bf16.gmra.mxu0 %v8536_v0  ;;  %v3029_v26 = vpop.f32.mrf.mxu1  ;;  %v8540_v0 = vld [vmem:[#allocation5 + $0x68] sm:$0xff]  }
 0x28b   : > { %v3030_v20 = vadd.f32 %v3029_v26, %v9689_v50  ;;  %8145 = vmatprep.mubr.bf16.mxu0 %v8537_v38  ;;  %v9788_v41 = vadd.f32 %v9721_v29, %v3038_v35 }
 0x28c   : > { %v9790_v55 = vpop.f32.mrf.mxu0  ;;  %v7792_v44 = vpop.f32.mrf.mxu1 }
 0x28d   : > { %v3041_v12 = vadd.f32 %v7792_v44, %v9691_v42  ;;  %v9794_v62 = vadd.f32 %v9725_v61, %v3030_v20  ;;  %v8541_v61 = vld [vmem:[#allocation5 + $0x70] sm:$0xff]  }
 0x28e   : > { %v9796_v24 = vpop.f32.mrf.mxu0  ;;  %v3032_v7 = vpop.f32.mrf.mxu1 }
 0x28f   : > { %v3033_v52 = vadd.f32 %v3032_v7, %v9693_v43  ;;  %v9800_v50 = vadd.f32 %v9729_v33, %v3041_v12 }
 0x290   : > { %v9802_v29 = vpop.f32.mrf.mxu0  ;;  %v7795_v21 = vpop.f32.mrf.mxu1  ;;  %8082 = vmatmul.mubr.bf16.gmra.mxu1 %v8538_v58  ;;  %v8542_v58 = vld [vmem:[#allocation3 + $0x38] sm:$0xff]  }
 0x291   : > { %v3054_v42 = vadd.f32 %v7795_v21, %v9695_v8  ;;  %8085 = vmatprep.mubr.bf16.mxu1 %v8539_v59  ;;  %v9806_v35 = vadd.f32 %v9733_v36, %v3033_v52  ;;  %v8543_v59 = vld [vmem:[#allocation3 + $0x40] sm:$0xff]  }
 0x292   : > { %v9808_v38 = vpop.f32.mrf.mxu0  ;;  %8146 = vmatmul.mubr.bf16.gmra.mxu0 %v8540_v0  ;;  %v3045_v43 = vpop.f32.mrf.mxu1  ;;  %v8544_v0 = vld [vmem:[#allocation5 + $0x78] sm:$0xff]  }
 0x293   : > { %v3046_v26 = vadd.f32 %v3045_v43, %v9697_v57  ;;  %8149 = vmatprep.mubr.bf16.mxu0 %v8541_v61  ;;  %v9812_v33 = vadd.f32 %v9737_v18, %v3054_v42 }
 0x294   : > { %v9814_v20 = vpop.f32.mrf.mxu0  ;;  %v7796_v44 = vpop.f32.mrf.mxu1 }
 0x295   : > { %v3057_v8 = vadd.f32 %v7796_v44, %v9699_v17  ;;  %v9818_v12 = vadd.f32 %v9741_v4, %v3046_v26  ;;  %v8545_v4 = vld [vmem:[#allocation5 + $0x80] sm:$0xff]  }
 0x296   : > { %v9820_v36 = vpop.f32.mrf.mxu0  ;;  %v3048_v7 = vpop.f32.mrf.mxu1 }
 0x297   : > { %v3049_v52 = vadd.f32 %v3048_v7, %v9701_v45  ;;  %v9824_v57 = vadd.f32 %v9745_v31, %v3057_v8  ;;  %v8556_v8 = vld [vmem:[#allocation15 + $0x38] sm:$0xff]  }
 0x298   : > { %v9826_v18 = vpop.f32.mrf.mxu0  ;;  %v7799_v21 = vpop.f32.mrf.mxu1  ;;  %8086 = vmatmul.mubr.bf16.gmra.mxu1 %v8542_v58  ;;  %8157 = vmatprep.subr.bf16.mxu1 %v8556_v8 }
 0x299   : > { %v3070_v17 = vadd.f32 %v7799_v21, %v9703_v6  ;;  %8089 = vmatprep.mubr.bf16.mxu1 %v8543_v59  ;;  %v9830_v42 = vadd.f32 %v9749_v9, %v3049_v52  ;;  %v8546_v52 = vld [vmem:[#allocation3 + $0x48] sm:$0xff]   ;;  %v8547_v21 = vld [vmem:[#allocation3 + $0x50] sm:$0xff]   ;;  %8158 = vmatpush3.bf16.msra.mxu1 %v8556_v8  ;;  %v8557_v8 = vld [vmem:[#allocation15 + $0x30] sm:$0xff]  }
 0x29a   : > { %v9832_v61 = vpop.f32.mrf.mxu0  ;;  %8150 = vmatmul.mubr.bf16.gmra.mxu0 %v8544_v0  ;;  %v3061_v45 = vpop.f32.mrf.mxu1  ;;  %v8554_v59 = vld [vmem:[#allocation5 + $0x88] sm:$0xff]   ;;  %8159 = vmatprep.subr.bf16.mxu1 %v8557_v8 }
 0x29b   : > { %v3062_v43 = vadd.f32 %v3061_v45, %v9705_v46  ;;  %8153 = vmatprep.mubr.bf16.mxu0 %v8545_v4  ;;  %v9836_v31 = vadd.f32 %v9753_v22, %v3070_v17 }
 0x29c   : > { %v9838_v26 = vpop.f32.mrf.mxu0  ;;  %v7800_v44 = vpop.f32.mrf.mxu1 }
 0x29d   : > { %v3073_v6 = vadd.f32 %v7800_v44, %v9707_v13  ;;  %v9842_v7 = vadd.f32 %v9757_v51, %v3062_v43  ;;  %8160 = vmatpush3.bf16.msra.mxu1 %v8557_v8 }
 0x29e   : > { %v9844_v9 = vpop.f32.mrf.mxu0  ;;  %v3064_v58 = vpop.f32.mrf.mxu1 }
 0x29f   : > { %v3065_v46 = vadd.f32 %v3064_v58, %v9709_v15  ;;  %v9848_v22 = vadd.f32 %v9761_v53, %v3073_v6 }
 0x2a0   : > { %v9850_v0 = vpop.f32.mrf.mxu0  ;;  %v7803_v17 = vpop.f32.mrf.mxu1  ;;  %8090 = vmatmul.mubr.bf16.gmra.mxu1 %v8546_v52  ;;  %v8548_v52 = vld [vmem:[#allocation3 + $0x58] sm:$0xff]  }
 0x2a1   : > { %v3086_v13 = vadd.f32 %v7803_v17, %v9711_v1  ;;  %8093 = vmatprep.mubr.bf16.mxu1 %v8547_v21  ;;  %v9854_v51 = vadd.f32 %v9765_v23, %v3065_v46 }
 0x2a2   : > { %v9856_v4 = vpop.f32.mrf.mxu0  ;;  %v3077_v45 = vpop.f32.mrf.mxu1  ;;  %8154 = vmatmul.mubr.bf16.gmra.mxu0 %v8554_v59 }
 0x2a3   : > { %v3078_v15 = vadd.f32 %v3077_v45, %v9713_v56  ;;  %v9860_v53 = vadd.f32 %v9769_v63, %v3086_v13  ;;  %v8549_v56 = vld [vmem:[#allocation3 + $0x60] sm:$0xff]  }
 0x2a4   : > { %v9862_v43 = vpop.f32.mrf.mxu0  ;;  %v7804_v44 = vpop.f32.mrf.mxu1 }
 0x2a5   : > { %v3089_v6 = vadd.f32 %v7804_v44, %v9715_v25  ;;  %v9866_v1 = vadd.f32 %v9773_v37, %v3078_v15  ;;  %v8558_v44 = vld [vmem:[#allocation15 + $0x28] sm:$0xff]  }
 0x2a6   : > { %v9868_v23 = vpop.f32.mrf.mxu0  ;;  %v3080_v58 = vpop.f32.mrf.mxu1  ;;  %8161 = vmatprep.subr.bf16.mxu1 %v8558_v44 }
 0x2a7   : > { %v3081_v59 = vadd.f32 %v3080_v58, %v9717_v54  ;;  %v9872_v63 = vadd.f32 %v9777_v16, %v3089_v6  ;;  %v8550_v58 = vld [vmem:[#allocation3 + $0x68] sm:$0xff]   ;;  %8162 = vmatpush3.bf16.msra.mxu1 %v8558_v44 }
 0x2a8   : > { %v9874_v46 = vpop.f32.mrf.mxu0  ;;  %v7807_v21 = vpop.f32.mrf.mxu1  ;;  %8094 = vmatmul.mubr.bf16.gmra.mxu1 %v8548_v52 }
 0x2a9   : > { %v3102_v25 = vadd.f32 %v7807_v21, %v9719_v27  ;;  %8097 = vmatprep.mubr.bf16.mxu1 %v8549_v56  ;;  %v9878_v37 = vadd.f32 %v9781_v3, %v3081_v59 }
 0x2aa   : > { %v9880_v17 = vpop.f32.mrf.mxu0  ;;  %v3093_v13 = vpop.f32.mrf.mxu1 }
 0x2ab   : > { %v3094_v54 = vadd.f32 %v3093_v13, %v9723_v39  ;;  %v9884_v45 = vadd.f32 %v9784_v10, %v3102_v25  ;;  %v8551_v39 = vld [vmem:[#allocation3 + $0x70] sm:$0xff]  }
 0x2ac   : > { %v9886_v16 = vpop.f32.mrf.mxu0  ;;  %v7808_v15 = vpop.f32.mrf.mxu1 }
 0x2ad   : > { %v3105_v8 = vadd.f32 %v7808_v15, %v9727_v32  ;;  %v9890_v27 = vadd.f32 %v9790_v55, %v3094_v54  ;;  %v8559_v15 = vld [vmem:[#allocation15 + $0x20] sm:$0xff]  }
 0x2ae   : > { %v9892_v6 = vpop.f32.mrf.mxu0  ;;  %v3096_v3 = vpop.f32.mrf.mxu1  ;;  %8163 = vmatprep.subr.bf16.mxu1 %v8559_v15 }
 0x2af   : > { %v3097_v52 = vadd.f32 %v3096_v3, %v9731_v28  ;;  %v9896_v10 = vadd.f32 %v9796_v24, %v3105_v8  ;;  %v8552_v3 = vld [vmem:[#allocation3 + $0x78] sm:$0xff]   ;;  %8164 = vmatpush3.bf16.msra.mxu1 %v8559_v15  ;;  %v8560_v15 = vld [vmem:[#allocation15 + $0x18] sm:$0xff]  }
 0x2b0   : > { %v9898_v59 = vpop.f32.mrf.mxu0  ;;  %v7811_v56 = vpop.f32.mrf.mxu1  ;;  %8098 = vmatmul.mubr.bf16.gmra.mxu1 %v8550_v58  ;;  %8165 = vmatprep.subr.bf16.mxu1 %v8560_v15 }
 0x2b1   : > { %v3118_v32 = vadd.f32 %v7811_v56, %v9735_v40  ;;  %8101 = vmatprep.mubr.bf16.mxu1 %v8551_v39  ;;  %v9902_v55 = vadd.f32 %v9802_v29, %v3097_v52 }
 0x2b2   : > { %v9904_v21 = vpop.f32.mrf.mxu0  ;;  %v3109_v25 = vpop.f32.mrf.mxu1 }
 0x2b3   : > { %v3110_v28 = vadd.f32 %v3109_v25, %v9739_v60  ;;  %v9908_v13 = vadd.f32 %v9808_v38, %v3118_v32  ;;  %v8553_v60 = vld [vmem:[#allocation3 + $0x80] sm:$0xff]   ;;  %8166 = vmatpush3.bf16.msra.mxu1 %v8560_v15 }
 0x2b4   : > { %v9910_v24 = vpop.f32.mrf.mxu0  ;;  %v7812_v54 = vpop.f32.mrf.mxu1 }
 0x2b5   : > { %v3121_v44 = vadd.f32 %v7812_v54, %v9743_v5  ;;  %v9914_v40 = vadd.f32 %v9814_v20, %v3110_v28  ;;  %v8555_v54 = vld [vmem:[#allocation3 + $0x88] sm:$0xff]  }
 0x2b6   : > { %v9916_v8 = vpop.f32.mrf.mxu0  ;;  %v3112_v29 = vpop.f32.mrf.mxu1 }
 0x2b7   : > { %v3113_v58 = vadd.f32 %v3112_v29, %v9747_v11  ;;  %v9920_v38 = vadd.f32 %v9820_v36, %v3121_v44 }
 0x2b8   : > { %v9922_v52 = vpop.f32.mrf.mxu0  ;;  %v7815_v39 = vpop.f32.mrf.mxu1  ;;  %8102 = vmatmul.mubr.bf16.gmra.mxu1 %v8552_v3 }
 0x2b9   : > { %v3134_v5 = vadd.f32 %v7815_v39, %v9751_v47  ;;  %8105 = vmatprep.mubr.bf16.mxu1 %v8553_v60  ;;  %v9926_v20 = vadd.f32 %v9826_v18, %v3113_v58 }
 0x2ba   : > { %v9928_v56 = vpop.f32.mrf.mxu0  ;;  %v3125_v32 = vpop.f32.mrf.mxu1 }
 0x2bb   : > { %v3126_v11 = vadd.f32 %v3125_v32, %v9755_v30  ;;  %v9932_v25 = vadd.f32 %v9832_v61, %v3134_v5 }
 0x2bc   : > { %v9934_v36 = vpop.f32.mrf.mxu0  ;;  %v7816_v28 = vpop.f32.mrf.mxu1 }
 0x2bd   : > { %v3137_v44 = vadd.f32 %v7816_v28, %v9759_v34  ;;  %v9938_v47 = vadd.f32 %v9838_v26, %v3126_v11  ;;  %v8561_v11 = vld [vmem:[#allocation15 + $0x10] sm:$0xff]  }
 0x2be   : > { %v9940_v18 = vpop.f32.mrf.mxu0  ;;  %v3128_v29 = vpop.f32.mrf.mxu1  ;;  %8167 = vmatprep.subr.bf16.mxu1 %v8561_v11 }
 0x2bf   : > { %v3129_v3 = vadd.f32 %v3128_v29, %v9763_v49  ;;  %v9944_v30 = vadd.f32 %v9844_v9, %v3137_v44  ;;  %8168 = vmatpush3.bf16.msra.mxu1 %v8561_v11 }
 0x2c0   : > { %v9946_v61 = vpop.f32.mrf.mxu0  ;;  %v7819_v58 = vpop.f32.mrf.mxu1  ;;  %8106 = vmatmul.mubr.bf16.gmra.mxu1 %v8555_v54 }
 0x2c1   : > { %v3150_v60 = vadd.f32 %v7819_v58, %v9767_v2  ;;  %v9950_v34 = vadd.f32 %v9850_v0, %v3129_v3 }
 0x2c2   : > { %v9952_v26 = vpop.f32.mrf.mxu0  ;;  %v3141_v39 = vpop.f32.mrf.mxu1 }
 0x2c3   : > { %v3142_v5 = vadd.f32 %v3141_v39, %v9771_v48  ;;  %v9956_v49 = vadd.f32 %v9856_v4, %v3150_v60 }
 0x2c4   : > { %v9958_v9 = vpop.f32.mrf.mxu0  ;;  %v7820_v32 = vpop.f32.mrf.mxu1 }
 0x2c5   : > { %v3153_v28 = vadd.f32 %v7820_v32, %v9775_v14  ;;  %v9962_v54 = vadd.f32 %v9862_v43, %v3142_v5 }
 0x2c6   : > { %v9964_v2 = vpop.f32.mrf.mxu0  ;;  %v3144_v0 = vpop.f32.mrf.mxu1 }
 0x2c7   : > { %v3145_v15 = vadd.f32 %v3144_v0, %v9779_v19  ;;  %v9968_v48 = vadd.f32 %v9868_v23, %v3153_v28 }
 0x2c8   : > { %v9970_v4 = vpop.f32.mrf.mxu0  ;;  %v7887_v44 = vpop.f32.mrf.mxu1 }
 0x2c9   : > { %v3898_v29 = vadd.f32 %v7887_v44, %v9788_v41  ;;  %v9974_v14 = vadd.f32 %v9874_v46, %v3145_v15 }
 0x2ca   : > { %v9976_v43 = vpop.f32.mrf.mxu0  ;;  %v3769_v3 = vpop.f32.mrf.mxu1 }
 0x2cb   : > { %v3896_v58 = vadd.f32 %v3769_v3, %v9794_v62  ;;  %v9980_v60 = vadd.f32 %v9880_v17, %v3898_v29 }
 0x2cc   : > { %v9982_v19 = vpop.f32.mrf.mxu0  ;;  %v7888_v23 = vpop.f32.mrf.mxu1 }
 0x2cd   : > { %v3899_v39 = vadd.f32 %v7888_v23, %v9800_v50  ;;  %v9986_v5 = vadd.f32 %v9886_v16, %v3896_v58  ;;  %v8562_v50 = vld [vmem:[#allocation15 + $0x8] sm:$0xff]  }
 0x2ce   : > { %v9988_v41 = vpop.f32.mrf.mxu0  ;;  %v3772_v46 = vpop.f32.mrf.mxu1  ;;  %8169 = vmatprep.subr.bf16.mxu1 %v8562_v50 }
 0x2cf   : > { %v3897_v32 = vadd.f32 %v3772_v46, %v9806_v35  ;;  %v9992_v11 = vadd.f32 %v9892_v6, %v3899_v39  ;;  %8170 = vmatpush3.bf16.msra.mxu1 %v8562_v50 }
 0x2d0   : > { %v9994_v62 = vpop.f32.mrf.mxu0  ;;  %v7891_v17 = vpop.f32.mrf.mxu1 }
 0x2d1   : > { %v3902_v28 = vadd.f32 %v7891_v17, %v9812_v33  ;;  %v9998_v0 = vadd.f32 %v9898_v59, %v3897_v32 }
 0x2d2   : > { %v10000_v15 = vpop.f32.mrf.mxu0  ;;  %v3785_v16 = vpop.f32.mrf.mxu1 }
 0x2d3   : > { %v3900_v44 = vadd.f32 %v3785_v16, %v9818_v12  ;;  %v10004_v29 = vadd.f32 %v9904_v21, %v3902_v28 }
 0x2d4   : > { %v10006_v35 = vpop.f32.mrf.mxu0  ;;  %v7892_v6 = vpop.f32.mrf.mxu1 }
 0x2d5   : > { %v3903_v3 = vadd.f32 %v7892_v6, %v9824_v57  ;;  %v10010_v33 = vadd.f32 %v9910_v24, %v3900_v44  ;;  %v8563_v57 = vld [vmem:[#allocation15] sm:$0xff]  }
 0x2d6   : > { %v10012_v59 = vpop.f32.mrf.mxu0  ;;  %v3788_v58 = vpop.f32.mrf.mxu1  ;;  %8171 = vmatprep.subr.bf16.mxu1 %v8563_v57 }
 0x2d7   : > { %v3901_v23 = vadd.f32 %v3788_v58, %v9830_v42  ;;  %v10016_v12 = vadd.f32 %v9916_v8, %v3903_v3  ;;  %8172 = vmatpush3.bf16.msra.mxu1 %v8563_v57 }
 0x2d8   : > { %v10018_v21 = vpop.f32.mrf.mxu0  ;;  %v7895_v39 = vpop.f32.mrf.mxu1 }
 0x2d9   : > { %v3906_v46 = vadd.f32 %v7895_v39, %v9836_v31  ;;  %v10022_v32 = vadd.f32 %v9922_v52, %v3901_v23 }
 0x2da   : > { %v10024_v17 = vpop.f32.mrf.mxu0  ;;  %v3801_v24 = vpop.f32.mrf.mxu1 }
 0x2db   : > { %v3904_v28 = vadd.f32 %v3801_v24, %v9842_v7  ;;  %v10028_v50 = vadd.f32 %v9928_v56, %v3906_v46 }
 0x2dc   : > { %v10030_v42 = vpop.f32.mrf.mxu0  ;;  %v7896_v8 = vpop.f32.mrf.mxu1 }
 0x2dd   : > { %v3907_v16 = vadd.f32 %v7896_v8, %v9848_v22  ;;  %v10034_v31 = vadd.f32 %v9934_v36, %v3904_v28 }
 0x2de   : > { %v10036_v52 = vpop.f32.mrf.mxu0  ;;  %v3804_v44 = vpop.f32.mrf.mxu1 }
 0x2df   : > { %v3905_v6 = vadd.f32 %v3804_v44, %v9854_v51  ;;  %v10040_v7 = vadd.f32 %v9940_v18, %v3907_v16 }
 0x2e0   : > { %v10042_v56 = vpop.f32.mrf.mxu0  ;;  %v7899_v3 = vpop.f32.mrf.mxu1 }
 0x2e1   : > { %v3910_v58 = vadd.f32 %v7899_v3, %v9860_v53  ;;  %v10046_v23 = vadd.f32 %v9946_v61, %v3905_v6 }
 0x2e2   : > { %v10048_v22 = vpop.f32.mrf.mxu0  ;;  %v3817_v36 = vpop.f32.mrf.mxu1 }
 0x2e3   : > { %v3908_v39 = vadd.f32 %v3817_v36, %v9866_v1  ;;  %v10052_v46 = vadd.f32 %v9952_v26, %v3910_v58 }
 0x2e4   : > { %v10054_v51 = vpop.f32.mrf.mxu0  ;;  %v7900_v18 = vpop.f32.mrf.mxu1 }
 0x2e5   : > { %v3911_v57 = vadd.f32 %v7900_v18, %v9872_v63  ;;  %v10058_v24 = vadd.f32 %v9958_v9, %v3908_v39 }
 0x2e6   : > { %v10060_v53 = vpop.f32.mrf.mxu0  ;;  %v3820_v61 = vpop.f32.mrf.mxu1 }
 0x2e7   : > { %v3909_v28 = vadd.f32 %v3820_v61, %v9878_v37  ;;  %v10064_v8 = vadd.f32 %v9964_v2, %v3911_v57 }
 0x2e8   : > { %v10066_v1 = vpop.f32.mrf.mxu0  ;;  %v7903_v26 = vpop.f32.mrf.mxu1 }
 0x2e9   : > { %v3914_v16 = vadd.f32 %v7903_v26, %v9884_v45  ;;  %v10070_v44 = vadd.f32 %v9970_v4, %v3909_v28 }
 0x2ea   : > { %v10072_v63 = vpop.f32.mrf.mxu0  ;;  %v3833_v9 = vpop.f32.mrf.mxu1 }
 0x2eb   : > { %v3912_v6 = vadd.f32 %v3833_v9, %v9890_v27  ;;  %v10076_v3 = vadd.f32 %v9976_v43, %v3914_v16 }
 0x2ec   : > { %v10078_v37 = vpop.f32.mrf.mxu0  ;;  %v7904_v2 = vpop.f32.mrf.mxu1 }
 0x2ed   : > { %v3915_v58 = vadd.f32 %v7904_v2, %v9896_v10  ;;  %v10082_v36 = vadd.f32 %v9982_v19, %v3912_v6 }
 0x2ee   : > { %v10084_v45 = vpop.f32.mrf.mxu0  ;;  %v3836_v4 = vpop.f32.mrf.mxu1 }
 0x2ef   : > { %v3913_v39 = vadd.f32 %v3836_v4, %v9902_v55  ;;  %v10088_v18 = vadd.f32 %v9988_v41, %v3915_v58 }
 0x2f0   : > { %v10090_v27 = vpop.f32.mrf.mxu0  ;;  %v7907_v43 = vpop.f32.mrf.mxu1 }
 0x2f1   : > { %v3918_v57 = vadd.f32 %v7907_v43, %v9908_v13  ;;  %v10094_v61 = vadd.f32 %v9994_v62, %v3913_v39 }
 0x2f2   : > { %v10096_v10 = vpop.f32.mrf.mxu0  ;;  %v3849_v19 = vpop.f32.mrf.mxu1 }
 0x2f3   : > { %v3916_v28 = vadd.f32 %v3849_v19, %v9914_v40  ;;  %v10100_v26 = vadd.f32 %v10000_v15, %v3918_v57 }
 0x2f4   : > { %v10102_v55 = vpop.f32.mrf.mxu0  ;;  %v7908_v41 = vpop.f32.mrf.mxu1 }
 0x2f5   : > { %v3919_v16 = vadd.f32 %v7908_v41, %v9920_v38  ;;  %v10106_v9 = vadd.f32 %v10006_v35, %v3916_v28 }
 0x2f6   : > { %v10108_v13 = vpop.f32.mrf.mxu0  ;;  %v3852_v62 = vpop.f32.mrf.mxu1 }
 0x2f7   : > { %v3917_v6 = vadd.f32 %v3852_v62, %v9926_v20  ;;  %v10112_v2 = vadd.f32 %v10012_v59, %v3919_v16 }
 0x2f8   : > { %v10114_v40 = vpop.f32.mrf.mxu0  ;;  %v7911_v15 = vpop.f32.mrf.mxu1 }
 0x2f9   : > { %v3922_v58 = vadd.f32 %v7911_v15, %v9932_v25  ;;  %v10118_v4 = vadd.f32 %v10018_v21, %v3917_v6 }
 0x2fa   : > { %v10120_v38 = vpop.f32.mrf.mxu0  ;;  %v3865_v35 = vpop.f32.mrf.mxu1 }
 0x2fb   : > { %10775 = vst [vmem:[#allocation31_spill] sm:$0xff] %v10118_v4  ;;  %v3920_v39 = vadd.f32 %v3865_v35, %v9938_v47  ;;  %v10124_v43 = vadd.f32 %v10024_v17, %v3922_v58 }
 0x2fc   : > { %v10126_v20 = vpop.f32.mrf.mxu0  ;;  %v7912_v59 = vpop.f32.mrf.mxu1 }
 0x2fd   : > { %v3923_v57 = vadd.f32 %v7912_v59, %v9944_v30  ;;  %v10130_v19 = vadd.f32 %v10030_v42, %v3920_v39 }
 0x2fe   : > { %v8040_v25 = vpop.f32.mrf.mxu0  ;;  %v3868_v28 = vpop.f32.mrf.mxu1 }
 0x2ff   : > { %v3921_v21 = vadd.f32 %v3868_v28, %v9950_v34  ;;  %v10134_v41 = vadd.f32 %v10036_v52, %v3923_v57 }
 0x300   : > { %v10136_v16 = vpop.f32.mrf.mxu0  ;;  %v7915_v47 = vpop.f32.mrf.mxu1 }
 0x301   : > { %v3926_v17 = vadd.f32 %v7915_v47, %v9956_v49  ;;  %v10140_v62 = vadd.f32 %v10042_v56, %v3921_v21 }
 0x302   : > { %v8043_v6 = vpop.f32.mrf.mxu0  ;;  %v3881_v30 = vpop.f32.mrf.mxu1 }
 0x303   : > { %10776 = vst [vmem:[#allocation32_spill] sm:$0xff] %v10140_v62  ;;  %v3924_v42 = vadd.f32 %v3881_v30, %v9962_v54  ;;  %v10144_v15 = vadd.f32 %v10048_v22, %v3926_v17 }
 0x304   : > { %v4975_v58 = vpop.f32.mrf.mxu0  ;;  %v7916_v34 = vpop.f32.mrf.mxu1 }
 0x305   : > { %v3927_v52 = vadd.f32 %v7916_v34, %v9968_v48  ;;  %v10148_v35 = vadd.f32 %v10054_v51, %v3924_v42 }
 0x306   : > { %v8044_v39 = vpop.f32.mrf.mxu0  ;;  %v3884_v59 = vpop.f32.mrf.mxu1 }
 0x307   : > { %v3925_v49 = vadd.f32 %v3884_v59, %v9974_v14  ;;  %v10152_v56 = vadd.f32 %v10060_v53, %v3927_v52 }
 0x308   : > { %v10154_v57 = vpop.f32.mrf.mxu0  ;;  %v7983_v54 = vpop.f32.mrf.mxu1 }
 0x309   : > { %v4670_v22 = vadd.f32 %v7983_v54, %v9980_v60  ;;  %v10158_v28 = vadd.f32 %v10066_v1, %v3925_v49 }
 0x30a   : > { %v8047_v21 = vpop.f32.mrf.mxu0  ;;  %v4541_v48 = vpop.f32.mrf.mxu1 }
 0x30b   : > { %10777 = vst [vmem:[#allocation33_spill] sm:$0xff] %v10158_v28  ;;  %v4668_v51 = vadd.f32 %v4541_v48, %v9986_v5  ;;  %v10162_v47 = vadd.f32 %v10072_v63, %v4670_v22 }
 0x30c   : > { %v4991_v17 = vpop.f32.mrf.mxu0  ;;  %v7984_v14 = vpop.f32.mrf.mxu1 }
 0x30d   : > { %v4671_v53 = vadd.f32 %v7984_v14, %v9992_v11  ;;  %v10166_v30 = vadd.f32 %v10078_v37, %v4668_v51 }
 0x30e   : > { %v8048_v42 = vpop.f32.mrf.mxu0  ;;  %v10168_v34 = vpop.f32.mrf.mxu1 }
 0x30f   : > { %v10171_v60 = vadd.f32 %v10084_v45, %v4671_v53 }
 0x310   : > { %v10173_v1 = vpop.f32.mrf.mxu0  ;;  %v7987_v52 = vpop.f32.mrf.mxu1 }
 0x311   : > { %10778 = vst [vmem:[#allocation34_spill] sm:$0xff] %v10173_v1  ;;  %v4674_v5 = vadd.f32 %v7987_v52, %v10004_v29 }
 0x312   : > { %v8051_v63 = vpop.f32.mrf.mxu0  ;;  %v4557_v59 = vpop.f32.mrf.mxu1 }
 0x313   : > { %v4672_v49 = vadd.f32 %v4557_v59, %v10010_v33  ;;  %v10178_v11 = vadd.f32 %v10096_v10, %v4674_v5 }
 0x314   : > { %v5007_v37 = vpop.f32.mrf.mxu0  ;;  %v7988_v54 = vpop.f32.mrf.mxu1 }
 0x315   : > { %v4675_v22 = vadd.f32 %v7988_v54, %v10016_v12  ;;  %v10182_v48 = vadd.f32 %v10102_v55, %v4672_v49 }
 0x316   : > { %v8052_v45 = vpop.f32.mrf.mxu0  ;;  %v10184_v51 = vpop.f32.mrf.mxu1 }
 0x317   : > { %v10187_v14 = vadd.f32 %v10108_v13, %v4675_v22 }
 0x318   : > { %v10189_v29 = vpop.f32.mrf.mxu0  ;;  %v7991_v53 = vpop.f32.mrf.mxu1 }
 0x319   : > { %10779 = vst [vmem:[#allocation35_spill] sm:$0xff] %v10189_v29  ;;  %v4678_v33 = vadd.f32 %v7991_v53, %v10028_v50 }
 0x31a   : > { %v8055_v10 = vpop.f32.mrf.mxu0  ;;  %v4573_v52 = vpop.f32.mrf.mxu1 }
 0x31b   : > { %v4676_v5 = vadd.f32 %v4573_v52, %v10034_v31  ;;  %v10194_v12 = vadd.f32 %v10120_v38, %v4678_v33 }
 0x31c   : > { %v5023_v55 = vpop.f32.mrf.mxu0  ;;  %v7992_v59 = vpop.f32.mrf.mxu1 }
 0x31d   : > { %v4679_v49 = vadd.f32 %v7992_v59, %v10040_v7  ;;  %v10198_v54 = vadd.f32 %v10126_v20, %v4676_v5 }
 0x31e   : > { %v8056_v13 = vpop.f32.mrf.mxu0  ;;  %v10200_v22 = vpop.f32.mrf.mxu1 }
 0x31f   : > { %v10202_v28 = vadd.f32 %v8040_v25, %v4679_v49 }
 0x320   : > { %v10204_v50 = vpop.f32.mrf.mxu0  ;;  %v7995_v53 = vpop.f32.mrf.mxu1 }
 0x321   : > { %10780 = vst [vmem:[#allocation36_spill] sm:$0xff] %v10204_v50  ;;  %v4682_v31 = vadd.f32 %v7995_v53, %v10052_v46 }
 0x322   : > { %v8059_v52 = vpop.f32.mrf.mxu0  ;;  %v4589_v38 = vpop.f32.mrf.mxu1 }
 0x323   : > { %v4680_v33 = vadd.f32 %v4589_v38, %v10058_v24  ;;  %v10208_v62 = vadd.f32 %v8043_v6, %v4682_v31 }
 0x324   : > { %v5039_v7 = vpop.f32.mrf.mxu0  ;;  %v7996_v59 = vpop.f32.mrf.mxu1 }
 0x325   : > { %v4683_v20 = vadd.f32 %v7996_v59, %v10064_v8  ;;  %v10211_v5 = vadd.f32 %v4975_v58, %v4680_v33 }
 0x326   : > { %v8060_v29 = vpop.f32.mrf.mxu0  ;;  %v10213_v25 = vpop.f32.mrf.mxu1 }
 0x327   : > { %v10215_v49 = vadd.f32 %v8044_v39, %v4683_v20 }
 0x328   : > { %v10217_v50 = vpop.f32.mrf.mxu0  ;;  %v7999_v46 = vpop.f32.mrf.mxu1 }
 0x329   : > { %10781 = vst [vmem:[#allocation37_spill] sm:$0xff] %v10217_v50  ;;  %v4686_v53 = vadd.f32 %v7999_v46, %v10076_v3 }
 0x32a   : > { %v8127_v4 = vpop.f32.mrf.mxu0  ;;  %v4605_v24 = vpop.f32.mrf.mxu1 }
 0x32b   : > { %v4684_v6 = vadd.f32 %v4605_v24, %v10082_v36  ;;  %v10221_v31 = vadd.f32 %v8047_v21, %v4686_v53 }
 0x32c   : > { %v5699_v38 = vpop.f32.mrf.mxu0  ;;  %v8000_v8 = vpop.f32.mrf.mxu1 }
 0x32d   : > { %v4687_v58 = vadd.f32 %v8000_v8, %v10088_v18  ;;  %v10224_v33 = vadd.f32 %v4991_v17, %v4684_v6 }
 0x32e   : > { %v8128_v59 = vpop.f32.mrf.mxu0  ;;  %v10226_v39 = vpop.f32.mrf.mxu1 }
 0x32f   : > { %v10228_v20 = vadd.f32 %v8048_v42, %v4687_v58 }
 0x330   : > { %v10230_v50 = vpop.f32.mrf.mxu0  ;;  %v8003_v3 = vpop.f32.mrf.mxu1 }
 0x331   : > { %v4690_v46 = vadd.f32 %v8003_v3, %v10100_v26 }
 0x332   : > { %v10233_v1 = vpop.f32.mrf.mxu0  ;;  %v4621_v36 = vpop.f32.mrf.mxu1 }
 0x333   : > { %v4688_v21 = vadd.f32 %v4621_v36, %v10106_v9  ;;  %v10236_v53 = vadd.f32 %v8051_v63, %v4690_v46 }
 0x334   : > { %v10238_v18 = vpop.f32.mrf.mxu0  ;;  %v8004_v17 = vpop.f32.mrf.mxu1 }
 0x335   : > { %10782 = vst [vmem:[#allocation38_spill] sm:$0xff] %v10236_v53  ;;  %v4691_v24 = vadd.f32 %v8004_v17, %v10112_v2  ;;  %v10241_v6 = vadd.f32 %v5007_v37, %v4688_v21 }
 0x336   : > { %v10243_v42 = vpop.f32.mrf.mxu0  ;;  %v10245_v8 = vpop.f32.mrf.mxu1 }
 0x337   : > { %v10247_v58 = vadd.f32 %v8052_v45, %v4691_v24 }
 0x338   : > { %v10249_v26 = vpop.f32.mrf.mxu0  ;;  %v8007_v3 = vpop.f32.mrf.mxu1 }
 0x339   : > { %10783 = vst [vmem:[#allocation39_spill] sm:$0xff] %v10247_v58  ;;  %v4694_v9 = vadd.f32 %v8007_v3, %v10124_v43 }
 0x33a   : > { %v10252_v63 = vpop.f32.mrf.mxu0  ;;  %v4637_v46 = vpop.f32.mrf.mxu1 }
 0x33b   : > { %v4692_v36 = vadd.f32 %v4637_v46, %v10130_v19  ;;  %v10255_v53 = vadd.f32 %v8055_v10, %v4694_v9 }
 0x33c   : > { %v10257_v2 = vpop.f32.mrf.mxu0  ;;  %v8008_v37 = vpop.f32.mrf.mxu1 }
 0x33d   : > { %10784 = vst [vmem:[#allocation40_spill] sm:$0xff] %v10255_v53  ;;  %v4695_v21 = vadd.f32 %v8008_v37, %v10134_v41  ;;  %v10260_v17 = vadd.f32 %v5023_v55, %v4692_v36 }
 0x33e   : > { %v10262_v45 = vpop.f32.mrf.mxu0  ;;  %v10264_v24 = vpop.f32.mrf.mxu1 }
 0x33f   : > { %v10266_v58 = vadd.f32 %v8056_v13, %v4695_v21 }
 0x340   : > { %v10268_v43 = vpop.f32.mrf.mxu0  ;;  %v8011_v3 = vpop.f32.mrf.mxu1 }
 0x341   : > { %10785 = vst [vmem:[#allocation41_spill] sm:$0xff] %v10266_v58  ;;  %v4698_v19 = vadd.f32 %v8011_v3, %v10144_v15  ;;  %v4669_v3 = vadd.f32 %v10168_v34, %v9998_v0 }
 0x342   : > { %v10271_v10 = vpop.f32.mrf.mxu0  ;;  %v4653_v9 = vpop.f32.mrf.mxu1 }
 0x343   : > { %v4696_v46 = vadd.f32 %v4653_v9, %v10148_v35  ;;  %v10274_v53 = vadd.f32 %v8059_v52, %v4698_v19  ;;  %v5055_v0 = vadd.f32 %v10090_v27, %v4669_v3  ;;  %v4673_v3 = vadd.f32 %v10184_v51, %v10022_v32 }
 0x344   : > { %v10276_v41 = vpop.f32.mrf.mxu0  ;;  %v8012_v55 = vpop.f32.mrf.mxu1 }
 0x345   : > { %v4699_v36 = vadd.f32 %v8012_v55, %v10152_v56  ;;  %v10279_v37 = vadd.f32 %v5039_v7, %v4696_v46  ;;  %v10295_v56 = vld [vmem:[%s10649_s7] ss:$0 sm:$0xff] }
 0x346   : > { %v10281_v13 = vpop.f32.mrf.mxu0  ;;  %v10283_v21 = vpop.f32.mrf.mxu1 }
 0x347   : > { %v10285_v58 = vadd.f32 %v8060_v29, %v4699_v36 }
 0x348   : > { %v8079_v15 = vpop.f32.mrf.mxu1  ;;  %v10290_v52 = vpop.f32.mrf.mxu0 }
 0x349   : > { %10786 = vst [vmem:[#allocation42_spill] sm:$0xff] %v10285_v58  ;;  %v5442_v35 = vadd.f32 %v8079_v15, %v10162_v47  ;;  %v10304_v47 = vld [vmem:[%s10787_s3] ss:$0 sm:$0xff] }
 0x34a   : > { %v5313_v7 = vpop.f32.mrf.mxu1  ;;  %v10306_v34 = vpop.f32.mrf.mxu0 }
 0x34b   : > { %v5828_v19 = vadd.f32 %v8127_v4, %v5442_v35  ;;  %v5440_v9 = vadd.f32 %v5313_v7, %v10166_v30 }
 0x34c   : > { %v8080_v46 = vpop.f32.mrf.mxu1 }
 0x34d   : > { %v5867_v29 = vmul.f32 %v10295_v56, %v5828_v19  ;;  %v5826_v55 = vadd.f32 %v5699_v38, %v5440_v9  ;;  %v5443_v36 = vadd.f32 %v8080_v46, %v10171_v60  ;;  %v10315_v19 = vpop.f32.mrf.mxu0 }
 0x34e   : > { %v5316_v15 = vpop.f32.mrf.mxu1 }
 0x34f   : > { %v5829_v58 = vadd.f32 %v8128_v59, %v5443_v36  ;;  %v5441_v4 = vadd.f32 %v5316_v15, %v5055_v0  ;;  %v5865_v30 = vmul.f32 %v10295_v56, %v5826_v55  ;;  %v5906_v7 = vadd.f32 %v10304_v47, %v5867_v29  ;;  %v10324_v51 = vpop.f32.mrf.mxu0 }
 0x350   : > { %v8083_v35 = vpop.f32.mrf.mxu1 }
 0x351   : > { %v5868_v38 = vmul.f32 %v10295_v56, %v5829_v58  ;;  %v5827_v60 = vadd.f32 %v10230_v50, %v5441_v4  ;;  %v5446_v27 = vadd.f32 %v8083_v35, %v10178_v11  ;;  %v5904_v58 = vadd.f32 %v10304_v47, %v5865_v30 }
 0x352   : > { %v5329_v9 = vpop.f32.mrf.mxu1  ;;  %v5938_v50 = vmax.f32 %v5906_v7, 0.0  ;;  %v5059_v4 = vadd.f32 %v10114_v40, %v4673_v3  ;;  %v10335_v40 = vpop.f32.mrf.mxu0 }
 0x353   : > { %v5907_v59 = vadd.f32 %v10304_v47, %v5868_v38  ;;  %v5866_v46 = vmul.f32 %v10295_v56, %v5827_v60  ;;  %v5832_v55 = vadd.f32 %v10233_v1, %v5446_v27  ;;  %v5444_v29 = vadd.f32 %v5329_v9, %v10182_v48 }
 0x354   : > { %v8084_v36 = vpop.f32.mrf.mxu1  ;;  %v5936_v27 = vmax.f32 %v5904_v58, 0.0 }
 0x355   : > { %v5939_v0 = vmax.f32 %v5907_v59, 0.0  ;;  %v5830_v11 = vadd.f32 %v10238_v18, %v5444_v29  ;;  %v5447_v32 = vadd.f32 %v8084_v36, %v10187_v14  ;;  %v5871_v15 = vmul.f32 %v10295_v56, %v5832_v55 }
 0x356   : > { %v5332_v35 = vpop.f32.mrf.mxu1  ;;  %v5905_v1 = vadd.f32 %v10304_v47, %v5866_v46  ;;  %v4677_v14 = vadd.f32 %v10200_v22, %v10046_v23 }
 0x357   : > { %v5969_v38 = vpack.c.bf16 %v5939_v0, %v5938_v50  ;;  %v5833_v48 = vadd.f32 %v10243_v42, %v5447_v32  ;;  %v5869_v30 = vmul.f32 %v10295_v56, %v5830_v11  ;;  %v5445_v7 = vadd.f32 %v5332_v35, %v5059_v4 }
 0x358   : > { %v8087_v60 = vpop.f32.mrf.mxu1  ;;  %v5937_v18 = vmax.f32 %v5905_v1, 0.0  ;;  %v5910_v3 = vadd.f32 %v10304_v47, %v5871_v15  ;;  %v10347_v15 = vpop.f32.mrf.mxu0 }
 0x359   : > { %v5872_v9 = vmul.f32 %v10295_v56, %v5833_v48  ;;  %v5450_v59 = vadd.f32 %v8087_v60, %v10194_v12  ;;  %v5831_v46 = vadd.f32 %v10249_v26, %v5445_v7  ;;  %v5908_v12 = vadd.f32 %v10304_v47, %v5869_v30 }
 0x35a   : > { %v5345_v42 = vpop.f32.mrf.mxu1  ;;  %v5968_v55 = vpack.c.bf16 %v5937_v18, %v5936_v27  ;;  %v5063_v26 = vadd.f32 %v10136_v16, %v4677_v14  ;;  %v5942_v32 = vmax.f32 %v5910_v3, 0.0  ;;  %v4681_v16 = vadd.f32 %v10213_v25, %v10070_v44  ;;  %v10358_v18 = vpop.f32.mrf.mxu0 }
 0x35b   : > { %v5911_v29 = vadd.f32 %v10304_v47, %v5872_v9  ;;  %v5836_v36 = vadd.f32 %v10252_v63, %v5450_v59  ;;  %v5448_v58 = vadd.f32 %v5345_v42, %v10198_v54  ;;  %v5870_v23 = vmul.f32 %v10295_v56, %v5831_v46 }
 0x35c   : > { %8173 = vmatprep.mubr.bf16.mxu1 %v5968_v55  ;;  %v8088_v22 = vpop.f32.mrf.mxu1 }
 0x35d   : > { %v5943_v50 = vmax.f32 %v5911_v29, 0.0  ;;  %v5834_v0 = vadd.f32 %v10257_v2, %v5448_v58  ;;  %v5451_v11 = vadd.f32 %v8088_v22, %v10202_v28  ;;  %8174 = vmatmul.mubr.bf16.vlgmr.msra.gmra.mxu1 %v5969_v38  ;;  %v5875_v63 = vmul.f32 %v10295_v56, %v5836_v36  ;;  %v10369_v36 = vpop.f32.mrf.mxu0 }
 0x35e   : > { %v5348_v54 = vpop.f32.mrf.mxu1  ;;  %v5909_v4 = vadd.f32 %v10304_v47, %v5870_v23  ;;  %v5940_v2 = vmax.f32 %v5908_v12, 0.0  ;;  %v5067_v29 = vadd.f32 %v10154_v57, %v4681_v16  ;;  %v4685_v57 = vadd.f32 %v10226_v39, %v10094_v61 }
 0x35f   : > { %v5837_v35 = vadd.f32 %v10262_v45, %v5451_v11  ;;  %v5449_v1 = vadd.f32 %v5348_v54, %v5063_v26  ;;  %v5873_v48 = vmul.f32 %v10295_v56, %v5834_v0  ;;  %v5971_v28 = vpack.c.bf16 %v5943_v50, %v5942_v32  ;;  %v5782_v54 = vpop.f32.mrf.mxu0 }
 0x360   : > { %v8091_v30 = vpop.f32.mrf.mxu1  ;;  %v5941_v7 = vmax.f32 %v5909_v4, 0.0  ;;  %v5914_v45 = vadd.f32 %v10304_v47, %v5875_v63 }
 0x361   : > { %v5876_v38 = vmul.f32 %v10295_v56, %v5837_v35  ;;  %v5835_v60 = vadd.f32 %v10268_v43, %v5449_v1  ;;  %v5454_v27 = vadd.f32 %v8091_v30, %v10208_v62  ;;  %v5912_v43 = vadd.f32 %v10304_v47, %v5873_v48 }
 0x362   : > { %v5361_v14 = vpop.f32.mrf.mxu1  ;;  %v5970_v9 = vpack.c.bf16 %v5941_v7, %v5940_v2  ;;  %v5946_v58 = vmax.f32 %v5914_v45, 0.0 }
 0x363   : > { %v5915_v59 = vadd.f32 %v10304_v47, %v5876_v38  ;;  %v5874_v3 = vmul.f32 %v10295_v56, %v5835_v60  ;;  %v5840_v46 = vadd.f32 %v10271_v10, %v5454_v27  ;;  %v5452_v44 = vadd.f32 %v5361_v14, %v10211_v5  ;;  %v8151_v38 = vpop.f32.mrf.mxu0 }
 0x364   : > { %8177 = vmatprep.mubr.bf16.mxu1 %v5970_v9  ;;  %v8092_v25 = vpop.f32.mrf.mxu1 }
 0x365   : > { %v5947_v42 = vmax.f32 %v5915_v59, 0.0  ;;  %v5838_v62 = vadd.f32 %v10276_v41, %v5452_v44  ;;  %v5455_v55 = vadd.f32 %v8092_v25, %v10215_v49  ;;  %8178 = vmatmul.mubr.bf16.gmra.mxu1 %v5971_v28  ;;  %v5879_v23 = vmul.f32 %v10295_v56, %v5840_v46  ;;  %v10788_v28 = vld [vmem:[#allocation34_spill] sm:$0xff] }
 0x366   : > { %v5364_v10 = vpop.f32.mrf.mxu1  ;;  %v5913_v5 = vadd.f32 %v10304_v47, %v5874_v3  ;;  %v5944_v41 = vmax.f32 %v5912_v43, 0.0  ;;  %v5071_v16 = vadd.f32 %v10788_v28, %v4685_v57 }
 0x367   : > { %v5841_v22 = vadd.f32 %v10281_v13, %v5455_v55  ;;  %v5453_v12 = vadd.f32 %v5364_v10, %v5067_v29  ;;  %v5877_v50 = vmul.f32 %v10295_v56, %v5838_v62  ;;  %v5973_v49 = vpack.c.bf16 %v5947_v42, %v5946_v58  ;;  %v10790_v42 = vld [vmem:[#allocation38_spill] sm:$0xff]  ;;  %v5795_v55 = vpop.f32.mrf.mxu0 }
 0x368   : > { %v8095_v0 = vpop.f32.mrf.mxu1  ;;  %v5945_v11 = vmax.f32 %v5913_v5, 0.0  ;;  %v5918_v4 = vadd.f32 %v10304_v47, %v5879_v23 }
 0x369   : > { %v5880_v26 = vmul.f32 %v10295_v56, %v5841_v22  ;;  %v5839_v32 = vadd.f32 %v10290_v52, %v5453_v12  ;;  %v5458_v63 = vadd.f32 %v8095_v0, %v10221_v31  ;;  %v5916_v39 = vadd.f32 %v10304_v47, %v5877_v50  ;;  %v10791_v0 = vld [vmem:[#allocation39_spill] sm:$0xff]  ;;  %v8152_v57 = vpop.f32.mrf.mxu0 }
 0x36a   : > { %v5377_v13 = vpop.f32.mrf.mxu1  ;;  %v5972_v35 = vpack.c.bf16 %v5945_v11, %v5944_v41  ;;  %v5950_v60 = vmax.f32 %v5918_v4, 0.0  ;;  %v10792_v11 = vld [vmem:[#allocation35_spill] sm:$0xff] }
 0x36b   : > { %v5919_v1 = vadd.f32 %v10304_v47, %v5880_v26  ;;  %v5878_v48 = vmul.f32 %v10295_v56, %v5839_v32  ;;  %v5844_v30 = vadd.f32 %v10306_v34, %v5458_v63  ;;  %v5456_v2 = vadd.f32 %v5377_v13, %v10224_v33 }
 0x36c   : > { %8181 = vmatprep.mubr.bf16.mxu1 %v5972_v35  ;;  %v8096_v61 = vpop.f32.mrf.mxu1  ;;  %v5948_v3 = vmax.f32 %v5916_v39, 0.0 }
 0x36d   : > { %v5951_v52 = vmax.f32 %v5919_v1, 0.0  ;;  %v5842_v31 = vadd.f32 %v10315_v19, %v5456_v2  ;;  %v5459_v7 = vadd.f32 %v8096_v61, %v10228_v20  ;;  %8182 = vmatmul.mubr.bf16.gmra.mxu1 %v5973_v49  ;;  %v5883_v27 = vmul.f32 %v10295_v56, %v5844_v30  ;;  %v10789_v20 = vld [vmem:[#allocation31_spill] sm:$0xff]  ;;  %v10793_v30 = vld [vmem:[#allocation32_spill] sm:$0xff] }
 0x36e   : > { %v5380_v45 = vpop.f32.mrf.mxu1  ;;  %v5917_v34 = vadd.f32 %v10304_v47, %v5878_v48  ;;  %v4689_v44 = vadd.f32 %v10245_v8, %v10789_v20  ;;  %v4693_v2 = vadd.f32 %v10264_v24, %v10793_v30 }
 0x36f   : > { %v5845_v33 = vadd.f32 %v10324_v51, %v5459_v7  ;;  %v5457_v14 = vadd.f32 %v5380_v45, %v5071_v16  ;;  %v5881_v9 = vmul.f32 %v10295_v56, %v5842_v31  ;;  %v5975_v46 = vpack.c.bf16 %v5951_v52, %v5950_v60  ;;  %v10794_v52 = vld [vmem:[#allocation40_spill] sm:$0xff]  ;;  %v5798_v7 = vpop.f32.mrf.mxu0 }
 0x370   : > { %v8099_v59 = vpop.f32.mrf.mxu1  ;;  %v5949_v19 = vmax.f32 %v5917_v34, 0.0  ;;  %v5922_v29 = vadd.f32 %v10304_v47, %v5883_v27  ;;  %v5075_v49 = vadd.f32 %v10792_v11, %v4689_v44 }
 0x371   : > { %v5884_v25 = vmul.f32 %v10295_v56, %v5845_v33  ;;  %v5843_v43 = vadd.f32 %v10335_v40, %v5457_v14  ;;  %v5462_v62 = vadd.f32 %v8099_v59, %v10790_v42  ;;  %v5920_v12 = vadd.f32 %v10304_v47, %v5881_v9  ;;  %v8155_v24 = vpop.f32.mrf.mxu0  ;;  %v10795_v59 = vld [vmem:[#allocation41_spill] sm:$0xff] }
 0x372   : > { %v5393_v51 = vpop.f32.mrf.mxu1  ;;  %v5974_v58 = vpack.c.bf16 %v5949_v19, %v5948_v3  ;;  %v5954_v26 = vmax.f32 %v5922_v29, 0.0  ;;  %v10796_v19 = vld [vmem:[#allocation36_spill] sm:$0xff] }
 0x373   : > { %v5923_v23 = vadd.f32 %v10304_v47, %v5884_v25  ;;  %v5882_v10 = vmul.f32 %v10295_v56, %v5843_v43  ;;  %v5848_v5 = vadd.f32 %v10347_v15, %v5462_v62  ;;  %v5460_v22 = vadd.f32 %v5393_v51, %v10241_v6  ;;  %v10797_v43 = vld [vmem:[#allocation33_spill] sm:$0xff]  ;;  %v5811_v51 = vpop.f32.mrf.mxu0 }
 0x374   : > { %8185 = vmatprep.mubr.bf16.mxu1 %v5974_v58  ;;  %v8100_v8 = vpop.f32.mrf.mxu1  ;;  %v5952_v1 = vmax.f32 %v5920_v12, 0.0 }
 0x375   : > { %v5955_v40 = vmax.f32 %v5923_v23, 0.0  ;;  %v5846_v50 = vadd.f32 %v10358_v18, %v5460_v22  ;;  %v5463_v41 = vadd.f32 %v8100_v8, %v10791_v0  ;;  %8186 = vmatmul.mubr.bf16.gmra.mxu1 %v5975_v46  ;;  %v5887_v32 = vmul.f32 %v10295_v56, %v5848_v5 }
 0x376   : > { %v5396_v63 = vpop.f32.mrf.mxu1  ;;  %v5921_v15 = vadd.f32 %v10304_v47, %v5882_v10  ;;  %v5079_v46 = vadd.f32 %v10796_v19, %v4693_v2  ;;  %v6289_v19 = vld [vmem:[%s9103_s10 + $0x10] sm:$0xff] }
 0x377   : > { %v5849_v6 = vadd.f32 %v10369_v36, %v5463_v41  ;;  %v5461_v4 = vadd.f32 %v5396_v63, %v5075_v49  ;;  %v5885_v13 = vmul.f32 %v10295_v56, %v5846_v50  ;;  %v5977_v48 = vpack.c.bf16 %v5955_v40, %v5954_v26  ;;  %v8156_v49 = vpop.f32.mrf.mxu0  ;;  %v10798_v26 = vld [vmem:[#allocation37_spill] sm:$0xff] }
 0x378   : > { %v8103_v35 = vpop.f32.mrf.mxu1  ;;  %v5953_v18 = vmax.f32 %v5921_v15, 0.0  ;;  %v5926_v28 = vadd.f32 %v10304_v47, %v5887_v32 }
 0x379   : > { %v5888_v61 = vmul.f32 %v10295_v56, %v5849_v6  ;;  %v5847_v39 = vadd.f32 %v5782_v54, %v5461_v4  ;;  %v5466_v31 = vadd.f32 %v8103_v35, %v10794_v52  ;;  %v5924_v14 = vadd.f32 %v10304_v47, %v5885_v13  ;;  %v10799_v4 = vld [vmem:[#allocation42_spill] sm:$0xff]  ;;  %v5814_v2 = vpop.f32.mrf.mxu0 }
 0x37a   : > { %v5409_v16 = vpop.f32.mrf.mxu1  ;;  %v5976_v36 = vpack.c.bf16 %v5953_v18, %v5952_v1  ;;  %v5958_v20 = vmax.f32 %v5926_v28, 0.0 }
 0x37b   : > { %v5927_v60 = vadd.f32 %v10304_v47, %v5888_v61  ;;  %v5886_v27 = vmul.f32 %v10295_v56, %v5847_v39  ;;  %v5852_v45 = vadd.f32 %v8151_v38, %v5466_v31  ;;  %v5464_v34 = vadd.f32 %v5409_v16, %v10260_v17 }
 0x37c   : > { %8189 = vmatprep.mubr.bf16.mxu1 %v5976_v36  ;;  %v8104_v33 = vpop.f32.mrf.mxu1  ;;  %v4697_v17 = vadd.f32 %v10283_v21, %v10797_v43  ;;  %v5956_v58 = vmax.f32 %v5924_v14, 0.0 }
 0x37d   : > { %v5959_v54 = vmax.f32 %v5927_v60, 0.0  ;;  %v5850_v9 = vadd.f32 %v5795_v55, %v5464_v34  ;;  %v5467_v3 = vadd.f32 %v8104_v33, %v10795_v59  ;;  %8190 = vmatmul.mubr.bf16.gmra.mxu1 %v5977_v48  ;;  %v5891_v44 = vmul.f32 %v10295_v56, %v5852_v45 }
 0x37e   : > { %v5412_v25 = vpop.f32.mrf.mxu1  ;;  %v5925_v38 = vadd.f32 %v10304_v47, %v5886_v27  ;;  %v5083_v32 = vadd.f32 %v10798_v26, %v4697_v17 }
 0x37f   : > { %v5853_v42 = vadd.f32 %v8152_v57, %v5467_v3  ;;  %v5465_v62 = vadd.f32 %v5412_v25, %v5079_v46  ;;  %v5889_v29 = vmul.f32 %v10295_v56, %v5850_v9  ;;  %v5979_v10 = vpack.c.bf16 %v5959_v54, %v5958_v20  ;;  %v10453_v3 = vld [vmem:[%s10801_s29] ss:$0 sm:$0xff] }
 0x380   : > { %v8107_v55 = vpop.f32.mrf.mxu1  ;;  %v5957_v23 = vmax.f32 %v5925_v38, 0.0  ;;  %v5930_v12 = vadd.f32 %v10304_v47, %v5891_v44  ;;  %v6287_v25 = vld [vmem:[%s9103_s10] sm:$0xff] }
 0x381   : > { %v5892_v5 = vmul.f32 %v10295_v56, %v5853_v42  ;;  %v5851_v22 = vadd.f32 %v5798_v7, %v5465_v62  ;;  %v5470_v8 = vadd.f32 %v8107_v55, %v10274_v53  ;;  %v5928_v63 = vadd.f32 %v10304_v47, %v5889_v29  ;;  %v6290_v62 = vld [vmem:[%s9103_s10 + $0x18] sm:$0xff] }
 0x382   : > { %v5425_v40 = vpop.f32.mrf.mxu1  ;;  %v5978_v50 = vpack.c.bf16 %v5957_v23, %v5956_v58  ;;  %v5962_v35 = vmax.f32 %v5930_v12, 0.0 }
 0x383   : > { %v5931_v21 = vadd.f32 %v10304_v47, %v5892_v5  ;;  %v5890_v0 = vmul.f32 %v10295_v56, %v5851_v22  ;;  %v5856_v41 = vadd.f32 %v8155_v24, %v5470_v8  ;;  %v5468_v11 = vadd.f32 %v5425_v40, %v10279_v37 }
 0x384   : > { %8193 = vmatprep.mubr.bf16.mxu1 %v5978_v50  ;;  %v8108_v57 = vpop.f32.mrf.mxu1  ;;  %v5960_v61 = vmax.f32 %v5928_v63, 0.0  ;;  %v6293_v50 = vld [vmem:[%s9103_s10 + $0x30] sm:$0xff] }
 0x385   : > { %v5963_v15 = vmax.f32 %v5931_v21, 0.0  ;;  %v5895_v53 = vmul.f32 %v10295_v56, %v5856_v41  ;;  %v5854_v6 = vadd.f32 %v5811_v51, %v5468_v11  ;;  %v5471_v13 = vadd.f32 %v8108_v57, %v10799_v4  ;;  %8194 = vmatmul.mubr.bf16.gmra.mxu1 %v5979_v10  ;;  %v6288_v10 = vld [vmem:[%s9103_s10 + $0x8] sm:$0xff]  ;;  %v6291_v57 = vld [vmem:[%s9103_s10 + $0x20] sm:$0xff] }
 0x386   : > { %v5428_v1 = vpop.f32.mrf.mxu1  ;;  %v5929_v18 = vadd.f32 %v10304_v47, %v5890_v0 }
 0x387   : > { %v5893_v37 = vmul.f32 %v10295_v56, %v5854_v6  ;;  %v5857_v48 = vadd.f32 %v8156_v49, %v5471_v13  ;;  %v5469_v30 = vadd.f32 %v5428_v1, %v5083_v32  ;;  %v5981_v52 = vpack.c.bf16 %v5963_v15, %v5962_v35  ;;  %v6294_v6 = vld [vmem:[%s9103_s10 + $0x38] sm:$0xff] }
 0x388   : > { %v5961_v39 = vmax.f32 %v5929_v18, 0.0  ;;  %v5934_v31 = vadd.f32 %v10304_v47, %v5895_v53 }
 0x389   : > { %v5896_v7 = vmul.f32 %v10295_v56, %v5857_v48  ;;  %v5855_v28 = vadd.f32 %v5814_v2, %v5469_v30  ;;  %v5932_v27 = vadd.f32 %v10304_v47, %v5893_v37  ;;  %v6292_v37 = vld [vmem:[%s9103_s10 + $0x28] sm:$0xff] }
 0x38a   : > { %v5980_v16 = vpack.c.bf16 %v5961_v39, %v5960_v61  ;;  %v5966_v45 = vmax.f32 %v5934_v31, 0.0 }
 0x38b   : > { %v5935_v36 = vadd.f32 %v10304_v47, %v5896_v7  ;;  %v5894_v60 = vmul.f32 %v10295_v56, %v5855_v28  ;;  %v5964_v24 = vmax.f32 %v5932_v27, 0.0  ;;  %v10448_v56 = vld [vmem:[%s10800_s23] ss:$0 sm:$0xff] }
 0x38c   : > { %8197 = vmatprep.mubr.bf16.mxu1 %v5980_v16 }
 0x38d   : > { %v5967_v34 = vmax.f32 %v5935_v36, 0.0  ;;  %8198 = vmatmul.mubr.bf16.gmra.mxu1 %v5981_v52  ;;  %v5933_v33 = vadd.f32 %v10304_v47, %v5894_v60  ;;  %v6297_v52 = vld [vmem:[%s9103_s10 + $0x50] sm:$0xff]  ;;  %v6295_v60 = vld [vmem:[%s9103_s10 + $0x40] sm:$0xff] }
 0x38f   : > { %v5965_v14 = vmax.f32 %v5933_v33, 0.0  ;;  %v5983_v54 = vpack.c.bf16 %v5967_v34, %v5966_v45 }
 0x391   : > { %v5982_v9 = vpack.c.bf16 %v5965_v14, %v5964_v24  ;;  %v6298_v14 = vld [vmem:[%s9103_s10 + $0x58] sm:$0xff] }
 0x393   : > { %8201 = vmatprep.mubr.bf16.mxu1 %v5982_v9 }
 0x395   : > { %8202 = vmatmul.mubr.bf16.gmra.mxu1 %v5983_v54 }
 0x41d   : > { %v8175_v59 = vpop.f32.mrf.mxu1 }
 0x41e   : > { %v6218_v47 = vmul.f32 %v8175_v59, %v10448_v56 }
 0x41f   : > { %v6082_v46 = vpop.f32.mrf.mxu1 }
 0x420   : > { %v6257_v20 = vadd.f32 %v10453_v3, %v6218_v47  ;;  %v6216_v44 = vmul.f32 %v10448_v56, %v6082_v46  ;;  %v6296_v46 = vld [vmem:[%s9103_s10 + $0x48] sm:$0xff] }
 0x421   : > { %v8176_v38 = vpop.f32.mrf.mxu1 }
 0x422   : > { %v6321_v43 = vadd.f32 %v6289_v19, %v6257_v20  ;;  %v6255_v17 = vadd.f32 %v10453_v3, %v6216_v44  ;;  %v6219_v42 = vmul.f32 %v8176_v38, %v10448_v56 }
 0x423   : > { %v6085_v29 = vpop.f32.mrf.mxu1 }
 0x424   : > { %v6353_v51 = vmax.f32 %v6321_v43, 0.0  ;;  %v6319_v55 = vadd.f32 %v6287_v25, %v6255_v17  ;;  %v6258_v58 = vadd.f32 %v10453_v3, %v6219_v42  ;;  %v6217_v23 = vmul.f32 %v10448_v56, %v6085_v29  ;;  %v6301_v17 = vld [vmem:[%s9103_s10 + $0x70] sm:$0xff] }
 0x425   : > { %v8179_v5 = vpop.f32.mrf.mxu1 }
 0x426   : > { %6385 = vst [vmem:[%s10468_s17 + $0x10] sm:$0xff] %v6353_v51  ;;  %v6351_v22 = vmax.f32 %v6319_v55, 0.0  ;;  %v6322_v8 = vadd.f32 %v6290_v62, %v6258_v58  ;;  %v6256_v12 = vadd.f32 %v10453_v3, %v6217_v23  ;;  %v6222_v40 = vmul.f32 %v8179_v5, %v10448_v56  ;;  %v6299_v58 = vld [vmem:[%s9103_s10 + $0x60] sm:$0xff] }
 0x427   : > { %v6098_v21 = vpop.f32.mrf.mxu1 }
 0x428   : > { %6383 = vst [vmem:[%s10468_s17] sm:$0xff] %v6351_v22  ;;  %v6354_v0 = vmax.f32 %v6322_v8, 0.0  ;;  %v6320_v41 = vadd.f32 %v6288_v10, %v6256_v12  ;;  %v6261_v11 = vadd.f32 %v10453_v3, %v6222_v40  ;;  %v6220_v49 = vmul.f32 %v10448_v56, %v6098_v21  ;;  %v6302_v12 = vld [vmem:[%s9103_s10 + $0x78] sm:$0xff] }
 0x429   : > { %v8180_v26 = vpop.f32.mrf.mxu1 }
 0x42a   : > { %6386 = vst [vmem:[%s10468_s17 + $0x18] sm:$0xff] %v6354_v0  ;;  %v6352_v32 = vmax.f32 %v6320_v41, 0.0  ;;  %v6325_v63 = vadd.f32 %v6293_v50, %v6261_v11  ;;  %v6259_v15 = vadd.f32 %v10453_v3, %v6220_v49  ;;  %v6223_v53 = vmul.f32 %v8180_v26, %v10448_v56  ;;  %v6300_v11 = vld [vmem:[%s9103_s10 + $0x68] sm:$0xff] }
 0x42b   : > { %v6101_v4 = vpop.f32.mrf.mxu1 }
 0x42c   : > { %6384 = vst [vmem:[%s10468_s17 + $0x8] sm:$0xff] %v6352_v32  ;;  %v6357_v13 = vmax.f32 %v6325_v63, 0.0  ;;  %v6323_v35 = vadd.f32 %v6291_v57, %v6259_v15  ;;  %v6262_v1 = vadd.f32 %v10453_v3, %v6223_v53  ;;  %v6221_v18 = vmul.f32 %v10448_v56, %v6101_v4  ;;  %v6305_v15 = vld [vmem:[%s9103_s10 + $0x90] sm:$0xff] }
 0x42d   : > { %v8183_v48 = vpop.f32.mrf.mxu1 }
 0x42e   : > { %6389 = vst [vmem:[%s10468_s17 + $0x30] sm:$0xff] %v6357_v13  ;;  %v6355_v30 = vmax.f32 %v6323_v35, 0.0  ;;  %v6326_v2 = vadd.f32 %v6294_v6, %v6262_v1  ;;  %v6260_v61 = vadd.f32 %v10453_v3, %v6221_v18  ;;  %v6226_v39 = vmul.f32 %v8183_v48, %v10448_v56  ;;  %v6303_v1 = vld [vmem:[%s9103_s10 + $0x80] sm:$0xff] }
 0x42f   : > { %v6114_v31 = vpop.f32.mrf.mxu1 }
 0x430   : > { %6387 = vst [vmem:[%s10468_s17 + $0x20] sm:$0xff] %v6355_v30  ;;  %v6358_v7 = vmax.f32 %v6326_v2, 0.0  ;;  %v6324_v28 = vadd.f32 %v6292_v37, %v6260_v61  ;;  %v6265_v16 = vadd.f32 %v10453_v3, %v6226_v39  ;;  %v6224_v36 = vmul.f32 %v10448_v56, %v6114_v31  ;;  %v6306_v61 = vld [vmem:[%s9103_s10 + $0x98] sm:$0xff] }
 0x431   : > { %v8184_v27 = vpop.f32.mrf.mxu1 }
 0x432   : > { %6390 = vst [vmem:[%s10468_s17 + $0x38] sm:$0xff] %v6358_v7  ;;  %v6356_v45 = vmax.f32 %v6324_v28, 0.0  ;;  %v6329_v34 = vadd.f32 %v6297_v52, %v6265_v16  ;;  %v6263_v33 = vadd.f32 %v10453_v3, %v6224_v36  ;;  %v6227_v24 = vmul.f32 %v8184_v27, %v10448_v56  ;;  %v6304_v16 = vld [vmem:[%s9103_s10 + $0x88] sm:$0xff] }
 0x433   : > { %v6117_v54 = vpop.f32.mrf.mxu1 }
 0x434   : > { %6388 = vst [vmem:[%s10468_s17 + $0x28] sm:$0xff] %v6356_v45  ;;  %v6361_v9 = vmax.f32 %v6329_v34, 0.0  ;;  %v6327_v59 = vadd.f32 %v6295_v60, %v6263_v33  ;;  %v6266_v47 = vadd.f32 %v10453_v3, %v6227_v24  ;;  %v6225_v19 = vmul.f32 %v10448_v56, %v6117_v54  ;;  %v6309_v33 = vld [vmem:[%s9103_s10 + $0xb0] sm:$0xff] }
 0x435   : > { %v8187_v20 = vpop.f32.mrf.mxu1 }
 0x436   : > { %6393 = vst [vmem:[%s10468_s17 + $0x50] sm:$0xff] %v6361_v9  ;;  %v6359_v44 = vmax.f32 %v6327_v59, 0.0  ;;  %v6330_v25 = vadd.f32 %v6298_v14, %v6266_v47  ;;  %v6264_v38 = vadd.f32 %v10453_v3, %v6225_v19  ;;  %v6230_v43 = vmul.f32 %v8187_v20, %v10448_v56  ;;  %v6307_v47 = vld [vmem:[%s9103_s10 + $0xa0] sm:$0xff] }
 0x437   : > { %v6130_v42 = vpop.f32.mrf.mxu1 }
 0x438   : > { %6391 = vst [vmem:[%s10468_s17 + $0x40] sm:$0xff] %v6359_v44  ;;  %v6362_v62 = vmax.f32 %v6330_v25, 0.0  ;;  %v6328_v29 = vadd.f32 %v6296_v46, %v6264_v38  ;;  %v6269_v51 = vadd.f32 %v10453_v3, %v6230_v43  ;;  %v6228_v55 = vmul.f32 %v10448_v56, %v6130_v42  ;;  %v6310_v38 = vld [vmem:[%s9103_s10 + $0xb8] sm:$0xff] }
 0x439   : > { %v8188_v23 = vpop.f32.mrf.mxu1 }
 0x43a   : > { %6394 = vst [vmem:[%s10468_s17 + $0x58] sm:$0xff] %v6362_v62  ;;  %v6360_v10 = vmax.f32 %v6328_v29, 0.0  ;;  %v6333_v5 = vadd.f32 %v6301_v17, %v6269_v51  ;;  %v6267_v22 = vadd.f32 %v10453_v3, %v6228_v55  ;;  %v6231_v8 = vmul.f32 %v8188_v23, %v10448_v56  ;;  %v6308_v51 = vld [vmem:[%s9103_s10 + $0xa8] sm:$0xff] }
 0x43b   : > { %v6133_v40 = vpop.f32.mrf.mxu1 }
 0x43c   : > { %6392 = vst [vmem:[%s10468_s17 + $0x48] sm:$0xff] %v6360_v10  ;;  %v6365_v50 = vmax.f32 %v6333_v5, 0.0  ;;  %v6331_v21 = vadd.f32 %v6299_v58, %v6267_v22  ;;  %v6270_v0 = vadd.f32 %v10453_v3, %v6231_v8  ;;  %v6229_v41 = vmul.f32 %v10448_v56, %v6133_v40  ;;  %v6313_v22 = vld [vmem:[%s9103_s10 + $0xd0] sm:$0xff] }
 0x43d   : > { %v8191_v49 = vpop.f32.mrf.mxu1 }
 0x43e   : > { %6397 = vst [vmem:[%s10468_s17 + $0x70] sm:$0xff] %v6365_v50  ;;  %v6363_v57 = vmax.f32 %v6331_v21, 0.0  ;;  %v6334_v26 = vadd.f32 %v6302_v12, %v6270_v0  ;;  %v6268_v32 = vadd.f32 %v10453_v3, %v6229_v41  ;;  %v6234_v63 = vmul.f32 %v8191_v49, %v10448_v56  ;;  %v6311_v0 = vld [vmem:[%s9103_s10 + $0xc0] sm:$0xff] }
 0x43f   : > { %v6146_v53 = vpop.f32.mrf.mxu1 }
 0x440   : > { %6395 = vst [vmem:[%s10468_s17 + $0x60] sm:$0xff] %v6363_v57  ;;  %v6366_v6 = vmax.f32 %v6334_v26, 0.0  ;;  %v6332_v4 = vadd.f32 %v6300_v11, %v6268_v32  ;;  %v6273_v13 = vadd.f32 %v10453_v3, %v6234_v63  ;;  %v6232_v35 = vmul.f32 %v10448_v56, %v6146_v53  ;;  %v6314_v32 = vld [vmem:[%s9103_s10 + $0xd8] sm:$0xff] }
 0x441   : > { %v8192_v18 = vpop.f32.mrf.mxu1 }
 0x442   : > { %6398 = vst [vmem:[%s10468_s17 + $0x78] sm:$0xff] %v6366_v6  ;;  %v6364_v37 = vmax.f32 %v6332_v4, 0.0  ;;  %v6337_v48 = vadd.f32 %v6305_v15, %v6273_v13  ;;  %v6271_v30 = vadd.f32 %v10453_v3, %v6232_v35  ;;  %v6235_v2 = vmul.f32 %v8192_v18, %v10448_v56  ;;  %v6312_v13 = vld [vmem:[%s9103_s10 + $0xc8] sm:$0xff] }
 0x443   : > { %v6149_v39 = vpop.f32.mrf.mxu1 }
 0x444   : > { %6396 = vst [vmem:[%s10468_s17 + $0x68] sm:$0xff] %v6364_v37  ;;  %v6369_v52 = vmax.f32 %v6337_v48, 0.0  ;;  %v6335_v31 = vadd.f32 %v6303_v1, %v6271_v30  ;;  %v6274_v7 = vadd.f32 %v10453_v3, %v6235_v2  ;;  %v6233_v28 = vmul.f32 %v10448_v56, %v6149_v39  ;;  %v6317_v30 = vld [vmem:[%s9103_s10 + $0xf0] sm:$0xff] }
 0x445   : > { %v8195_v36 = vpop.f32.mrf.mxu1 }
 0x446   : > { %6401 = vst [vmem:[%s10468_s17 + $0x90] sm:$0xff] %v6369_v52  ;;  %v6367_v60 = vmax.f32 %v6335_v31, 0.0  ;;  %v6338_v27 = vadd.f32 %v6306_v61, %v6274_v7  ;;  %v6272_v45 = vadd.f32 %v10453_v3, %v6233_v28  ;;  %v6238_v34 = vmul.f32 %v8195_v36, %v10448_v56  ;;  %v6315_v7 = vld [vmem:[%s9103_s10 + $0xe0] sm:$0xff] }
 0x447   : > { %v6162_v24 = vpop.f32.mrf.mxu1 }
 0x448   : > { %6399 = vst [vmem:[%s10468_s17 + $0x80] sm:$0xff] %v6367_v60  ;;  %v6370_v14 = vmax.f32 %v6338_v27, 0.0  ;;  %v6336_v54 = vadd.f32 %v6304_v16, %v6272_v45  ;;  %v6277_v9 = vadd.f32 %v10453_v3, %v6238_v34  ;;  %v6236_v59 = vmul.f32 %v10448_v56, %v6162_v24  ;;  %v6318_v45 = vld [vmem:[%s9103_s10 + $0xf8] sm:$0xff] }
 0x449   : > { %v8196_v19 = vpop.f32.mrf.mxu1 }
 0x44a   : > { %6402 = vst [vmem:[%s10468_s17 + $0x98] sm:$0xff] %v6370_v14  ;;  %v6368_v46 = vmax.f32 %v6336_v54, 0.0  ;;  %v6341_v20 = vadd.f32 %v6309_v33, %v6277_v9  ;;  %v6275_v44 = vadd.f32 %v10453_v3, %v6236_v59  ;;  %v6239_v25 = vmul.f32 %v8196_v19, %v10448_v56  ;;  %v6316_v9 = vld [vmem:[%s9103_s10 + $0xe8] sm:$0xff]  ;;  %s6416_s10 = scalar_lea.sflag [#allocation8], %s9097_s28 }
 0x44b   : > { %v6165_v43 = vpop.f32.mrf.mxu1 }
 0x44c   : > { %6400 = vst [vmem:[%s10468_s17 + $0x88] sm:$0xff] %v6368_v46  ;;  %v6373_v17 = vmax.f32 %v6341_v20, 0.0  ;;  %v6339_v42 = vadd.f32 %v6307_v47, %v6275_v44  ;;  %v6278_v62 = vadd.f32 %v10453_v3, %v6239_v25  ;;  %v6237_v29 = vmul.f32 %v10448_v56, %v6165_v43 }
 0x44d   : > { %v8199_v55 = vpop.f32.mrf.mxu1 }
 0x44e   : > { %6405 = vst [vmem:[%s10468_s17 + $0xb0] sm:$0xff] %v6373_v17  ;;  %v6371_v58 = vmax.f32 %v6339_v42, 0.0  ;;  %v6342_v23 = vadd.f32 %v6310_v38, %v6278_v62  ;;  %v6276_v10 = vadd.f32 %v10453_v3, %v6237_v29  ;;  %v6242_v5 = vmul.f32 %v8199_v55, %v10448_v56 }
 0x44f   : > { %v6178_v8 = vpop.f32.mrf.mxu1 }
 0x450   : > { %6403 = vst [vmem:[%s10468_s17 + $0xa0] sm:$0xff] %v6371_v58  ;;  %v6374_v12 = vmax.f32 %v6342_v23, 0.0  ;;  %v6340_v40 = vadd.f32 %v6308_v51, %v6276_v10  ;;  %v6281_v50 = vadd.f32 %v10453_v3, %v6242_v5  ;;  %v6240_v21 = vmul.f32 %v10448_v56, %v6178_v8 }
 0x451   : > { %v8200_v41 = vpop.f32.mrf.mxu1 }
 0x452   : > { %6406 = vst [vmem:[%s10468_s17 + $0xb8] sm:$0xff] %v6374_v12  ;;  %v6372_v11 = vmax.f32 %v6340_v40, 0.0  ;;  %v6345_v49 = vadd.f32 %v6313_v22, %v6281_v50  ;;  %v6279_v57 = vadd.f32 %v10453_v3, %v6240_v21  ;;  %v6243_v26 = vmul.f32 %v8200_v41, %v10448_v56 }
 0x453   : > { %v6181_v63 = vpop.f32.mrf.mxu1 }
 0x454   : > { %6404 = vst [vmem:[%s10468_s17 + $0xa8] sm:$0xff] %v6372_v11  ;;  %v6377_v15 = vmax.f32 %v6345_v49, 0.0  ;;  %v6343_v53 = vadd.f32 %v6311_v0, %v6279_v57  ;;  %v6282_v6 = vadd.f32 %v10453_v3, %v6243_v26  ;;  %v6241_v4 = vmul.f32 %v10448_v56, %v6181_v63 }
 0x455   : > { %v8203_v35 = vpop.f32.mrf.mxu1 }
 0x456   : > { %6409 = vst [vmem:[%s10468_s17 + $0xd0] sm:$0xff] %v6377_v15  ;;  %v6375_v1 = vmax.f32 %v6343_v53, 0.0  ;;  %v6346_v18 = vadd.f32 %v6314_v32, %v6282_v6  ;;  %v6280_v37 = vadd.f32 %v10453_v3, %v6241_v4  ;;  %v6246_v48 = vmul.f32 %v8203_v35, %v10448_v56 }
 0x457   : > { %v6194_v2 = vpop.f32.mrf.mxu1 }
 0x458   : > { %6407 = vst [vmem:[%s10468_s17 + $0xc0] sm:$0xff] %v6375_v1  ;;  %v6378_v61 = vmax.f32 %v6346_v18, 0.0  ;;  %v6344_v39 = vadd.f32 %v6312_v13, %v6280_v37  ;;  %v6285_v52 = vadd.f32 %v10453_v3, %v6246_v48  ;;  %v6244_v31 = vmul.f32 %v10448_v56, %v6194_v2 }
 0x459   : > { %v8204_v28 = vpop.f32.mrf.mxu1 }
 0x45a   : > { %6410 = vst [vmem:[%s10468_s17 + $0xd8] sm:$0xff] %v6378_v61  ;;  %v6376_v16 = vmax.f32 %v6344_v39, 0.0  ;;  %v6349_v36 = vadd.f32 %v6317_v30, %v6285_v52  ;;  %v6283_v60 = vadd.f32 %v10453_v3, %v6244_v31  ;;  %v6247_v27 = vmul.f32 %v8204_v28, %v10448_v56 }
 0x45b   : > { %v6197_v34 = vpop.f32.mrf.mxu1 }
 0x45c   : > { %6408 = vst [vmem:[%s10468_s17 + $0xc8] sm:$0xff] %v6376_v16  ;;  %v6381_v33 = vmax.f32 %v6349_v36, 0.0  ;;  %v6347_v24 = vadd.f32 %v6315_v7, %v6283_v60  ;;  %v6286_v14 = vadd.f32 %v10453_v3, %v6247_v27  ;;  %v6245_v54 = vmul.f32 %v10448_v56, %v6197_v34 }
 0x45e   : > { %6413 = vst [vmem:[%s10468_s17 + $0xf0] sm:$0xff] %v6381_v33  ;;  %v6379_v59 = vmax.f32 %v6347_v24, 0.0  ;;  %v6350_v47 = vadd.f32 %v6318_v45, %v6286_v14  ;;  %v6284_v19 = vadd.f32 %v10453_v3, %v6245_v54 }
 0x460   : > { %6411 = vst [vmem:[%s10468_s17 + $0xe0] sm:$0xff] %v6379_v59  ;;  %v6382_v46 = vmax.f32 %v6350_v47, 0.0  ;;  %v6348_v20 = vadd.f32 %v6316_v9, %v6284_v19 }
 0x462   : > { %6414 = vst [vmem:[%s10468_s17 + $0xf8] sm:$0xff] %v6382_v46  ;;  %v6380_v56 = vmax.f32 %v6348_v20, 0.0 }
 0x464   : > { %6412 = vst [vmem:[%s10468_s17 + $0xe8] sm:$0xff] %v6380_v56 }
 0x465   : > { %8741 = shalt.err (!%p8738_p10)
}
 0x466   : > { %s8742_s13 = scalar_lea.hbm %s10590_s21, 4096  ;;  %s8746_s14 = scalar_lea.hbm %s10804_s8, 8192 }
 0x467   : > { %p8743_p2 = scmp.ne.s32.totalorder %s10590_s21, %s8742_s13  ;;  %p8747_p0 = scmp.lt.s32.totalorder %s10590_s21, %s10804_s8 }
 0x468   : > { %p8748_p11 = scmp.lt.s32.totalorder %s8746_s14, %s8742_s13 }
 0x469   : > { %p8744_p7 = pnand %p8743_p2, %p8953_p8 }
 0x46a   : > { %p8749_p9 = por %p8748_p11, %p8747_p0 }
 0x46b   : > { %p8745_p12 = pneg %p8744_p7 }
 0x46d   : > { %p8750_p6 = pnand %p8749_p9, %p8745_p12 }
 0x46f   : > { %8753 = shalt.err (!%p8750_p6)
}
 0x470   : > { %s8835_s24 = smov 128   ;;  %s8836_s29 = smov 8  }
 0x471   : > { %8239 = dma.vmem_to_hbm [thread:$0]  (%p8953_p8), %s10592_s18, 4096, %s10590_s21, %s6416_s10, %s8835_s24, %s8835_s24, %s8836_s29  }
 0x472 PF: > { %s10805_s17 = sld [smem:[#allocation23_spill]]  ;;  %p10808_p3 = scmp.ge.s32.totalorder %s8820_s26, 2 }
 0x473   : > { %s10806_s20 = sld [smem:[#allocation28_spill]] }
 0x478   : > { %s6447_s30 = sand.u32 1, %s10805_s17  }
 0x479   : > { %p10807_p13 = scmp.ne.s32.totalorder %s10806_s20, 0  ;;  %s6448_s12 = scalar_lea.sflag [#allocation8], %s6447_s30 }
 0x47b   : > { %p8262_p5 = pnand %p10808_p3, %p10807_p13 }
 0x47d   : > { %p8263_p4 = pneg %p8262_p5 }
 0x47f   : > { %8795 = dma.done.wait (%p8263_p4), %s6448_s12, 4096  }
 0x480   : > { %8797 = vsyncadd (%p8263_p4), %s6448_s12, 4294963200  ;;  %s33_s26 = sadd.s32 1, %s8820_s26   ;;  %s10809_s16 = sld [smem:[#allocation24_spill]] }
 0x481   : > { %p30_p1 = scmp.ge.s32.totalorder %s33_s26, 4   ;;  %s10810_s23 = sld [smem:[#allocation30_spill]] }
 0x482   : > { %s10811_s24 = sld [smem:[#allocation26_spill]]  ;;  %s10813_s21 = smov %s8804_s22 }
 0x483   : > { %s10812_s25 = sld [smem:[#allocation29_spill]]  ;;  %32 = sbr.rel (!%p30_p1) target bundleno = 18 (0x12), region = 161 }
 0x486   : > { %s10814_s22 = smov %s10809_s16 }
 0x488   :  { %6453 = vsyncpa [#allocation7], 1 }
 0x489   :  { %6455 = vsyncpa [#allocation7 + $0x1], 1 }
 0x48a   :  { %6456 = vsyncpa [#allocation10], 1 }
 0x48b   :  { %6458 = vsyncpa [#allocation10 + $0x1], 1 }
 0x48c   :  { %6459 = vsyncpa [#allocation13], 1 }
 0x48d   :  { %6460 = vsyncpa [#allocation16], 1 }
 0x48e   :  { %6461 = vsyncpa [#allocation8], 1 }
 0x48f   :  { %6463 = vsyncpa [#allocation8 + $0x1], 1 }

// kernel: tpu_custom_call.1
= control target key start
LH: loop header
LB: loop body
LE: loop exit
PB: predicated region body
PF: predicated region fallthrough
CT: control target
= control target key end

     0   :  { %s10642_s0 = inlined_call_operand.hbm [shape: f32[2,16,16,128], index: 0, kind: input, shape index: {}]   ;;  %s10643_s1 = inlined_call_operand.hbm [shape: f32[2,16,16,128], index: 1, kind: input, shape index: {}]   ;;  %s10644_s2 = inlined_call_operand.hbm [shape: f32[2,16,16,128], index: 2, kind: input, shape index: {}]   ;;  %s10645_s3 = inlined_call_operand.hbm [shape: bf16[128,128], index: 3, kind: input, shape index: {}]   ;;  %s10646_s4 = inlined_call_operand.vmem [shape: f32[1,128], index: 4, kind: input, shape index: {}]   ;;  %s10647_s5 = inlined_call_operand.vmem [shape: f32[1,128], index: 5, kind: input, shape index: {}]   ;;  %s10648_s6 = inlined_call_operand.hbm [shape: bf16[3,3,128,128], index: 6, kind: input, shape index: {}]   ;;  %s10649_s7 = inlined_call_operand.vmem [shape: f32[1,128], index: 7, kind: input, shape index: {}]   ;;  %s10650_s8 = inlined_call_operand.vmem [shape: f32[1,128], index: 8, kind: input, shape index: {}]   ;;  %s10651_s9 = inlined_call_operand.hbm [shape: bf16[128,128], index: 9, kind: input, shape index: {}]   ;;  %s10652_s10 = inlined_call_operand.vmem [shape: f32[1,128], index: 10, kind: input, shape index: {}]   ;;  %s10653_s11 = inlined_call_operand.vmem [shape: f32[1,128], index: 11, kind: input, shape index: {}]   ;;  %s10654_s12 = inlined_call_operand.hbm [shape: f32[2,16,16,128], index: 12, kind: output, shape index: {}]  }
   0x1   :  { %10673 = sst [smem:[#allocation43_spill]] %s10643_s1 }
   0x2   :  { %10674 = sst [smem:[#allocation44_spill]] %s10645_s3 }
   0x3   :  { %10675 = sst [smem:[#allocation45_spill]] %s10648_s6 }
   0x4   :  { %10676 = sst [smem:[#allocation46_spill]] %s10650_s8 }
   0x5   :  { %10677 = sst [smem:[#allocation47_spill]] %s10652_s10 }
   0x6   :  { %10678 = sst [smem:[#allocation48_spill]] %s10653_s11 }
   0x7   :  { %10679 = sst [smem:[#allocation49_spill]] %s10654_s12 }
   0x8   :  { %17 = vsyncpa [#allocation7], 0 }
   0x9   :  { %19 = vsyncpa [#allocation7 + $0x1], 0 }
   0xa   :  { %20 = vsyncpa [#allocation10], 0 }
   0xb   :  { %22 = vsyncpa [#allocation10 + $0x1], 0 }
   0xc   :  { %23 = vsyncpa [#allocation13], 0 }
   0xd   :  { %24 = vsyncpa [#allocation16], 0 }
   0xe   :  { %25 = vsyncpa [#allocation8], 0 }
   0xf   :  { %27 = vsyncpa [#allocation8 + $0x1], 0  ;;  %s8902_s21 = smov 0   ;;  %s8904_s22 = smov 0  }
  0x10   :  { %s8906_s23 = smov 0   ;;  %s8908_s24 = smov 0  }
  0x11   :  { %s8910_s25 = smov 0   ;;  %s8912_s26 = smov 0  }
  0x12 LB: > { %10680 = sst [smem:[#allocation23_spill]] %s8800_s21  ;;  %s8933_s27 = sadd.s32 4294967295, %s8820_s26   ;;  %s8820_s26 = sphi %s8912_s26, %s33_s26   ;;  %s8816_s25 = sphi %s8910_s25, %s10812_s25   ;;  %s8812_s24 = sphi %s8908_s24, %s10811_s24   ;;  %s8808_s23 = sphi %s8906_s23, %s10810_s23   ;;  %s8804_s22 = sphi %s8904_s22, %s10814_s22   ;;  %s8800_s21 = sphi %s8902_s21, %s10813_s21  }
  0x13   : > { %10681 = sst [smem:[#allocation24_spill]] %s8808_s23  ;;  %s6598_s28 = sadd.s32 4294967294, %s8820_s26  }
  0x14   : > { %10682 = sst [smem:[#allocation25_spill]] %s8812_s24  ;;  %p61_p0 = scmp.ne.s32.totalorder %s8808_s23, %s8804_s22 }
  0x15   : > { %10683 = sst [smem:[#allocation26_spill]] %s8816_s25  ;;  %p62_p1 = scmp.eq.s32.totalorder %s8820_s26, 0 }
  0x16   : > { %p67_p2 = scmp.ne.s32.totalorder %s8804_s22, %s8800_s21  ;;  %p10655_p3 = scmp.eq.s32.totalorder %s8933_s27, 0 }
  0x17   : > { %p8942_p4 = por %p62_p1, %p61_p0  ;;  %p354_p5 = scmp.eq.s32.totalorder %s8933_s27, 1 }
  0x18   : > { %p8949_p6 = por %p10655_p3, %p67_p2  ;;  %p360_p7 = scmp.eq.s32.totalorder %s6598_s28, 1 }
  0x19   : > { %p8953_p8 = por %p354_p5, %p61_p0  ;;  %p6599_p9 = scmp.ge.s32.totalorder %s8820_s26, 1 }
  0x1a   : > { %p8958_p10 = por %p360_p7, %p67_p2  ;;  %p367_p11 = scmp.lt.s32.totalorder %s8820_s26, 3 }
  0x1b   : > { %s10686_s13 = scalar_select %p8953_p8, 1, 0 }
  0x1c   : > { %s10688_s14 = scalar_select %p8958_p10, 1, 0 }
  0x1d   : > { %10687 = sst [smem:[#allocation27_spill]] %s10686_s13  ;;  %p8963_p12 = pnand %p6599_p9, %p367_p11 }
  0x1e   : > { %10689 = sst [smem:[#allocation28_spill]] %s10688_s14  ;;  %s8822_s16 = smov [#allocation12]  }
  0x1f   : > { %s379_s17 = sshll.u32 %s8822_s16, 4  ;;  %p8241_p13 = pneg %p8963_p12  ;;  %s380_s17 = int_to_ptr.vmem [resolvable:$true] %s379_s17 }
  0x20   : > { %s45_s19 = sadd.s32 1, %s8816_s25  ;;  %s54_s20 = sadd.s32 1, %s8808_s23 }
  0x21   : > { %p8972_p1 = pnand %p8241_p13, %p10655_p3  ;;  %p8978_p2 = scmp.ge.s32.totalorder %s45_s19, 2 }
  0x22   : > { %s8577_s16 = scalar_lea.vmem %s380_s17, 1024  ;;  %p8585_p13 = scmp.lt.s32.totalorder %s380_s17, %s380_s17 }
  0x23   : > { %p8568_p5 = pneg %p8972_p1  ;;  %p8578_p7 = scmp.ne.s32.totalorder %s380_s17, %s8577_s16 }
  0x24   : > { %p8586_p0 = scmp.lt.s32.totalorder %s8577_s16, %s8577_s16 }
  0x25   : > { %p8580_p9 = pnand %p8578_p7, %p8568_p5 }
  0x26   : > { %p8587_p3 = por %p8586_p0, %p8585_p13 }
  0x27   : > { %p8581_p11 = pneg %p8580_p9 }
  0x29   : > { %p8588_p10 = pnand %p8587_p3, %p8581_p11 }
  0x2b   : > { %8591 = shalt.err (!%p8588_p10)
}
  0x2c   : > { %s10661_s14 = smov 64   ;;  %s10663_s21 = smov 4  }
  0x2d   : > { %s10693_s3 = sld [smem:[#allocation44_spill]]  ;;  %s10816_s19 = smov (%p8978_p2, %s45_s19), 0 }
  0x2e   : > { %10694 = sst [smem:[#allocation29_spill]] %s10816_s19  ;;  %p8268_p3 = scmp.lt.s32.totalorder %s8820_s26, 2 }
  0x2f   : > { %s9001_s13 = sand.u32 1, %s8808_s23   ;;  %s49_s24 = ssub.s32 %s8816_s25, %s10816_s19 }
  0x30   : > { %s9006_s11 = sshll.u32 %s8816_s25, 12  ;;  %p52_p10 = scmp.eq.s32.totalorder %s49_s24, 0 }
  0x31   : > { %p9010_p0 = pnand %p8268_p3, %p8942_p4  ;;  %s6607_s28 = sshll.u32 %s9001_s13, 4 }
  0x32   : > { %s9015_s12 = scalar_select %p52_p10, %s8808_s23, %s54_s20  }
  0x33   : > { %8244 = dma.hbm_to_vmem [thread:$0]  (!%p8972_p1), %s10693_s3, 1024, %s380_s17, [#allocation13], %s10661_s14, %s10661_s14, %s10663_s21  }
  0x34   : > { %10696 = sst [smem:[#allocation30_spill]] %s9015_s12  ;;  %s461_s17 = sand.u32 1, %s8820_s26  }
  0x35   : > { %s10697_s1 = sld [smem:[#allocation43_spill]]  ;;  %s465_s3 = scalar_lea.vmem [#allocation9], %s6607_s28 }
  0x36   : > { %s478_s19 = sshll.u32 %s465_s3, 4  ;;  %s492_s25 = scalar_lea.vmem [#allocation11], %s6607_s28  ;;  %s479_s19 = int_to_ptr.vmem [resolvable:$true] %s478_s19 }
  0x37   : > { %s505_s24 = sshll.u32 %s492_s25, 4  ;;  %s9023_s29 = scalar_lea.sflag [#allocation10], %s461_s17  ;;  %s9036_s24 = int_to_ptr.vmem [resolvable:$true] %s505_s24 }
  0x38   : > { %p10667_p4 = pneg %p9010_p0  ;;  %s8605_s8 = scalar_lea.vmem %s479_s19, 256 }
  0x39   : > { %p8606_p2 = scmp.ne.s32.totalorder %s479_s19, %s8605_s8  ;;  %s8825_s20 = smov [#allocation9]  }
  0x3a   : > { %s8610_s12 = sshll.u32 %s8825_s20, 4  ;;  %s8611_s12 = int_to_ptr.vmem [resolvable:$false] %s8610_s12 }
  0x3b   : > { %s477_s21 = scalar_lea.hbm %s10697_s1, %s9006_s11  ;;  %p8608_p7 = pnand %p8606_p2, %p10667_p4 }
  0x3c   : > { %s8612_s14 = scalar_lea.vmem %s8611_s12, 512  ;;  %p8613_p11 = scmp.lt.s32.totalorder %s479_s19, %s8611_s12 }
  0x3d   : > { %p8609_p9 = pneg %p8608_p7  ;;  %p8614_p13 = scmp.lt.s32.totalorder %s8612_s14, %s8605_s8 }
  0x3f   : > { %p8615_p3 = por %p8614_p13, %p8613_p11 }
  0x41   : > { %p8616_p10 = pnand %p8615_p3, %p8609_p9 }
  0x43   : > { %8619 = shalt.err (!%p8616_p10)
}
  0x44   : > { %s10668_s3 = smov 128   ;;  %s10670_s25 = smov 8  }
  0x45   : > { %8257 = dma.hbm_to_vmem [thread:$0]  (!%p9010_p0), %s477_s21, 256, %s479_s19, %s9023_s29, %s10668_s3, %s10668_s3, %s10670_s25  }
  0x46   : > { %s8828_s17 = smov [#allocation14]   ;;  %s8829_s12 = smov [#allocation15]  }
  0x47   : > { %s398_s28 = sshll.u32 %s8828_s17, 4  ;;  %s417_s8 = sshll.u32 %s8829_s12, 4  ;;  %s399_s28 = int_to_ptr.vmem [resolvable:$true] %s398_s28  ;;  %s418_s8 = int_to_ptr.vmem [resolvable:$true] %s417_s8 }
  0x48   : > { %s8631_s16 = scalar_lea.vmem %s399_s28, 9216  ;;  %p8639_p11 = scmp.lt.s32.totalorder %s399_s28, %s399_s28 }
  0x49   : > { %p8632_p2 = scmp.ne.s32.totalorder %s399_s28, %s8631_s16  ;;  %p8640_p13 = scmp.lt.s32.totalorder %s8631_s16, %s8631_s16 }
  0x4b   : > { %p8634_p7 = pnand %p8632_p2, %p8568_p5  ;;  %p8641_p3 = por %p8640_p13, %p8639_p11 }
  0x4d   : > { %p8635_p9 = pneg %p8634_p7 }
  0x4f   : > { %p8642_p10 = pnand %p8641_p3, %p8635_p9 }
  0x51   : > { %8645 = shalt.err (!%p8642_p10)
}
  0x52   : > { %s10698_s21 = smov 4   ;;  %s10699_s19 = smov 64  }
  0x53   : > { %s10700_s6 = sld [smem:[#allocation45_spill]]  ;;  %s8657_s17 = scalar_lea.vmem %s418_s8, 1024 }
  0x54   : > { %p8658_p4 = scmp.ne.s32.totalorder %s418_s8, %s8657_s17  ;;  %p8665_p11 = scmp.lt.s32.totalorder %s418_s8, %s418_s8 }
  0x55   : > { %p8666_p9 = scmp.lt.s32.totalorder %s8657_s17, %s8657_s17 }
  0x56   : > { %p8660_p2 = pnand %p8658_p4, %p8568_p5 }
  0x57   : > { %p8667_p13 = por %p8666_p9, %p8665_p11 }
  0x58   : > { %p8661_p7 = pneg %p8660_p2 }
  0x59   : > { %8247 = dma.hbm_to_vmem [thread:$0]  (!%p8972_p1), %s10700_s6, 9216, %s399_s28, [#allocation13], %s10699_s19, %s10699_s19, %s10698_s21  }
  0x5a   : > { %p8668_p3 = pnand %p8667_p13, %p8661_p7 }
  0x5c   : > { %8671 = shalt.err (!%p8668_p3)
}
  0x5d   : > { %8250 = dma.hbm_to_vmem [thread:$0]  (!%p8972_p1), %s10651_s9, 1024, %s418_s8, [#allocation16], %s10699_s19, %s10699_s19, %s10698_s21  }
  0x5e   : > { %s6604_s28 = sshll.u32 %s9001_s13, 8  ;;  %s450_s17 = scalar_lea.hbm %s10642_s0, %s9006_s11 }
  0x5f   : > { %s6975_s3 = sadd.s32 3840, %s9006_s11  ;;  %s441_s25 = scalar_lea.vmem [#allocation6], %s6604_s28 }
  0x60   : > { %s451_s18 = sshll.u32 %s441_s25, 4  ;;  %s9069_s23 = scalar_lea.hbm %s10644_s2, %s6975_s3  ;;  %s452_s18 = int_to_ptr.vmem [resolvable:$true] %s451_s18 }
  0x61   : > { %s438_s12 = scalar_lea.sflag [#allocation7], %s9001_s13  ;;  %s8685_s16 = scalar_lea.vmem %s452_s18, 4096 }
  0x62   : > { %p8686_p5 = scmp.ne.s32.totalorder %s452_s18, %s8685_s16  ;;  %p10701_p4 = pneg %p9010_p0 }
  0x63   : > { %s8830_s8 = smov [#allocation6]  }
  0x64   : > { %p8688_p1 = pnand %p8686_p5, %p10701_p4  ;;  %s8690_s21 = sshll.u32 %s8830_s8, 4  ;;  %s8691_s21 = int_to_ptr.vmem [resolvable:$false] %s8690_s21 }
  0x65   : > { %s8692_s19 = scalar_lea.vmem %s8691_s21, 8192  ;;  %p8693_p2 = scmp.lt.s32.totalorder %s452_s18, %s8691_s21 }
  0x66   : > { %p8689_p10 = pneg %p8688_p1  ;;  %p8694_p7 = scmp.lt.s32.totalorder %s8692_s19, %s8685_s16 }
  0x68   : > { %p8695_p11 = por %p8694_p7, %p8693_p2 }
  0x6a   : > { %p8696_p9 = pnand %p8695_p11, %p8689_p10 }
  0x6c   : > { %8699 = shalt.err (!%p8696_p9)
}
  0x6d   : > { %s10702_s1 = smov 8   ;;  %s10703_s6 = smov 128  }
  0x6e   : > { %8254 = dma.hbm_to_vmem [thread:$0]  (!%p9010_p0), %s450_s17, 4096, %s452_s18, %s438_s12, %s10703_s6, %s10703_s6, %s10702_s1  }
  0x6f   : > { %s8713_s11 = scalar_lea.vmem %s9036_s24, 256  ;;  %p10704_p3 = pmov %p10701_p4 }
  0x70   : > { %p8714_p13 = scmp.ne.s32.totalorder %s9036_s24, %s8713_s11  ;;  %s8831_s13 = smov [#allocation11]  }
  0x71   : > { %s8718_s3 = sshll.u32 %s8831_s13, 4  ;;  %s8719_s3 = int_to_ptr.vmem [resolvable:$false] %s8718_s3 }
  0x72   : > { %p8716_p5 = pnand %p8714_p13, %p10704_p3  ;;  %s8720_s25 = scalar_lea.vmem %s8719_s3, 512 }
  0x73   : > { %p8721_p1 = scmp.lt.s32.totalorder %s9036_s24, %s8719_s3  ;;  %p8722_p10 = scmp.lt.s32.totalorder %s8720_s25, %s8713_s11 }
  0x74   : > { %p8717_p4 = pneg %p8716_p5 }
  0x75   : > { %p8723_p2 = por %p8722_p10, %p8721_p1 }
  0x77   : > { %p8724_p7 = pnand %p8723_p2, %p8717_p4 }
  0x79   : > { %8727 = shalt.err (!%p8724_p7)
}
  0x7a   : > { %8260 = dma.hbm_to_vmem [thread:$0]  (!%p9010_p0), %s9069_s23, 256, %s9036_s24, %s9023_s29, %s10703_s6, %s10703_s6, %s10702_s1  }
  0x7b   : > { %517 = sbr.rel (%p8963_p12) target bundleno = 1138 (0x472), region = 68 }
  0x80   : > { %s9097_s28 = sand.u32 1, %s8804_s22  }
  0x81   : > { %s6614_s20 = sshll.u32 %s9097_s28, 8  ;;  %s520_s14 = scalar_lea.sflag [#allocation7], %s9097_s28 }
  0x82   : > { %s9103_s10 = scalar_lea.vmem [#allocation6], %s6614_s20 }
  0x83   : > { %8779 = dma.done.wait (%p8949_p6), %s520_s14, 4096  }
  0x84   : > { %8781 = vsyncadd (%p8949_p6), %s520_s14, 4294963200  ;;  %s528_s23 = sand.u32 1, %s8933_s27   ;;  %s6615_s15 = sshll.u32 %s9097_s28, 4 }
  0x85   : > { %s529_s24 = scalar_lea.sflag [#allocation10], %s528_s23  ;;  %s532_s29 = scalar_lea.vmem [#allocation9], %s6615_s15 }
  0x86   : > { %8783 = dma.done.wait (%p8949_p6), %s529_s24, 512  }
  0x87   : > { %8785 = vsyncadd (%p8949_p6), %s529_s24, 4294966784  ;;  %s9115_s17 = scalar_lea.vmem [#allocation11], %s6615_s15  ;;  %p10705_p12 = scmp.eq.s32.totalorder %s8933_s27, 0 }
  0x89   : > { %8787 = dma.done.wait (%p10705_p12), [#allocation13], 10240   ;;  %p10706_p0 = pmov %p10705_p12 }
  0x8b   : > { %8789 = vsyncadd (%p10706_p0), [#allocation13], 4294957056  ;;  %p10707_p11 = pmov %p10706_p0 }
  0x8c   : > { %p10708_p9 = pmov %p10706_p0 }
  0x8d   : > { %8791 = dma.done.wait (%p10707_p11), [#allocation16], 1024  }
  0x8e   : > { %8793 = vsyncadd (%p10708_p9), [#allocation16], 4294966272  ;;  %v8332_v0 = vld [vmem:[#allocation12 + $0x38] sm:$0xff]   ;;  %v8333_v1 = vld [vmem:[#allocation12 + $0x30] sm:$0xff]   ;;  %s10787_s3 = sld [smem:[#allocation46_spill]]  ;;  %s8834_s1 = smov [#allocation17]  }
  0x8f   : > { %7673 = vmatprep.subr.bf16.mxu0 %v8332_v0  ;;  %v8334_v2 = vld [vmem:[#allocation12 + $0x28] sm:$0xff]   ;;  %v8335_v3 = vld [vmem:[#allocation12 + $0x20] sm:$0xff]   ;;  %v8336_v7 = vld [vmem:[#allocation12 + $0x18] sm:$0xff]   ;;  %s10800_s23 = sld [smem:[#allocation47_spill]]  ;;  %s8732_s6 = sshll.u32 %s8834_s1, 4  ;;  %s8733_s6 = int_to_ptr.vmem [resolvable:$false] %s8732_s6 }
  0x90   : > { %7674 = vmatpush3.bf16.msra.mxu0 %v8332_v0  ;;  %v615_v4 = vld [vmem:[%s532_s29] sm:$0xff]  ;;  %v616_v5 = vld [vmem:[%s532_s29 + $0x8] sm:$0xff]  ;;  %s10801_s29 = sld [smem:[#allocation48_spill]]  ;;  %s8734_s11 = scalar_lea.vmem %s8733_s6, 8192 }
  0x91   : > { %7675 = vmatprep.subr.bf16.mxu0 %v8333_v1  ;;  %v651_v6 = vpack.c.bf16 %v616_v5, %v615_v4  ;;  %v8337_v8 = vld [vmem:[#allocation12 + $0x10] sm:$0xff]   ;;  %v8338_v9 = vld [vmem:[#allocation12 + $0x8] sm:$0xff]   ;;  %v8340_v10 = vld [vmem:[#allocation14 + $0x78] sm:$0xff]   ;;  %s10804_s8 = sld [smem:[#allocation49_spill]] }
  0x92   : > { %v8341_v11 = vld [vmem:[#allocation14 + $0x70] sm:$0xff]   ;;  %v8339_v12 = vld [vmem:[#allocation12] sm:$0xff]   ;;  %8205 = vmatprep.subr.bf16.mxu1 %v8340_v10  ;;  %v618_v14 = vld [vmem:[%s9103_s10 + $0x8] sm:$0xff] }
  0x93   : > { %7689 = vmatprep.mubr.bf16.mxu0 %v651_v6  ;;  %8213 = vmatpush3.bf16.msra.mxu1 %v8340_v10  ;;  %v617_v13 = vld [vmem:[%s9103_s10] sm:$0xff]  ;;  %v619_v15 = vld [vmem:[%s9103_s10 + $0x10] sm:$0xff]  ;;  %v620_v16 = vld [vmem:[%s9103_s10 + $0x18] sm:$0xff] }
  0x94   : > { %7676 = vmatpush3.bf16.msra.mxu0 %v8333_v1  ;;  %8206 = vmatprep.subr.bf16.mxu1 %v8341_v11  ;;  %v652_v17 = vpack.c.bf16 %v618_v14, %v617_v13  ;;  %v653_v18 = vpack.c.bf16 %v620_v16, %v619_v15  ;;  %v621_v19 = vld [vmem:[%s9103_s10 + $0x20] sm:$0xff]  ;;  %v622_v20 = vld [vmem:[%s9103_s10 + $0x28] sm:$0xff]  ;;  %v623_v21 = vld [vmem:[%s9103_s10 + $0x30] sm:$0xff] }
  0x95   : > { %7677 = vmatprep.subr.bf16.mxu0 %v8334_v2  ;;  %v624_v22 = vld [vmem:[%s9103_s10 + $0x38] sm:$0xff]  ;;  %v654_v23 = vpack.c.bf16 %v622_v20, %v621_v19  ;;  %v625_v25 = vld [vmem:[%s9103_s10 + $0x40] sm:$0xff]  ;;  %v626_v26 = vld [vmem:[%s9103_s10 + $0x48] sm:$0xff] }
  0x96   : > { %v655_v24 = vpack.c.bf16 %v624_v22, %v623_v21  ;;  %v627_v27 = vld [vmem:[%s9103_s10 + $0x50] sm:$0xff]  ;;  %v628_v28 = vld [vmem:[%s9103_s10 + $0x58] sm:$0xff]  ;;  %v656_v29 = vpack.c.bf16 %v626_v26, %v625_v25  ;;  %v629_v31 = vld [vmem:[%s9103_s10 + $0x60] sm:$0xff] }
  0x97   : > { %8214 = vmatpush3.bf16.msra.mxu1 %v8341_v11  ;;  %v657_v30 = vpack.c.bf16 %v628_v28, %v627_v27  ;;  %v630_v32 = vld [vmem:[%s9103_s10 + $0x68] sm:$0xff]  ;;  %v631_v33 = vld [vmem:[%s9103_s10 + $0x70] sm:$0xff]  ;;  %v632_v34 = vld [vmem:[%s9103_s10 + $0x78] sm:$0xff] }
  0x98   : > { %7678 = vmatpush3.bf16.msra.mxu0 %v8334_v2  ;;  %v658_v35 = vpack.c.bf16 %v630_v32, %v629_v31  ;;  %v659_v36 = vpack.c.bf16 %v632_v34, %v631_v33  ;;  %v633_v37 = vld [vmem:[%s9103_s10 + $0x80] sm:$0xff]  ;;  %v634_v38 = vld [vmem:[%s9103_s10 + $0x88] sm:$0xff]  ;;  %v635_v39 = vld [vmem:[%s9103_s10 + $0x90] sm:$0xff]  ;;  %v8832_v2 = vmov 0.0  }
  0x99   : > { %7679 = vmatprep.subr.bf16.mxu0 %v8335_v3  ;;  %v636_v40 = vld [vmem:[%s9103_s10 + $0x98] sm:$0xff]  ;;  %v660_v41 = vpack.c.bf16 %v634_v38, %v633_v37  ;;  %v637_v43 = vld [vmem:[%s9103_s10 + $0xa0] sm:$0xff]  ;;  %v638_v44 = vld [vmem:[%s9103_s10 + $0xa8] sm:$0xff]  ;;  %1252 = vst [vmem:[#allocation2 + $0x8] sm:$0xff] %v8832_v2 }
  0x9a   : > { %v661_v42 = vpack.c.bf16 %v636_v40, %v635_v39  ;;  %v639_v45 = vld [vmem:[%s9103_s10 + $0xb0] sm:$0xff]  ;;  %v640_v46 = vld [vmem:[%s9103_s10 + $0xb8] sm:$0xff]  ;;  %v662_v47 = vpack.c.bf16 %v638_v44, %v637_v43  ;;  %v641_v49 = vld [vmem:[%s9103_s10 + $0xc0] sm:$0xff]  ;;  %1253 = vst [vmem:[#allocation2 + $0x10] sm:$0xff] %v8832_v2 }
  0x9b   : > { %v663_v48 = vpack.c.bf16 %v640_v46, %v639_v45  ;;  %v642_v50 = vld [vmem:[%s9103_s10 + $0xc8] sm:$0xff]  ;;  %v643_v51 = vld [vmem:[%s9103_s10 + $0xd0] sm:$0xff]  ;;  %v644_v52 = vld [vmem:[%s9103_s10 + $0xd8] sm:$0xff]  ;;  %1256 = vst [vmem:[#allocation2 + $0x118] sm:$0xff] %v8832_v2 }
  0x9c   : > { %7680 = vmatpush3.bf16.msra.mxu0 %v8335_v3  ;;  %v664_v53 = vpack.c.bf16 %v642_v50, %v641_v49  ;;  %v665_v54 = vpack.c.bf16 %v644_v52, %v643_v51  ;;  %v645_v55 = vld [vmem:[%s9103_s10 + $0xe0] sm:$0xff]  ;;  %v646_v56 = vld [vmem:[%s9103_s10 + $0xe8] sm:$0xff]  ;;  %v647_v57 = vld [vmem:[%s9103_s10 + $0xf0] sm:$0xff]  ;;  %1257 = vst [vmem:[#allocation2 + $0x120] sm:$0xff] %v8832_v2 }
  0x9d   : > { %7681 = vmatprep.subr.bf16.mxu0 %v8336_v7  ;;  %v648_v58 = vld [vmem:[%s9103_s10 + $0xf8] sm:$0xff]  ;;  %v666_v59 = vpack.c.bf16 %v646_v56, %v645_v55  ;;  %v649_v61 = vld [vmem:[%s9115_s17] sm:$0xff]  ;;  %v8342_v0 = vld [vmem:[#allocation14 + $0x68] sm:$0xff]  }
  0x9e   : > { %v667_v60 = vpack.c.bf16 %v648_v58, %v647_v57  ;;  %v650_v62 = vld [vmem:[%s9115_s17 + $0x8] sm:$0xff]  ;;  %8207 = vmatprep.subr.bf16.mxu1 %v8342_v0  ;;  %v8343_v1 = vld [vmem:[#allocation14 + $0x60] sm:$0xff]   ;;  %v8345_v4 = vld [vmem:[#allocation14 + $0x50] sm:$0xff]   ;;  %s10468_s17 = scalar_lea.vmem [#allocation17], %s6614_s20  ;;  %s10802_s20 = sld [smem:[#allocation25_spill]] }
  0x9f   : > { %v668_v63 = vpack.c.bf16 %v650_v62, %v649_v61  ;;  %8215 = vmatpush3.bf16.msra.mxu1 %v8342_v0  ;;  %v8344_v3 = vld [vmem:[#allocation14 + $0x58] sm:$0xff]   ;;  %v8346_v5 = vld [vmem:[#allocation14 + $0x48] sm:$0xff]   ;;  %v8347_v6 = vld [vmem:[#allocation14 + $0x40] sm:$0xff]   ;;  %s6432_s18 = sshll.u32 %s10468_s17, 4  ;;  %s10592_s18 = int_to_ptr.vmem [resolvable:$true] %s6432_s18 }
  0xa0   : > { %7682 = vmatpush3.bf16.msra.mxu0 %v8336_v7  ;;  %8208 = vmatprep.subr.bf16.mxu1 %v8343_v1  ;;  %v9159_v7 = vld [vmem:[#allocation14 + $0xb8] sm:$0xff]   ;;  %v9172_v22 = vld [vmem:[%s10646_s4] ss:$0 sm:$0xff]  ;;  %s8728_s19 = scalar_lea.vmem %s10592_s18, 4096  ;;  %p8735_p5 = scmp.lt.s32.totalorder %s10592_s18, %s8733_s6 }
  0xa1   : > { %7683 = vmatprep.subr.bf16.mxu0 %v8337_v8  ;;  %v1730_v14 = vld [vmem:[#allocation2 + $0xf] sm:$0xff]  ;;  %p8729_p6 = scmp.ne.s32.totalorder %s10592_s18, %s8728_s19  ;;  %p8736_p4 = scmp.lt.s32.totalorder %s8734_s11, %s8728_s19 }
  0xa3   : > { %8216 = vmatpush3.bf16.msra.mxu1 %v8343_v1  ;;  %v2123_v19 = vld [vmem:[#allocation2 + $0x119] sm:$0xff]  ;;  %p8730_p13 = pnand %p8729_p6, %p8953_p8  ;;  %p8737_p1 = por %p8736_p4, %p8735_p5 }
  0xa4   : > { %7684 = vmatpush3.bf16.msra.mxu0 %v8337_v8  ;;  %8209 = vmatprep.subr.bf16.mxu1 %v8344_v3  ;;  %v9162_v8 = vld [vmem:[#allocation14 + $0x38] sm:$0xff]   ;;  %s7084_s30 = sshll.u32 %s10802_s20, 12 }
  0xa5   : > { %7685 = vmatprep.subr.bf16.mxu0 %v8338_v9  ;;  %s10590_s21 = scalar_lea.hbm %s10804_s8, %s7084_s30  ;;  %p8731_p3 = pneg %p8730_p13 }
  0xa7   : > { %8217 = vmatpush3.bf16.msra.mxu1 %v8344_v3  ;;  %p8738_p10 = pnand %p8737_p1, %p8731_p3 }
  0xa8   : > { %7686 = vmatpush3.bf16.msra.mxu0 %v8338_v9  ;;  %8210 = vmatprep.subr.bf16.mxu1 %v8345_v4  ;;  %v1260_v9 = vlaneseq }
  0xa9   : > { %7687 = vmatprep.subr.bf16.mxu0 %v8339_v12 }
  0xab   : > { %8218 = vmatpush3.bf16.msra.mxu1 %v8345_v4 }
  0xac   : > { %7688 = vmatpush3.bf16.msra.mxu0 %v8339_v12  ;;  %8211 = vmatprep.subr.bf16.mxu1 %v8346_v5  ;;  %v1729_v12 = vld [vmem:[#allocation2 + $0x7] sm:$0xff] }
  0xad   : > { %7725 = vmatprep.subr.bf16.mxu0 %v8340_v10 }
  0xaf   : > { %7690 = vmatmul.mubr.bf16.vlgmr.msra.gmra.mxu0 %v652_v17  ;;  %8219 = vmatpush3.bf16.msra.mxu1 %v8346_v5  ;;  %v2124_v17 = vld [vmem:[#allocation2 + $0x121] sm:$0xff] }
  0xb0   : > { %7693 = vmatprep.mubr.bf16.mxu0 %v653_v18  ;;  %7726 = vmatpush3.bf16.msra.mxu0 %v8340_v10  ;;  %v9165_v10 = vshrl.u32 %v1260_v9, 7 }
  0xb1   : > { %7727 = vmatprep.subr.bf16.mxu0 %v8341_v11  ;;  %8212 = vmatprep.subr.bf16.mxu1 %v8347_v6 }
  0xb2   : > { %v1296_v13 = vadd.s32 280, %v9165_v10  ;;  %v1264_v39 = vadd.s32 24, %v9165_v10  ;;  %v1265_v40 = vadd.s32 32, %v9165_v10  ;;  %v1267_v49 = vadd.s32 48, %v9165_v10 }
  0xb3   : > { %8220 = vmatpush3.bf16.msra.mxu1 %v8347_v6  ;;  %v1268_v2 = vadd.s32 56, %v9165_v10 }
  0xb4   : > { %7728 = vmatpush3.bf16.msra.mxu0 %v8341_v11  ;;  %7773 = vmatprep.subr.bf16.mxu1 %v9162_v8  ;;  %v1301_v11 = vand.u32 15, %v9165_v10  ;;  %v1546_v16 = vand.u32 15, %v1296_v13  ;;  %v1329_v55 = vand.u32 15, %v1265_v40 }
  0xb5   : > { %7729 = vmatprep.subr.bf16.mxu0 %v8342_v0 }
  0xb6   : > { %vm1765_vm0 = vcmp.eq.s32.totalorder %v1301_v11, 0  ;;  %vm2160_vm1 = vcmp.eq.s32.totalorder %v1546_v16, 15  ;;  %vm9218_vm5 = vcmp.eq.s32.totalorder %v1329_v55, 0 }
  0xb7   : > { %7694 = vmatmul.mubr.bf16.gmra.mxu0 %v654_v23  ;;  %v1873_v15 = vsel %vm1765_vm0, 0.0, %v1729_v12  ;;  %v2268_v20 = vsel %vm2160_vm1, 0.0, %v2124_v17  ;;  %v8833_v12 = vmov 0  }
  0xb8   : > { %7697 = vmatprep.mubr.bf16.mxu0 %v655_v24  ;;  %7730 = vmatpush3.bf16.msra.mxu0 %v8342_v0  ;;  %v7178_v18 = vpack.c.bf16 %v1730_v14, %v1873_v15  ;;  %v7353_v21 = vpack.c.bf16 %v2268_v20, %v2123_v19  ;;  %v9177_v24 = vld [vmem:[%s10647_s5] ss:$0 sm:$0xff]  ;;  %v1269_v15 = vadd.s32 64, %v9165_v10 }
  0xb9   : > { %7731 = vmatprep.subr.bf16.mxu0 %v8343_v1 }
  0xba   : > { %7179 = vst [vmem:[#allocation4] sm:$0xff] %v7178_v18   ;;  %7406 = vst [vmem:[#allocation5 + $0x88] sm:$0xff] %v7353_v21  }
  0xbc   : > { %7732 = vmatpush3.bf16.msra.mxu0 %v8343_v1  ;;  %v1343_v1 = vand.u32 15, %v1267_v49  ;;  %v9252_v49 = vld [vmem:[#allocation14 + $0xb0] sm:$0xff]  }
  0xbd   : > { %7733 = vmatprep.subr.bf16.mxu0 %v8344_v3 }
  0xbe   : > { %vm9226_vm6 = vcmp.eq.s32.totalorder %v1343_v1, 0 }
  0xbf   : > { %7698 = vmatmul.mubr.bf16.gmra.mxu0 %v656_v29 }
  0xc0   : > { %7701 = vmatprep.mubr.bf16.mxu0 %v657_v30  ;;  %7734 = vmatpush3.bf16.msra.mxu0 %v8344_v3  ;;  %v1262_v30 = vadd.s32 8, %v9165_v10  ;;  %v2089_v3 = vld [vmem:[#allocation2 + $0x9] sm:$0xff] }
  0xc1   : > { %7735 = vmatprep.subr.bf16.mxu0 %v8345_v4 }
  0xc4   : > { %7736 = vmatpush3.bf16.msra.mxu0 %v8345_v4 }
  0xc5   : > { %7737 = vmatprep.subr.bf16.mxu0 %v8346_v5 }
  0xc7   : > { %7702 = vmatmul.mubr.bf16.gmra.mxu0 %v658_v35  ;;  %v1263_v35 = vadd.s32 16, %v9165_v10 }
  0xc8   : > { %7705 = vmatprep.mubr.bf16.mxu0 %v659_v36  ;;  %7738 = vmatpush3.bf16.msra.mxu0 %v8346_v5 }
  0xc9   : > { %7739 = vmatprep.subr.bf16.mxu0 %v8347_v6  ;;  %v1315_v46 = vand.u32 15, %v1263_v35 }
  0xcb   : > { %vm9202_vm3 = vcmp.eq.s32.totalorder %v1315_v46, 0 }
  0xcc   : > { %7740 = vmatpush3.bf16.msra.mxu0 %v8347_v6 }
  0xcd   : > { %7821 = vmatprep.subr.bf16.mxu0 %v9159_v7 }
  0xcf   : > { %7706 = vmatmul.mubr.bf16.gmra.mxu0 %v660_v41  ;;  %v1308_v41 = vand.u32 15, %v1262_v30  ;;  %v1271_v30 = vadd.s32 80, %v9165_v10 }
  0xd0   : > { %7709 = vmatprep.mubr.bf16.mxu0 %v661_v42 }
  0xd1   : > { %vm9196_vm2 = vcmp.eq.s32.totalorder %v1308_v41, 15  ;;  %v1371_v46 = vand.u32 15, %v1271_v30 }
  0xd3   : > { %vm9272_vm10 = vcmp.eq.s32.totalorder %v1371_v46, 0 }
  0xd7   : > { %7710 = vmatmul.mubr.bf16.gmra.mxu0 %v662_v47 }
  0xd8   : > { %7713 = vmatprep.mubr.bf16.mxu0 %v663_v48  ;;  %v1266_v48 = vadd.s32 40, %v9165_v10 }
  0xda   : > { %v1336_v11 = vand.u32 15, %v1266_v48  ;;  %v9250_v48 = vadd.s32 112, %v9165_v10 }
  0xdc   : > { %vm9232_vm7 = vcmp.eq.s32.totalorder %v1336_v11, 15  ;;  %v1399_v13 = vand.u32 15, %v9250_v48 }
  0xde   : > { %vm9329_vm14 = vcmp.eq.s32.totalorder %v1399_v13, 0 }
  0xdf   : > { %7714 = vmatmul.mubr.bf16.gmra.mxu0 %v664_v53 }
  0xe0   : > { %7717 = vmatprep.mubr.bf16.mxu0 %v665_v54  ;;  %v1322_v54 = vand.u32 15, %v1264_v39  ;;  %v9239_v39 = vadd.s32 88, %v9165_v10 }
  0xe2   : > { %vm9211_vm4 = vcmp.eq.s32.totalorder %v1322_v54, 15 }
  0xe7   : > { %7718 = vmatmul.mubr.bf16.gmra.mxu0 %v666_v59 }
  0xe8   : > { %7721 = vmatprep.mubr.bf16.mxu0 %v667_v60 }
  0xef   : > { %7722 = vmatmul.mubr.bf16.gmra.mxu0 %v668_v63 }
 0x16f   : > { %v7691_v23 = vpop.f32.mrf.mxu0 }
 0x170   : > { %v919_v25 = vmul.f32 %v7691_v23, %v9172_v22 }
 0x171   : > { %v767_v26 = vpop.f32.mrf.mxu0 }
 0x172   : > { %v962_v27 = vadd.f32 %v9177_v24, %v919_v25  ;;  %v917_v28 = vmul.f32 %v9172_v22, %v767_v26 }
 0x173   : > { %v7692_v29 = vpop.f32.mrf.mxu0 }
 0x174   : > { %v998_v31 = vmax.f32 %v962_v27, 0.0  ;;  %v920_v32 = vmul.f32 %v7692_v29, %v9172_v22  ;;  %v960_v33 = vadd.f32 %v9177_v24, %v917_v28  ;;  %v1350_v28 = vand.u32 15, %v1268_v2 }
 0x175   : > { %v770_v34 = vpop.f32.mrf.mxu0  ;;  %v1270_v29 = vadd.s32 72, %v9165_v10 }
 0x176   : > { %1034 = vst [vmem:[#allocation2 + $0x18] sm:$0xff] %v998_v31  ;;  %v963_v36 = vadd.f32 %v9177_v24, %v920_v32  ;;  %v918_v37 = vmul.f32 %v9172_v22, %v770_v34  ;;  %v996_v45 = vmax.f32 %v960_v33, 0.0  ;;  %vm9256_vm8 = vcmp.eq.s32.totalorder %v1350_v28, 15  ;;  %v9314_v34 = vld [vmem:[#allocation14 + $0xa0] sm:$0xff]  }
 0x177   : > { %v7695_v38 = vpop.f32.mrf.mxu0 }
 0x178   : > { %v999_v42 = vmax.f32 %v963_v36, 0.0  ;;  %v961_v43 = vadd.f32 %v9177_v24, %v918_v37  ;;  %v923_v44 = vmul.f32 %v7695_v38, %v9172_v22  ;;  %v1357_v37 = vand.u32 15, %v1269_v15 }
 0x179   : > { %v783_v47 = vpop.f32.mrf.mxu0 }
 0x17a   : > { %1035 = vst [vmem:[#allocation2 + $0x20] sm:$0xff] %v999_v42  ;;  %v7093_v50 = vpack.c.bf16 %v999_v42, %v998_v31  ;;  %v997_v51 = vmax.f32 %v961_v43, 0.0  ;;  %v966_v52 = vadd.f32 %v9177_v24, %v923_v44  ;;  %v921_v53 = vmul.f32 %v9172_v22, %v783_v47 }
 0x17b   : > { %v7696_v56 = vpop.f32.mrf.mxu0  ;;  %v9243_v43 = vadd.s32 96, %v9165_v10  ;;  %v9247_v47 = vadd.s32 104, %v9165_v10  ;;  %vm9266_vm9 = vcmp.eq.s32.totalorder %v1357_v37, 0 }
 0x17c   : > { %7356 = vst [vmem:[#allocation3 + $0x8] sm:$0xff] %v7093_v50   ;;  %v7088_v58 = vpack.c.bf16 %v997_v51, %v996_v45  ;;  %v1002_v59 = vmax.f32 %v966_v52, 0.0  ;;  %v964_v60 = vadd.f32 %v9177_v24, %v921_v53  ;;  %v924_v61 = vmul.f32 %v7696_v56, %v9172_v22 }
 0x17d   : > { %v2090_v63 = vld [vmem:[#allocation2 + $0x11] sm:$0xff]  ;;  %v786_v0 = vpop.f32.mrf.mxu0  ;;  %v1364_v52 = vand.u32 15, %v1270_v29  ;;  %v1392_v11 = vand.u32 15, %v9247_v47  ;;  %v9357_v47 = vadd.s32 168, %v9165_v10 }
 0x17e   : > { %7089 = vst [vmem:[#allocation3] sm:$0xff] %v7088_v58   ;;  %v1731_v4 = vld [vmem:[#allocation2 + $0x17] sm:$0xff]  ;;  %1038 = vst [vmem:[#allocation2 + $0x38] sm:$0xff] %v1002_v59  ;;  %v1000_v5 = vmax.f32 %v964_v60, 0.0  ;;  %v967_v6 = vadd.f32 %v9177_v24, %v924_v61  ;;  %v922_v9 = vmul.f32 %v9172_v22, %v786_v0  ;;  %v2234_v16 = vsel %vm9196_vm2, 0.0, %v2090_v63 }
 0x17f   : > { %1254 = vst [vmem:[#allocation3] sm:$0xf] %v8833_v12  ;;  %1255 = vst [vmem:[#allocation3 + $0x4] sm:$0xf] %v8833_v12  ;;  %v7699_v14 = vpop.f32.mrf.mxu0  ;;  %v7268_v21 = vpack.c.bf16 %v2234_v16, %v2089_v3  ;;  %v1875_v25 = vsel %vm9202_vm3, 0.0, %v1731_v4  ;;  %v1378_v58 = vand.u32 15, %v9239_v39 }
 0x180   : > { %1036 = vst [vmem:[#allocation2 + $0x28] sm:$0xff] %v1000_v5  ;;  %v1003_v18 = vmax.f32 %v967_v6, 0.0  ;;  %v965_v19 = vadd.f32 %v9177_v24, %v922_v9  ;;  %v927_v20 = vmul.f32 %v7699_v14, %v9172_v22  ;;  %v9262_v60 = vadd.s32 120, %v9165_v10 }
 0x181   : > { %v1732_v23 = vld [vmem:[#allocation2 + $0x1f] sm:$0xff]  ;;  %v799_v27 = vpop.f32.mrf.mxu0  ;;  %7269 = vst [vmem:[#allocation5] sm:$0xff] %v7268_v21   ;;  %v1385_v3 = vand.u32 15, %v9243_v43  ;;  %vm9279_vm11 = vcmp.eq.s32.totalorder %v1364_v52, 15  ;;  %v9288_v21 = vld [vmem:[#allocation14 + $0xa8] sm:$0xff]   ;;  %vm9306_vm12 = vcmp.eq.s32.totalorder %v1378_v58, 15 }
 0x182   : > { %v7183_v31 = vpack.c.bf16 %v1732_v23, %v1875_v25  ;;  %1039 = vst [vmem:[#allocation2 + $0x40] sm:$0xff] %v1003_v18  ;;  %v7103_v32 = vpack.c.bf16 %v1003_v18, %v1002_v59  ;;  %v1001_v33 = vmax.f32 %v965_v19, 0.0  ;;  %v970_v35 = vadd.f32 %v9177_v24, %v927_v20  ;;  %v2091_v61 = vld [vmem:[#allocation2 + $0x19] sm:$0xff] }
 0x183   : > { %v925_v36 = vmul.f32 %v9172_v22, %v799_v27  ;;  %v7700_v38 = vpop.f32.mrf.mxu0  ;;  %v8349_v59 = vld [vmem:[#allocation3 + $0x8] sm:$0xff]   ;;  %v9286_v20 = vadd.s32 128, %v9165_v10  ;;  %vm9318_vm13 = vcmp.eq.s32.totalorder %v1385_v3, 0  ;;  %v9325_v58 = vadd.s32 136, %v9165_v10 }
 0x184   : > { %7373 = vst [vmem:[#allocation4 + $0x8] sm:$0xff] %v7183_v31   ;;  %7358 = vst [vmem:[#allocation3 + $0x18] sm:$0xff] %v7103_v32   ;;  %v7098_v40 = vpack.c.bf16 %v1001_v33, %v1000_v5  ;;  %v1006_v41 = vmax.f32 %v970_v35, 0.0  ;;  %v928_v42 = vmul.f32 %v7700_v38, %v9172_v22  ;;  %v1406_v31 = vand.u32 15, %v9262_v60  ;;  %v9340_v3 = vld [vmem:[#allocation14 + $0x98] sm:$0xff]  }
 0x185   : > { %1037 = vst [vmem:[#allocation2 + $0x30] sm:$0xff] %v1001_v33  ;;  %v968_v44 = vadd.f32 %v9177_v24, %v925_v36  ;;  %v802_v45 = vpop.f32.mrf.mxu0  ;;  %vm9344_vm15 = vcmp.eq.s32.totalorder %v1392_v11, 15  ;;  %v9360_v11 = vadd.s32 176, %v9165_v10  ;;  %v1420_v60 = vand.u32 15, %v9325_v58 }
 0x186   : > { %7357 = vst [vmem:[#allocation3 + $0x10] sm:$0xff] %v7098_v40   ;;  %1042 = vst [vmem:[#allocation2 + $0x58] sm:$0xff] %v1006_v41  ;;  %v971_v50 = vadd.f32 %v9177_v24, %v928_v42  ;;  %v926_v51 = vmul.f32 %v9172_v22, %v802_v45  ;;  %v8348_v53 = vld [vmem:[#allocation3] sm:$0xff]   ;;  %vm9372_vm0 = vcmp.eq.s32.totalorder %v1406_v31, 15 }
 0x187   : > { %v2092_v54 = vld [vmem:[#allocation2 + $0x21] sm:$0xff]  ;;  %v1004_v55 = vmax.f32 %v968_v44, 0.0  ;;  %v7703_v57 = vpop.f32.mrf.mxu0  ;;  %7741 = vmatprep.mubr.bf16.mxu0 %v8348_v53  ;;  %vm9410_vm3 = vcmp.eq.s32.totalorder %v1420_v60, 15 }
 0x188   : > { %v1733_v62 = vld [vmem:[#allocation2 + $0x27] sm:$0xff]  ;;  %v2236_v63 = vsel %vm9211_vm4, 0.0, %v2092_v54  ;;  %v1007_v1 = vmax.f32 %v971_v50, 0.0  ;;  %v969_v2 = vadd.f32 %v9177_v24, %v926_v51  ;;  %v931_v6 = vmul.f32 %v7703_v57, %v9172_v22  ;;  %7742 = vmatmul.mubr.bf16.vlgmr.msra.gmra.mxu0 %v8349_v59 }
 0x189   : > { %v7273_v4 = vpack.c.bf16 %v2236_v63, %v2091_v61  ;;  %1040 = vst [vmem:[#allocation2 + $0x48] sm:$0xff] %v1004_v55  ;;  %v815_v9 = vpop.f32.mrf.mxu0  ;;  %v1736_v14 = vld [vmem:[#allocation2 + $0x3f] sm:$0xff]  ;;  %7822 = vmatpush3.bf16.msra.mxu0 %v9159_v7  ;;  %v1877_v23 = vsel %vm9218_vm5, 0.0, %v1733_v62  ;;  %v9296_v7 = vadd.s32 144, %v9165_v10  ;;  %v1413_v50 = vand.u32 15, %v9286_v20 }
 0x18a   : > { %1043 = vst [vmem:[#allocation2 + $0x60] sm:$0xff] %v1007_v1  ;;  %v7113_v15 = vpack.c.bf16 %v1007_v1, %v1006_v41  ;;  %v1005_v16 = vmax.f32 %v969_v2, 0.0  ;;  %v929_v19 = vmul.f32 %v9172_v22, %v815_v9  ;;  %v974_v29 = vadd.f32 %v9177_v24, %v931_v6  ;;  %7823 = vmatprep.subr.bf16.mxu0 %v9252_v49 }
 0x18b   : > { %7390 = vst [vmem:[#allocation5 + $0x8] sm:$0xff] %v7273_v4   ;;  %v7704_v30 = vpop.f32.mrf.mxu0  ;;  %v8353_v51 = vld [vmem:[#allocation3 + $0x18] sm:$0xff]   ;;  %v1427_v63 = vand.u32 15, %v9296_v7  ;;  %v9335_v1 = vadd.s32 152, %v9165_v10  ;;  %v9338_v2 = vadd.s32 160, %v9165_v10  ;;  %v2095_v4 = vld [vmem:[#allocation2 + $0x39] sm:$0xff] }
 0x18c   : > { %v1734_v25 = vld [vmem:[#allocation2 + $0x2f] sm:$0xff]  ;;  %v1735_v27 = vld [vmem:[#allocation2 + $0x37] sm:$0xff]  ;;  %7360 = vst [vmem:[#allocation3 + $0x28] sm:$0xff] %v7113_v15   ;;  %1041 = vst [vmem:[#allocation2 + $0x50] sm:$0xff] %v1005_v16  ;;  %v7108_v17 = vpack.c.bf16 %v1005_v16, %v1004_v55  ;;  %v9301_v35 = vadd.f32 %v9177_v24, %v929_v19  ;;  %v932_v36 = vmul.f32 %v7704_v30, %v9172_v22  ;;  %v1010_v38 = vmax.f32 %v974_v29, 0.0 }
 0x18d   : > { %v2093_v28 = vld [vmem:[#allocation2 + $0x29] sm:$0xff]  ;;  %v1879_v32 = vsel %vm9226_vm6, 0.0, %v1735_v27  ;;  %v2094_v33 = vld [vmem:[#allocation2 + $0x31] sm:$0xff]  ;;  %v818_v40 = vpop.f32.mrf.mxu0  ;;  %v7188_v26 = vpack.c.bf16 %v1734_v25, %v1877_v23  ;;  %7824 = vmatpush3.bf16.msra.mxu0 %v9252_v49  ;;  %v8352_v45 = vld [vmem:[#allocation3 + $0x10] sm:$0xff]   ;;  %vm9391_vm1 = vcmp.eq.s32.totalorder %v1413_v50, 0  ;;  %vm9400_vm2 = vcmp.eq.s32.totalorder %v1427_v63, 0 }
 0x18e   : > { %v2238_v37 = vsel %vm9232_vm7, 0.0, %v2094_v33  ;;  %v7193_v41 = vpack.c.bf16 %v1736_v14, %v1879_v32  ;;  %7359 = vst [vmem:[#allocation3 + $0x20] sm:$0xff] %v7108_v17   ;;  %v1008_v42 = vmax.f32 %v9301_v35, 0.0  ;;  %v975_v43 = vadd.f32 %v9177_v24, %v932_v36  ;;  %1046 = vst [vmem:[#allocation2 + $0x78] sm:$0xff] %v1010_v38  ;;  %7825 = vmatprep.subr.bf16.mxu0 %v9288_v21 }
 0x18f   : > { %v930_v44 = vmul.f32 %v9172_v22, %v818_v40  ;;  %v7278_v46 = vpack.c.bf16 %v2238_v37, %v2093_v28  ;;  %v7707_v48 = vpop.f32.mrf.mxu0  ;;  %7374 = vst [vmem:[#allocation4 + $0x10] sm:$0xff] %v7188_v26   ;;  %7745 = vmatprep.mubr.bf16.mxu0 %v8352_v45  ;;  %v9377_v37 = vld [vmem:[#allocation14 + $0x90] sm:$0xff]   ;;  %v1441_v45 = vand.u32 15, %v9338_v2  ;;  %v1455_v20 = vand.u32 15, %v9360_v11 }
 0x190   : > { %7375 = vst [vmem:[#allocation4 + $0x18] sm:$0xff] %v7193_v41   ;;  %v1737_v52 = vld [vmem:[#allocation2 + $0x47] sm:$0xff]  ;;  %1044 = vst [vmem:[#allocation2 + $0x68] sm:$0xff] %v1008_v42  ;;  %v1011_v49 = vmax.f32 %v975_v43, 0.0  ;;  %v935_v57 = vmul.f32 %v7707_v48, %v9172_v22  ;;  %7746 = vmatmul.mubr.bf16.gmra.mxu0 %v8353_v51  ;;  %v9406_v50 = vadd.s32 184, %v9165_v10 }
 0x191   : > { %v2096_v53 = vld [vmem:[#allocation2 + $0x41] sm:$0xff]  ;;  %v973_v55 = vadd.f32 %v9177_v24, %v930_v44  ;;  %7391 = vst [vmem:[#allocation5 + $0x10] sm:$0xff] %v7278_v46   ;;  %v831_v62 = vpop.f32.mrf.mxu0  ;;  %7826 = vmatpush3.bf16.msra.mxu0 %v9288_v21  ;;  %v1881_v15 = vsel %vm9266_vm9, 0.0, %v1737_v52  ;;  %v1434_v44 = vand.u32 15, %v9335_v1  ;;  %v2099_v48 = vld [vmem:[#allocation2 + $0x59] sm:$0xff]  ;;  %vm9457_vm5 = vcmp.eq.s32.totalorder %v1441_v45, 0 }
 0x192   : > { %v2240_v59 = vsel %vm9256_vm8, 0.0, %v2096_v53  ;;  %1047 = vst [vmem:[#allocation2 + $0x80] sm:$0xff] %v1011_v49  ;;  %v7123_v56 = vpack.c.bf16 %v1011_v49, %v1010_v38  ;;  %v9349_v13 = vadd.f32 %v9177_v24, %v935_v57  ;;  %v933_v14 = vmul.f32 %v9172_v22, %v831_v62  ;;  %7827 = vmatprep.subr.bf16.mxu0 %v9314_v34  ;;  %v1740_v28 = vld [vmem:[#allocation2 + $0x5f] sm:$0xff] }
 0x193   : > { %v1009_v6 = vmax.f32 %v973_v55, 0.0  ;;  %v1738_v16 = vld [vmem:[#allocation2 + $0x4f] sm:$0xff]  ;;  %v1739_v19 = vld [vmem:[#allocation2 + $0x57] sm:$0xff]  ;;  %v7708_v25 = vpop.f32.mrf.mxu0  ;;  %v7283_v27 = vpack.c.bf16 %v2240_v59, %v2095_v4  ;;  %v1448_v55 = vand.u32 15, %v9357_v47  ;;  %vm9439_vm4 = vcmp.eq.s32.totalorder %v1434_v44, 15 }
 0x194   : > { %v2097_v23 = vld [vmem:[#allocation2 + $0x49] sm:$0xff]  ;;  %v1883_v21 = vsel %vm9272_vm10, 0.0, %v1739_v19  ;;  %v2098_v29 = vld [vmem:[#allocation2 + $0x51] sm:$0xff]  ;;  %7362 = vst [vmem:[#allocation3 + $0x38] sm:$0xff] %v7123_v56   ;;  %v1014_v30 = vmax.f32 %v9349_v13, 0.0  ;;  %v9366_v32 = vadd.f32 %v9177_v24, %v933_v14  ;;  %v936_v5 = vmul.f32 %v7708_v25, %v9172_v22 }
 0x195   : > { %1045 = vst [vmem:[#allocation2 + $0x70] sm:$0xff] %v1009_v6  ;;  %v7118_v0 = vpack.c.bf16 %v1009_v6, %v1008_v42  ;;  %v2242_v33 = vsel %vm9279_vm11, 0.0, %v2098_v29  ;;  %v834_v35 = vpop.f32.mrf.mxu0  ;;  %v8356_v36 = vld [vmem:[#allocation3 + $0x20] sm:$0xff]   ;;  %7392 = vst [vmem:[#allocation5 + $0x18] sm:$0xff] %v7283_v27   ;;  %v7198_v38 = vpack.c.bf16 %v1738_v16, %v1881_v15  ;;  %v7203_v40 = vpack.c.bf16 %v1740_v28, %v1883_v21  ;;  %v8357_v46 = vld [vmem:[#allocation3 + $0x28] sm:$0xff]  }
 0x196   : > { %1050 = vst [vmem:[#allocation2 + $0x98] sm:$0xff] %v1014_v30  ;;  %v1012_v18 = vmax.f32 %v9366_v32, 0.0  ;;  %v934_v26 = vmul.f32 %v9172_v22, %v834_v35  ;;  %7828 = vmatpush3.bf16.msra.mxu0 %v9314_v34  ;;  %v7288_v31 = vpack.c.bf16 %v2242_v33, %v2097_v23  ;;  %v979_v42 = vadd.f32 %v9177_v24, %v936_v5  ;;  %v9408_v59 = vld [vmem:[#allocation14 + $0x88] sm:$0xff]   ;;  %v9444_v5 = vld [vmem:[#allocation14 + $0x80] sm:$0xff]   ;;  %v8368_v39 = vld [vmem:[#allocation5 + $0x8] sm:$0xff]  }
 0x197   : > { %7361 = vst [vmem:[#allocation3 + $0x30] sm:$0xff] %v7118_v0   ;;  %v2100_v41 = vld [vmem:[#allocation2 + $0x61] sm:$0xff]  ;;  %v7711_v43 = vpop.f32.mrf.mxu0  ;;  %7749 = vmatprep.mubr.bf16.mxu0 %v8356_v36  ;;  %7829 = vmatprep.subr.bf16.mxu0 %v9340_v3  ;;  %7376 = vst [vmem:[#allocation4 + $0x20] sm:$0xff] %v7198_v38   ;;  %v9420_v56 = vadd.s32 192, %v9165_v10  ;;  %v9426_v23 = vadd.s32 200, %v9165_v10  ;;  %v9429_v25 = vadd.s32 208, %v9165_v10 }
 0x198   : > { %7377 = vst [vmem:[#allocation4 + $0x28] sm:$0xff] %v7203_v40   ;;  %v1741_v51 = vld [vmem:[#allocation2 + $0x67] sm:$0xff]  ;;  %v2244_v34 = vsel %vm9306_vm12, 0.0, %v2100_v41  ;;  %1048 = vst [vmem:[#allocation2 + $0x88] sm:$0xff] %v1012_v18  ;;  %v977_v53 = vadd.f32 %v9177_v24, %v934_v26  ;;  %v939_v49 = vmul.f32 %v7711_v43, %v9172_v22  ;;  %v1015_v57 = vmax.f32 %v979_v42, 0.0  ;;  %7750 = vmatmul.mubr.bf16.gmra.mxu0 %v8357_v46  ;;  %v9495_v4 = vld [vmem:[#allocation14 + $0x130] sm:$0xff]  }
 0x199   : > { %7393 = vst [vmem:[#allocation5 + $0x20] sm:$0xff] %v7288_v31   ;;  %v847_v58 = vpop.f32.mrf.mxu0  ;;  %v7293_v62 = vpack.c.bf16 %v2244_v34, %v2099_v48  ;;  %v1885_v6 = vsel %vm9318_vm13, 0.0, %v1741_v51  ;;  %v2103_v38 = vld [vmem:[#allocation2 + $0x79] sm:$0xff]  ;;  %v1462_v42 = vand.u32 15, %v9406_v50  ;;  %v1469_v43 = vand.u32 15, %v9420_v56 }
 0x19a   : > { %v1013_v1 = vmax.f32 %v977_v53, 0.0  ;;  %v9415_v7 = vadd.f32 %v9177_v24, %v939_v49  ;;  %v937_v63 = vmul.f32 %v9172_v22, %v847_v58  ;;  %7830 = vmatpush3.bf16.msra.mxu0 %v9340_v3  ;;  %1051 = vst [vmem:[#allocation2 + $0xa0] sm:$0xff] %v1015_v57  ;;  %v7133_v16 = vpack.c.bf16 %v1015_v57, %v1014_v30  ;;  %v1744_v3 = vld [vmem:[#allocation2 + $0x7f] sm:$0xff] }
 0x19b   : > { %v7712_v19 = vpop.f32.mrf.mxu0  ;;  %7831 = vmatprep.subr.bf16.mxu0 %v9377_v37  ;;  %7394 = vst [vmem:[#allocation5 + $0x28] sm:$0xff] %v7293_v62   ;;  %v8361_v44 = vld [vmem:[#allocation3 + $0x38] sm:$0xff]   ;;  %v1476_v57 = vand.u32 15, %v9426_v23  ;;  %v1483_v45 = vand.u32 15, %v9429_v25  ;;  %vm9499_vm6 = vcmp.eq.s32.totalorder %v1455_v20, 0  ;;  %vm9505_vm7 = vcmp.eq.s32.totalorder %v1448_v55, 15 }
 0x19c   : > { %v1742_v13 = vld [vmem:[#allocation2 + $0x6f] sm:$0xff]  ;;  %v1743_v14 = vld [vmem:[#allocation2 + $0x77] sm:$0xff]  ;;  %1049 = vst [vmem:[#allocation2 + $0x90] sm:$0xff] %v1013_v1  ;;  %v7128_v28 = vpack.c.bf16 %v1013_v1, %v1012_v18  ;;  %v1018_v21 = vmax.f32 %v9415_v7, 0.0  ;;  %v9435_v29 = vadd.f32 %v9177_v24, %v937_v63  ;;  %7364 = vst [vmem:[#allocation3 + $0x48] sm:$0xff] %v7133_v16   ;;  %v940_v32 = vmul.f32 %v7712_v19, %v9172_v22 }
 0x19d   : > { %v2101_v15 = vld [vmem:[#allocation2 + $0x69] sm:$0xff]  ;;  %v1887_v54 = vsel %vm9329_vm14, 0.0, %v1743_v14  ;;  %v2102_v27 = vld [vmem:[#allocation2 + $0x71] sm:$0xff]  ;;  %v850_v61 = vpop.f32.mrf.mxu0  ;;  %v7208_v35 = vpack.c.bf16 %v1742_v13, %v1885_v6  ;;  %v9476_v16 = vadd.s32 216, %v9165_v10  ;;  %vm9515_vm8 = vcmp.eq.s32.totalorder %v1462_v42, 15 }
 0x19e   : > { %v2246_v0 = vsel %vm9344_vm15, 0.0, %v2102_v27  ;;  %v8360_v33 = vld [vmem:[#allocation3 + $0x30] sm:$0xff]   ;;  %v7213_v36 = vpack.c.bf16 %v1744_v3, %v1887_v54  ;;  %7363 = vst [vmem:[#allocation3 + $0x40] sm:$0xff] %v7128_v28   ;;  %1054 = vst [vmem:[#allocation2 + $0xb8] sm:$0xff] %v1018_v21  ;;  %v1016_v40 = vmax.f32 %v9435_v29, 0.0  ;;  %v938_v9 = vmul.f32 %v9172_v22, %v850_v61  ;;  %7832 = vmatpush3.bf16.msra.mxu0 %v9377_v37  ;;  %v8363_v18 = vld [vmem:[#allocation5] sm:$0xff]  }
 0x19f   : > { %v7298_v26 = vpack.c.bf16 %v2246_v0, %v2101_v15  ;;  %v2104_v60 = vld [vmem:[#allocation2 + $0x81] sm:$0xff]  ;;  %v983_v31 = vadd.f32 %v9177_v24, %v940_v32  ;;  %v7715_v41 = vpop.f32.mrf.mxu0  ;;  %7753 = vmatprep.mubr.bf16.mxu0 %v8360_v33  ;;  %7833 = vmatprep.subr.bf16.mxu0 %v9408_v59  ;;  %7378 = vst [vmem:[#allocation4 + $0x30] sm:$0xff] %v7208_v35   ;;  %v9470_v1 = vld [vmem:[#allocation14 + $0x138] sm:$0xff]   ;;  %v9487_v28 = vld [vmem:[#allocation14 + $0x30] sm:$0xff]   ;;  %vm9523_vm9 = vcmp.eq.s32.totalorder %v1469_v43, 0  ;;  %vm9527_vm10 = vcmp.eq.s32.totalorder %v1483_v45, 0 }
 0x1a0   : > { %7379 = vst [vmem:[#allocation4 + $0x38] sm:$0xff] %v7213_v36   ;;  %v1745_v46 = vld [vmem:[#allocation2 + $0x87] sm:$0xff]  ;;  %v2248_v37 = vsel %vm9372_vm0, 0.0, %v2104_v60  ;;  %1052 = vst [vmem:[#allocation2 + $0xa8] sm:$0xff] %v1016_v40  ;;  %v981_v51 = vadd.f32 %v9177_v24, %v938_v9  ;;  %v943_v34 = vmul.f32 %v7715_v41, %v9172_v22  ;;  %7754 = vmatmul.mubr.bf16.gmra.mxu0 %v8361_v44  ;;  %v1490_v42 = vand.u32 15, %v9476_v16 }
 0x1a1   : > { %7395 = vst [vmem:[#allocation5 + $0x30] sm:$0xff] %v7298_v26   ;;  %v1019_v53 = vmax.f32 %v983_v31, 0.0  ;;  %v863_v49 = vpop.f32.mrf.mxu0  ;;  %v7303_v58 = vpack.c.bf16 %v2248_v37, %v2103_v38  ;;  %7837 = vmatprep.mubr.bf16.mxu0 %v8363_v18  ;;  %v1889_v7 = vsel %vm9391_vm1, 0.0, %v1745_v46  ;;  %v1748_v19 = vld [vmem:[#allocation2 + $0x9f] sm:$0xff]  ;;  %vm9535_vm11 = vcmp.eq.s32.totalorder %v1476_v57, 15 }
 0x1a2   : > { %v1017_v17 = vmax.f32 %v981_v51, 0.0  ;;  %v9465_v62 = vadd.f32 %v9177_v24, %v943_v34  ;;  %v941_v2 = vmul.f32 %v9172_v22, %v863_v49  ;;  %7834 = vmatpush3.bf16.msra.mxu0 %v9408_v59  ;;  %v9479_v59 = vadd.s32 224, %v9165_v10  ;;  %v8369_v31 = vld [vmem:[#allocation5 + $0x10] sm:$0xff]  }
 0x1a3   : > { %v1746_v63 = vld [vmem:[#allocation2 + $0x8f] sm:$0xff]  ;;  %v1747_v6 = vld [vmem:[#allocation2 + $0x97] sm:$0xff]  ;;  %1055 = vst [vmem:[#allocation2 + $0xc0] sm:$0xff] %v1019_v53  ;;  %v7143_v14 = vpack.c.bf16 %v1019_v53, %v1018_v21  ;;  %v7716_v15 = vpop.f32.mrf.mxu0  ;;  %7835 = vmatprep.subr.bf16.mxu0 %v9444_v5  ;;  %7396 = vst [vmem:[#allocation5 + $0x38] sm:$0xff] %v7303_v58   ;;  %vm9585_vm13 = vcmp.eq.s32.totalorder %v1490_v42, 15 }
 0x1a4   : > { %v2105_v13 = vld [vmem:[#allocation2 + $0x89] sm:$0xff]  ;;  %v1891_v52 = vsel %vm9400_vm2, 0.0, %v1747_v6  ;;  %v2106_v25 = vld [vmem:[#allocation2 + $0x91] sm:$0xff]  ;;  %1053 = vst [vmem:[#allocation2 + $0xb0] sm:$0xff] %v1017_v17  ;;  %v7138_v3 = vpack.c.bf16 %v1017_v17, %v1016_v40  ;;  %v1022_v54 = vmax.f32 %v9465_v62, 0.0  ;;  %v9485_v27 = vadd.f32 %v9177_v24, %v941_v2  ;;  %v2107_v11 = vld [vmem:[#allocation2 + $0x99] sm:$0xff] }
 0x1a5   : > { %v2250_v21 = vsel %vm9410_vm3, 0.0, %v2106_v25  ;;  %7366 = vst [vmem:[#allocation3 + $0x58] sm:$0xff] %v7143_v14   ;;  %v944_v29 = vmul.f32 %v7716_v15, %v9172_v22  ;;  %v866_v0 = vpop.f32.mrf.mxu0  ;;  %v8365_v32 = vld [vmem:[#allocation3 + $0x40] sm:$0xff]   ;;  %v7218_v61 = vpack.c.bf16 %v1746_v63, %v1889_v7  ;;  %v7223_v33 = vpack.c.bf16 %v1748_v19, %v1891_v52  ;;  %v8367_v38 = vld [vmem:[#allocation3 + $0x48] sm:$0xff]   ;;  %v9545_v58 = vld [vmem:[#allocation14 + $0x128] sm:$0xff]  }
 0x1a6   : > { %7365 = vst [vmem:[#allocation3 + $0x50] sm:$0xff] %v7138_v3   ;;  %1058 = vst [vmem:[#allocation2 + $0xd8] sm:$0xff] %v1022_v54  ;;  %v1020_v35 = vmax.f32 %v9485_v27, 0.0  ;;  %v942_v36 = vmul.f32 %v9172_v22, %v866_v0  ;;  %7836 = vmatpush3.bf16.msra.mxu0 %v9444_v5  ;;  %v7308_v40 = vpack.c.bf16 %v2250_v21, %v2105_v13  ;;  %7757 = vmatprep.mubr.bf16.mxu1 %v8365_v32  ;;  %v9571_v32 = vld [vmem:[#allocation14 + $0x120] sm:$0xff]  }
 0x1a7   : > { %v2108_v9 = vld [vmem:[#allocation2 + $0xa1] sm:$0xff]  ;;  %v987_v60 = vadd.f32 %v9177_v24, %v944_v29  ;;  %v7719_v5 = vpop.f32.mrf.mxu0  ;;  %7917 = vmatprep.subr.bf16.mxu0 %v9470_v1  ;;  %7380 = vst [vmem:[#allocation4 + $0x40] sm:$0xff] %v7218_v61   ;;  %7381 = vst [vmem:[#allocation4 + $0x48] sm:$0xff] %v7223_v33   ;;  %7758 = vmatmul.mubr.bf16.vlgmr.msra.gmra.mxu1 %v8367_v38  ;;  %v1497_v49 = vand.u32 15, %v9479_v59  ;;  %v9550_v7 = vadd.s32 232, %v9165_v10  ;;  %v9553_v63 = vadd.s32 240, %v9165_v10 }
 0x1a8   : > { %v1749_v20 = vld [vmem:[#allocation2 + $0xa7] sm:$0xff]  ;;  %v2252_v41 = vsel %vm9439_vm4, 0.0, %v2108_v9  ;;  %1056 = vst [vmem:[#allocation2 + $0xc8] sm:$0xff] %v1020_v35  ;;  %v985_v55 = vadd.f32 %v9177_v24, %v942_v36  ;;  %v947_v44 = vmul.f32 %v7719_v5, %v9172_v22  ;;  %7397 = vst [vmem:[#allocation5 + $0x40] sm:$0xff] %v7308_v40   ;;  %7774 = vmatpush3.bf16.msra.mxu1 %v9162_v8  ;;  %v9591_v5 = vld [vmem:[#allocation14 + $0x18] sm:$0xff]  }
 0x1a9   : > { %v1023_v30 = vmax.f32 %v987_v60, 0.0  ;;  %v879_v50 = vpop.f32.mrf.mxu0  ;;  %7838 = vmatmul.mubr.bf16.vlgmr.msra.gmra.mxu0 %v8368_v39  ;;  %v7313_v51 = vpack.c.bf16 %v2252_v41, %v2107_v11  ;;  %7775 = vmatprep.subr.bf16.mxu1 %v9487_v28  ;;  %v8372_v8 = vld [vmem:[#allocation14 + $0x28] sm:$0xff]   ;;  %v1893_v23 = vsel %vm9457_vm5, 0.0, %v1749_v20  ;;  %v9562_v59 = vld [vmem:[#allocation14 + $0x20] sm:$0xff]   ;;  %v1511_v33 = vand.u32 15, %v9553_v63  ;;  %v9619_v63 = vld [vmem:[#allocation14 + $0x10] sm:$0xff]  }
 0x1aa   : > { %v1021_v34 = vmax.f32 %v985_v55, 0.0  ;;  %v9540_v43 = vadd.f32 %v9177_v24, %v947_v44  ;;  %v945_v53 = vmul.f32 %v9172_v22, %v879_v50  ;;  %7841 = vmatprep.mubr.bf16.mxu0 %v8369_v31  ;;  %7918 = vmatpush3.bf16.msra.mxu0 %v9470_v1  ;;  %v1752_v6 = vld [vmem:[#allocation2 + $0xbf] sm:$0xff]  ;;  %v8374_v36 = vld [vmem:[#allocation5 + $0x18] sm:$0xff]   ;;  %vm9581_vm12 = vcmp.eq.s32.totalorder %v1497_v49, 0 }
 0x1ab   : > { %v1750_v57 = vld [vmem:[#allocation2 + $0xaf] sm:$0xff]  ;;  %v1751_v17 = vld [vmem:[#allocation2 + $0xb7] sm:$0xff]  ;;  %1059 = vst [vmem:[#allocation2 + $0xe0] sm:$0xff] %v1023_v30  ;;  %v7153_v2 = vpack.c.bf16 %v1023_v30, %v1022_v54  ;;  %v7720_v45 = vpop.f32.mrf.mxu0  ;;  %7398 = vst [vmem:[#allocation5 + $0x48] sm:$0xff] %v7313_v51   ;;  %7919 = vmatprep.subr.bf16.mxu0 %v9495_v4  ;;  %v1504_v55 = vand.u32 15, %v9550_v7  ;;  %v9599_v44 = vadd.s32 256, %v9165_v10 }
 0x1ac   : > { %v2109_v62 = vld [vmem:[#allocation2 + $0xa9] sm:$0xff]  ;;  %v1895_v48 = vsel %vm9499_vm6, 0.0, %v1751_v17  ;;  %v2110_v13 = vld [vmem:[#allocation2 + $0xb1] sm:$0xff]  ;;  %1057 = vst [vmem:[#allocation2 + $0xd0] sm:$0xff] %v1021_v34  ;;  %v7148_v14 = vpack.c.bf16 %v1021_v34, %v1020_v35  ;;  %v1026_v15 = vmax.f32 %v9540_v43, 0.0  ;;  %v9560_v16 = vadd.f32 %v9177_v24, %v945_v53  ;;  %7776 = vmatpush3.bf16.msra.mxu1 %v9487_v28  ;;  %v2111_v38 = vld [vmem:[#allocation2 + $0xb9] sm:$0xff] }
 0x1ad   : > { %v2254_v19 = vsel %vm9505_vm7, 0.0, %v2110_v13  ;;  %7368 = vst [vmem:[#allocation3 + $0x68] sm:$0xff] %v7153_v2   ;;  %v948_v1 = vmul.f32 %v7720_v45, %v9172_v22  ;;  %v882_v52 = vpop.f32.mrf.mxu0  ;;  %v8371_v25 = vld [vmem:[#allocation3 + $0x50] sm:$0xff]   ;;  %v7228_v3 = vpack.c.bf16 %v1750_v57, %v1893_v23  ;;  %v7233_v54 = vpack.c.bf16 %v1752_v6, %v1895_v48  ;;  %7777 = vmatprep.subr.bf16.mxu1 %v8372_v8  ;;  %v8373_v29 = vld [vmem:[#allocation3 + $0x58] sm:$0xff]   ;;  %v9602_v30 = vld [vmem:[#allocation14 + $0x118] sm:$0xff]  }
 0x1ae   : > { %7367 = vst [vmem:[#allocation3 + $0x60] sm:$0xff] %v7148_v14   ;;  %1062 = vst [vmem:[#allocation2 + $0xf8] sm:$0xff] %v1026_v15  ;;  %v1024_v27 = vmax.f32 %v9560_v16, 0.0  ;;  %v946_v21 = vmul.f32 %v9172_v22, %v882_v52  ;;  %v7318_v0 = vpack.c.bf16 %v2254_v19, %v2109_v62  ;;  %7761 = vmatprep.mubr.bf16.mxu1 %v8371_v25  ;;  %v9576_v35 = vadd.s32 248, %v9165_v10  ;;  %v8565_v53 = vld [vmem:[%s10647_s5] ss:$0 sm:$0xff] }
 0x1af   : > { %v2112_v39 = vld [vmem:[#allocation2 + $0xc1] sm:$0xff]  ;;  %v991_v61 = vadd.f32 %v9177_v24, %v948_v1  ;;  %v7723_v28 = vpop.f32.mrf.mxu0  ;;  %7920 = vmatpush3.bf16.msra.mxu0 %v9495_v4  ;;  %7382 = vst [vmem:[#allocation4 + $0x50] sm:$0xff] %v7228_v3   ;;  %7383 = vst [vmem:[#allocation4 + $0x58] sm:$0xff] %v7233_v54   ;;  %7762 = vmatmul.mubr.bf16.gmra.mxu1 %v8373_v29  ;;  %v8375_v4 = vld [vmem:[#allocation5 + $0x20] sm:$0xff]   ;;  %vm9604_vm14 = vcmp.eq.s32.totalorder %v1511_v33, 0  ;;  %v9630_v54 = vadd.s32 272, %v9165_v10 }
 0x1b0   : > { %v2256_v40 = vsel %vm9515_vm8, 0.0, %v2112_v39  ;;  %1060 = vst [vmem:[#allocation2 + $0xe8] sm:$0xff] %v1024_v27  ;;  %v989_v26 = vadd.f32 %v9177_v24, %v946_v21  ;;  %v951_v60 = vmul.f32 %v7723_v28, %v9172_v22  ;;  %7399 = vst [vmem:[#allocation5 + $0x50] sm:$0xff] %v7318_v0   ;;  %7921 = vmatprep.subr.bf16.mxu0 %v9545_v58  ;;  %v1753_v31 = vld [vmem:[#allocation2 + $0xc7] sm:$0xff]  ;;  %7778 = vmatpush3.bf16.msra.mxu1 %v8372_v8  ;;  %v8564_v22 = vld [vmem:[%s10646_s4] ss:$0 sm:$0xff] }
 0x1b1   : > { %v1027_v11 = vmax.f32 %v991_v61, 0.0  ;;  %v895_v20 = vpop.f32.mrf.mxu0  ;;  %7842 = vmatmul.mubr.bf16.gmra.mxu0 %v8374_v36  ;;  %v7323_v41 = vpack.c.bf16 %v2256_v40, %v2111_v38  ;;  %7779 = vmatprep.subr.bf16.mxu1 %v9562_v59  ;;  %v1518_v8 = vand.u32 15, %v9576_v35  ;;  %v1897_v57 = vsel %vm9523_vm9, 0.0, %v1753_v31  ;;  %v8380_v13 = vld [vmem:[#allocation5 + $0x28] sm:$0xff]   ;;  %v9626_v52 = vld [vmem:[#allocation14 + $0x110] sm:$0xff]   ;;  %v8415_v38 = vld [vmem:[#allocation14 + $0x108] sm:$0xff]  }
 0x1b2   : > { %v1025_v47 = vmax.f32 %v989_v26, 0.0  ;;  %v949_v24 = vmul.f32 %v8564_v22, %v895_v20  ;;  %7845 = vmatprep.mubr.bf16.mxu0 %v8375_v4  ;;  %v9611_v49 = vadd.f32 %v8565_v53, %v951_v60  ;;  %v1756_v17 = vld [vmem:[#allocation2 + $0xdf] sm:$0xff]  ;;  %vm9635_vm15 = vcmp.eq.s32.totalorder %v1504_v55, 15  ;;  %v8428_v0 = vld [vmem:[#allocation14 + $0xc8] sm:$0xff]  }
 0x1b3   : > { %v1754_v50 = vld [vmem:[#allocation2 + $0xcf] sm:$0xff]  ;;  %v1755_v42 = vld [vmem:[#allocation2 + $0xd7] sm:$0xff]  ;;  %1063 = vst [vmem:[#allocation2 + $0x100] sm:$0xff] %v1027_v11  ;;  %v7163_v34 = vpack.c.bf16 %v1027_v11, %v1026_v15  ;;  %v7724_v23 = vpop.f32.mrf.mxu0  ;;  %7400 = vst [vmem:[#allocation5 + $0x58] sm:$0xff] %v7323_v41   ;;  %7922 = vmatpush3.bf16.msra.mxu0 %v9545_v58  ;;  %v1525_v35 = vand.u32 15, %v9599_v44  ;;  %vm9645_vm0 = vcmp.eq.s32.totalorder %v1518_v8, 15 }
 0x1b4   : > { %v2113_v51 = vld [vmem:[#allocation2 + $0xc9] sm:$0xff]  ;;  %v1899_v62 = vsel %vm9527_vm10, 0.0, %v1755_v42  ;;  %v2114_v2 = vld [vmem:[#allocation2 + $0xd1] sm:$0xff]  ;;  %1061 = vst [vmem:[#allocation2 + $0xf0] sm:$0xff] %v1025_v47  ;;  %v7158_v45 = vpack.c.bf16 %v1025_v47, %v1024_v27  ;;  %v992_v7 = vadd.f32 %v8565_v53, %v949_v24  ;;  %7923 = vmatprep.subr.bf16.mxu0 %v9571_v32  ;;  %v952_v58 = vmul.f32 %v8564_v22, %v7724_v23  ;;  %v2115_v27 = vld [vmem:[#allocation2 + $0xd9] sm:$0xff] }
 0x1b5   : > { %v2258_v6 = vsel %vm9535_vm11, 0.0, %v2114_v2  ;;  %7370 = vst [vmem:[#allocation3 + $0x78] sm:$0xff] %v7163_v34   ;;  %v898_v48 = vpop.f32.mrf.mxu0  ;;  %7780 = vmatpush3.bf16.msra.mxu1 %v9562_v59  ;;  %v8377_v46 = vld [vmem:[#allocation3 + $0x60] sm:$0xff]   ;;  %v7238_v37 = vpack.c.bf16 %v1754_v50, %v1897_v57  ;;  %v7243_v14 = vpack.c.bf16 %v1756_v17, %v1899_v62  ;;  %v8379_v19 = vld [vmem:[#allocation3 + $0x68] sm:$0xff]   ;;  %v1030_v25 = vmax.f32 %v9611_v49, 0.0  ;;  %v8381_v59 = vld [vmem:[#allocation5 + $0x30] sm:$0xff]  }
 0x1b6   : > { %7369 = vst [vmem:[#allocation3 + $0x70] sm:$0xff] %v7158_v45   ;;  %v1028_v15 = vmax.f32 %v992_v7, 0.0  ;;  %v950_v16 = vmul.f32 %v8564_v22, %v898_v48  ;;  %7781 = vmatprep.subr.bf16.mxu1 %v9591_v5  ;;  %v7328_v1 = vpack.c.bf16 %v2258_v6, %v2113_v51  ;;  %v995_v3 = vadd.f32 %v8565_v53, %v952_v58  ;;  %v8388_v41 = vld [vmem:[#allocation14] sm:$0xff]   ;;  %v8386_v50 = vld [vmem:[#allocation5 + $0x38] sm:$0xff]   ;;  %v8390_v62 = vld [vmem:[#allocation14 + $0xf8] sm:$0xff]  }
 0x1b7   : > { %v2116_v56 = vld [vmem:[#allocation2 + $0xe1] sm:$0xff]  ;;  %7765 = vmatprep.mubr.bf16.mxu1 %v8377_v46  ;;  %7924 = vmatpush3.bf16.msra.mxu0 %v9571_v32  ;;  %7384 = vst [vmem:[#allocation4 + $0x60] sm:$0xff] %v7238_v37   ;;  %7385 = vst [vmem:[#allocation4 + $0x68] sm:$0xff] %v7243_v14   ;;  %v1539_v31 = vand.u32 15, %v9630_v54  ;;  %vm9659_vm1 = vcmp.eq.s32.totalorder %v1525_v35, 0  ;;  %v8397_v6 = vld [vmem:[#allocation14 + $0xf0] sm:$0xff]  }
 0x1b8   : > { %v1757_v21 = vld [vmem:[#allocation2 + $0xe7] sm:$0xff]  ;;  %v2260_v29 = vsel %vm9585_vm13, 0.0, %v2116_v56  ;;  %1064 = vst [vmem:[#allocation2 + $0x108] sm:$0xff] %v1028_v15  ;;  %v993_v39 = vadd.f32 %v8565_v53, %v950_v16  ;;  %7766 = vmatmul.mubr.bf16.gmra.mxu1 %v8379_v19  ;;  %7401 = vst [vmem:[#allocation5 + $0x60] sm:$0xff] %v7328_v1   ;;  %7925 = vmatprep.subr.bf16.mxu0 %v9602_v30  ;;  %v1031_v61 = vmax.f32 %v995_v3, 0.0  ;;  %v8387_v53 = vld [vmem:[#allocation5 + $0x40] sm:$0xff]  }
 0x1b9   : > { %7782 = vmatpush3.bf16.msra.mxu1 %v9591_v5  ;;  %7846 = vmatmul.mubr.bf16.gmra.mxu0 %v8380_v13  ;;  %v8384_v32 = vld [vmem:[#allocation14 + $0x8] sm:$0xff]   ;;  %v7333_v33 = vpack.c.bf16 %v2260_v29, %v2115_v27  ;;  %v1901_v40 = vsel %vm9581_vm12, 0.0, %v1757_v21  ;;  %v8389_v24 = vld [vmem:[#allocation4] sm:$0xff]   ;;  %vm9666_vm2 = vcmp.eq.s32.totalorder %v1539_v31, 0  ;;  %v9674_v58 = vld [vmem:[#allocation14 + $0x1b8] sm:$0xff]  }
 0x1ba   : > { %v1760_v28 = vld [vmem:[#allocation2 + $0xff] sm:$0xff]  ;;  %v1029_v36 = vmax.f32 %v993_v39, 0.0  ;;  %7849 = vmatprep.mubr.bf16.mxu0 %v8381_v59  ;;  %7783 = vmatprep.subr.bf16.mxu1 %v9619_v63  ;;  %v7173_v5 = vpack.c.bf16 %v1031_v61, %v1030_v25  ;;  %v8391_v13 = vld [vmem:[#allocation4 + $0x8] sm:$0xff]   ;;  %v8392_v37 = vld [vmem:[#allocation4 + $0x10] sm:$0xff]   ;;  %v1294_v39 = vadd.s32 264, %v9165_v10 }
 0x1bb   : > { %v1758_v18 = vld [vmem:[#allocation2 + $0xef] sm:$0xff]  ;;  %v1759_v26 = vld [vmem:[#allocation2 + $0xf7] sm:$0xff]  ;;  %7402 = vst [vmem:[#allocation5 + $0x68] sm:$0xff] %v7333_v33   ;;  %7926 = vmatpush3.bf16.msra.mxu0 %v9602_v30  ;;  %v8417_v51 = vld [vmem:[#allocation14 + $0x100] sm:$0xff]  }
 0x1bc   : > { %v2117_v60 = vld [vmem:[#allocation2 + $0xe9] sm:$0xff]  ;;  %v1903_v11 = vsel %vm9604_vm14, 0.0, %v1759_v26  ;;  %v2118_v20 = vld [vmem:[#allocation2 + $0xf1] sm:$0xff]  ;;  %1065 = vst [vmem:[#allocation2 + $0x110] sm:$0xff] %v1029_v36  ;;  %v7168_v9 = vpack.c.bf16 %v1029_v36, %v1028_v15  ;;  %7927 = vmatprep.subr.bf16.mxu0 %v9626_v52  ;;  %v7248_v47 = vpack.c.bf16 %v1758_v18, %v1901_v40  ;;  %7372 = vst [vmem:[#allocation3 + $0x88] sm:$0xff] %v7173_v5  }
 0x1bd   : > { %v2262_v55 = vsel %vm9635_vm15, 0.0, %v2118_v20  ;;  %7784 = vmatpush3.bf16.msra.mxu1 %v9619_v63  ;;  %v8383_v22 = vld [vmem:[#allocation3 + $0x70] sm:$0xff]   ;;  %v7253_v44 = vpack.c.bf16 %v1760_v28, %v1903_v11  ;;  %1258 = vst [vmem:[#allocation3 + $0x88] sm:$0xf] %v8833_v12  ;;  %1259 = vst [vmem:[#allocation3 + $0x8c] sm:$0xf] %v8833_v12 }
 0x1be   : > { %7371 = vst [vmem:[#allocation3 + $0x80] sm:$0xff] %v7168_v9   ;;  %7785 = vmatprep.subr.bf16.mxu1 %v8384_v32  ;;  %v8385_v30 = vld [vmem:[#allocation3 + $0x78] sm:$0xff]   ;;  %v7338_v42 = vpack.c.bf16 %v2262_v55, %v2117_v60  ;;  %7386 = vst [vmem:[#allocation4 + $0x70] sm:$0xff] %v7248_v47   ;;  %7769 = vmatprep.mubr.bf16.mxu1 %v8383_v22  ;;  %v2119_v49 = vld [vmem:[#allocation2 + $0xf9] sm:$0xff]  ;;  %v1532_v28 = vand.u32 15, %v1294_v39 }
 0x1bf   : > { %v2120_v43 = vld [vmem:[#allocation2 + $0x101] sm:$0xff]  ;;  %7928 = vmatpush3.bf16.msra.mxu0 %v9626_v52  ;;  %7387 = vst [vmem:[#allocation4 + $0x78] sm:$0xff] %v7253_v44   ;;  %v8393_v14 = vld [vmem:[#allocation5 + $0x48] sm:$0xff]   ;;  %v8402_v25 = vld [vmem:[#allocation5 + $0x60] sm:$0xff]  }
 0x1c0   : > { %v1761_v8 = vld [vmem:[#allocation2 + $0x107] sm:$0xff]  ;;  %v2264_v12 = vsel %vm9645_vm0, 0.0, %v2120_v43  ;;  %v1764_v23 = vld [vmem:[#allocation2 + $0x11f] sm:$0xff]  ;;  %7770 = vmatmul.mubr.bf16.gmra.mxu1 %v8385_v30  ;;  %7403 = vst [vmem:[#allocation5 + $0x70] sm:$0xff] %v7338_v42   ;;  %7929 = vmatprep.subr.bf16.mxu0 %v8415_v38  ;;  %v8423_v54 = vld [vmem:[#allocation14 + $0xd0] sm:$0xff]   ;;  %vm2158_vm3 = vcmp.eq.s32.totalorder %v1532_v28, 15 }
 0x1c1   : > { %7786 = vmatpush3.bf16.msra.mxu1 %v8384_v32  ;;  %7850 = vmatmul.mubr.bf16.gmra.mxu0 %v8386_v50  ;;  %v7343_v17 = vpack.c.bf16 %v2264_v12, %v2119_v49  ;;  %v1905_v2 = vsel %vm9659_vm1, 0.0, %v1761_v8  ;;  %v8395_v15 = vld [vmem:[#allocation5 + $0x50] sm:$0xff]   ;;  %v8404_v16 = vld [vmem:[#allocation14 + $0xe8] sm:$0xff]   ;;  %v8398_v1 = vld [vmem:[#allocation4 + $0x18] sm:$0xff]  }
 0x1c2   : > { %7853 = vmatprep.mubr.bf16.mxu0 %v8387_v53  ;;  %7787 = vmatprep.subr.bf16.mxu1 %v8388_v41  ;;  %v8411_v19 = vld [vmem:[#allocation14 + $0xe0] sm:$0xff]   ;;  %v8400_v56 = vld [vmem:[#allocation5 + $0x58] sm:$0xff]   ;;  %v8418_v3 = vld [vmem:[#allocation14 + $0xd8] sm:$0xff]  }
 0x1c3   : > { %v1762_v45 = vld [vmem:[#allocation2 + $0x10f] sm:$0xff]  ;;  %v1763_v7 = vld [vmem:[#allocation2 + $0x117] sm:$0xff]  ;;  %7789 = vmatprep.mubr.bf16.mxu1 %v8389_v24  ;;  %7404 = vst [vmem:[#allocation5 + $0x78] sm:$0xff] %v7343_v17   ;;  %7930 = vmatpush3.bf16.msra.mxu0 %v8415_v38  ;;  %v8399_v52 = vld [vmem:[#allocation4 + $0x20] sm:$0xff]  }
 0x1c4   : > { %v1907_v63 = vsel %vm9666_vm2, 0.0, %v1763_v7  ;;  %7931 = vmatprep.subr.bf16.mxu0 %v8417_v51  ;;  %v7258_v48 = vpack.c.bf16 %v1762_v45, %v1905_v2  ;;  %v8405_v59 = vld [vmem:[#allocation4 + $0x28] sm:$0xff]   ;;  %v8406_v27 = vld [vmem:[#allocation4 + $0x30] sm:$0xff]   ;;  %v8407_v21 = vld [vmem:[#allocation5 + $0x68] sm:$0xff]  }
 0x1c5   : > { %v7263_v46 = vpack.c.bf16 %v1764_v23, %v1907_v63  ;;  %7788 = vmatpush3.bf16.msra.mxu1 %v8388_v41  ;;  %v8433_v61 = vld [vmem:[#allocation14 + $0xc0] sm:$0xff]   ;;  %v8412_v32 = vld [vmem:[#allocation4 + $0x38] sm:$0xff]   ;;  %v8419_v10 = vld [vmem:[#allocation4 + $0x48] sm:$0xff]  }
 0x1c6   : > { %7869 = vmatprep.subr.bf16.mxu1 %v8390_v62  ;;  %7388 = vst [vmem:[#allocation4 + $0x80] sm:$0xff] %v7258_v48   ;;  %v8413_v33 = vld [vmem:[#allocation4 + $0x40] sm:$0xff]   ;;  %v8416_v36 = vld [vmem:[#allocation3 + $0x8] sm:$0xff]   ;;  %v2121_v26 = vld [vmem:[#allocation2 + $0x109] sm:$0xff] }
 0x1c7   : > { %7389 = vst [vmem:[#allocation4 + $0x88] sm:$0xff] %v7263_v46   ;;  %7932 = vmatpush3.bf16.msra.mxu0 %v8417_v51  ;;  %v8409_v29 = vld [vmem:[#allocation5 + $0x70] sm:$0xff]   ;;  %v9678_v38 = vld [vmem:[#allocation14 + $0x178] sm:$0xff]   ;;  %v8420_v4 = vld [vmem:[#allocation4 + $0x50] sm:$0xff]  }
 0x1c8   : > { %7790 = vmatmul.mubr.bf16.vlgmr.msra.gmra.mxu1 %v8391_v13  ;;  %8013 = vmatprep.subr.bf16.mxu0 %v9674_v58  ;;  %v2122_v40 = vld [vmem:[#allocation2 + $0x111] sm:$0xff]  ;;  %v8421_v18 = vld [vmem:[#allocation3 + $0x10] sm:$0xff]   ;;  %v8422_v31 = vld [vmem:[#allocation3 + $0x18] sm:$0xff]  }
 0x1c9   : > { %7870 = vmatpush3.bf16.msra.mxu1 %v8390_v62  ;;  %7793 = vmatprep.mubr.bf16.mxu1 %v8392_v37  ;;  %v2266_v60 = vsel %vm2158_vm3, 0.0, %v2122_v40  ;;  %v8444_v5 = vld [vmem:[#allocation14 + $0x1b0] sm:$0xff]   ;;  %v8449_v20 = vld [vmem:[#allocation14 + $0x1a8] sm:$0xff]   ;;  %v8424_v9 = vld [vmem:[#allocation4 + $0x58] sm:$0xff]  }
 0x1ca   : > { %7854 = vmatmul.mubr.bf16.gmra.mxu0 %v8393_v14  ;;  %7871 = vmatprep.subr.bf16.mxu1 %v8397_v6  ;;  %v8414_v35 = vld [vmem:[#allocation5 + $0x78] sm:$0xff]   ;;  %v7348_v11 = vpack.c.bf16 %v2266_v60, %v2121_v26  ;;  %v8425_v41 = vld [vmem:[#allocation4 + $0x60] sm:$0xff]   ;;  %v8426_v47 = vld [vmem:[#allocation3 + $0x20] sm:$0xff]  }
 0x1cb   : > { %7857 = vmatprep.mubr.bf16.mxu0 %v8395_v15  ;;  %v8451_v55 = vld [vmem:[#allocation14 + $0x1a0] sm:$0xff]   ;;  %v8427_v22 = vld [vmem:[#allocation3 + $0x28] sm:$0xff]   ;;  %v8429_v44 = vld [vmem:[#allocation4 + $0x68] sm:$0xff]  }
 0x1cc   : > { %7405 = vst [vmem:[#allocation5 + $0x80] sm:$0xff] %v7348_v11   ;;  %v8456_v24 = vld [vmem:[#allocation14 + $0x198] sm:$0xff]   ;;  %v8430_v30 = vld [vmem:[#allocation4 + $0x70] sm:$0xff]   ;;  %v8431_v50 = vld [vmem:[#allocation3 + $0x30] sm:$0xff]  }
 0x1cd   : > { %7872 = vmatpush3.bf16.msra.mxu1 %v8397_v6  ;;  %v8458_v42 = vld [vmem:[#allocation14 + $0x190] sm:$0xff]   ;;  %v8432_v51 = vld [vmem:[#allocation3 + $0x38] sm:$0xff]   ;;  %v8434_v43 = vld [vmem:[#allocation4 + $0x78] sm:$0xff]  }
 0x1ce   : > { %7873 = vmatprep.subr.bf16.mxu1 %v8404_v16  ;;  %v8463_v34 = vld [vmem:[#allocation14 + $0x188] sm:$0xff]   ;;  %v8436_v49 = vld [vmem:[#allocation3 + $0x40] sm:$0xff]   ;;  %v8465_v8 = vld [vmem:[#allocation14 + $0x180] sm:$0xff]  }
 0x1cf   : > { %v8435_v53 = vld [vmem:[#allocation4 + $0x8] sm:$0xff]   ;;  %v8437_v12 = vld [vmem:[#allocation3 + $0x48] sm:$0xff]   ;;  %v8439_v57 = vld [vmem:[#allocation4 + $0x10] sm:$0xff]  }
 0x1d0   : > { %7794 = vmatmul.mubr.bf16.gmra.mxu1 %v8398_v1  ;;  %v9682_v23 = vld [vmem:[#allocation14 + $0x238] sm:$0xff]   ;;  %v8445_v17 = vld [vmem:[#allocation14 + $0x170] sm:$0xff]   ;;  %v8441_v2 = vld [vmem:[#allocation3 + $0x50] sm:$0xff]  }
 0x1d1   : > { %7797 = vmatprep.mubr.bf16.mxu1 %v8399_v52  ;;  %7874 = vmatpush3.bf16.msra.mxu1 %v8404_v16  ;;  %v8440_v62 = vld [vmem:[#allocation4 + $0x18] sm:$0xff]   ;;  %v8443_v45 = vld [vmem:[#allocation3 + $0x58] sm:$0xff]   ;;  %v8446_v63 = vld [vmem:[#allocation4 + $0x20] sm:$0xff]  }
 0x1d2   : > { %7858 = vmatmul.mubr.bf16.gmra.mxu0 %v8400_v56  ;;  %7875 = vmatprep.subr.bf16.mxu1 %v8411_v19  ;;  %v8452_v7 = vld [vmem:[#allocation14 + $0x168] sm:$0xff]   ;;  %v8459_v6 = vld [vmem:[#allocation14 + $0x160] sm:$0xff]   ;;  %v8448_v48 = vld [vmem:[#allocation3 + $0x60] sm:$0xff]  }
 0x1d3   : > { %7861 = vmatprep.mubr.bf16.mxu0 %v8402_v25  ;;  %v8450_v46 = vld [vmem:[#allocation3 + $0x68] sm:$0xff]   ;;  %v8453_v37 = vld [vmem:[#allocation4 + $0x30] sm:$0xff]   ;;  %v8455_v16 = vld [vmem:[#allocation3 + $0x70] sm:$0xff]  }
 0x1d4   : > { %v8466_v13 = vld [vmem:[#allocation14 + $0x158] sm:$0xff]   ;;  %v8471_v14 = vld [vmem:[#allocation14 + $0x150] sm:$0xff]   ;;  %v8476_v1 = vld [vmem:[#allocation14 + $0x148] sm:$0xff]  }
 0x1d5   : > { %7876 = vmatpush3.bf16.msra.mxu1 %v8411_v19  ;;  %v8454_v15 = vld [vmem:[#allocation4 + $0x38] sm:$0xff]   ;;  %v8457_v19 = vld [vmem:[#allocation3 + $0x78] sm:$0xff]   ;;  %v8460_v52 = vld [vmem:[#allocation4 + $0x40] sm:$0xff]  }
 0x1d6   : > { %7877 = vmatprep.subr.bf16.mxu1 %v8418_v3  ;;  %v8481_v56 = vld [vmem:[#allocation14 + $0x140] sm:$0xff]   ;;  %v8461_v25 = vld [vmem:[#allocation4 + $0x48] sm:$0xff]   ;;  %v8477_v40 = vld [vmem:[#allocation4 + $0x70] sm:$0xff]  }
 0x1d7   : > { %v8470_v39 = vld [vmem:[#allocation4 + $0x20] sm:$0xff]   ;;  %v8474_v28 = vld [vmem:[#allocation4 + $0x28] sm:$0xff]   ;;  %v8506_v26 = vld [vmem:[#allocation14 + $0x210] sm:$0xff]  }
 0x1d8   : > { %7798 = vmatmul.mubr.bf16.gmra.mxu1 %v8405_v59  ;;  %v8486_v59 = vld [vmem:[#allocation14 + $0x1f8] sm:$0xff]   ;;  %v8480_v60 = vld [vmem:[#allocation4 + $0x40] sm:$0xff]   ;;  %v8484_v11 = vld [vmem:[#allocation4 + $0x48] sm:$0xff]  }
 0x1d9   : > { %7801 = vmatprep.mubr.bf16.mxu1 %v8406_v27  ;;  %7878 = vmatpush3.bf16.msra.mxu1 %v8418_v3  ;;  %v8462_v3 = vld [vmem:[#allocation3 + $0x80] sm:$0xff]  }
 0x1da   : > { %7862 = vmatmul.mubr.bf16.gmra.mxu0 %v8407_v21  ;;  %7879 = vmatprep.subr.bf16.mxu1 %v8423_v54  ;;  %v8467_v27 = vld [vmem:[#allocation4 + $0x50] sm:$0xff]   ;;  %v8468_v21 = vld [vmem:[#allocation4 + $0x58] sm:$0xff]  }
 0x1db   : > { %7865 = vmatprep.mubr.bf16.mxu0 %v8409_v29  ;;  %v8469_v29 = vld [vmem:[#allocation4 + $0x18] sm:$0xff]  }
 0x1dd   : > { %7880 = vmatpush3.bf16.msra.mxu1 %v8423_v54  ;;  %v8464_v54 = vld [vmem:[#allocation4 + $0x10] sm:$0xff]  }
 0x1de   : > { %7881 = vmatprep.subr.bf16.mxu1 %v8428_v0 }
 0x1e0   : > { %7802 = vmatmul.mubr.bf16.gmra.mxu1 %v8412_v32  ;;  %v8472_v32 = vld [vmem:[#allocation4 + $0x60] sm:$0xff]  }
 0x1e1   : > { %7805 = vmatprep.mubr.bf16.mxu1 %v8413_v33  ;;  %7882 = vmatpush3.bf16.msra.mxu1 %v8428_v0  ;;  %v8492_v0 = vld [vmem:[#allocation14 + $0x230] sm:$0xff]   ;;  %v8473_v33 = vld [vmem:[#allocation4 + $0x68] sm:$0xff]  }
 0x1e2   : > { %7866 = vmatmul.mubr.bf16.gmra.mxu0 %v8414_v35  ;;  %7883 = vmatprep.subr.bf16.mxu1 %v8433_v61  ;;  %v8499_v35 = vld [vmem:[#allocation14 + $0x220] sm:$0xff]  }
 0x1e3   : > { %7933 = vmatprep.mubr.bf16.mxu0 %v8416_v36  ;;  %v8475_v36 = vld [vmem:[#allocation4 + $0x30] sm:$0xff]  }
 0x1e5   : > { %7884 = vmatpush3.bf16.msra.mxu1 %v8433_v61  ;;  %v8497_v61 = vld [vmem:[#allocation14 + $0x228] sm:$0xff]  }
 0x1e6   : > { %7965 = vmatprep.subr.bf16.mxu1 %v9678_v38 }
 0x1e8   : > { %7806 = vmatmul.mubr.bf16.gmra.mxu1 %v8419_v10  ;;  %v8478_v10 = vld [vmem:[#allocation4 + $0x78] sm:$0xff]  }
 0x1e9   : > { %7809 = vmatprep.mubr.bf16.mxu1 %v8420_v4  ;;  %v8511_v4 = vld [vmem:[#allocation14 + $0x208] sm:$0xff]  }
 0x1ea   : > { %7934 = vmatmul.mubr.bf16.vlgmr.msra.gmra.mxu0 %v8421_v18  ;;  %v8479_v18 = vld [vmem:[#allocation4 + $0x38] sm:$0xff]  }
 0x1eb   : > { %7937 = vmatprep.mubr.bf16.mxu0 %v8422_v31  ;;  %8014 = vmatpush3.bf16.msra.mxu0 %v9674_v58  ;;  %v8447_v58 = vld [vmem:[#allocation4 + $0x28] sm:$0xff]   ;;  %v8483_v31 = vld [vmem:[#allocation5 + $0x8] sm:$0xff]  }
 0x1ec   : > { %8015 = vmatprep.subr.bf16.mxu0 %v8444_v5 }
 0x1ef   : > { %8016 = vmatpush3.bf16.msra.mxu0 %v8444_v5  ;;  %v8482_v5 = vld [vmem:[#allocation4 + $0x80] sm:$0xff]  }
 0x1f0   : > { %7810 = vmatmul.mubr.bf16.gmra.mxu1 %v8424_v9  ;;  %8017 = vmatprep.subr.bf16.mxu0 %v8449_v20  ;;  %v8485_v9 = vld [vmem:[#allocation4 + $0x50] sm:$0xff]  }
 0x1f1   : > { %7813 = vmatprep.mubr.bf16.mxu1 %v8425_v41  ;;  %v8487_v41 = vld [vmem:[#allocation5 + $0x10] sm:$0xff]  }
 0x1f2   : > { %7938 = vmatmul.mubr.bf16.gmra.mxu0 %v8426_v47  ;;  %v8493_v47 = vld [vmem:[#allocation14 + $0x1f0] sm:$0xff]  }
 0x1f3   : > { %7941 = vmatprep.mubr.bf16.mxu0 %v8427_v22  ;;  %8018 = vmatpush3.bf16.msra.mxu0 %v8449_v20  ;;  %v8513_v20 = vld [vmem:[#allocation14 + $0x200] sm:$0xff]   ;;  %v8489_v22 = vld [vmem:[#allocation4 + $0x58] sm:$0xff]  }
 0x1f4   : > { %8019 = vmatprep.subr.bf16.mxu0 %v8451_v55 }
 0x1f7   : > { %8020 = vmatpush3.bf16.msra.mxu0 %v8451_v55  ;;  %v8488_v55 = vld [vmem:[#allocation5 + $0x18] sm:$0xff]  }
 0x1f8   : > { %7814 = vmatmul.mubr.bf16.gmra.mxu1 %v8429_v44  ;;  %8021 = vmatprep.subr.bf16.mxu0 %v8456_v24  ;;  %v8491_v44 = vld [vmem:[#allocation4 + $0x60] sm:$0xff]  }
 0x1f9   : > { %7817 = vmatprep.mubr.bf16.mxu1 %v8430_v30  ;;  %v8500_v30 = vld [vmem:[#allocation14 + $0x1e8] sm:$0xff]  }
 0x1fa   : > { %7942 = vmatmul.mubr.bf16.gmra.mxu0 %v8431_v50 }
 0x1fb   : > { %7945 = vmatprep.mubr.bf16.mxu0 %v8432_v51  ;;  %8022 = vmatpush3.bf16.msra.mxu0 %v8456_v24  ;;  %v8494_v51 = vld [vmem:[#allocation5 + $0x20] sm:$0xff]  }
 0x1fc   : > { %8023 = vmatprep.subr.bf16.mxu0 %v8458_v42 }
 0x1ff   : > { %8024 = vmatpush3.bf16.msra.mxu0 %v8458_v42 }
 0x200   : > { %7818 = vmatmul.mubr.bf16.gmra.mxu1 %v8434_v43  ;;  %8025 = vmatprep.subr.bf16.mxu0 %v8463_v34 }
 0x201   : > { %7885 = vmatprep.mubr.bf16.mxu1 %v8435_v53  ;;  %v8495_v53 = vld [vmem:[#allocation5 + $0x28] sm:$0xff]  }
 0x202   : > { %7946 = vmatmul.mubr.bf16.gmra.mxu0 %v8436_v49  ;;  %v8496_v49 = vld [vmem:[#allocation4 + $0x68] sm:$0xff]  }
 0x203   : > { %7949 = vmatprep.mubr.bf16.mxu0 %v8437_v12  ;;  %8026 = vmatpush3.bf16.msra.mxu0 %v8463_v34  ;;  %v8507_v34 = vld [vmem:[#allocation14 + $0x1e0] sm:$0xff]   ;;  %v8498_v12 = vld [vmem:[#allocation4 + $0x70] sm:$0xff]  }
 0x204   : > { %8027 = vmatprep.subr.bf16.mxu0 %v8465_v8 }
 0x207   : > { %8028 = vmatpush3.bf16.msra.mxu0 %v8465_v8 }
 0x208   : > { %7886 = vmatmul.mubr.bf16.vlgmr.msra.gmra.mxu1 %v8439_v57  ;;  %8109 = vmatprep.subr.bf16.mxu0 %v9682_v23 }
 0x209   : > { %7966 = vmatpush3.bf16.msra.mxu1 %v9678_v38  ;;  %7889 = vmatprep.mubr.bf16.mxu1 %v8440_v62  ;;  %v8504_v38 = vld [vmem:[#allocation14 + $0x218] sm:$0xff]   ;;  %v8501_v62 = vld [vmem:[#allocation5 + $0x30] sm:$0xff]  }
 0x20a   : > { %7950 = vmatmul.mubr.bf16.gmra.mxu0 %v8441_v2  ;;  %7967 = vmatprep.subr.bf16.mxu1 %v8445_v17  ;;  %v8519_v2 = vld [vmem:[#allocation14 + $0x1d0] sm:$0xff]  }
 0x20b   : > { %7953 = vmatprep.mubr.bf16.mxu0 %v8443_v45 }
 0x20d   : > { %7968 = vmatpush3.bf16.msra.mxu1 %v8445_v17 }
 0x20e   : > { %7969 = vmatprep.subr.bf16.mxu1 %v8452_v7 }
 0x210   : > { %7890 = vmatmul.mubr.bf16.gmra.mxu1 %v8446_v63  ;;  %v8503_v63 = vld [vmem:[#allocation4 + $0x78] sm:$0xff]  }
 0x211   : > { %7893 = vmatprep.mubr.bf16.mxu1 %v8447_v58  ;;  %7970 = vmatpush3.bf16.msra.mxu1 %v8452_v7  ;;  %v8502_v7 = vld [vmem:[#allocation5 + $0x38] sm:$0xff]   ;;  %v8505_v58 = vld [vmem:[#allocation4 + $0x80] sm:$0xff]  }
 0x212   : > { %7954 = vmatmul.mubr.bf16.gmra.mxu0 %v8448_v48  ;;  %7971 = vmatprep.subr.bf16.mxu1 %v8459_v6  ;;  %v8524_v48 = vld [vmem:[#allocation14 + $0x1c8] sm:$0xff]  }
 0x213   : > { %7957 = vmatprep.mubr.bf16.mxu0 %v8450_v46 }
 0x215   : > { %7972 = vmatpush3.bf16.msra.mxu1 %v8459_v6 }
 0x216   : > { %7973 = vmatprep.subr.bf16.mxu1 %v8466_v13 }
 0x218   : > { %7894 = vmatmul.mubr.bf16.gmra.mxu1 %v8453_v37  ;;  %v8508_v37 = vld [vmem:[#allocation5 + $0x40] sm:$0xff]  }
 0x219   : > { %7897 = vmatprep.mubr.bf16.mxu1 %v8454_v15  ;;  %7974 = vmatpush3.bf16.msra.mxu1 %v8466_v13 }
 0x21a   : > { %7958 = vmatmul.mubr.bf16.gmra.mxu0 %v8455_v16  ;;  %7975 = vmatprep.subr.bf16.mxu1 %v8471_v14  ;;  %v8509_v16 = vld [vmem:[#allocation5 + $0x48] sm:$0xff]  }
 0x21b   : > { %7961 = vmatprep.mubr.bf16.mxu0 %v8457_v19  ;;  %v8510_v19 = vld [vmem:[#allocation4 + $0x88] sm:$0xff]  }
 0x21d   : > { %7976 = vmatpush3.bf16.msra.mxu1 %v8471_v14  ;;  %v8529_v14 = vld [vmem:[#allocation14 + $0x1c0] sm:$0xff]  }
 0x21e   : > { %7977 = vmatprep.subr.bf16.mxu1 %v8476_v1 }
 0x220   : > { %7898 = vmatmul.mubr.bf16.gmra.mxu1 %v8460_v52  ;;  %v8512_v52 = vld [vmem:[#allocation5 + $0x10] sm:$0xff]  }
 0x221   : > { %7901 = vmatprep.mubr.bf16.mxu1 %v8461_v25  ;;  %7978 = vmatpush3.bf16.msra.mxu1 %v8476_v1 }
 0x222   : > { %7962 = vmatmul.mubr.bf16.gmra.mxu0 %v8462_v3  ;;  %7979 = vmatprep.subr.bf16.mxu1 %v8481_v56  ;;  %v8515_v3 = vld [vmem:[#allocation5 + $0x50] sm:$0xff]  }
 0x223   : > { %8029 = vmatprep.mubr.bf16.mxu0 %v8464_v54 }
 0x225   : > { %7980 = vmatpush3.bf16.msra.mxu1 %v8481_v56 }
 0x226   : > { %8061 = vmatprep.subr.bf16.mxu1 %v8486_v59 }
 0x228   : > { %7902 = vmatmul.mubr.bf16.gmra.mxu1 %v8467_v27 }
 0x229   : > { %7905 = vmatprep.mubr.bf16.mxu1 %v8468_v21  ;;  %v8517_v21 = vld [vmem:[#allocation5 + $0x18] sm:$0xff]  }
 0x22a   : > { %8030 = vmatmul.mubr.bf16.vlgmr.msra.gmra.mxu0 %v8469_v29 }
 0x22b   : > { %8033 = vmatprep.mubr.bf16.mxu0 %v8470_v39  ;;  %8110 = vmatpush3.bf16.msra.mxu0 %v9682_v23  ;;  %v8514_v23 = vld [vmem:[#allocation14 + $0x1d8] sm:$0xff]  }
 0x22c   : > { %8111 = vmatprep.subr.bf16.mxu0 %v8492_v0 }
 0x22f   : > { %8112 = vmatpush3.bf16.msra.mxu0 %v8492_v0  ;;  %v8518_v0 = vld [vmem:[#allocation5 + $0x20] sm:$0xff]  }
 0x230   : > { %7906 = vmatmul.mubr.bf16.gmra.mxu1 %v8472_v32  ;;  %8113 = vmatprep.subr.bf16.mxu0 %v8497_v61 }
 0x231   : > { %7909 = vmatprep.mubr.bf16.mxu1 %v8473_v33 }
 0x232   : > { %8034 = vmatmul.mubr.bf16.gmra.mxu0 %v8474_v28 }
 0x233   : > { %8037 = vmatprep.mubr.bf16.mxu0 %v8475_v36  ;;  %8114 = vmatpush3.bf16.msra.mxu0 %v8497_v61 }
 0x234   : > { %8115 = vmatprep.subr.bf16.mxu0 %v8499_v35 }
 0x237   : > { %8116 = vmatpush3.bf16.msra.mxu0 %v8499_v35  ;;  %v8520_v35 = vld [vmem:[#allocation5 + $0x60] sm:$0xff]  }
 0x238   : > { %7910 = vmatmul.mubr.bf16.gmra.mxu1 %v8477_v40  ;;  %8117 = vmatprep.subr.bf16.mxu0 %v8504_v38 }
 0x239   : > { %7913 = vmatprep.mubr.bf16.mxu1 %v8478_v10  ;;  %v8522_v10 = vld [vmem:[#allocation5 + $0x28] sm:$0xff]  }
 0x23a   : > { %8038 = vmatmul.mubr.bf16.gmra.mxu0 %v8479_v18 }
 0x23b   : > { %8041 = vmatprep.mubr.bf16.mxu0 %v8480_v60  ;;  %8118 = vmatpush3.bf16.msra.mxu0 %v8504_v38  ;;  %v8521_v38 = vld [vmem:[#allocation5 + $0x68] sm:$0xff]  }
 0x23c   : > { %8119 = vmatprep.subr.bf16.mxu0 %v8506_v26 }
 0x23f   : > { %8120 = vmatpush3.bf16.msra.mxu0 %v8506_v26  ;;  %v8523_v26 = vld [vmem:[#allocation5 + $0x30] sm:$0xff]  }
 0x240   : > { %7914 = vmatmul.mubr.bf16.gmra.mxu1 %v8482_v5  ;;  %8121 = vmatprep.subr.bf16.mxu0 %v8511_v4 }
 0x241   : > { %7981 = vmatprep.mubr.bf16.mxu1 %v8483_v31 }
 0x242   : > { %8042 = vmatmul.mubr.bf16.gmra.mxu0 %v8484_v11 }
 0x243   : > { %8045 = vmatprep.mubr.bf16.mxu0 %v8485_v9  ;;  %8122 = vmatpush3.bf16.msra.mxu0 %v8511_v4 }
 0x244   : > { %8123 = vmatprep.subr.bf16.mxu0 %v8513_v20 }
 0x247   : > { %8124 = vmatpush3.bf16.msra.mxu0 %v8513_v20  ;;  %v8525_v20 = vld [vmem:[#allocation5 + $0x70] sm:$0xff]  }
 0x248   : > { %7982 = vmatmul.mubr.bf16.vlgmr.msra.gmra.mxu1 %v8487_v41  ;;  %v9687_v24 = vpop.f32.mrf.mxu0  ;;  %v8526_v41 = vld [vmem:[#allocation5 + $0x78] sm:$0xff]  }
 0x249   : > { %8062 = vmatpush3.bf16.msra.mxu1 %v8486_v59  ;;  %7985 = vmatprep.mubr.bf16.mxu1 %v8488_v55  ;;  %v8516_v59 = vld [vmem:[#allocation5 + $0x58] sm:$0xff]  }
 0x24a   : > { %8046 = vmatmul.mubr.bf16.gmra.mxu0 %v8489_v22  ;;  %8063 = vmatprep.subr.bf16.mxu1 %v8493_v47  ;;  %v9689_v50 = vpop.f32.mrf.mxu0  ;;  %v8527_v55 = vld [vmem:[#allocation5 + $0x38] sm:$0xff]  }
 0x24b   : > { %8049 = vmatprep.mubr.bf16.mxu0 %v8491_v44  ;;  %v8528_v44 = vld [vmem:[#allocation5 + $0x40] sm:$0xff]  }
 0x24c   : > { %v9691_v42 = vpop.f32.mrf.mxu0 }
 0x24d   : > { %8064 = vmatpush3.bf16.msra.mxu1 %v8493_v47 }
 0x24e   : > { %8065 = vmatprep.subr.bf16.mxu1 %v8500_v30  ;;  %v9693_v43 = vpop.f32.mrf.mxu0 }
 0x250   : > { %7986 = vmatmul.mubr.bf16.gmra.mxu1 %v8494_v51  ;;  %v9695_v8 = vpop.f32.mrf.mxu0 }
 0x251   : > { %7989 = vmatprep.mubr.bf16.mxu1 %v8495_v53  ;;  %8066 = vmatpush3.bf16.msra.mxu1 %v8500_v30 }
 0x252   : > { %8050 = vmatmul.mubr.bf16.gmra.mxu0 %v8496_v49  ;;  %8067 = vmatprep.subr.bf16.mxu1 %v8507_v34  ;;  %v9697_v57 = vpop.f32.mrf.mxu0 }
 0x253   : > { %8053 = vmatprep.mubr.bf16.mxu0 %v8498_v12  ;;  %v8530_v12 = vld [vmem:[#allocation5 + $0x80] sm:$0xff]  }
 0x254   : > { %v9699_v17 = vpop.f32.mrf.mxu0 }
 0x255   : > { %8068 = vmatpush3.bf16.msra.mxu1 %v8507_v34 }
 0x256   : > { %8069 = vmatprep.subr.bf16.mxu1 %v8514_v23  ;;  %v9701_v45 = vpop.f32.mrf.mxu0 }
 0x258   : > { %7990 = vmatmul.mubr.bf16.gmra.mxu1 %v8501_v62  ;;  %v9703_v6 = vpop.f32.mrf.mxu0  ;;  %v8531_v62 = vld [vmem:[#allocation3 + $0x10] sm:$0xff]  }
 0x259   : > { %7993 = vmatprep.mubr.bf16.mxu1 %v8502_v7  ;;  %8070 = vmatpush3.bf16.msra.mxu1 %v8514_v23  ;;  %v8532_v7 = vld [vmem:[#allocation5 + $0x48] sm:$0xff]  }
 0x25a   : > { %8054 = vmatmul.mubr.bf16.gmra.mxu0 %v8503_v63  ;;  %8071 = vmatprep.subr.bf16.mxu1 %v8519_v2  ;;  %v9705_v46 = vpop.f32.mrf.mxu0 }
 0x25b   : > { %8057 = vmatprep.mubr.bf16.mxu0 %v8505_v58  ;;  %v8533_v58 = vld [vmem:[#allocation5 + $0x50] sm:$0xff]  }
 0x25c   : > { %v9707_v13 = vpop.f32.mrf.mxu0 }
 0x25d   : > { %8072 = vmatpush3.bf16.msra.mxu1 %v8519_v2 }
 0x25e   : > { %8073 = vmatprep.subr.bf16.mxu1 %v8524_v48  ;;  %v9709_v15 = vpop.f32.mrf.mxu0 }
 0x260   : > { %7994 = vmatmul.mubr.bf16.gmra.mxu1 %v8508_v37  ;;  %v9711_v1 = vpop.f32.mrf.mxu0 }
 0x261   : > { %7997 = vmatprep.mubr.bf16.mxu1 %v8509_v16  ;;  %8074 = vmatpush3.bf16.msra.mxu1 %v8524_v48 }
 0x262   : > { %8058 = vmatmul.mubr.bf16.gmra.mxu0 %v8510_v19  ;;  %8075 = vmatprep.subr.bf16.mxu1 %v8529_v14  ;;  %v9713_v56 = vpop.f32.mrf.mxu0 }
 0x263   : > { %8125 = vmatprep.mubr.bf16.mxu0 %v8512_v52  ;;  %v8534_v52 = vld [vmem:[#allocation3 + $0x18] sm:$0xff]  }
 0x264   : > { %v9715_v25 = vpop.f32.mrf.mxu0 }
 0x265   : > { %8076 = vmatpush3.bf16.msra.mxu1 %v8529_v14 }
 0x266   : > { %v9717_v54 = vpop.f32.mrf.mxu0 }
 0x267   : > { %v9719_v27 = vpop.f32.mrf.mxu1 }
 0x268   : > { %7998 = vmatmul.mubr.bf16.gmra.mxu1 %v8515_v3 }
 0x269   : > { %v9721_v29 = vpop.f32.mrf.mxu0  ;;  %8001 = vmatprep.mubr.bf16.mxu1 %v8516_v59  ;;  %v9723_v39 = vpop.f32.mrf.mxu1  ;;  %v8535_v59 = vld [vmem:[#allocation3 + $0x20] sm:$0xff]  }
 0x26a   : > { %8126 = vmatmul.mubr.bf16.vlgmr.msra.gmra.mxu0 %v8517_v21 }
 0x26b   : > { %8129 = vmatprep.mubr.bf16.mxu0 %v8518_v0  ;;  %v9725_v61 = vpop.f32.mrf.mxu0  ;;  %v9727_v32 = vpop.f32.mrf.mxu1  ;;  %v8536_v0 = vld [vmem:[#allocation5 + $0x58] sm:$0xff]  }
 0x26d   : > { %v9729_v33 = vpop.f32.mrf.mxu0  ;;  %v9731_v28 = vpop.f32.mrf.mxu1 }
 0x26f   : > { %v9733_v36 = vpop.f32.mrf.mxu0  ;;  %v9735_v40 = vpop.f32.mrf.mxu1 }
 0x270   : > { %8002 = vmatmul.mubr.bf16.gmra.mxu1 %v8520_v35 }
 0x271   : > { %v9737_v18 = vpop.f32.mrf.mxu0  ;;  %8005 = vmatprep.mubr.bf16.mxu1 %v8521_v38  ;;  %v9739_v60 = vpop.f32.mrf.mxu1  ;;  %v8537_v38 = vld [vmem:[#allocation5 + $0x60] sm:$0xff]  }
 0x272   : > { %8130 = vmatmul.mubr.bf16.gmra.mxu0 %v8522_v10 }
 0x273   : > { %8133 = vmatprep.mubr.bf16.mxu0 %v8523_v26  ;;  %v9741_v4 = vpop.f32.mrf.mxu0  ;;  %v9743_v5 = vpop.f32.mrf.mxu1 }
 0x275   : > { %v9745_v31 = vpop.f32.mrf.mxu0  ;;  %v9747_v11 = vpop.f32.mrf.mxu1 }
 0x277   : > { %v9749_v9 = vpop.f32.mrf.mxu0 }
 0x278   : > { %v9751_v47 = vpop.f32.mrf.mxu1  ;;  %8006 = vmatmul.mubr.bf16.gmra.mxu1 %v8525_v20 }
 0x279   : > { %v9753_v22 = vpop.f32.mrf.mxu0  ;;  %8009 = vmatprep.mubr.bf16.mxu1 %v8526_v41 }
 0x27a   : > { %8134 = vmatmul.mubr.bf16.gmra.mxu0 %v8527_v55  ;;  %v9755_v30 = vpop.f32.mrf.mxu1 }
 0x27b   : > { %8137 = vmatprep.mubr.bf16.mxu0 %v8528_v44  ;;  %v9757_v51 = vpop.f32.mrf.mxu0 }
 0x27c   : > { %v9759_v34 = vpop.f32.mrf.mxu1 }
 0x27d   : > { %v9761_v53 = vpop.f32.mrf.mxu0 }
 0x27e   : > { %v9763_v49 = vpop.f32.mrf.mxu1 }
 0x27f   : > { %v9765_v23 = vpop.f32.mrf.mxu0 }
 0x280   : > { %v9767_v2 = vpop.f32.mrf.mxu1  ;;  %8010 = vmatmul.mubr.bf16.gmra.mxu1 %v8530_v12 }
 0x281   : > { %v9769_v63 = vpop.f32.mrf.mxu0  ;;  %8077 = vmatprep.mubr.bf16.mxu1 %v8531_v62 }
 0x282   : > { %8138 = vmatmul.mubr.bf16.gmra.mxu0 %v8532_v7  ;;  %v9771_v48 = vpop.f32.mrf.mxu1 }
 0x283   : > { %8141 = vmatprep.mubr.bf16.mxu0 %v8533_v58  ;;  %v9773_v37 = vpop.f32.mrf.mxu0  ;;  %v8538_v58 = vld [vmem:[#allocation3 + $0x28] sm:$0xff]  }
 0x284   : > { %v9775_v14 = vpop.f32.mrf.mxu1 }
 0x285   : > { %v9777_v16 = vpop.f32.mrf.mxu0 }
 0x286   : > { %v9779_v19 = vpop.f32.mrf.mxu1 }
 0x287   : > { %v9781_v3 = vpop.f32.mrf.mxu0 }
 0x288   : > { %v7791_v21 = vpop.f32.mrf.mxu1  ;;  %8078 = vmatmul.mubr.bf16.vlgmr.msra.gmra.mxu1 %v8534_v52 }
 0x289   : > { %v3038_v35 = vadd.f32 %v7791_v21, %v9687_v24  ;;  %8081 = vmatprep.mubr.bf16.mxu1 %v8535_v59  ;;  %v8539_v59 = vld [vmem:[#allocation3 + $0x30] sm:$0xff]  }
 0x28a   : > { %v9784_v10 = vpop.f32.mrf.mxu0  ;;  %8142 = vmatmul.mubr.bf16.gmra.mxu0 %v8536_v0  ;;  %v3029_v26 = vpop.f32.mrf.mxu1  ;;  %v8540_v0 = vld [vmem:[#allocation5 + $0x68] sm:$0xff]  }
 0x28b   : > { %v3030_v20 = vadd.f32 %v3029_v26, %v9689_v50  ;;  %8145 = vmatprep.mubr.bf16.mxu0 %v8537_v38  ;;  %v9788_v41 = vadd.f32 %v9721_v29, %v3038_v35 }
 0x28c   : > { %v9790_v55 = vpop.f32.mrf.mxu0  ;;  %v7792_v44 = vpop.f32.mrf.mxu1 }
 0x28d   : > { %v3041_v12 = vadd.f32 %v7792_v44, %v9691_v42  ;;  %v9794_v62 = vadd.f32 %v9725_v61, %v3030_v20  ;;  %v8541_v61 = vld [vmem:[#allocation5 + $0x70] sm:$0xff]  }
 0x28e   : > { %v9796_v24 = vpop.f32.mrf.mxu0  ;;  %v3032_v7 = vpop.f32.mrf.mxu1 }
 0x28f   : > { %v3033_v52 = vadd.f32 %v3032_v7, %v9693_v43  ;;  %v9800_v50 = vadd.f32 %v9729_v33, %v3041_v12 }
 0x290   : > { %v9802_v29 = vpop.f32.mrf.mxu0  ;;  %v7795_v21 = vpop.f32.mrf.mxu1  ;;  %8082 = vmatmul.mubr.bf16.gmra.mxu1 %v8538_v58  ;;  %v8542_v58 = vld [vmem:[#allocation3 + $0x38] sm:$0xff]  }
 0x291   : > { %v3054_v42 = vadd.f32 %v7795_v21, %v9695_v8  ;;  %8085 = vmatprep.mubr.bf16.mxu1 %v8539_v59  ;;  %v9806_v35 = vadd.f32 %v9733_v36, %v3033_v52  ;;  %v8543_v59 = vld [vmem:[#allocation3 + $0x40] sm:$0xff]  }
 0x292   : > { %v9808_v38 = vpop.f32.mrf.mxu0  ;;  %8146 = vmatmul.mubr.bf16.gmra.mxu0 %v8540_v0  ;;  %v3045_v43 = vpop.f32.mrf.mxu1  ;;  %v8544_v0 = vld [vmem:[#allocation5 + $0x78] sm:$0xff]  }
 0x293   : > { %v3046_v26 = vadd.f32 %v3045_v43, %v9697_v57  ;;  %8149 = vmatprep.mubr.bf16.mxu0 %v8541_v61  ;;  %v9812_v33 = vadd.f32 %v9737_v18, %v3054_v42 }
 0x294   : > { %v9814_v20 = vpop.f32.mrf.mxu0  ;;  %v7796_v44 = vpop.f32.mrf.mxu1 }
 0x295   : > { %v3057_v8 = vadd.f32 %v7796_v44, %v9699_v17  ;;  %v9818_v12 = vadd.f32 %v9741_v4, %v3046_v26  ;;  %v8545_v4 = vld [vmem:[#allocation5 + $0x80] sm:$0xff]  }
 0x296   : > { %v9820_v36 = vpop.f32.mrf.mxu0  ;;  %v3048_v7 = vpop.f32.mrf.mxu1 }
 0x297   : > { %v3049_v52 = vadd.f32 %v3048_v7, %v9701_v45  ;;  %v9824_v57 = vadd.f32 %v9745_v31, %v3057_v8  ;;  %v8556_v8 = vld [vmem:[#allocation15 + $0x38] sm:$0xff]  }
 0x298   : > { %v9826_v18 = vpop.f32.mrf.mxu0  ;;  %v7799_v21 = vpop.f32.mrf.mxu1  ;;  %8086 = vmatmul.mubr.bf16.gmra.mxu1 %v8542_v58  ;;  %8157 = vmatprep.subr.bf16.mxu1 %v8556_v8 }
 0x299   : > { %v3070_v17 = vadd.f32 %v7799_v21, %v9703_v6  ;;  %8089 = vmatprep.mubr.bf16.mxu1 %v8543_v59  ;;  %v9830_v42 = vadd.f32 %v9749_v9, %v3049_v52  ;;  %v8546_v52 = vld [vmem:[#allocation3 + $0x48] sm:$0xff]   ;;  %v8547_v21 = vld [vmem:[#allocation3 + $0x50] sm:$0xff]   ;;  %8158 = vmatpush3.bf16.msra.mxu1 %v8556_v8  ;;  %v8557_v8 = vld [vmem:[#allocation15 + $0x30] sm:$0xff]  }
 0x29a   : > { %v9832_v61 = vpop.f32.mrf.mxu0  ;;  %8150 = vmatmul.mubr.bf16.gmra.mxu0 %v8544_v0  ;;  %v3061_v45 = vpop.f32.mrf.mxu1  ;;  %v8554_v59 = vld [vmem:[#allocation5 + $0x88] sm:$0xff]   ;;  %8159 = vmatprep.subr.bf16.mxu1 %v8557_v8 }
 0x29b   : > { %v3062_v43 = vadd.f32 %v3061_v45, %v9705_v46  ;;  %8153 = vmatprep.mubr.bf16.mxu0 %v8545_v4  ;;  %v9836_v31 = vadd.f32 %v9753_v22, %v3070_v17 }
 0x29c   : > { %v9838_v26 = vpop.f32.mrf.mxu0  ;;  %v7800_v44 = vpop.f32.mrf.mxu1 }
 0x29d   : > { %v3073_v6 = vadd.f32 %v7800_v44, %v9707_v13  ;;  %v9842_v7 = vadd.f32 %v9757_v51, %v3062_v43  ;;  %8160 = vmatpush3.bf16.msra.mxu1 %v8557_v8 }
 0x29e   : > { %v9844_v9 = vpop.f32.mrf.mxu0  ;;  %v3064_v58 = vpop.f32.mrf.mxu1 }
 0x29f   : > { %v3065_v46 = vadd.f32 %v3064_v58, %v9709_v15  ;;  %v9848_v22 = vadd.f32 %v9761_v53, %v3073_v6 }
 0x2a0   : > { %v9850_v0 = vpop.f32.mrf.mxu0  ;;  %v7803_v17 = vpop.f32.mrf.mxu1  ;;  %8090 = vmatmul.mubr.bf16.gmra.mxu1 %v8546_v52  ;;  %v8548_v52 = vld [vmem:[#allocation3 + $0x58] sm:$0xff]  }
 0x2a1   : > { %v3086_v13 = vadd.f32 %v7803_v17, %v9711_v1  ;;  %8093 = vmatprep.mubr.bf16.mxu1 %v8547_v21  ;;  %v9854_v51 = vadd.f32 %v9765_v23, %v3065_v46 }
 0x2a2   : > { %v9856_v4 = vpop.f32.mrf.mxu0  ;;  %v3077_v45 = vpop.f32.mrf.mxu1  ;;  %8154 = vmatmul.mubr.bf16.gmra.mxu0 %v8554_v59 }
 0x2a3   : > { %v3078_v15 = vadd.f32 %v3077_v45, %v9713_v56  ;;  %v9860_v53 = vadd.f32 %v9769_v63, %v3086_v13  ;;  %v8549_v56 = vld [vmem:[#allocation3 + $0x60] sm:$0xff]  }
 0x2a4   : > { %v9862_v43 = vpop.f32.mrf.mxu0  ;;  %v7804_v44 = vpop.f32.mrf.mxu1 }
 0x2a5   : > { %v3089_v6 = vadd.f32 %v7804_v44, %v9715_v25  ;;  %v9866_v1 = vadd.f32 %v9773_v37, %v3078_v15  ;;  %v8558_v44 = vld [vmem:[#allocation15 + $0x28] sm:$0xff]  }
 0x2a6   : > { %v9868_v23 = vpop.f32.mrf.mxu0  ;;  %v3080_v58 = vpop.f32.mrf.mxu1  ;;  %8161 = vmatprep.subr.bf16.mxu1 %v8558_v44 }
 0x2a7   : > { %v3081_v59 = vadd.f32 %v3080_v58, %v9717_v54  ;;  %v9872_v63 = vadd.f32 %v9777_v16, %v3089_v6  ;;  %v8550_v58 = vld [vmem:[#allocation3 + $0x68] sm:$0xff]   ;;  %8162 = vmatpush3.bf16.msra.mxu1 %v8558_v44 }
 0x2a8   : > { %v9874_v46 = vpop.f32.mrf.mxu0  ;;  %v7807_v21 = vpop.f32.mrf.mxu1  ;;  %8094 = vmatmul.mubr.bf16.gmra.mxu1 %v8548_v52 }
 0x2a9   : > { %v3102_v25 = vadd.f32 %v7807_v21, %v9719_v27  ;;  %8097 = vmatprep.mubr.bf16.mxu1 %v8549_v56  ;;  %v9878_v37 = vadd.f32 %v9781_v3, %v3081_v59 }
 0x2aa   : > { %v9880_v17 = vpop.f32.mrf.mxu0  ;;  %v3093_v13 = vpop.f32.mrf.mxu1 }
 0x2ab   : > { %v3094_v54 = vadd.f32 %v3093_v13, %v9723_v39  ;;  %v9884_v45 = vadd.f32 %v9784_v10, %v3102_v25  ;;  %v8551_v39 = vld [vmem:[#allocation3 + $0x70] sm:$0xff]  }
 0x2ac   : > { %v9886_v16 = vpop.f32.mrf.mxu0  ;;  %v7808_v15 = vpop.f32.mrf.mxu1 }
 0x2ad   : > { %v3105_v8 = vadd.f32 %v7808_v15, %v9727_v32  ;;  %v9890_v27 = vadd.f32 %v9790_v55, %v3094_v54  ;;  %v8559_v15 = vld [vmem:[#allocation15 + $0x20] sm:$0xff]  }
 0x2ae   : > { %v9892_v6 = vpop.f32.mrf.mxu0  ;;  %v3096_v3 = vpop.f32.mrf.mxu1  ;;  %8163 = vmatprep.subr.bf16.mxu1 %v8559_v15 }
 0x2af   : > { %v3097_v52 = vadd.f32 %v3096_v3, %v9731_v28  ;;  %v9896_v10 = vadd.f32 %v9796_v24, %v3105_v8  ;;  %v8552_v3 = vld [vmem:[#allocation3 + $0x78] sm:$0xff]   ;;  %8164 = vmatpush3.bf16.msra.mxu1 %v8559_v15  ;;  %v8560_v15 = vld [vmem:[#allocation15 + $0x18] sm:$0xff]  }
 0x2b0   : > { %v9898_v59 = vpop.f32.mrf.mxu0  ;;  %v7811_v56 = vpop.f32.mrf.mxu1  ;;  %8098 = vmatmul.mubr.bf16.gmra.mxu1 %v8550_v58  ;;  %8165 = vmatprep.subr.bf16.mxu1 %v8560_v15 }
 0x2b1   : > { %v3118_v32 = vadd.f32 %v7811_v56, %v9735_v40  ;;  %8101 = vmatprep.mubr.bf16.mxu1 %v8551_v39  ;;  %v9902_v55 = vadd.f32 %v9802_v29, %v3097_v52 }
 0x2b2   : > { %v9904_v21 = vpop.f32.mrf.mxu0  ;;  %v3109_v25 = vpop.f32.mrf.mxu1 }
 0x2b3   : > { %v3110_v28 = vadd.f32 %v3109_v25, %v9739_v60  ;;  %v9908_v13 = vadd.f32 %v9808_v38, %v3118_v32  ;;  %v8553_v60 = vld [vmem:[#allocation3 + $0x80] sm:$0xff]   ;;  %8166 = vmatpush3.bf16.msra.mxu1 %v8560_v15 }
 0x2b4   : > { %v9910_v24 = vpop.f32.mrf.mxu0  ;;  %v7812_v54 = vpop.f32.mrf.mxu1 }
 0x2b5   : > { %v3121_v44 = vadd.f32 %v7812_v54, %v9743_v5  ;;  %v9914_v40 = vadd.f32 %v9814_v20, %v3110_v28  ;;  %v8555_v54 = vld [vmem:[#allocation3 + $0x88] sm:$0xff]  }
 0x2b6   : > { %v9916_v8 = vpop.f32.mrf.mxu0  ;;  %v3112_v29 = vpop.f32.mrf.mxu1 }
 0x2b7   : > { %v3113_v58 = vadd.f32 %v3112_v29, %v9747_v11  ;;  %v9920_v38 = vadd.f32 %v9820_v36, %v3121_v44 }
 0x2b8   : > { %v9922_v52 = vpop.f32.mrf.mxu0  ;;  %v7815_v39 = vpop.f32.mrf.mxu1  ;;  %8102 = vmatmul.mubr.bf16.gmra.mxu1 %v8552_v3 }
 0x2b9   : > { %v3134_v5 = vadd.f32 %v7815_v39, %v9751_v47  ;;  %8105 = vmatprep.mubr.bf16.mxu1 %v8553_v60  ;;  %v9926_v20 = vadd.f32 %v9826_v18, %v3113_v58 }
 0x2ba   : > { %v9928_v56 = vpop.f32.mrf.mxu0  ;;  %v3125_v32 = vpop.f32.mrf.mxu1 }
 0x2bb   : > { %v3126_v11 = vadd.f32 %v3125_v32, %v9755_v30  ;;  %v9932_v25 = vadd.f32 %v9832_v61, %v3134_v5 }
 0x2bc   : > { %v9934_v36 = vpop.f32.mrf.mxu0  ;;  %v7816_v28 = vpop.f32.mrf.mxu1 }
 0x2bd   : > { %v3137_v44 = vadd.f32 %v7816_v28, %v9759_v34  ;;  %v9938_v47 = vadd.f32 %v9838_v26, %v3126_v11  ;;  %v8561_v11 = vld [vmem:[#allocation15 + $0x10] sm:$0xff]  }
 0x2be   : > { %v9940_v18 = vpop.f32.mrf.mxu0  ;;  %v3128_v29 = vpop.f32.mrf.mxu1  ;;  %8167 = vmatprep.subr.bf16.mxu1 %v8561_v11 }
 0x2bf   : > { %v3129_v3 = vadd.f32 %v3128_v29, %v9763_v49  ;;  %v9944_v30 = vadd.f32 %v9844_v9, %v3137_v44  ;;  %8168 = vmatpush3.bf16.msra.mxu1 %v8561_v11 }
 0x2c0   : > { %v9946_v61 = vpop.f32.mrf.mxu0  ;;  %v7819_v58 = vpop.f32.mrf.mxu1  ;;  %8106 = vmatmul.mubr.bf16.gmra.mxu1 %v8555_v54 }
 0x2c1   : > { %v3150_v60 = vadd.f32 %v7819_v58, %v9767_v2  ;;  %v9950_v34 = vadd.f32 %v9850_v0, %v3129_v3 }
 0x2c2   : > { %v9952_v26 = vpop.f32.mrf.mxu0  ;;  %v3141_v39 = vpop.f32.mrf.mxu1 }
 0x2c3   : > { %v3142_v5 = vadd.f32 %v3141_v39, %v9771_v48  ;;  %v9956_v49 = vadd.f32 %v9856_v4, %v3150_v60 }
 0x2c4   : > { %v9958_v9 = vpop.f32.mrf.mxu0  ;;  %v7820_v32 = vpop.f32.mrf.mxu1 }
 0x2c5   : > { %v3153_v28 = vadd.f32 %v7820_v32, %v9775_v14  ;;  %v9962_v54 = vadd.f32 %v9862_v43, %v3142_v5 }
 0x2c6   : > { %v9964_v2 = vpop.f32.mrf.mxu0  ;;  %v3144_v0 = vpop.f32.mrf.mxu1 }
 0x2c7   : > { %v3145_v15 = vadd.f32 %v3144_v0, %v9779_v19  ;;  %v9968_v48 = vadd.f32 %v9868_v23, %v3153_v28 }
 0x2c8   : > { %v9970_v4 = vpop.f32.mrf.mxu0  ;;  %v7887_v44 = vpop.f32.mrf.mxu1 }
 0x2c9   : > { %v3898_v29 = vadd.f32 %v7887_v44, %v9788_v41  ;;  %v9974_v14 = vadd.f32 %v9874_v46, %v3145_v15 }
 0x2ca   : > { %v9976_v43 = vpop.f32.mrf.mxu0  ;;  %v3769_v3 = vpop.f32.mrf.mxu1 }
 0x2cb   : > { %v3896_v58 = vadd.f32 %v3769_v3, %v9794_v62  ;;  %v9980_v60 = vadd.f32 %v9880_v17, %v3898_v29 }
 0x2cc   : > { %v9982_v19 = vpop.f32.mrf.mxu0  ;;  %v7888_v23 = vpop.f32.mrf.mxu1 }
 0x2cd   : > { %v3899_v39 = vadd.f32 %v7888_v23, %v9800_v50  ;;  %v9986_v5 = vadd.f32 %v9886_v16, %v3896_v58  ;;  %v8562_v50 = vld [vmem:[#allocation15 + $0x8] sm:$0xff]  }
 0x2ce   : > { %v9988_v41 = vpop.f32.mrf.mxu0  ;;  %v3772_v46 = vpop.f32.mrf.mxu1  ;;  %8169 = vmatprep.subr.bf16.mxu1 %v8562_v50 }
 0x2cf   : > { %v3897_v32 = vadd.f32 %v3772_v46, %v9806_v35  ;;  %v9992_v11 = vadd.f32 %v9892_v6, %v3899_v39  ;;  %8170 = vmatpush3.bf16.msra.mxu1 %v8562_v50 }
 0x2d0   : > { %v9994_v62 = vpop.f32.mrf.mxu0  ;;  %v7891_v17 = vpop.f32.mrf.mxu1 }
 0x2d1   : > { %v3902_v28 = vadd.f32 %v7891_v17, %v9812_v33  ;;  %v9998_v0 = vadd.f32 %v9898_v59, %v3897_v32 }
 0x2d2   : > { %v10000_v15 = vpop.f32.mrf.mxu0  ;;  %v3785_v16 = vpop.f32.mrf.mxu1 }
 0x2d3   : > { %v3900_v44 = vadd.f32 %v3785_v16, %v9818_v12  ;;  %v10004_v29 = vadd.f32 %v9904_v21, %v3902_v28 }
 0x2d4   : > { %v10006_v35 = vpop.f32.mrf.mxu0  ;;  %v7892_v6 = vpop.f32.mrf.mxu1 }
 0x2d5   : > { %v3903_v3 = vadd.f32 %v7892_v6, %v9824_v57  ;;  %v10010_v33 = vadd.f32 %v9910_v24, %v3900_v44  ;;  %v8563_v57 = vld [vmem:[#allocation15] sm:$0xff]  }
 0x2d6   : > { %v10012_v59 = vpop.f32.mrf.mxu0  ;;  %v3788_v58 = vpop.f32.mrf.mxu1  ;;  %8171 = vmatprep.subr.bf16.mxu1 %v8563_v57 }
 0x2d7   : > { %v3901_v23 = vadd.f32 %v3788_v58, %v9830_v42  ;;  %v10016_v12 = vadd.f32 %v9916_v8, %v3903_v3  ;;  %8172 = vmatpush3.bf16.msra.mxu1 %v8563_v57 }
 0x2d8   : > { %v10018_v21 = vpop.f32.mrf.mxu0  ;;  %v7895_v39 = vpop.f32.mrf.mxu1 }
 0x2d9   : > { %v3906_v46 = vadd.f32 %v7895_v39, %v9836_v31  ;;  %v10022_v32 = vadd.f32 %v9922_v52, %v3901_v23 }
 0x2da   : > { %v10024_v17 = vpop.f32.mrf.mxu0  ;;  %v3801_v24 = vpop.f32.mrf.mxu1 }
 0x2db   : > { %v3904_v28 = vadd.f32 %v3801_v24, %v9842_v7  ;;  %v10028_v50 = vadd.f32 %v9928_v56, %v3906_v46 }
 0x2dc   : > { %v10030_v42 = vpop.f32.mrf.mxu0  ;;  %v7896_v8 = vpop.f32.mrf.mxu1 }
 0x2dd   : > { %v3907_v16 = vadd.f32 %v7896_v8, %v9848_v22  ;;  %v10034_v31 = vadd.f32 %v9934_v36, %v3904_v28 }
 0x2de   : > { %v10036_v52 = vpop.f32.mrf.mxu0  ;;  %v3804_v44 = vpop.f32.mrf.mxu1 }
 0x2df   : > { %v3905_v6 = vadd.f32 %v3804_v44, %v9854_v51  ;;  %v10040_v7 = vadd.f32 %v9940_v18, %v3907_v16 }
 0x2e0   : > { %v10042_v56 = vpop.f32.mrf.mxu0  ;;  %v7899_v3 = vpop.f32.mrf.mxu1 }
 0x2e1   : > { %v3910_v58 = vadd.f32 %v7899_v3, %v9860_v53  ;;  %v10046_v23 = vadd.f32 %v9946_v61, %v3905_v6 }
 0x2e2   : > { %v10048_v22 = vpop.f32.mrf.mxu0  ;;  %v3817_v36 = vpop.f32.mrf.mxu1 }
 0x2e3   : > { %v3908_v39 = vadd.f32 %v3817_v36, %v9866_v1  ;;  %v10052_v46 = vadd.f32 %v9952_v26, %v3910_v58 }
 0x2e4   : > { %v10054_v51 = vpop.f32.mrf.mxu0  ;;  %v7900_v18 = vpop.f32.mrf.mxu1 }
 0x2e5   : > { %v3911_v57 = vadd.f32 %v7900_v18, %v9872_v63  ;;  %v10058_v24 = vadd.f32 %v9958_v9, %v3908_v39 }
 0x2e6   : > { %v10060_v53 = vpop.f32.mrf.mxu0  ;;  %v3820_v61 = vpop.f32.mrf.mxu1 }
 0x2e7   : > { %v3909_v28 = vadd.f32 %v3820_v61, %v9878_v37  ;;  %v10064_v8 = vadd.f32 %v9964_v2, %v3911_v57 }
 0x2e8   : > { %v10066_v1 = vpop.f32.mrf.mxu0  ;;  %v7903_v26 = vpop.f32.mrf.mxu1 }
 0x2e9   : > { %v3914_v16 = vadd.f32 %v7903_v26, %v9884_v45  ;;  %v10070_v44 = vadd.f32 %v9970_v4, %v3909_v28 }
 0x2ea   : > { %v10072_v63 = vpop.f32.mrf.mxu0  ;;  %v3833_v9 = vpop.f32.mrf.mxu1 }
 0x2eb   : > { %v3912_v6 = vadd.f32 %v3833_v9, %v9890_v27  ;;  %v10076_v3 = vadd.f32 %v9976_v43, %v3914_v16 }
 0x2ec   : > { %v10078_v37 = vpop.f32.mrf.mxu0  ;;  %v7904_v2 = vpop.f32.mrf.mxu1 }
 0x2ed   : > { %v3915_v58 = vadd.f32 %v7904_v2, %v9896_v10  ;;  %v10082_v36 = vadd.f32 %v9982_v19, %v3912_v6 }
 0x2ee   : > { %v10084_v45 = vpop.f32.mrf.mxu0  ;;  %v3836_v4 = vpop.f32.mrf.mxu1 }
 0x2ef   : > { %v3913_v39 = vadd.f32 %v3836_v4, %v9902_v55  ;;  %v10088_v18 = vadd.f32 %v9988_v41, %v3915_v58 }
 0x2f0   : > { %v10090_v27 = vpop.f32.mrf.mxu0  ;;  %v7907_v43 = vpop.f32.mrf.mxu1 }
 0x2f1   : > { %v3918_v57 = vadd.f32 %v7907_v43, %v9908_v13  ;;  %v10094_v61 = vadd.f32 %v9994_v62, %v3913_v39 }
 0x2f2   : > { %v10096_v10 = vpop.f32.mrf.mxu0  ;;  %v3849_v19 = vpop.f32.mrf.mxu1 }
 0x2f3   : > { %v3916_v28 = vadd.f32 %v3849_v19, %v9914_v40  ;;  %v10100_v26 = vadd.f32 %v10000_v15, %v3918_v57 }
 0x2f4   : > { %v10102_v55 = vpop.f32.mrf.mxu0  ;;  %v7908_v41 = vpop.f32.mrf.mxu1 }
 0x2f5   : > { %v3919_v16 = vadd.f32 %v7908_v41, %v9920_v38  ;;  %v10106_v9 = vadd.f32 %v10006_v35, %v3916_v28 }
 0x2f6   : > { %v10108_v13 = vpop.f32.mrf.mxu0  ;;  %v3852_v62 = vpop.f32.mrf.mxu1 }
 0x2f7   : > { %v3917_v6 = vadd.f32 %v3852_v62, %v9926_v20  ;;  %v10112_v2 = vadd.f32 %v10012_v59, %v3919_v16 }
 0x2f8   : > { %v10114_v40 = vpop.f32.mrf.mxu0  ;;  %v7911_v15 = vpop.f32.mrf.mxu1 }
 0x2f9   : > { %v3922_v58 = vadd.f32 %v7911_v15, %v9932_v25  ;;  %v10118_v4 = vadd.f32 %v10018_v21, %v3917_v6 }
 0x2fa   : > { %v10120_v38 = vpop.f32.mrf.mxu0  ;;  %v3865_v35 = vpop.f32.mrf.mxu1 }
 0x2fb   : > { %10775 = vst [vmem:[#allocation31_spill] sm:$0xff] %v10118_v4  ;;  %v3920_v39 = vadd.f32 %v3865_v35, %v9938_v47  ;;  %v10124_v43 = vadd.f32 %v10024_v17, %v3922_v58 }
 0x2fc   : > { %v10126_v20 = vpop.f32.mrf.mxu0  ;;  %v7912_v59 = vpop.f32.mrf.mxu1 }
 0x2fd   : > { %v3923_v57 = vadd.f32 %v7912_v59, %v9944_v30  ;;  %v10130_v19 = vadd.f32 %v10030_v42, %v3920_v39 }
 0x2fe   : > { %v8040_v25 = vpop.f32.mrf.mxu0  ;;  %v3868_v28 = vpop.f32.mrf.mxu1 }
 0x2ff   : > { %v3921_v21 = vadd.f32 %v3868_v28, %v9950_v34  ;;  %v10134_v41 = vadd.f32 %v10036_v52, %v3923_v57 }
 0x300   : > { %v10136_v16 = vpop.f32.mrf.mxu0  ;;  %v7915_v47 = vpop.f32.mrf.mxu1 }
 0x301   : > { %v3926_v17 = vadd.f32 %v7915_v47, %v9956_v49  ;;  %v10140_v62 = vadd.f32 %v10042_v56, %v3921_v21 }
 0x302   : > { %v8043_v6 = vpop.f32.mrf.mxu0  ;;  %v3881_v30 = vpop.f32.mrf.mxu1 }
 0x303   : > { %10776 = vst [vmem:[#allocation32_spill] sm:$0xff] %v10140_v62  ;;  %v3924_v42 = vadd.f32 %v3881_v30, %v9962_v54  ;;  %v10144_v15 = vadd.f32 %v10048_v22, %v3926_v17 }
 0x304   : > { %v4975_v58 = vpop.f32.mrf.mxu0  ;;  %v7916_v34 = vpop.f32.mrf.mxu1 }
 0x305   : > { %v3927_v52 = vadd.f32 %v7916_v34, %v9968_v48  ;;  %v10148_v35 = vadd.f32 %v10054_v51, %v3924_v42 }
 0x306   : > { %v8044_v39 = vpop.f32.mrf.mxu0  ;;  %v3884_v59 = vpop.f32.mrf.mxu1 }
 0x307   : > { %v3925_v49 = vadd.f32 %v3884_v59, %v9974_v14  ;;  %v10152_v56 = vadd.f32 %v10060_v53, %v3927_v52 }
 0x308   : > { %v10154_v57 = vpop.f32.mrf.mxu0  ;;  %v7983_v54 = vpop.f32.mrf.mxu1 }
 0x309   : > { %v4670_v22 = vadd.f32 %v7983_v54, %v9980_v60  ;;  %v10158_v28 = vadd.f32 %v10066_v1, %v3925_v49 }
 0x30a   : > { %v8047_v21 = vpop.f32.mrf.mxu0  ;;  %v4541_v48 = vpop.f32.mrf.mxu1 }
 0x30b   : > { %10777 = vst [vmem:[#allocation33_spill] sm:$0xff] %v10158_v28  ;;  %v4668_v51 = vadd.f32 %v4541_v48, %v9986_v5  ;;  %v10162_v47 = vadd.f32 %v10072_v63, %v4670_v22 }
 0x30c   : > { %v4991_v17 = vpop.f32.mrf.mxu0  ;;  %v7984_v14 = vpop.f32.mrf.mxu1 }
 0x30d   : > { %v4671_v53 = vadd.f32 %v7984_v14, %v9992_v11  ;;  %v10166_v30 = vadd.f32 %v10078_v37, %v4668_v51 }
 0x30e   : > { %v8048_v42 = vpop.f32.mrf.mxu0  ;;  %v10168_v34 = vpop.f32.mrf.mxu1 }
 0x30f   : > { %v10171_v60 = vadd.f32 %v10084_v45, %v4671_v53 }
 0x310   : > { %v10173_v1 = vpop.f32.mrf.mxu0  ;;  %v7987_v52 = vpop.f32.mrf.mxu1 }
 0x311   : > { %10778 = vst [vmem:[#allocation34_spill] sm:$0xff] %v10173_v1  ;;  %v4674_v5 = vadd.f32 %v7987_v52, %v10004_v29 }
 0x312   : > { %v8051_v63 = vpop.f32.mrf.mxu0  ;;  %v4557_v59 = vpop.f32.mrf.mxu1 }
 0x313   : > { %v4672_v49 = vadd.f32 %v4557_v59, %v10010_v33  ;;  %v10178_v11 = vadd.f32 %v10096_v10, %v4674_v5 }
 0x314   : > { %v5007_v37 = vpop.f32.mrf.mxu0  ;;  %v7988_v54 = vpop.f32.mrf.mxu1 }
 0x315   : > { %v4675_v22 = vadd.f32 %v7988_v54, %v10016_v12  ;;  %v10182_v48 = vadd.f32 %v10102_v55, %v4672_v49 }
 0x316   : > { %v8052_v45 = vpop.f32.mrf.mxu0  ;;  %v10184_v51 = vpop.f32.mrf.mxu1 }
 0x317   : > { %v10187_v14 = vadd.f32 %v10108_v13, %v4675_v22 }
 0x318   : > { %v10189_v29 = vpop.f32.mrf.mxu0  ;;  %v7991_v53 = vpop.f32.mrf.mxu1 }
 0x319   : > { %10779 = vst [vmem:[#allocation35_spill] sm:$0xff] %v10189_v29  ;;  %v4678_v33 = vadd.f32 %v7991_v53, %v10028_v50 }
 0x31a   : > { %v8055_v10 = vpop.f32.mrf.mxu0  ;;  %v4573_v52 = vpop.f32.mrf.mxu1 }
 0x31b   : > { %v4676_v5 = vadd.f32 %v4573_v52, %v10034_v31  ;;  %v10194_v12 = vadd.f32 %v10120_v38, %v4678_v33 }
 0x31c   : > { %v5023_v55 = vpop.f32.mrf.mxu0  ;;  %v7992_v59 = vpop.f32.mrf.mxu1 }
 0x31d   : > { %v4679_v49 = vadd.f32 %v7992_v59, %v10040_v7  ;;  %v10198_v54 = vadd.f32 %v10126_v20, %v4676_v5 }
 0x31e   : > { %v8056_v13 = vpop.f32.mrf.mxu0  ;;  %v10200_v22 = vpop.f32.mrf.mxu1 }
 0x31f   : > { %v10202_v28 = vadd.f32 %v8040_v25, %v4679_v49 }
 0x320   : > { %v10204_v50 = vpop.f32.mrf.mxu0  ;;  %v7995_v53 = vpop.f32.mrf.mxu1 }
 0x321   : > { %10780 = vst [vmem:[#allocation36_spill] sm:$0xff] %v10204_v50  ;;  %v4682_v31 = vadd.f32 %v7995_v53, %v10052_v46 }
 0x322   : > { %v8059_v52 = vpop.f32.mrf.mxu0  ;;  %v4589_v38 = vpop.f32.mrf.mxu1 }
 0x323   : > { %v4680_v33 = vadd.f32 %v4589_v38, %v10058_v24  ;;  %v10208_v62 = vadd.f32 %v8043_v6, %v4682_v31 }
 0x324   : > { %v5039_v7 = vpop.f32.mrf.mxu0  ;;  %v7996_v59 = vpop.f32.mrf.mxu1 }
 0x325   : > { %v4683_v20 = vadd.f32 %v7996_v59, %v10064_v8  ;;  %v10211_v5 = vadd.f32 %v4975_v58, %v4680_v33 }
 0x326   : > { %v8060_v29 = vpop.f32.mrf.mxu0  ;;  %v10213_v25 = vpop.f32.mrf.mxu1 }
 0x327   : > { %v10215_v49 = vadd.f32 %v8044_v39, %v4683_v20 }
 0x328   : > { %v10217_v50 = vpop.f32.mrf.mxu0  ;;  %v7999_v46 = vpop.f32.mrf.mxu1 }
 0x329   : > { %10781 = vst [vmem:[#allocation37_spill] sm:$0xff] %v10217_v50  ;;  %v4686_v53 = vadd.f32 %v7999_v46, %v10076_v3 }
 0x32a   : > { %v8127_v4 = vpop.f32.mrf.mxu0  ;;  %v4605_v24 = vpop.f32.mrf.mxu1 }
 0x32b   : > { %v4684_v6 = vadd.f32 %v4605_v24, %v10082_v36  ;;  %v10221_v31 = vadd.f32 %v8047_v21, %v4686_v53 }
 0x32c   : > { %v5699_v38 = vpop.f32.mrf.mxu0  ;;  %v8000_v8 = vpop.f32.mrf.mxu1 }
 0x32d   : > { %v4687_v58 = vadd.f32 %v8000_v8, %v10088_v18  ;;  %v10224_v33 = vadd.f32 %v4991_v17, %v4684_v6 }
 0x32e   : > { %v8128_v59 = vpop.f32.mrf.mxu0  ;;  %v10226_v39 = vpop.f32.mrf.mxu1 }
 0x32f   : > { %v10228_v20 = vadd.f32 %v8048_v42, %v4687_v58 }
 0x330   : > { %v10230_v50 = vpop.f32.mrf.mxu0  ;;  %v8003_v3 = vpop.f32.mrf.mxu1 }
 0x331   : > { %v4690_v46 = vadd.f32 %v8003_v3, %v10100_v26 }
 0x332   : > { %v10233_v1 = vpop.f32.mrf.mxu0  ;;  %v4621_v36 = vpop.f32.mrf.mxu1 }
 0x333   : > { %v4688_v21 = vadd.f32 %v4621_v36, %v10106_v9  ;;  %v10236_v53 = vadd.f32 %v8051_v63, %v4690_v46 }
 0x334   : > { %v10238_v18 = vpop.f32.mrf.mxu0  ;;  %v8004_v17 = vpop.f32.mrf.mxu1 }
 0x335   : > { %10782 = vst [vmem:[#allocation38_spill] sm:$0xff] %v10236_v53  ;;  %v4691_v24 = vadd.f32 %v8004_v17, %v10112_v2  ;;  %v10241_v6 = vadd.f32 %v5007_v37, %v4688_v21 }
 0x336   : > { %v10243_v42 = vpop.f32.mrf.mxu0  ;;  %v10245_v8 = vpop.f32.mrf.mxu1 }
 0x337   : > { %v10247_v58 = vadd.f32 %v8052_v45, %v4691_v24 }
 0x338   : > { %v10249_v26 = vpop.f32.mrf.mxu0  ;;  %v8007_v3 = vpop.f32.mrf.mxu1 }
 0x339   : > { %10783 = vst [vmem:[#allocation39_spill] sm:$0xff] %v10247_v58  ;;  %v4694_v9 = vadd.f32 %v8007_v3, %v10124_v43 }
 0x33a   : > { %v10252_v63 = vpop.f32.mrf.mxu0  ;;  %v4637_v46 = vpop.f32.mrf.mxu1 }
 0x33b   : > { %v4692_v36 = vadd.f32 %v4637_v46, %v10130_v19  ;;  %v10255_v53 = vadd.f32 %v8055_v10, %v4694_v9 }
 0x33c   : > { %v10257_v2 = vpop.f32.mrf.mxu0  ;;  %v8008_v37 = vpop.f32.mrf.mxu1 }
 0x33d   : > { %10784 = vst [vmem:[#allocation40_spill] sm:$0xff] %v10255_v53  ;;  %v4695_v21 = vadd.f32 %v8008_v37, %v10134_v41  ;;  %v10260_v17 = vadd.f32 %v5023_v55, %v4692_v36 }
 0x33e   : > { %v10262_v45 = vpop.f32.mrf.mxu0  ;;  %v10264_v24 = vpop.f32.mrf.mxu1 }
 0x33f   : > { %v10266_v58 = vadd.f32 %v8056_v13, %v4695_v21 }
 0x340   : > { %v10268_v43 = vpop.f32.mrf.mxu0  ;;  %v8011_v3 = vpop.f32.mrf.mxu1 }
 0x341   : > { %10785 = vst [vmem:[#allocation41_spill] sm:$0xff] %v10266_v58  ;;  %v4698_v19 = vadd.f32 %v8011_v3, %v10144_v15  ;;  %v4669_v3 = vadd.f32 %v10168_v34, %v9998_v0 }
 0x342   : > { %v10271_v10 = vpop.f32.mrf.mxu0  ;;  %v4653_v9 = vpop.f32.mrf.mxu1 }
 0x343   : > { %v4696_v46 = vadd.f32 %v4653_v9, %v10148_v35  ;;  %v10274_v53 = vadd.f32 %v8059_v52, %v4698_v19  ;;  %v5055_v0 = vadd.f32 %v10090_v27, %v4669_v3  ;;  %v4673_v3 = vadd.f32 %v10184_v51, %v10022_v32 }
 0x344   : > { %v10276_v41 = vpop.f32.mrf.mxu0  ;;  %v8012_v55 = vpop.f32.mrf.mxu1 }
 0x345   : > { %v4699_v36 = vadd.f32 %v8012_v55, %v10152_v56  ;;  %v10279_v37 = vadd.f32 %v5039_v7, %v4696_v46  ;;  %v10295_v56 = vld [vmem:[%s10649_s7] ss:$0 sm:$0xff] }
 0x346   : > { %v10281_v13 = vpop.f32.mrf.mxu0  ;;  %v10283_v21 = vpop.f32.mrf.mxu1 }
 0x347   : > { %v10285_v58 = vadd.f32 %v8060_v29, %v4699_v36 }
 0x348   : > { %v8079_v15 = vpop.f32.mrf.mxu1  ;;  %v10290_v52 = vpop.f32.mrf.mxu0 }
 0x349   : > { %10786 = vst [vmem:[#allocation42_spill] sm:$0xff] %v10285_v58  ;;  %v5442_v35 = vadd.f32 %v8079_v15, %v10162_v47  ;;  %v10304_v47 = vld [vmem:[%s10787_s3] ss:$0 sm:$0xff] }
 0x34a   : > { %v5313_v7 = vpop.f32.mrf.mxu1  ;;  %v10306_v34 = vpop.f32.mrf.mxu0 }
 0x34b   : > { %v5828_v19 = vadd.f32 %v8127_v4, %v5442_v35  ;;  %v5440_v9 = vadd.f32 %v5313_v7, %v10166_v30 }
 0x34c   : > { %v8080_v46 = vpop.f32.mrf.mxu1 }
 0x34d   : > { %v5867_v29 = vmul.f32 %v10295_v56, %v5828_v19  ;;  %v5826_v55 = vadd.f32 %v5699_v38, %v5440_v9  ;;  %v5443_v36 = vadd.f32 %v8080_v46, %v10171_v60  ;;  %v10315_v19 = vpop.f32.mrf.mxu0 }
 0x34e   : > { %v5316_v15 = vpop.f32.mrf.mxu1 }
 0x34f   : > { %v5829_v58 = vadd.f32 %v8128_v59, %v5443_v36  ;;  %v5441_v4 = vadd.f32 %v5316_v15, %v5055_v0  ;;  %v5865_v30 = vmul.f32 %v10295_v56, %v5826_v55  ;;  %v5906_v7 = vadd.f32 %v10304_v47, %v5867_v29  ;;  %v10324_v51 = vpop.f32.mrf.mxu0 }
 0x350   : > { %v8083_v35 = vpop.f32.mrf.mxu1 }
 0x351   : > { %v5868_v38 = vmul.f32 %v10295_v56, %v5829_v58  ;;  %v5827_v60 = vadd.f32 %v10230_v50, %v5441_v4  ;;  %v5446_v27 = vadd.f32 %v8083_v35, %v10178_v11  ;;  %v5904_v58 = vadd.f32 %v10304_v47, %v5865_v30 }
 0x352   : > { %v5329_v9 = vpop.f32.mrf.mxu1  ;;  %v5938_v50 = vmax.f32 %v5906_v7, 0.0  ;;  %v5059_v4 = vadd.f32 %v10114_v40, %v4673_v3  ;;  %v10335_v40 = vpop.f32.mrf.mxu0 }
 0x353   : > { %v5907_v59 = vadd.f32 %v10304_v47, %v5868_v38  ;;  %v5866_v46 = vmul.f32 %v10295_v56, %v5827_v60  ;;  %v5832_v55 = vadd.f32 %v10233_v1, %v5446_v27  ;;  %v5444_v29 = vadd.f32 %v5329_v9, %v10182_v48 }
 0x354   : > { %v8084_v36 = vpop.f32.mrf.mxu1  ;;  %v5936_v27 = vmax.f32 %v5904_v58, 0.0 }
 0x355   : > { %v5939_v0 = vmax.f32 %v5907_v59, 0.0  ;;  %v5830_v11 = vadd.f32 %v10238_v18, %v5444_v29  ;;  %v5447_v32 = vadd.f32 %v8084_v36, %v10187_v14  ;;  %v5871_v15 = vmul.f32 %v10295_v56, %v5832_v55 }
 0x356   : > { %v5332_v35 = vpop.f32.mrf.mxu1  ;;  %v5905_v1 = vadd.f32 %v10304_v47, %v5866_v46  ;;  %v4677_v14 = vadd.f32 %v10200_v22, %v10046_v23 }
 0x357   : > { %v5969_v38 = vpack.c.bf16 %v5939_v0, %v5938_v50  ;;  %v5833_v48 = vadd.f32 %v10243_v42, %v5447_v32  ;;  %v5869_v30 = vmul.f32 %v10295_v56, %v5830_v11  ;;  %v5445_v7 = vadd.f32 %v5332_v35, %v5059_v4 }
 0x358   : > { %v8087_v60 = vpop.f32.mrf.mxu1  ;;  %v5937_v18 = vmax.f32 %v5905_v1, 0.0  ;;  %v5910_v3 = vadd.f32 %v10304_v47, %v5871_v15  ;;  %v10347_v15 = vpop.f32.mrf.mxu0 }
 0x359   : > { %v5872_v9 = vmul.f32 %v10295_v56, %v5833_v48  ;;  %v5450_v59 = vadd.f32 %v8087_v60, %v10194_v12  ;;  %v5831_v46 = vadd.f32 %v10249_v26, %v5445_v7  ;;  %v5908_v12 = vadd.f32 %v10304_v47, %v5869_v30 }
 0x35a   : > { %v5345_v42 = vpop.f32.mrf.mxu1  ;;  %v5968_v55 = vpack.c.bf16 %v5937_v18, %v5936_v27  ;;  %v5063_v26 = vadd.f32 %v10136_v16, %v4677_v14  ;;  %v5942_v32 = vmax.f32 %v5910_v3, 0.0  ;;  %v4681_v16 = vadd.f32 %v10213_v25, %v10070_v44  ;;  %v10358_v18 = vpop.f32.mrf.mxu0 }
 0x35b   : > { %v5911_v29 = vadd.f32 %v10304_v47, %v5872_v9  ;;  %v5836_v36 = vadd.f32 %v10252_v63, %v5450_v59  ;;  %v5448_v58 = vadd.f32 %v5345_v42, %v10198_v54  ;;  %v5870_v23 = vmul.f32 %v10295_v56, %v5831_v46 }
 0x35c   : > { %8173 = vmatprep.mubr.bf16.mxu1 %v5968_v55  ;;  %v8088_v22 = vpop.f32.mrf.mxu1 }
 0x35d   : > { %v5943_v50 = vmax.f32 %v5911_v29, 0.0  ;;  %v5834_v0 = vadd.f32 %v10257_v2, %v5448_v58  ;;  %v5451_v11 = vadd.f32 %v8088_v22, %v10202_v28  ;;  %8174 = vmatmul.mubr.bf16.vlgmr.msra.gmra.mxu1 %v5969_v38  ;;  %v5875_v63 = vmul.f32 %v10295_v56, %v5836_v36  ;;  %v10369_v36 = vpop.f32.mrf.mxu0 }
 0x35e   : > { %v5348_v54 = vpop.f32.mrf.mxu1  ;;  %v5909_v4 = vadd.f32 %v10304_v47, %v5870_v23  ;;  %v5940_v2 = vmax.f32 %v5908_v12, 0.0  ;;  %v5067_v29 = vadd.f32 %v10154_v57, %v4681_v16  ;;  %v4685_v57 = vadd.f32 %v10226_v39, %v10094_v61 }
 0x35f   : > { %v5837_v35 = vadd.f32 %v10262_v45, %v5451_v11  ;;  %v5449_v1 = vadd.f32 %v5348_v54, %v5063_v26  ;;  %v5873_v48 = vmul.f32 %v10295_v56, %v5834_v0  ;;  %v5971_v28 = vpack.c.bf16 %v5943_v50, %v5942_v32  ;;  %v5782_v54 = vpop.f32.mrf.mxu0 }
 0x360   : > { %v8091_v30 = vpop.f32.mrf.mxu1  ;;  %v5941_v7 = vmax.f32 %v5909_v4, 0.0  ;;  %v5914_v45 = vadd.f32 %v10304_v47, %v5875_v63 }
 0x361   : > { %v5876_v38 = vmul.f32 %v10295_v56, %v5837_v35  ;;  %v5835_v60 = vadd.f32 %v10268_v43, %v5449_v1  ;;  %v5454_v27 = vadd.f32 %v8091_v30, %v10208_v62  ;;  %v5912_v43 = vadd.f32 %v10304_v47, %v5873_v48 }
 0x362   : > { %v5361_v14 = vpop.f32.mrf.mxu1  ;;  %v5970_v9 = vpack.c.bf16 %v5941_v7, %v5940_v2  ;;  %v5946_v58 = vmax.f32 %v5914_v45, 0.0 }
 0x363   : > { %v5915_v59 = vadd.f32 %v10304_v47, %v5876_v38  ;;  %v5874_v3 = vmul.f32 %v10295_v56, %v5835_v60  ;;  %v5840_v46 = vadd.f32 %v10271_v10, %v5454_v27  ;;  %v5452_v44 = vadd.f32 %v5361_v14, %v10211_v5  ;;  %v8151_v38 = vpop.f32.mrf.mxu0 }
 0x364   : > { %8177 = vmatprep.mubr.bf16.mxu1 %v5970_v9  ;;  %v8092_v25 = vpop.f32.mrf.mxu1 }
 0x365   : > { %v5947_v42 = vmax.f32 %v5915_v59, 0.0  ;;  %v5838_v62 = vadd.f32 %v10276_v41, %v5452_v44  ;;  %v5455_v55 = vadd.f32 %v8092_v25, %v10215_v49  ;;  %8178 = vmatmul.mubr.bf16.gmra.mxu1 %v5971_v28  ;;  %v5879_v23 = vmul.f32 %v10295_v56, %v5840_v46  ;;  %v10788_v28 = vld [vmem:[#allocation34_spill] sm:$0xff] }
 0x366   : > { %v5364_v10 = vpop.f32.mrf.mxu1  ;;  %v5913_v5 = vadd.f32 %v10304_v47, %v5874_v3  ;;  %v5944_v41 = vmax.f32 %v5912_v43, 0.0  ;;  %v5071_v16 = vadd.f32 %v10788_v28, %v4685_v57 }
 0x367   : > { %v5841_v22 = vadd.f32 %v10281_v13, %v5455_v55  ;;  %v5453_v12 = vadd.f32 %v5364_v10, %v5067_v29  ;;  %v5877_v50 = vmul.f32 %v10295_v56, %v5838_v62  ;;  %v5973_v49 = vpack.c.bf16 %v5947_v42, %v5946_v58  ;;  %v10790_v42 = vld [vmem:[#allocation38_spill] sm:$0xff]  ;;  %v5795_v55 = vpop.f32.mrf.mxu0 }
 0x368   : > { %v8095_v0 = vpop.f32.mrf.mxu1  ;;  %v5945_v11 = vmax.f32 %v5913_v5, 0.0  ;;  %v5918_v4 = vadd.f32 %v10304_v47, %v5879_v23 }
 0x369   : > { %v5880_v26 = vmul.f32 %v10295_v56, %v5841_v22  ;;  %v5839_v32 = vadd.f32 %v10290_v52, %v5453_v12  ;;  %v5458_v63 = vadd.f32 %v8095_v0, %v10221_v31  ;;  %v5916_v39 = vadd.f32 %v10304_v47, %v5877_v50  ;;  %v10791_v0 = vld [vmem:[#allocation39_spill] sm:$0xff]  ;;  %v8152_v57 = vpop.f32.mrf.mxu0 }
 0x36a   : > { %v5377_v13 = vpop.f32.mrf.mxu1  ;;  %v5972_v35 = vpack.c.bf16 %v5945_v11, %v5944_v41  ;;  %v5950_v60 = vmax.f32 %v5918_v4, 0.0  ;;  %v10792_v11 = vld [vmem:[#allocation35_spill] sm:$0xff] }
 0x36b   : > { %v5919_v1 = vadd.f32 %v10304_v47, %v5880_v26  ;;  %v5878_v48 = vmul.f32 %v10295_v56, %v5839_v32  ;;  %v5844_v30 = vadd.f32 %v10306_v34, %v5458_v63  ;;  %v5456_v2 = vadd.f32 %v5377_v13, %v10224_v33 }
 0x36c   : > { %8181 = vmatprep.mubr.bf16.mxu1 %v5972_v35  ;;  %v8096_v61 = vpop.f32.mrf.mxu1  ;;  %v5948_v3 = vmax.f32 %v5916_v39, 0.0 }
 0x36d   : > { %v5951_v52 = vmax.f32 %v5919_v1, 0.0  ;;  %v5842_v31 = vadd.f32 %v10315_v19, %v5456_v2  ;;  %v5459_v7 = vadd.f32 %v8096_v61, %v10228_v20  ;;  %8182 = vmatmul.mubr.bf16.gmra.mxu1 %v5973_v49  ;;  %v5883_v27 = vmul.f32 %v10295_v56, %v5844_v30  ;;  %v10789_v20 = vld [vmem:[#allocation31_spill] sm:$0xff]  ;;  %v10793_v30 = vld [vmem:[#allocation32_spill] sm:$0xff] }
 0x36e   : > { %v5380_v45 = vpop.f32.mrf.mxu1  ;;  %v5917_v34 = vadd.f32 %v10304_v47, %v5878_v48  ;;  %v4689_v44 = vadd.f32 %v10245_v8, %v10789_v20  ;;  %v4693_v2 = vadd.f32 %v10264_v24, %v10793_v30 }
 0x36f   : > { %v5845_v33 = vadd.f32 %v10324_v51, %v5459_v7  ;;  %v5457_v14 = vadd.f32 %v5380_v45, %v5071_v16  ;;  %v5881_v9 = vmul.f32 %v10295_v56, %v5842_v31  ;;  %v5975_v46 = vpack.c.bf16 %v5951_v52, %v5950_v60  ;;  %v10794_v52 = vld [vmem:[#allocation40_spill] sm:$0xff]  ;;  %v5798_v7 = vpop.f32.mrf.mxu0 }
 0x370   : > { %v8099_v59 = vpop.f32.mrf.mxu1  ;;  %v5949_v19 = vmax.f32 %v5917_v34, 0.0  ;;  %v5922_v29 = vadd.f32 %v10304_v47, %v5883_v27  ;;  %v5075_v49 = vadd.f32 %v10792_v11, %v4689_v44 }
 0x371   : > { %v5884_v25 = vmul.f32 %v10295_v56, %v5845_v33  ;;  %v5843_v43 = vadd.f32 %v10335_v40, %v5457_v14  ;;  %v5462_v62 = vadd.f32 %v8099_v59, %v10790_v42  ;;  %v5920_v12 = vadd.f32 %v10304_v47, %v5881_v9  ;;  %v8155_v24 = vpop.f32.mrf.mxu0  ;;  %v10795_v59 = vld [vmem:[#allocation41_spill] sm:$0xff] }
 0x372   : > { %v5393_v51 = vpop.f32.mrf.mxu1  ;;  %v5974_v58 = vpack.c.bf16 %v5949_v19, %v5948_v3  ;;  %v5954_v26 = vmax.f32 %v5922_v29, 0.0  ;;  %v10796_v19 = vld [vmem:[#allocation36_spill] sm:$0xff] }
 0x373   : > { %v5923_v23 = vadd.f32 %v10304_v47, %v5884_v25  ;;  %v5882_v10 = vmul.f32 %v10295_v56, %v5843_v43  ;;  %v5848_v5 = vadd.f32 %v10347_v15, %v5462_v62  ;;  %v5460_v22 = vadd.f32 %v5393_v51, %v10241_v6  ;;  %v10797_v43 = vld [vmem:[#allocation33_spill] sm:$0xff]  ;;  %v5811_v51 = vpop.f32.mrf.mxu0 }
 0x374   : > { %8185 = vmatprep.mubr.bf16.mxu1 %v5974_v58  ;;  %v8100_v8 = vpop.f32.mrf.mxu1  ;;  %v5952_v1 = vmax.f32 %v5920_v12, 0.0 }
 0x375   : > { %v5955_v40 = vmax.f32 %v5923_v23, 0.0  ;;  %v5846_v50 = vadd.f32 %v10358_v18, %v5460_v22  ;;  %v5463_v41 = vadd.f32 %v8100_v8, %v10791_v0  ;;  %8186 = vmatmul.mubr.bf16.gmra.mxu1 %v5975_v46  ;;  %v5887_v32 = vmul.f32 %v10295_v56, %v5848_v5 }
 0x376   : > { %v5396_v63 = vpop.f32.mrf.mxu1  ;;  %v5921_v15 = vadd.f32 %v10304_v47, %v5882_v10  ;;  %v5079_v46 = vadd.f32 %v10796_v19, %v4693_v2  ;;  %v6289_v19 = vld [vmem:[%s9103_s10 + $0x10] sm:$0xff] }
 0x377   : > { %v5849_v6 = vadd.f32 %v10369_v36, %v5463_v41  ;;  %v5461_v4 = vadd.f32 %v5396_v63, %v5075_v49  ;;  %v5885_v13 = vmul.f32 %v10295_v56, %v5846_v50  ;;  %v5977_v48 = vpack.c.bf16 %v5955_v40, %v5954_v26  ;;  %v8156_v49 = vpop.f32.mrf.mxu0  ;;  %v10798_v26 = vld [vmem:[#allocation37_spill] sm:$0xff] }
 0x378   : > { %v8103_v35 = vpop.f32.mrf.mxu1  ;;  %v5953_v18 = vmax.f32 %v5921_v15, 0.0  ;;  %v5926_v28 = vadd.f32 %v10304_v47, %v5887_v32 }
 0x379   : > { %v5888_v61 = vmul.f32 %v10295_v56, %v5849_v6  ;;  %v5847_v39 = vadd.f32 %v5782_v54, %v5461_v4  ;;  %v5466_v31 = vadd.f32 %v8103_v35, %v10794_v52  ;;  %v5924_v14 = vadd.f32 %v10304_v47, %v5885_v13  ;;  %v10799_v4 = vld [vmem:[#allocation42_spill] sm:$0xff]  ;;  %v5814_v2 = vpop.f32.mrf.mxu0 }
 0x37a   : > { %v5409_v16 = vpop.f32.mrf.mxu1  ;;  %v5976_v36 = vpack.c.bf16 %v5953_v18, %v5952_v1  ;;  %v5958_v20 = vmax.f32 %v5926_v28, 0.0 }
 0x37b   : > { %v5927_v60 = vadd.f32 %v10304_v47, %v5888_v61  ;;  %v5886_v27 = vmul.f32 %v10295_v56, %v5847_v39  ;;  %v5852_v45 = vadd.f32 %v8151_v38, %v5466_v31  ;;  %v5464_v34 = vadd.f32 %v5409_v16, %v10260_v17 }
 0x37c   : > { %8189 = vmatprep.mubr.bf16.mxu1 %v5976_v36  ;;  %v8104_v33 = vpop.f32.mrf.mxu1  ;;  %v4697_v17 = vadd.f32 %v10283_v21, %v10797_v43  ;;  %v5956_v58 = vmax.f32 %v5924_v14, 0.0 }
 0x37d   : > { %v5959_v54 = vmax.f32 %v5927_v60, 0.0  ;;  %v5850_v9 = vadd.f32 %v5795_v55, %v5464_v34  ;;  %v5467_v3 = vadd.f32 %v8104_v33, %v10795_v59  ;;  %8190 = vmatmul.mubr.bf16.gmra.mxu1 %v5977_v48  ;;  %v5891_v44 = vmul.f32 %v10295_v56, %v5852_v45 }
 0x37e   : > { %v5412_v25 = vpop.f32.mrf.mxu1  ;;  %v5925_v38 = vadd.f32 %v10304_v47, %v5886_v27  ;;  %v5083_v32 = vadd.f32 %v10798_v26, %v4697_v17 }
 0x37f   : > { %v5853_v42 = vadd.f32 %v8152_v57, %v5467_v3  ;;  %v5465_v62 = vadd.f32 %v5412_v25, %v5079_v46  ;;  %v5889_v29 = vmul.f32 %v10295_v56, %v5850_v9  ;;  %v5979_v10 = vpack.c.bf16 %v5959_v54, %v5958_v20  ;;  %v10453_v3 = vld [vmem:[%s10801_s29] ss:$0 sm:$0xff] }
 0x380   : > { %v8107_v55 = vpop.f32.mrf.mxu1  ;;  %v5957_v23 = vmax.f32 %v5925_v38, 0.0  ;;  %v5930_v12 = vadd.f32 %v10304_v47, %v5891_v44  ;;  %v6287_v25 = vld [vmem:[%s9103_s10] sm:$0xff] }
 0x381   : > { %v5892_v5 = vmul.f32 %v10295_v56, %v5853_v42  ;;  %v5851_v22 = vadd.f32 %v5798_v7, %v5465_v62  ;;  %v5470_v8 = vadd.f32 %v8107_v55, %v10274_v53  ;;  %v5928_v63 = vadd.f32 %v10304_v47, %v5889_v29  ;;  %v6290_v62 = vld [vmem:[%s9103_s10 + $0x18] sm:$0xff] }
 0x382   : > { %v5425_v40 = vpop.f32.mrf.mxu1  ;;  %v5978_v50 = vpack.c.bf16 %v5957_v23, %v5956_v58  ;;  %v5962_v35 = vmax.f32 %v5930_v12, 0.0 }
 0x383   : > { %v5931_v21 = vadd.f32 %v10304_v47, %v5892_v5  ;;  %v5890_v0 = vmul.f32 %v10295_v56, %v5851_v22  ;;  %v5856_v41 = vadd.f32 %v8155_v24, %v5470_v8  ;;  %v5468_v11 = vadd.f32 %v5425_v40, %v10279_v37 }
 0x384   : > { %8193 = vmatprep.mubr.bf16.mxu1 %v5978_v50  ;;  %v8108_v57 = vpop.f32.mrf.mxu1  ;;  %v5960_v61 = vmax.f32 %v5928_v63, 0.0  ;;  %v6293_v50 = vld [vmem:[%s9103_s10 + $0x30] sm:$0xff] }
 0x385   : > { %v5963_v15 = vmax.f32 %v5931_v21, 0.0  ;;  %v5895_v53 = vmul.f32 %v10295_v56, %v5856_v41  ;;  %v5854_v6 = vadd.f32 %v5811_v51, %v5468_v11  ;;  %v5471_v13 = vadd.f32 %v8108_v57, %v10799_v4  ;;  %8194 = vmatmul.mubr.bf16.gmra.mxu1 %v5979_v10  ;;  %v6288_v10 = vld [vmem:[%s9103_s10 + $0x8] sm:$0xff]  ;;  %v6291_v57 = vld [vmem:[%s9103_s10 + $0x20] sm:$0xff] }
 0x386   : > { %v5428_v1 = vpop.f32.mrf.mxu1  ;;  %v5929_v18 = vadd.f32 %v10304_v47, %v5890_v0 }
 0x387   : > { %v5893_v37 = vmul.f32 %v10295_v56, %v5854_v6  ;;  %v5857_v48 = vadd.f32 %v8156_v49, %v5471_v13  ;;  %v5469_v30 = vadd.f32 %v5428_v1, %v5083_v32  ;;  %v5981_v52 = vpack.c.bf16 %v5963_v15, %v5962_v35  ;;  %v6294_v6 = vld [vmem:[%s9103_s10 + $0x38] sm:$0xff] }
 0x388   : > { %v5961_v39 = vmax.f32 %v5929_v18, 0.0  ;;  %v5934_v31 = vadd.f32 %v10304_v47, %v5895_v53 }
 0x389   : > { %v5896_v7 = vmul.f32 %v10295_v56, %v5857_v48  ;;  %v5855_v28 = vadd.f32 %v5814_v2, %v5469_v30  ;;  %v5932_v27 = vadd.f32 %v10304_v47, %v5893_v37  ;;  %v6292_v37 = vld [vmem:[%s9103_s10 + $0x28] sm:$0xff] }
 0x38a   : > { %v5980_v16 = vpack.c.bf16 %v5961_v39, %v5960_v61  ;;  %v5966_v45 = vmax.f32 %v5934_v31, 0.0 }
 0x38b   : > { %v5935_v36 = vadd.f32 %v10304_v47, %v5896_v7  ;;  %v5894_v60 = vmul.f32 %v10295_v56, %v5855_v28  ;;  %v5964_v24 = vmax.f32 %v5932_v27, 0.0  ;;  %v10448_v56 = vld [vmem:[%s10800_s23] ss:$0 sm:$0xff] }
 0x38c   : > { %8197 = vmatprep.mubr.bf16.mxu1 %v5980_v16 }
 0x38d   : > { %v5967_v34 = vmax.f32 %v5935_v36, 0.0  ;;  %8198 = vmatmul.mubr.bf16.gmra.mxu1 %v5981_v52  ;;  %v5933_v33 = vadd.f32 %v10304_v47, %v5894_v60  ;;  %v6297_v52 = vld [vmem:[%s9103_s10 + $0x50] sm:$0xff]  ;;  %v6295_v60 = vld [vmem:[%s9103_s10 + $0x40] sm:$0xff] }
 0x38f   : > { %v5965_v14 = vmax.f32 %v5933_v33, 0.0  ;;  %v5983_v54 = vpack.c.bf16 %v5967_v34, %v5966_v45 }
 0x391   : > { %v5982_v9 = vpack.c.bf16 %v5965_v14, %v5964_v24  ;;  %v6298_v14 = vld [vmem:[%s9103_s10 + $0x58] sm:$0xff] }
 0x393   : > { %8201 = vmatprep.mubr.bf16.mxu1 %v5982_v9 }
 0x395   : > { %8202 = vmatmul.mubr.bf16.gmra.mxu1 %v5983_v54 }
 0x41d   : > { %v8175_v59 = vpop.f32.mrf.mxu1 }
 0x41e   : > { %v6218_v47 = vmul.f32 %v8175_v59, %v10448_v56 }
 0x41f   : > { %v6082_v46 = vpop.f32.mrf.mxu1 }
 0x420   : > { %v6257_v20 = vadd.f32 %v10453_v3, %v6218_v47  ;;  %v6216_v44 = vmul.f32 %v10448_v56, %v6082_v46  ;;  %v6296_v46 = vld [vmem:[%s9103_s10 + $0x48] sm:$0xff] }
 0x421   : > { %v8176_v38 = vpop.f32.mrf.mxu1 }
 0x422   : > { %v6321_v43 = vadd.f32 %v6289_v19, %v6257_v20  ;;  %v6255_v17 = vadd.f32 %v10453_v3, %v6216_v44  ;;  %v6219_v42 = vmul.f32 %v8176_v38, %v10448_v56 }
 0x423   : > { %v6085_v29 = vpop.f32.mrf.mxu1 }
 0x424   : > { %v6353_v51 = vmax.f32 %v6321_v43, 0.0  ;;  %v6319_v55 = vadd.f32 %v6287_v25, %v6255_v17  ;;  %v6258_v58 = vadd.f32 %v10453_v3, %v6219_v42  ;;  %v6217_v23 = vmul.f32 %v10448_v56, %v6085_v29  ;;  %v6301_v17 = vld [vmem:[%s9103_s10 + $0x70] sm:$0xff] }
 0x425   : > { %v8179_v5 = vpop.f32.mrf.mxu1 }
 0x426   : > { %6385 = vst [vmem:[%s10468_s17 + $0x10] sm:$0xff] %v6353_v51  ;;  %v6351_v22 = vmax.f32 %v6319_v55, 0.0  ;;  %v6322_v8 = vadd.f32 %v6290_v62, %v6258_v58  ;;  %v6256_v12 = vadd.f32 %v10453_v3, %v6217_v23  ;;  %v6222_v40 = vmul.f32 %v8179_v5, %v10448_v56  ;;  %v6299_v58 = vld [vmem:[%s9103_s10 + $0x60] sm:$0xff] }
 0x427   : > { %v6098_v21 = vpop.f32.mrf.mxu1 }
 0x428   : > { %6383 = vst [vmem:[%s10468_s17] sm:$0xff] %v6351_v22  ;;  %v6354_v0 = vmax.f32 %v6322_v8, 0.0  ;;  %v6320_v41 = vadd.f32 %v6288_v10, %v6256_v12  ;;  %v6261_v11 = vadd.f32 %v10453_v3, %v6222_v40  ;;  %v6220_v49 = vmul.f32 %v10448_v56, %v6098_v21  ;;  %v6302_v12 = vld [vmem:[%s9103_s10 + $0x78] sm:$0xff] }
 0x429   : > { %v8180_v26 = vpop.f32.mrf.mxu1 }
 0x42a   : > { %6386 = vst [vmem:[%s10468_s17 + $0x18] sm:$0xff] %v6354_v0  ;;  %v6352_v32 = vmax.f32 %v6320_v41, 0.0  ;;  %v6325_v63 = vadd.f32 %v6293_v50, %v6261_v11  ;;  %v6259_v15 = vadd.f32 %v10453_v3, %v6220_v49  ;;  %v6223_v53 = vmul.f32 %v8180_v26, %v10448_v56  ;;  %v6300_v11 = vld [vmem:[%s9103_s10 + $0x68] sm:$0xff] }
 0x42b   : > { %v6101_v4 = vpop.f32.mrf.mxu1 }
 0x42c   : > { %6384 = vst [vmem:[%s10468_s17 + $0x8] sm:$0xff] %v6352_v32  ;;  %v6357_v13 = vmax.f32 %v6325_v63, 0.0  ;;  %v6323_v35 = vadd.f32 %v6291_v57, %v6259_v15  ;;  %v6262_v1 = vadd.f32 %v10453_v3, %v6223_v53  ;;  %v6221_v18 = vmul.f32 %v10448_v56, %v6101_v4  ;;  %v6305_v15 = vld [vmem:[%s9103_s10 + $0x90] sm:$0xff] }
 0x42d   : > { %v8183_v48 = vpop.f32.mrf.mxu1 }
 0x42e   : > { %6389 = vst [vmem:[%s10468_s17 + $0x30] sm:$0xff] %v6357_v13  ;;  %v6355_v30 = vmax.f32 %v6323_v35, 0.0  ;;  %v6326_v2 = vadd.f32 %v6294_v6, %v6262_v1  ;;  %v6260_v61 = vadd.f32 %v10453_v3, %v6221_v18  ;;  %v6226_v39 = vmul.f32 %v8183_v48, %v10448_v56  ;;  %v6303_v1 = vld [vmem:[%s9103_s10 + $0x80] sm:$0xff] }
 0x42f   : > { %v6114_v31 = vpop.f32.mrf.mxu1 }
 0x430   : > { %6387 = vst [vmem:[%s10468_s17 + $0x20] sm:$0xff] %v6355_v30  ;;  %v6358_v7 = vmax.f32 %v6326_v2, 0.0  ;;  %v6324_v28 = vadd.f32 %v6292_v37, %v6260_v61  ;;  %v6265_v16 = vadd.f32 %v10453_v3, %v6226_v39  ;;  %v6224_v36 = vmul.f32 %v10448_v56, %v6114_v31  ;;  %v6306_v61 = vld [vmem:[%s9103_s10 + $0x98] sm:$0xff] }
 0x431   : > { %v8184_v27 = vpop.f32.mrf.mxu1 }
 0x432   : > { %6390 = vst [vmem:[%s10468_s17 + $0x38] sm:$0xff] %v6358_v7  ;;  %v6356_v45 = vmax.f32 %v6324_v28, 0.0  ;;  %v6329_v34 = vadd.f32 %v6297_v52, %v6265_v16  ;;  %v6263_v33 = vadd.f32 %v10453_v3, %v6224_v36  ;;  %v6227_v24 = vmul.f32 %v8184_v27, %v10448_v56  ;;  %v6304_v16 = vld [vmem:[%s9103_s10 + $0x88] sm:$0xff] }
 0x433   : > { %v6117_v54 = vpop.f32.mrf.mxu1 }
 0x434   : > { %6388 = vst [vmem:[%s10468_s17 + $0x28] sm:$0xff] %v6356_v45  ;;  %v6361_v9 = vmax.f32 %v6329_v34, 0.0  ;;  %v6327_v59 = vadd.f32 %v6295_v60, %v6263_v33  ;;  %v6266_v47 = vadd.f32 %v10453_v3, %v6227_v24  ;;  %v6225_v19 = vmul.f32 %v10448_v56, %v6117_v54  ;;  %v6309_v33 = vld [vmem:[%s9103_s10 + $0xb0] sm:$0xff] }
 0x435   : > { %v8187_v20 = vpop.f32.mrf.mxu1 }
 0x436   : > { %6393 = vst [vmem:[%s10468_s17 + $0x50] sm:$0xff] %v6361_v9  ;;  %v6359_v44 = vmax.f32 %v6327_v59, 0.0  ;;  %v6330_v25 = vadd.f32 %v6298_v14, %v6266_v47  ;;  %v6264_v38 = vadd.f32 %v10453_v3, %v6225_v19  ;;  %v6230_v43 = vmul.f32 %v8187_v20, %v10448_v56  ;;  %v6307_v47 = vld [vmem:[%s9103_s10 + $0xa0] sm:$0xff] }
 0x437   : > { %v6130_v42 = vpop.f32.mrf.mxu1 }
 0x438   : > { %6391 = vst [vmem:[%s10468_s17 + $0x40] sm:$0xff] %v6359_v44  ;;  %v6362_v62 = vmax.f32 %v6330_v25, 0.0  ;;  %v6328_v29 = vadd.f32 %v6296_v46, %v6264_v38  ;;  %v6269_v51 = vadd.f32 %v10453_v3, %v6230_v43  ;;  %v6228_v55 = vmul.f32 %v10448_v56, %v6130_v42  ;;  %v6310_v38 = vld [vmem:[%s9103_s10 + $0xb8] sm:$0xff] }
 0x439   : > { %v8188_v23 = vpop.f32.mrf.mxu1 }
 0x43a   : > { %6394 = vst [vmem:[%s10468_s17 + $0x58] sm:$0xff] %v6362_v62  ;;  %v6360_v10 = vmax.f32 %v6328_v29, 0.0  ;;  %v6333_v5 = vadd.f32 %v6301_v17, %v6269_v51  ;;  %v6267_v22 = vadd.f32 %v10453_v3, %v6228_v55  ;;  %v6231_v8 = vmul.f32 %v8188_v23, %v10448_v56  ;;  %v6308_v51 = vld [vmem:[%s9103_s10 + $0xa8] sm:$0xff] }
 0x43b   : > { %v6133_v40 = vpop.f32.mrf.mxu1 }
 0x43c   : > { %6392 = vst [vmem:[%s10468_s17 + $0x48] sm:$0xff] %v6360_v10  ;;  %v6365_v50 = vmax.f32 %v6333_v5, 0.0  ;;  %v6331_v21 = vadd.f32 %v6299_v58, %v6267_v22  ;;  %v6270_v0 = vadd.f32 %v10453_v3, %v6231_v8  ;;  %v6229_v41 = vmul.f32 %v10448_v56, %v6133_v40  ;;  %v6313_v22 = vld [vmem:[%s9103_s10 + $0xd0] sm:$0xff] }
 0x43d   : > { %v8191_v49 = vpop.f32.mrf.mxu1 }
 0x43e   : > { %6397 = vst [vmem:[%s10468_s17 + $0x70] sm:$0xff] %v6365_v50  ;;  %v6363_v57 = vmax.f32 %v6331_v21, 0.0  ;;  %v6334_v26 = vadd.f32 %v6302_v12, %v6270_v0  ;;  %v6268_v32 = vadd.f32 %v10453_v3, %v6229_v41  ;;  %v6234_v63 = vmul.f32 %v8191_v49, %v10448_v56  ;;  %v6311_v0 = vld [vmem:[%s9103_s10 + $0xc0] sm:$0xff] }
 0x43f   : > { %v6146_v53 = vpop.f32.mrf.mxu1 }
 0x440   : > { %6395 = vst [vmem:[%s10468_s17 + $0x60] sm:$0xff] %v6363_v57  ;;  %v6366_v6 = vmax.f32 %v6334_v26, 0.0  ;;  %v6332_v4 = vadd.f32 %v6300_v11, %v6268_v32  ;;  %v6273_v13 = vadd.f32 %v10453_v3, %v6234_v63  ;;  %v6232_v35 = vmul.f32 %v10448_v56, %v6146_v53  ;;  %v6314_v32 = vld [vmem:[%s9103_s10 + $0xd8] sm:$0xff] }
 0x441   : > { %v8192_v18 = vpop.f32.mrf.mxu1 }
 0x442   : > { %6398 = vst [vmem:[%s10468_s17 + $0x78] sm:$0xff] %v6366_v6  ;;  %v6364_v37 = vmax.f32 %v6332_v4, 0.0  ;;  %v6337_v48 = vadd.f32 %v6305_v15, %v6273_v13  ;;  %v6271_v30 = vadd.f32 %v10453_v3, %v6232_v35  ;;  %v6235_v2 = vmul.f32 %v8192_v18, %v10448_v56  ;;  %v6312_v13 = vld [vmem:[%s9103_s10 + $0xc8] sm:$0xff] }
 0x443   : > { %v6149_v39 = vpop.f32.mrf.mxu1 }
 0x444   : > { %6396 = vst [vmem:[%s10468_s17 + $0x68] sm:$0xff] %v6364_v37  ;;  %v6369_v52 = vmax.f32 %v6337_v48, 0.0  ;;  %v6335_v31 = vadd.f32 %v6303_v1, %v6271_v30  ;;  %v6274_v7 = vadd.f32 %v10453_v3, %v6235_v2  ;;  %v6233_v28 = vmul.f32 %v10448_v56, %v6149_v39  ;;  %v6317_v30 = vld [vmem:[%s9103_s10 + $0xf0] sm:$0xff] }
 0x445   : > { %v8195_v36 = vpop.f32.mrf.mxu1 }
 0x446   : > { %6401 = vst [vmem:[%s10468_s17 + $0x90] sm:$0xff] %v6369_v52  ;;  %v6367_v60 = vmax.f32 %v6335_v31, 0.0  ;;  %v6338_v27 = vadd.f32 %v6306_v61, %v6274_v7  ;;  %v6272_v45 = vadd.f32 %v10453_v3, %v6233_v28  ;;  %v6238_v34 = vmul.f32 %v8195_v36, %v10448_v56  ;;  %v6315_v7 = vld [vmem:[%s9103_s10 + $0xe0] sm:$0xff] }
 0x447   : > { %v6162_v24 = vpop.f32.mrf.mxu1 }
 0x448   : > { %6399 = vst [vmem:[%s10468_s17 + $0x80] sm:$0xff] %v6367_v60  ;;  %v6370_v14 = vmax.f32 %v6338_v27, 0.0  ;;  %v6336_v54 = vadd.f32 %v6304_v16, %v6272_v45  ;;  %v6277_v9 = vadd.f32 %v10453_v3, %v6238_v34  ;;  %v6236_v59 = vmul.f32 %v10448_v56, %v6162_v24  ;;  %v6318_v45 = vld [vmem:[%s9103_s10 + $0xf8] sm:$0xff] }
 0x449   : > { %v8196_v19 = vpop.f32.mrf.mxu1 }
 0x44a   : > { %6402 = vst [vmem:[%s10468_s17 + $0x98] sm:$0xff] %v6370_v14  ;;  %v6368_v46 = vmax.f32 %v6336_v54, 0.0  ;;  %v6341_v20 = vadd.f32 %v6309_v33, %v6277_v9  ;;  %v6275_v44 = vadd.f32 %v10453_v3, %v6236_v59  ;;  %v6239_v25 = vmul.f32 %v8196_v19, %v10448_v56  ;;  %v6316_v9 = vld [vmem:[%s9103_s10 + $0xe8] sm:$0xff]  ;;  %s6416_s10 = scalar_lea.sflag [#allocation8], %s9097_s28 }
 0x44b   : > { %v6165_v43 = vpop.f32.mrf.mxu1 }
 0x44c   : > { %6400 = vst [vmem:[%s10468_s17 + $0x88] sm:$0xff] %v6368_v46  ;;  %v6373_v17 = vmax.f32 %v6341_v20, 0.0  ;;  %v6339_v42 = vadd.f32 %v6307_v47, %v6275_v44  ;;  %v6278_v62 = vadd.f32 %v10453_v3, %v6239_v25  ;;  %v6237_v29 = vmul.f32 %v10448_v56, %v6165_v43 }
 0x44d   : > { %v8199_v55 = vpop.f32.mrf.mxu1 }
 0x44e   : > { %6405 = vst [vmem:[%s10468_s17 + $0xb0] sm:$0xff] %v6373_v17  ;;  %v6371_v58 = vmax.f32 %v6339_v42, 0.0  ;;  %v6342_v23 = vadd.f32 %v6310_v38, %v6278_v62  ;;  %v6276_v10 = vadd.f32 %v10453_v3, %v6237_v29  ;;  %v6242_v5 = vmul.f32 %v8199_v55, %v10448_v56 }
 0x44f   : > { %v6178_v8 = vpop.f32.mrf.mxu1 }
 0x450   : > { %6403 = vst [vmem:[%s10468_s17 + $0xa0] sm:$0xff] %v6371_v58  ;;  %v6374_v12 = vmax.f32 %v6342_v23, 0.0  ;;  %v6340_v40 = vadd.f32 %v6308_v51, %v6276_v10  ;;  %v6281_v50 = vadd.f32 %v10453_v3, %v6242_v5  ;;  %v6240_v21 = vmul.f32 %v10448_v56, %v6178_v8 }
 0x451   : > { %v8200_v41 = vpop.f32.mrf.mxu1 }
 0x452   : > { %6406 = vst [vmem:[%s10468_s17 + $0xb8] sm:$0xff] %v6374_v12  ;;  %v6372_v11 = vmax.f32 %v6340_v40, 0.0  ;;  %v6345_v49 = vadd.f32 %v6313_v22, %v6281_v50  ;;  %v6279_v57 = vadd.f32 %v10453_v3, %v6240_v21  ;;  %v6243_v26 = vmul.f32 %v8200_v41, %v10448_v56 }
 0x453   : > { %v6181_v63 = vpop.f32.mrf.mxu1 }
 0x454   : > { %6404 = vst [vmem:[%s10468_s17 + $0xa8] sm:$0xff] %v6372_v11  ;;  %v6377_v15 = vmax.f32 %v6345_v49, 0.0  ;;  %v6343_v53 = vadd.f32 %v6311_v0, %v6279_v57  ;;  %v6282_v6 = vadd.f32 %v10453_v3, %v6243_v26  ;;  %v6241_v4 = vmul.f32 %v10448_v56, %v6181_v63 }
 0x455   : > { %v8203_v35 = vpop.f32.mrf.mxu1 }
 0x456   : > { %6409 = vst [vmem:[%s10468_s17 + $0xd0] sm:$0xff] %v6377_v15  ;;  %v6375_v1 = vmax.f32 %v6343_v53, 0.0  ;;  %v6346_v18 = vadd.f32 %v6314_v32, %v6282_v6  ;;  %v6280_v37 = vadd.f32 %v10453_v3, %v6241_v4  ;;  %v6246_v48 = vmul.f32 %v8203_v35, %v10448_v56 }
 0x457   : > { %v6194_v2 = vpop.f32.mrf.mxu1 }
 0x458   : > { %6407 = vst [vmem:[%s10468_s17 + $0xc0] sm:$0xff] %v6375_v1  ;;  %v6378_v61 = vmax.f32 %v6346_v18, 0.0  ;;  %v6344_v39 = vadd.f32 %v6312_v13, %v6280_v37  ;;  %v6285_v52 = vadd.f32 %v10453_v3, %v6246_v48  ;;  %v6244_v31 = vmul.f32 %v10448_v56, %v6194_v2 }
 0x459   : > { %v8204_v28 = vpop.f32.mrf.mxu1 }
 0x45a   : > { %6410 = vst [vmem:[%s10468_s17 + $0xd8] sm:$0xff] %v6378_v61  ;;  %v6376_v16 = vmax.f32 %v6344_v39, 0.0  ;;  %v6349_v36 = vadd.f32 %v6317_v30, %v6285_v52  ;;  %v6283_v60 = vadd.f32 %v10453_v3, %v6244_v31  ;;  %v6247_v27 = vmul.f32 %v8204_v28, %v10448_v56 }
 0x45b   : > { %v6197_v34 = vpop.f32.mrf.mxu1 }
 0x45c   : > { %6408 = vst [vmem:[%s10468_s17 + $0xc8] sm:$0xff] %v6376_v16  ;;  %v6381_v33 = vmax.f32 %v6349_v36, 0.0  ;;  %v6347_v24 = vadd.f32 %v6315_v7, %v6283_v60  ;;  %v6286_v14 = vadd.f32 %v10453_v3, %v6247_v27  ;;  %v6245_v54 = vmul.f32 %v10448_v56, %v6197_v34 }
 0x45e   : > { %6413 = vst [vmem:[%s10468_s17 + $0xf0] sm:$0xff] %v6381_v33  ;;  %v6379_v59 = vmax.f32 %v6347_v24, 0.0  ;;  %v6350_v47 = vadd.f32 %v6318_v45, %v6286_v14  ;;  %v6284_v19 = vadd.f32 %v10453_v3, %v6245_v54 }
 0x460   : > { %6411 = vst [vmem:[%s10468_s17 + $0xe0] sm:$0xff] %v6379_v59  ;;  %v6382_v46 = vmax.f32 %v6350_v47, 0.0  ;;  %v6348_v20 = vadd.f32 %v6316_v9, %v6284_v19 }
 0x462   : > { %6414 = vst [vmem:[%s10468_s17 + $0xf8] sm:$0xff] %v6382_v46  ;;  %v6380_v56 = vmax.f32 %v6348_v20, 0.0 }
 0x464   : > { %6412 = vst [vmem:[%s10468_s17 + $0xe8] sm:$0xff] %v6380_v56 }
 0x465   : > { %8741 = shalt.err (!%p8738_p10)
}
 0x466   : > { %s8742_s13 = scalar_lea.hbm %s10590_s21, 4096  ;;  %s8746_s14 = scalar_lea.hbm %s10804_s8, 8192 }
 0x467   : > { %p8743_p2 = scmp.ne.s32.totalorder %s10590_s21, %s8742_s13  ;;  %p8747_p0 = scmp.lt.s32.totalorder %s10590_s21, %s10804_s8 }
 0x468   : > { %p8748_p11 = scmp.lt.s32.totalorder %s8746_s14, %s8742_s13 }
 0x469   : > { %p8744_p7 = pnand %p8743_p2, %p8953_p8 }
 0x46a   : > { %p8749_p9 = por %p8748_p11, %p8747_p0 }
 0x46b   : > { %p8745_p12 = pneg %p8744_p7 }
 0x46d   : > { %p8750_p6 = pnand %p8749_p9, %p8745_p12 }
 0x46f   : > { %8753 = shalt.err (!%p8750_p6)
}
 0x470   : > { %s8835_s24 = smov 128   ;;  %s8836_s29 = smov 8  }
 0x471   : > { %8239 = dma.vmem_to_hbm [thread:$0]  (%p8953_p8), %s10592_s18, 4096, %s10590_s21, %s6416_s10, %s8835_s24, %s8835_s24, %s8836_s29  }
 0x472 PF: > { %s10805_s17 = sld [smem:[#allocation23_spill]]  ;;  %p10808_p3 = scmp.ge.s32.totalorder %s8820_s26, 2 }
 0x473   : > { %s10806_s20 = sld [smem:[#allocation28_spill]] }
 0x478   : > { %s6447_s30 = sand.u32 1, %s10805_s17  }
 0x479   : > { %p10807_p13 = scmp.ne.s32.totalorder %s10806_s20, 0  ;;  %s6448_s12 = scalar_lea.sflag [#allocation8], %s6447_s30 }
 0x47b   : > { %p8262_p5 = pnand %p10808_p3, %p10807_p13 }
 0x47d   : > { %p8263_p4 = pneg %p8262_p5 }
 0x47f   : > { %8795 = dma.done.wait (%p8263_p4), %s6448_s12, 4096  }
 0x480   : > { %8797 = vsyncadd (%p8263_p4), %s6448_s12, 4294963200  ;;  %s33_s26 = sadd.s32 1, %s8820_s26   ;;  %s10809_s16 = sld [smem:[#allocation24_spill]] }
 0x481   : > { %p30_p1 = scmp.ge.s32.totalorder %s33_s26, 4   ;;  %s10810_s23 = sld [smem:[#allocation30_spill]] }
 0x482   : > { %s10811_s24 = sld [smem:[#allocation26_spill]]  ;;  %s10813_s21 = smov %s8804_s22 }
 0x483   : > { %s10812_s25 = sld [smem:[#allocation29_spill]]  ;;  %32 = sbr.rel (!%p30_p1) target bundleno = 18 (0x12), region = 161 }
 0x486   : > { %s10814_s22 = smov %s10809_s16 }
 0x488   :  { %6453 = vsyncpa [#allocation7], 1 }
 0x489   :  { %6455 = vsyncpa [#allocation7 + $0x1], 1 }
 0x48a   :  { %6456 = vsyncpa [#allocation10], 1 }
 0x48b   :  { %6458 = vsyncpa [#allocation10 + $0x1], 1 }
 0x48c   :  { %6459 = vsyncpa [#allocation13], 1 }
 0x48d   :  { %6460 = vsyncpa [#allocation16], 1 }
 0x48e   :  { %6461 = vsyncpa [#allocation8], 1 }
 0x48f   :  { %6463 = vsyncpa [#allocation8 + $0x1], 1 }

</bundles_post_ra>
